<compile_context>
chip_gen: v7x
topology: tpu7x:2x2x1
jax: 0.10.0
libtpu: 0.0.40
codegen_flags: <defaults>
</compile_context>

<pallas_src>
import jax
import jax.numpy as jnp
import numpy as np
from jax.experimental import pallas as pl
from jax.experimental.pallas import tpu as pltpu

EPS = 1e-5
_VMEM_LIMIT = 32 * 1024 * 1024   # explicit scoped-VMEM request (>= default on all generations)


# ------------------------------ small helpers --------------------------------

def _round_up(n, m):
    return ((n + m - 1) // m) * m


def _pick_tile_m(m):
    # Largest row-tile that divides M, preferring >=2 grid steps so the BlockSpec
    # pipeline actually double-buffers.
    for t in (512, 256, 128, 64, 32, 16, 8):
        if m % t == 0 and m // t >= 2:
            return t
    # TODO(synk): mask partial tiles instead of falling back to a single whole-M tile.
    return m


def _fold_bn(s_partial, ss_partial, gamma_p, beta_p, count):
    """Reduce per-tile partial sums/sumsq (tiny arrays) and fold BN into per-channel scale/bias."""
    s = jnp.sum(s_partial[:, 0, :], axis=0)
    ss = jnp.sum(ss_partial[:, 0, :], axis=0)
    mean = s / count
    # biased (training-mode) variance; clamp guards tiny negative values from cancellation.
    var = jnp.maximum(ss / count - mean * mean, 0.0)
    scale = gamma_p * jax.lax.rsqrt(var + EPS)
    bias = beta_p - mean * scale
    return (scale.reshape(1, -1).astype(jnp.float32),
            bias.reshape(1, -1).astype(jnp.float32))


# ------------------------------ Pallas kernels --------------------------------

def _conv1x1_stats_kernel(x_ref, w_ref, y_ref, s_ref, ss_ref):
    # x: (TM, Cin_p) bf16, w: (Cin_p, Cout_p) bf16 -> y f32 accumulate on the MXU.
    y = jnp.dot(x_ref[...], w_ref[...], preferred_element_type=jnp.float32)
    y_ref[...] = y.astype(y_ref.dtype)
    # per-tile BN partial statistics (f32)
    s_ref[...] = jnp.broadcast_to(jnp.sum(y, axis=0, keepdims=True), s_ref.shape)
    ss_ref[...] = jnp.broadcast_to(jnp.sum(y * y, axis=0, keepdims=True), ss_ref.shape)


def _bn_relu_conv1x1_stats_kernel(y_in_ref, scale_ref, bias_ref, w_ref, y_ref, s_ref, ss_ref):
    # prologue: previous layer's folded BN (scale/bias) + ReLU, in f32
    h = jnp.maximum(y_in_ref[...].astype(jnp.float32) * scale_ref[...] + bias_ref[...], 0.0)
    y = jnp.dot(h.astype(jnp.bfloat16), w_ref[...], preferred_element_type=jnp.float32)
    y_ref[...] = y.astype(y_ref.dtype)
    s_ref[...] = jnp.broadcast_to(jnp.sum(y, axis=0, keepdims=True), s_ref.shape)
    ss_ref[...] = jnp.broadcast_to(jnp.sum(y * y, axis=0, keepdims=True), ss_ref.shape)


def _bn_relu_conv3x3_stats_kernel(y1_ref, scale_ref, bias_ref, w_ref,
                                  y2_ref, s_ref, ss_ref, hp_ref, xcol_ref):
    # y1: (1, H, W, C) un-normalized conv1 output; w: (9*C, C) packed per-tap weights.
    _, H, W, C = y1_ref.shape
    # BN1 (folded scale/bias) + ReLU prologue, f32 epilogue math.
    h = jnp.maximum(y1_ref[0].astype(jnp.float32) * scale_ref[...] + bias_ref[...], 0.0)
    # Zero-padded halo lives only in VMEM (no 9x im2col slabs ever touch HBM).
    hp_ref[...] = jnp.zeros(hp_ref.shape, hp_ref.dtype)
    hp_ref[1:H + 1, 1:W + 1, :] = h.astype(hp_ref.dtype)
    # Build the (H*W, 9*C) im2col block in VMEM and run ONE deep-K MXU matmul.
    for k in range(9):
        dy, dx = divmod(k, 3)
        xcol_ref[:, k * C:(k + 1) * C] = hp_ref[dy:dy + H, dx:dx + W, :].reshape(H * W, C)
    y = jnp.dot(xcol_ref[...], w_ref[...], preferred_element_type=jnp.float32)
    y2_ref[...] = y.reshape(1, H, W, C).astype(y2_ref.dtype)
    s_ref[...] = jnp.broadcast_to(jnp.sum(y, axis=0, keepdims=True), s_ref.shape)
    ss_ref[...] = jnp.broadcast_to(jnp.sum(y * y, axis=0, keepdims=True), ss_ref.shape)


def _bn_relu_residual_kernel(y_ref, scale_ref, bias_ref, res_ref, o_ref):
    # out = relu(bn3(y3)) + identity(x)   (ordering matches the PyTorch module)
    z = jnp.maximum(y_ref[...].astype(jnp.float32) * scale_ref[...] + bias_ref[...], 0.0)
    o_ref[...] = (z + res_ref[...]).astype(o_ref.dtype)


# ------------------------------ wrapper (glue) --------------------------------

def res_block_bottleneck(x_nchw, params):
    """Forward of ResBlockBottleneck (downsample=False, stride=1 -> Identity shortcut),
    training-mode BatchNorm (batch statistics), matching the PyTorch module."""
    # TODO(synk): downsample=True / stride=2 shortcut branch not implemented (module defaults).
    w1, g1, b1, w2, g2, b2, w3, g3, b3 = params
    N, Cin, H, W = x_nchw.shape
    Cmid = w1.shape[0]
    Cout = w3.shape[0]
    assert Cin == Cout, "identity shortcut requires n_chans_in == n_chans_out"
    M = N * H * W

    CPi = _round_up(Cin, 128)
    CPm = _round_up(Cmid, 128)
    CPo = _round_up(Cout, 128)
    TM = _pick_tile_m(M)
    gm = M // TM
    f32, bf16 = jnp.float32, jnp.bfloat16

    # NCHW -> (M, C) channels-last flat, channel-padded to 128 lanes (lane-dense stores).
    x_flat = jnp.transpose(x_nchw, (0, 2, 3, 1)).reshape(M, Cin)
    x_p = jnp.pad(x_flat, ((0, 0), (0, CPi - Cin))).astype(f32)        # residual stays f32

    # Conv weights as lane-padded bf16 matmul operands.
    w1m = jnp.pad(w1[:, :, 0, 0].T, ((0, CPi - Cin), (0, CPm - Cmid))).astype(bf16)
    w3m = jnp.pad(w3[:, :, 0, 0].T, ((0, CPm - Cmid), (0, CPo - Cout))).astype(bf16)
    # 3x3 weights packed (tap-major) into one deep-K matrix: (9*CPm, CPm)
    w2p = jnp.concatenate(
        [jnp.pad(w2[:, :, dy, dx].T, ((0, CPm - Cmid), (0, CPm - Cmid)))
         for dy in range(3) for dx in range(3)], axis=0).astype(bf16)

    g1p, b1p = jnp.pad(g1, (0, CPm - Cmid)), jnp.pad(b1, (0, CPm - Cmid))
    g2p, b2p = jnp.pad(g2, (0, CPm - Cmid)), jnp.pad(b2, (0, CPm - Cmid))
    g3p, b3p = jnp.pad(g3, (0, CPo - Cout)), jnp.pad(b3, (0, CPo - Cout))

    cparams = pltpu.CompilerParams(dimension_semantics=("parallel",),
                                   vmem_limit_bytes=_VMEM_LIMIT)

    # ---- conv1 (1x1) + BN1 partial stats, gridded over M ------------------------------
    y1, s1, ss1 = pl.pallas_call(
        _conv1x1_stats_kernel,
        grid=(gm,),
        in_specs=[pl.BlockSpec((TM, CPi), lambda i: (i, 0)),
                  pl.BlockSpec((CPi, CPm), lambda i: (0, 0))],
        out_specs=(pl.BlockSpec((TM, CPm), lambda i: (i, 0)),
                   pl.BlockSpec((1, 8, CPm), lambda i: (i, 0, 0)),
                   pl.BlockSpec((1, 8, CPm), lambda i: (i, 0, 0))),
        out_shape=(jax.ShapeDtypeStruct((M, CPm), bf16),
                   jax.ShapeDtypeStruct((gm, 8, CPm), f32),
                   jax.ShapeDtypeStruct((gm, 8, CPm), f32)),
        compiler_params=cparams,
    )(x_p.astype(bf16), w1m)
    scale1, bias1 = _fold_bn(s1, ss1, g1p, b1p, M)

    # ---- BN1+ReLU -> conv2 (3x3, pad=1) + BN2 partial stats, gridded over batch --------
    # TODO(synk): for very large H*W (v7x 64 MiB VMEM) also tile rows with a halo DMA
    #             instead of one full image per grid step.
    y1_nhwc = y1.reshape(N, H, W, CPm)
    y2, s2, ss2 = pl.pallas_call(
        _bn_relu_conv3x3_stats_kernel,
        grid=(N,),
        in_specs=[pl.BlockSpec((1, H, W, CPm), lambda n: (n, 0, 0, 0)),
                  pl.BlockSpec((1, CPm), lambda n: (0, 0)),
                  pl.BlockSpec((1, CPm), lambda n: (0, 0)),
                  pl.BlockSpec((9 * CPm, CPm), lambda n: (0, 0))],
        out_specs=(pl.BlockSpec((1, H, W, CPm), lambda n: (n, 0, 0, 0)),
                   pl.BlockSpec((1, 8, CPm), lambda n: (n, 0, 0)),
                   pl.BlockSpec((1, 8, CPm), lambda n: (n, 0, 0))),
        out_shape=(jax.ShapeDtypeStruct((N, H, W, CPm), bf16),
                   jax.ShapeDtypeStruct((N, 8, CPm), f32),
                   jax.ShapeDtypeStruct((N, 8, CPm), f32)),
        scratch_shapes=[pltpu.VMEM((H + 2, W + 2, CPm), bf16),      # halo tile
                        pltpu.VMEM((H * W, 9 * CPm), bf16)],        # im2col block
        compiler_params=cparams,
    )(y1_nhwc, scale1, bias1, w2p)
    scale2, bias2 = _fold_bn(s2, ss2, g2p, b2p, M)

    # ---- BN2+ReLU -> conv3 (1x1) + BN3 partial stats, gridded over M -------------------
    y3, s3, ss3 = pl.pallas_call(
        _bn_relu_conv1x1_stats_kernel,
        grid=(gm,),
        in_specs=[pl.BlockSpec((TM, CPm), lambda i: (i, 0)),
                  pl.BlockSpec((1, CPm), lambda i: (0, 0)),
                  pl.BlockSpec((1, CPm), lambda i: (0, 0)),
                  pl.BlockSpec((CPm, CPo), lambda i: (0, 0))],
        out_specs=(pl.BlockSpec((TM, CPo), lambda i: (i, 0)),
                   pl.BlockSpec((1, 8, CPo), lambda i: (i, 0, 0)),
                   pl.BlockSpec((1, 8, CPo), lambda i: (i, 0, 0))),
        out_shape=(jax.ShapeDtypeStruct((M, CPo), bf16),
                   jax.ShapeDtypeStruct((gm, 8, CPo), f32),
                   jax.ShapeDtypeStruct((gm, 8, CPo), f32)),
        compiler_params=cparams,
    )(y2.reshape(M, CPm), scale2, bias2, w3m)
    scale3, bias3 = _fold_bn(s3, ss3, g3p, b3p, M)

    # ---- BN3+ReLU + identity residual add, gridded over M ------------------------------
    out = pl.pallas_call(
        _bn_relu_residual_kernel,
        grid=(gm,),
        in_specs=[pl.BlockSpec((TM, CPo), lambda i: (i, 0)),
                  pl.BlockSpec((1, CPo), lambda i: (0, 0)),
                  pl.BlockSpec((1, CPo), lambda i: (0, 0)),
                  pl.BlockSpec((TM, CPo), lambda i: (i, 0))],
        out_specs=pl.BlockSpec((TM, CPo), lambda i: (i, 0)),
        out_shape=jax.ShapeDtypeStruct((M, CPo), f32),
        compiler_params=cparams,
    )(y3, scale3, bias3, x_p)

    # back to NCHW, dropping channel padding
    return jnp.transpose(out[:, :Cout].reshape(N, H, W, Cout), (0, 3, 1, 2))


# --------------------------- params / reference -------------------------------

def init_params(key, cin, cmid, cout):
    k1, k2, k3 = jax.random.split(key, 3)

    def kaiming(k, shape):  # OIHW, kaiming_normal_ fan_in, gain=sqrt(2) (relu)
        fan_in = shape[1] * shape[2] * shape[3]
        std = float(np.sqrt(2.0 / fan_in))
        return jax.random.normal(k, shape, jnp.float32) * std

    w1 = kaiming(k1, (cmid, cin, 1, 1))
    w2 = kaiming(k2, (cmid, cmid, 3, 3))
    w3 = kaiming(k3, (cout, cmid, 1, 1))
    g1 = jnp.full((cmid,), 0.5, jnp.float32); b1 = jnp.zeros((cmid,), jnp.float32)
    g2 = jnp.full((cmid,), 0.5, jnp.float32); b2 = jnp.zeros((cmid,), jnp.float32)
    g3 = jnp.full((cout,), 0.5, jnp.float32); b3 = jnp.zeros((cout,), jnp.float32)
    return (w1, g1, b1, w2, g2, b2, w3, g3, b3)


def reference(x, params):
    """Pure-JAX f32 replica of the PyTorch forward (training-mode BN) for verification."""
    w1, g1, b1, w2, g2, b2, w3, g3, b3 = params

    def conv(h, w, pad=0):
        return jax.lax.conv_general_dilated(
            h, w, (1, 1), [(pad, pad), (pad, pad)],
            dimension_numbers=('NCHW', 'OIHW', 'NCHW'),
            precision=jax.lax.Precision.HIGHEST)

    def bn_relu(y, g, b):
        mean = y.mean(axis=(0, 2, 3), keepdims=True)
        var = ((y - mean) ** 2).mean(axis=(0, 2, 3), keepdims=True)
        z = (y - mean) / jnp.sqrt(var + EPS) * g.reshape(1, -1, 1, 1) + b.reshape(1, -1, 1, 1)
        return jnp.maximum(z, 0.0)

    out = bn_relu(conv(x, w1), g1, b1)
    out = bn_relu(conv(out, w2, pad=1), g2, b2)
    out = bn_relu(conv(out, w3), g3, b3)
    return out + x  # downsample = Identity


# ----------------------------------- main --------------------------------------

if __name__ == "__main__":
    key = jax.random.PRNGKey(0)
    kx, kp = jax.random.split(key)

    N, C, H, W = 2, 4, 16, 16           # n_chans_in == n_chans_out (Identity shortcut)
    x = jax.random.normal(kx, (N, C, H, W), jnp.float32)
    params = init_params(kp, cin=C, cmid=C, cout=C)

    fwd = jax.jit(res_block_bottleneck)
    out = jax.block_until_ready(fwd(x, params))

    ref = reference(x, params)
    # Kernel uses bf16 matmul operands / bf16 activation storage (f32 accumulate + f32 BN math),
    # compared against a full-f32 HIGHEST-precision reference -> loose tolerance.
    np.testing.assert_allclose(np.asarray(out), np.asarray(ref), rtol=3e-2, atol=3e-2)

    print("KERNEL_OK")
</pallas_src>

<mosaic_0001>
module attributes {stable_mosaic.version = 11 : i64} {
  func.func @_conv1x1_stats_kernel(%arg0: i32, %arg1: memref<256x128xbf16, #tpu.memory_space<vmem>>, %arg2: memref<128x128xbf16, #tpu.memory_space<vmem>>, %arg3: memref<256x128xbf16, #tpu.memory_space<vmem>>, %arg4: memref<1x8x128xf32, #tpu.memory_space<vmem>>, %arg5: memref<1x8x128xf32, #tpu.memory_space<vmem>>) attributes {dimension_semantics = [#tpu.dimension_semantics<parallel>], iteration_bounds = array<i64: 2>, scalar_prefetch = 0 : i64, scratch_operands = 0 : i64, tpu.core_type = #tpu.core_type<tc>, window_params = [{transform_indices = @transform_0, window_bounds = array<i64: 256, 128>}, {pipeline_mode = #tpu.pipeline_mode<synchronous>, transform_indices = @transform_1, window_bounds = array<i64: 128, 128>}, {transform_indices = @transform_2, window_bounds = array<i64: 256, 128>}, {transform_indices = @transform_3, window_bounds = array<i64: 1, 8, 128>}, {transform_indices = @transform_4, window_bounds = array<i64: 1, 8, 128>}]} {
    %c0 = arith.constant 0 : index
    %c0_0 = arith.constant 0 : index
    %0 = vector.load %arg1[%c0, %c0_0] : memref<256x128xbf16, #tpu.memory_space<vmem>>, vector<256x128xbf16>
    %c0_1 = arith.constant 0 : index
    %c0_2 = arith.constant 0 : index
    %1 = vector.load %arg2[%c0_1, %c0_2] : memref<128x128xbf16, #tpu.memory_space<vmem>>, vector<128x128xbf16>
    %cst = arith.constant dense<0.000000e+00> : vector<256x128xf32>
    %2 = tpu.matmul %0, %1, %cst {dimension_numbers = #tpu.dot_dimension_numbers<[1], [0], [0], [1], [0, 0, 1, 1], [], []>} : vector<256x128xbf16>, vector<128x128xbf16>, vector<256x128xf32> -> vector<256x128xf32>
    %3 = arith.truncf %2 : vector<256x128xf32> to vector<256x128xbf16>
    %c0_3 = arith.constant 0 : index
    %c0_4 = arith.constant 0 : index
    %4 = vector.load %arg3[%c0_3, %c0_4] : memref<256x128xbf16, #tpu.memory_space<vmem>>, vector<256x128xbf16>
    tpu.vector_store %arg3[%c0_3, %c0_4], %3 {strides = array<i32>} : memref<256x128xbf16, #tpu.memory_space<vmem>>, vector<256x128xbf16>,
    %cst_5 = arith.constant dense<0.000000e+00> : vector<128xf32>
    %5 = vector.multi_reduction <add>, %2, %cst_5 [0] : vector<256x128xf32> to vector<128xf32>
    %6 = vector.shape_cast %5 : vector<128xf32> to vector<1x128xf32>
    %7 = vector.shape_cast %6 : vector<1x128xf32> to vector<1x1x128xf32>
    %8 = vector.broadcast %7 : vector<1x1x128xf32> to vector<1x8x128xf32>
    %c0_6 = arith.constant 0 : index
    %c0_7 = arith.constant 0 : index
    %c0_8 = arith.constant 0 : index
    %9 = vector.load %arg4[%c0_6, %c0_7, %c0_8] : memref<1x8x128xf32, #tpu.memory_space<vmem>>, vector<1x8x128xf32>
    tpu.vector_store %arg4[%c0_6, %c0_7, %c0_8], %8 {strides = array<i32>} : memref<1x8x128xf32, #tpu.memory_space<vmem>>, vector<1x8x128xf32>,
    %10 = arith.mulf %2, %2 : vector<256x128xf32>
    %cst_9 = arith.constant dense<0.000000e+00> : vector<128xf32>
    %11 = vector.multi_reduction <add>, %10, %cst_9 [0] : vector<256x128xf32> to vector<128xf32>
    %12 = vector.shape_cast %11 : vector<128xf32> to vector<1x128xf32>
    %13 = vector.shape_cast %12 : vector<1x128xf32> to vector<1x1x128xf32>
    %14 = vector.broadcast %13 : vector<1x1x128xf32> to vector<1x8x128xf32>
    %c0_10 = arith.constant 0 : index
    %c0_11 = arith.constant 0 : index
    %c0_12 = arith.constant 0 : index
    %15 = vector.load %arg5[%c0_10, %c0_11, %c0_12] : memref<1x8x128xf32, #tpu.memory_space<vmem>>, vector<1x8x128xf32>
    tpu.vector_store %arg5[%c0_10, %c0_11, %c0_12], %14 {strides = array<i32>} : memref<1x8x128xf32, #tpu.memory_space<vmem>>, vector<1x8x128xf32>,
    return
  }
  func.func @transform_0(%arg0: i32) -> (i32, i32) {
    %c0_i32 = arith.constant 0 : i32
    %c0_i32_0 = arith.constant 0 : i32
    return %arg0, %c0_i32 : i32, i32
  }
  func.func @transform_1(%arg0: i32) -> (i32, i32) {
    %c0_i32 = arith.constant 0 : i32
    %c0_i32_0 = arith.constant 0 : i32
    %c0_i32_1 = arith.constant 0 : i32
    return %c0_i32, %c0_i32_0 : i32, i32
  }
  func.func @transform_2(%arg0: i32) -> (i32, i32) {
    %c0_i32 = arith.constant 0 : i32
    %c0_i32_0 = arith.constant 0 : i32
    return %arg0, %c0_i32 : i32, i32
  }
  func.func @transform_3(%arg0: i32) -> (i32, i32, i32) {
    %c0_i32 = arith.constant 0 : i32
    %c0_i32_0 = arith.constant 0 : i32
    %c0_i32_1 = arith.constant 0 : i32
    return %arg0, %c0_i32, %c0_i32_0 : i32, i32, i32
  }
  func.func @transform_4(%arg0: i32) -> (i32, i32, i32) {
    %c0_i32 = arith.constant 0 : i32
    %c0_i32_0 = arith.constant 0 : i32
    %c0_i32_1 = arith.constant 0 : i32
    return %arg0, %c0_i32, %c0_i32_0 : i32, i32, i32
  }
}

module attributes {stable_mosaic.version = 11 : i64} {
  func.func @_bn_relu_conv3x3_stats_kernel(%arg0: i32, %arg1: memref<1x16x16x128xbf16, #tpu.memory_space<vmem>>, %arg2: memref<1x128xf32, #tpu.memory_space<vmem>>, %arg3: memref<1x128xf32, #tpu.memory_space<vmem>>, %arg4: memref<1152x128xbf16, #tpu.memory_space<vmem>>, %arg5: memref<1x16x16x128xbf16, #tpu.memory_space<vmem>>, %arg6: memref<1x8x128xf32, #tpu.memory_space<vmem>>, %arg7: memref<1x8x128xf32, #tpu.memory_space<vmem>>, %arg8: memref<18x18x128xbf16, #tpu.memory_space<vmem>>, %arg9: memref<256x1152xbf16, #tpu.memory_space<vmem>>) attributes {dimension_semantics = [#tpu.dimension_semantics<parallel>], iteration_bounds = array<i64: 2>, scalar_prefetch = 0 : i64, scratch_operands = 2 : i64, tpu.core_type = #tpu.core_type<tc>, window_params = [{transform_indices = @transform_0, window_bounds = array<i64: 1, 16, 16, 128>}, {pipeline_mode = #tpu.pipeline_mode<synchronous>, transform_indices = @transform_1, window_bounds = array<i64: 1, 128>}, {pipeline_mode = #tpu.pipeline_mode<synchronous>, transform_indices = @transform_2, window_bounds = array<i64: 1, 128>}, {pipeline_mode = #tpu.pipeline_mode<synchronous>, transform_indices = @transform_3, window_bounds = array<i64: 1152, 128>}, {transform_indices = @transform_4, window_bounds = array<i64: 1, 16, 16, 128>}, {transform_indices = @transform_5, window_bounds = array<i64: 1, 8, 128>}, {transform_indices = @transform_6, window_bounds = array<i64: 1, 8, 128>}]} {
    %c0 = arith.constant 0 : index
    %c0_0 = arith.constant 0 : index
    %c0_1 = arith.constant 0 : index
    %c0_2 = arith.constant 0 : index
    %0 = vector.load %arg1[%c0, %c0_0, %c0_1, %c0_2] : memref<1x16x16x128xbf16, #tpu.memory_space<vmem>>, vector<1x16x16x128xbf16>
    %1 = vector.shape_cast %0 : vector<1x16x16x128xbf16> to vector<16x16x128xbf16>
    %2 = arith.extf %1 : vector<16x16x128xbf16> to vector<16x16x128xf32>
    %c0_3 = arith.constant 0 : index
    %c0_4 = arith.constant 0 : index
    %3 = vector.load %arg2[%c0_3, %c0_4] : memref<1x128xf32, #tpu.memory_space<vmem>>, vector<1x128xf32>
    %4 = vector.shape_cast %3 : vector<1x128xf32> to vector<1x1x128xf32>
    %5 = vector.broadcast %4 : vector<1x1x128xf32> to vector<16x16x128xf32>
    %6 = arith.mulf %2, %5 : vector<16x16x128xf32>
    %c0_5 = arith.constant 0 : index
    %c0_6 = arith.constant 0 : index
    %7 = vector.load %arg3[%c0_5, %c0_6] : memref<1x128xf32, #tpu.memory_space<vmem>>, vector<1x128xf32>
    %8 = vector.shape_cast %7 : vector<1x128xf32> to vector<1x1x128xf32>
    %9 = vector.broadcast %8 : vector<1x1x128xf32> to vector<16x16x128xf32>
    %10 = arith.addf %6, %9 : vector<16x16x128xf32>
    %cst = arith.constant 0.000000e+00 : f32
    %11 = vector.broadcast %cst : f32 to vector<16x16x128xf32>
    %12 = arith.maximumf %10, %11 : vector<16x16x128xf32>
    %cst_7 = arith.constant 0.000000e+00 : bf16
    %13 = vector.broadcast %cst_7 : bf16 to vector<18x18x128xbf16>
    %c0_8 = arith.constant 0 : index
    %c0_9 = arith.constant 0 : index
    %c0_10 = arith.constant 0 : index
    %14 = vector.load %arg8[%c0_8, %c0_9, %c0_10] : memref<18x18x128xbf16, #tpu.memory_space<vmem>>, vector<18x18x128xbf16>
    tpu.vector_store %arg8[%c0_8, %c0_9, %c0_10], %13 {strides = array<i32>} : memref<18x18x128xbf16, #tpu.memory_space<vmem>>, vector<18x18x128xbf16>,
    %15 = arith.truncf %12 : vector<16x16x128xf32> to vector<16x16x128xbf16>
    %c1 = arith.constant 1 : index
    %c1_11 = arith.constant 1 : index
    %c0_12 = arith.constant 0 : index
    %16 = vector.load %arg8[%c1, %c1_11, %c0_12] : memref<18x18x128xbf16, #tpu.memory_space<vmem>>, vector<16x16x128xbf16>
    tpu.vector_store %arg8[%c1, %c1_11, %c0_12], %15 {strides = array<i32>} : memref<18x18x128xbf16, #tpu.memory_space<vmem>>, vector<16x16x128xbf16>,
    %c0_13 = arith.constant 0 : index
    %c0_14 = arith.constant 0 : index
    %c0_15 = arith.constant 0 : index
    %17 = vector.load %arg8[%c0_13, %c0_14, %c0_15] : memref<18x18x128xbf16, #tpu.memory_space<vmem>>, vector<16x16x128xbf16>
    %18 = vector.shape_cast %17 : vector<16x16x128xbf16> to vector<256x128xbf16>
    %c0_16 = arith.constant 0 : index
    %c0_17 = arith.constant 0 : index
    %19 = vector.load %arg9[%c0_16, %c0_17] : memref<256x1152xbf16, #tpu.memory_space<vmem>>, vector<256x128xbf16>
    tpu.vector_store %arg9[%c0_16, %c0_17], %18 {strides = array<i32>} : memref<256x1152xbf16, #tpu.memory_space<vmem>>, vector<256x128xbf16>,
    %c0_18 = arith.constant 0 : index
    %c1_19 = arith.constant 1 : index
    %c0_20 = arith.constant 0 : index
    %20 = vector.load %arg8[%c0_18, %c1_19, %c0_20] : memref<18x18x128xbf16, #tpu.memory_space<vmem>>, vector<16x16x128xbf16>
    %21 = vector.shape_cast %20 : vector<16x16x128xbf16> to vector<256x128xbf16>
    %c0_21 = arith.constant 0 : index
    %c128 = arith.constant 128 : index
    %22 = vector.load %arg9[%c0_21, %c128] : memref<256x1152xbf16, #tpu.memory_space<vmem>>, vector<256x128xbf16>
    tpu.vector_store %arg9[%c0_21, %c128], %21 {strides = array<i32>} : memref<256x1152xbf16, #tpu.memory_space<vmem>>, vector<256x128xbf16>,
    %c0_22 = arith.constant 0 : index
    %c2 = arith.constant 2 : index
    %c0_23 = arith.constant 0 : index
    %23 = vector.load %arg8[%c0_22, %c2, %c0_23] : memref<18x18x128xbf16, #tpu.memory_space<vmem>>, vector<16x16x128xbf16>
    %24 = vector.shape_cast %23 : vector<16x16x128xbf16> to vector<256x128xbf16>
    %c0_24 = arith.constant 0 : index
    %c256 = arith.constant 256 : index
    %25 = vector.load %arg9[%c0_24, %c256] : memref<256x1152xbf16, #tpu.memory_space<vmem>>, vector<256x128xbf16>
    tpu.vector_store %arg9[%c0_24, %c256], %24 {strides = array<i32>} : memref<256x1152xbf16, #tpu.memory_space<vmem>>, vector<256x128xbf16>,
    %c1_25 = arith.constant 1 : index
    %c0_26 = arith.constant 0 : index
    %c0_27 = arith.constant 0 : index
    %26 = vector.load %arg8[%c1_25, %c0_26, %c0_27] : memref<18x18x128xbf16, #tpu.memory_space<vmem>>, vector<16x16x128xbf16>
    %27 = vector.shape_cast %26 : vector<16x16x128xbf16> to vector<256x128xbf16>
    %c0_28 = arith.constant 0 : index
    %c384 = arith.constant 384 : index
    %28 = vector.load %arg9[%c0_28, %c384] : memref<256x1152xbf16, #tpu.memory_space<vmem>>, vector<256x128xbf16>
    tpu.vector_store %arg9[%c0_28, %c384], %27 {strides = array<i32>} : memref<256x1152xbf16, #tpu.memory_space<vmem>>, vector<256x128xbf16>,
    %c1_29 = arith.constant 1 : index
    %c1_30 = arith.constant 1 : index
    %c0_31 = arith.constant 0 : index
    %29 = vector.load %arg8[%c1_29, %c1_30, %c0_31] : memref<18x18x128xbf16, #tpu.memory_space<vmem>>, vector<16x16x128xbf16>
    %30 = vector.shape_cast %29 : vector<16x16x128xbf16> to vector<256x128xbf16>
    %c0_32 = arith.constant 0 : index
    %c512 = arith.constant 512 : index
    %31 = vector.load %arg9[%c0_32, %c512] : memref<256x1152xbf16, #tpu.memory_space<vmem>>, vector<256x128xbf16>
    tpu.vector_store %arg9[%c0_32, %c512], %30 {strides = array<i32>} : memref<256x1152xbf16, #tpu.memory_space<vmem>>, vector<256x128xbf16>,
    %c1_33 = arith.constant 1 : index
    %c2_34 = arith.constant 2 : index
    %c0_35 = arith.constant 0 : index
    %32 = vector.load %arg8[%c1_33, %c2_34, %c0_35] : memref<18x18x128xbf16, #tpu.memory_space<vmem>>, vector<16x16x128xbf16>
    %33 = vector.shape_cast %32 : vector<16x16x128xbf16> to vector<256x128xbf16>
    %c0_36 = arith.constant 0 : index
    %c640 = arith.constant 640 : index
    %34 = vector.load %arg9[%c0_36, %c640] : memref<256x1152xbf16, #tpu.memory_space<vmem>>, vector<256x128xbf16>
    tpu.vector_store %arg9[%c0_36, %c640], %33 {strides = array<i32>} : memref<256x1152xbf16, #tpu.memory_space<vmem>>, vector<256x128xbf16>,
    %c2_37 = arith.constant 2 : index
    %c0_38 = arith.constant 0 : index
    %c0_39 = arith.constant 0 : index
    %35 = vector.load %arg8[%c2_37, %c0_38, %c0_39] : memref<18x18x128xbf16, #tpu.memory_space<vmem>>, vector<16x16x128xbf16>
    %36 = vector.shape_cast %35 : vector<16x16x128xbf16> to vector<256x128xbf16>
    %c0_40 = arith.constant 0 : index
    %c768 = arith.constant 768 : index
    %37 = vector.load %arg9[%c0_40, %c768] : memref<256x1152xbf16, #tpu.memory_space<vmem>>, vector<256x128xbf16>
    tpu.vector_store %arg9[%c0_40, %c768], %36 {strides = array<i32>} : memref<256x1152xbf16, #tpu.memory_space<vmem>>, vector<256x128xbf16>,
    %c2_41 = arith.constant 2 : index
    %c1_42 = arith.constant 1 : index
    %c0_43 = arith.constant 0 : index
    %38 = vector.load %arg8[%c2_41, %c1_42, %c0_43] : memref<18x18x128xbf16, #tpu.memory_space<vmem>>, vector<16x16x128xbf16>
    %39 = vector.shape_cast %38 : vector<16x16x128xbf16> to vector<256x128xbf16>
    %c0_44 = arith.constant 0 : index
    %c896 = arith.constant 896 : index
    %40 = vector.load %arg9[%c0_44, %c896] : memref<256x1152xbf16, #tpu.memory_space<vmem>>, vector<256x128xbf16>
    tpu.vector_store %arg9[%c0_44, %c896], %39 {strides = array<i32>} : memref<256x1152xbf16, #tpu.memory_space<vmem>>, vector<256x128xbf16>,
    %c2_45 = arith.constant 2 : index
    %c2_46 = arith.constant 2 : index
    %c0_47 = arith.constant 0 : index
    %41 = vector.load %arg8[%c2_45, %c2_46, %c0_47] : memref<18x18x128xbf16, #tpu.memory_space<vmem>>, vector<16x16x128xbf16>
    %42 = vector.shape_cast %41 : vector<16x16x128xbf16> to vector<256x128xbf16>
    %c0_48 = arith.constant 0 : index
    %c1024 = arith.constant 1024 : index
    %43 = vector.load %arg9[%c0_48, %c1024] : memref<256x1152xbf16, #tpu.memory_space<vmem>>, vector<256x128xbf16>
    tpu.vector_store %arg9[%c0_48, %c1024], %42 {strides = array<i32>} : memref<256x1152xbf16, #tpu.memory_space<vmem>>, vector<256x128xbf16>,
    %c0_49 = arith.constant 0 : index
    %c0_50 = arith.constant 0 : index
    %44 = vector.load %arg9[%c0_49, %c0_50] : memref<256x1152xbf16, #tpu.memory_space<vmem>>, vector<256x1152xbf16>
    %c0_51 = arith.constant 0 : index
    %c0_52 = arith.constant 0 : index
    %45 = vector.load %arg4[%c0_51, %c0_52] : memref<1152x128xbf16, #tpu.memory_space<vmem>>, vector<1152x128xbf16>
    %cst_53 = arith.constant dense<0.000000e+00> : vector<256x128xf32>
    %46 = tpu.matmul %44, %45, %cst_53 {dimension_numbers = #tpu.dot_dimension_numbers<[1], [0], [0], [1], [0, 0, 1, 1], [], []>} : vector<256x1152xbf16>, vector<1152x128xbf16>, vector<256x128xf32> -> vector<256x128xf32>
    %47 = vector.shape_cast %46 : vector<256x128xf32> to vector<1x16x16x128xf32>
    %48 = arith.truncf %47 : vector<1x16x16x128xf32> to vector<1x16x16x128xbf16>
    %c0_54 = arith.constant 0 : index
    %c0_55 = arith.constant 0 : index
    %c0_56 = arith.constant 0 : index
    %c0_57 = arith.constant 0 : index
    %49 = vector.load %arg5[%c0_54, %c0_55, %c0_56, %c0_57] : memref<1x16x16x128xbf16, #tpu.memory_space<vmem>>, vector<1x16x16x128xbf16>
    tpu.vector_store %arg5[%c0_54, %c0_55, %c0_56, %c0_57], %48 {strides = array<i32>} : memref<1x16x16x128xbf16, #tpu.memory_space<vmem>>, vector<1x16x16x128xbf16>,
    %cst_58 = arith.constant dense<0.000000e+00> : vector<128xf32>
    %50 = vector.multi_reduction <add>, %46, %cst_58 [0] : vector<256x128xf32> to vector<128xf32>
    %51 = vector.shape_cast %50 : vector<128xf32> to vector<1x128xf32>
    %52 = vector.shape_cast %51 : vector<1x128xf32> to vector<1x1x128xf32>
    %53 = vector.broadcast %52 : vector<1x1x128xf32> to vector<1x8x128xf32>
    %c0_59 = arith.constant 0 : index
    %c0_60 = arith.constant 0 : index
    %c0_61 = arith.constant 0 : index
    %54 = vector.load %arg6[%c0_59, %c0_60, %c0_61] : memref<1x8x128xf32, #tpu.memory_space<vmem>>, vector<1x8x128xf32>
    tpu.vector_store %arg6[%c0_59, %c0_60, %c0_61], %53 {strides = array<i32>} : memref<1x8x128xf32, #tpu.memory_space<vmem>>, vector<1x8x128xf32>,
    %55 = arith.mulf %46, %46 : vector<256x128xf32>
    %cst_62 = arith.constant dense<0.000000e+00> : vector<128xf32>
    %56 = vector.multi_reduction <add>, %55, %cst_62 [0] : vector<256x128xf32> to vector<128xf32>
    %57 = vector.shape_cast %56 : vector<128xf32> to vector<1x128xf32>
    %58 = vector.shape_cast %57 : vector<1x128xf32> to vector<1x1x128xf32>
    %59 = vector.broadcast %58 : vector<1x1x128xf32> to vector<1x8x128xf32>
    %c0_63 = arith.constant 0 : index
    %c0_64 = arith.constant 0 : index
    %c0_65 = arith.constant 0 : index
    %60 = vector.load %arg7[%c0_63, %c0_64, %c0_65] : memref<1x8x128xf32, #tpu.memory_space<vmem>>, vector<1x8x128xf32>
    tpu.vector_store %arg7[%c0_63, %c0_64, %c0_65], %59 {strides = array<i32>} : memref<1x8x128xf32, #tpu.memory_space<vmem>>, vector<1x8x128xf32>,
    return
  }
  func.func @transform_0(%arg0: i32) -> (i32, i32, i32, i32) {
    %c0_i32 = arith.constant 0 : i32
    %c0_i32_0 = arith.constant 0 : i32
    %c0_i32_1 = arith.constant 0 : i32
    %c0_i32_2 = arith.constant 0 : i32
    return %arg0, %c0_i32, %c0_i32_0, %c0_i32_1 : i32, i32, i32, i32
  }
  func.func @transform_1(%arg0: i32) -> (i32, i32) {
    %c0_i32 = arith.constant 0 : i32
    %c0_i32_0 = arith.constant 0 : i32
    %c0_i32_1 = arith.constant 0 : i32
    return %c0_i32, %c0_i32_0 : i32, i32
  }
  func.func @transform_2(%arg0: i32) -> (i32, i32) {
    %c0_i32 = arith.constant 0 : i32
    %c0_i32_0 = arith.constant 0 : i32
    %c0_i32_1 = arith.constant 0 : i32
    return %c0_i32, %c0_i32_0 : i32, i32
  }
  func.func @transform_3(%arg0: i32) -> (i32, i32) {
    %c0_i32 = arith.constant 0 : i32
    %c0_i32_0 = arith.constant 0 : i32
    %c0_i32_1 = arith.constant 0 : i32
    return %c0_i32, %c0_i32_0 : i32, i32
  }
  func.func @transform_4(%arg0: i32) -> (i32, i32, i32, i32) {
    %c0_i32 = arith.constant 0 : i32
    %c0_i32_0 = arith.constant 0 : i32
    %c0_i32_1 = arith.constant 0 : i32
    %c0_i32_2 = arith.constant 0 : i32
    return %arg0, %c0_i32, %c0_i32_0, %c0_i32_1 : i32, i32, i32, i32
  }
  func.func @transform_5(%arg0: i32) -> (i32, i32, i32) {
    %c0_i32 = arith.constant 0 : i32
    %c0_i32_0 = arith.constant 0 : i32
    %c0_i32_1 = arith.constant 0 : i32
    return %arg0, %c0_i32, %c0_i32_0 : i32, i32, i32
  }
  func.func @transform_6(%arg0: i32) -> (i32, i32, i32) {
    %c0_i32 = arith.constant 0 : i32
    %c0_i32_0 = arith.constant 0 : i32
    %c0_i32_1 = arith.constant 0 : i32
    return %arg0, %c0_i32, %c0_i32_0 : i32, i32, i32
  }
}

module attributes {stable_mosaic.version = 11 : i64} {
  func.func @_bn_relu_conv1x1_stats_kernel(%arg0: i32, %arg1: memref<256x128xbf16, #tpu.memory_space<vmem>>, %arg2: memref<1x128xf32, #tpu.memory_space<vmem>>, %arg3: memref<1x128xf32, #tpu.memory_space<vmem>>, %arg4: memref<128x128xbf16, #tpu.memory_space<vmem>>, %arg5: memref<256x128xbf16, #tpu.memory_space<vmem>>, %arg6: memref<1x8x128xf32, #tpu.memory_space<vmem>>, %arg7: memref<1x8x128xf32, #tpu.memory_space<vmem>>) attributes {dimension_semantics = [#tpu.dimension_semantics<parallel>], iteration_bounds = array<i64: 2>, scalar_prefetch = 0 : i64, scratch_operands = 0 : i64, tpu.core_type = #tpu.core_type<tc>, window_params = [{transform_indices = @transform_0, window_bounds = array<i64: 256, 128>}, {pipeline_mode = #tpu.pipeline_mode<synchronous>, transform_indices = @transform_1, window_bounds = array<i64: 1, 128>}, {pipeline_mode = #tpu.pipeline_mode<synchronous>, transform_indices = @transform_2, window_bounds = array<i64: 1, 128>}, {pipeline_mode = #tpu.pipeline_mode<synchronous>, transform_indices = @transform_3, window_bounds = array<i64: 128, 128>}, {transform_indices = @transform_4, window_bounds = array<i64: 256, 128>}, {transform_indices = @transform_5, window_bounds = array<i64: 1, 8, 128>}, {transform_indices = @transform_6, window_bounds = array<i64: 1, 8, 128>}]} {
    %c0 = arith.constant 0 : index
    %c0_0 = arith.constant 0 : index
    %0 = vector.load %arg1[%c0, %c0_0] : memref<256x128xbf16, #tpu.memory_space<vmem>>, vector<256x128xbf16>
    %1 = arith.extf %0 : vector<256x128xbf16> to vector<256x128xf32>
    %c0_1 = arith.constant 0 : index
    %c0_2 = arith.constant 0 : index
    %2 = vector.load %arg2[%c0_1, %c0_2] : memref<1x128xf32, #tpu.memory_space<vmem>>, vector<1x128xf32>
    %3 = vector.broadcast %2 : vector<1x128xf32> to vector<256x128xf32>
    %4 = arith.mulf %1, %3 : vector<256x128xf32>
    %c0_3 = arith.constant 0 : index
    %c0_4 = arith.constant 0 : index
    %5 = vector.load %arg3[%c0_3, %c0_4] : memref<1x128xf32, #tpu.memory_space<vmem>>, vector<1x128xf32>
    %6 = vector.broadcast %5 : vector<1x128xf32> to vector<256x128xf32>
    %7 = arith.addf %4, %6 : vector<256x128xf32>
    %cst = arith.constant 0.000000e+00 : f32
    %8 = vector.broadcast %cst : f32 to vector<256x128xf32>
    %9 = arith.maximumf %7, %8 : vector<256x128xf32>
    %10 = arith.truncf %9 : vector<256x128xf32> to vector<256x128xbf16>
    %c0_5 = arith.constant 0 : index
    %c0_6 = arith.constant 0 : index
    %11 = vector.load %arg4[%c0_5, %c0_6] : memref<128x128xbf16, #tpu.memory_space<vmem>>, vector<128x128xbf16>
    %cst_7 = arith.constant dense<0.000000e+00> : vector<256x128xf32>
    %12 = tpu.matmul %10, %11, %cst_7 {dimension_numbers = #tpu.dot_dimension_numbers<[1], [0], [0], [1], [0, 0, 1, 1], [], []>} : vector<256x128xbf16>, vector<128x128xbf16>, vector<256x128xf32> -> vector<256x128xf32>
    %13 = arith.truncf %12 : vector<256x128xf32> to vector<256x128xbf16>
    %c0_8 = arith.constant 0 : index
    %c0_9 = arith.constant 0 : index
    %14 = vector.load %arg5[%c0_8, %c0_9] : memref<256x128xbf16, #tpu.memory_space<vmem>>, vector<256x128xbf16>
    tpu.vector_store %arg5[%c0_8, %c0_9], %13 {strides = array<i32>} : memref<256x128xbf16, #tpu.memory_space<vmem>>, vector<256x128xbf16>,
    %cst_10 = arith.constant dense<0.000000e+00> : vector<128xf32>
    %15 = vector.multi_reduction <add>, %12, %cst_10 [0] : vector<256x128xf32> to vector<128xf32>
    %16 = vector.shape_cast %15 : vector<128xf32> to vector<1x128xf32>
    %17 = vector.shape_cast %16 : vector<1x128xf32> to vector<1x1x128xf32>
    %18 = vector.broadcast %17 : vector<1x1x128xf32> to vector<1x8x128xf32>
    %c0_11 = arith.constant 0 : index
    %c0_12 = arith.constant 0 : index
    %c0_13 = arith.constant 0 : index
    %19 = vector.load %arg6[%c0_11, %c0_12, %c0_13] : memref<1x8x128xf32, #tpu.memory_space<vmem>>, vector<1x8x128xf32>
    tpu.vector_store %arg6[%c0_11, %c0_12, %c0_13], %18 {strides = array<i32>} : memref<1x8x128xf32, #tpu.memory_space<vmem>>, vector<1x8x128xf32>,
    %20 = arith.mulf %12, %12 : vector<256x128xf32>
    %cst_14 = arith.constant dense<0.000000e+00> : vector<128xf32>
    %21 = vector.multi_reduction <add>, %20, %cst_14 [0] : vector<256x128xf32> to vector<128xf32>
    %22 = vector.shape_cast %21 : vector<128xf32> to vector<1x128xf32>
    %23 = vector.shape_cast %22 : vector<1x128xf32> to vector<1x1x128xf32>
    %24 = vector.broadcast %23 : vector<1x1x128xf32> to vector<1x8x128xf32>
    %c0_15 = arith.constant 0 : index
    %c0_16 = arith.constant 0 : index
    %c0_17 = arith.constant 0 : index
    %25 = vector.load %arg7[%c0_15, %c0_16, %c0_17] : memref<1x8x128xf32, #tpu.memory_space<vmem>>, vector<1x8x128xf32>
    tpu.vector_store %arg7[%c0_15, %c0_16, %c0_17], %24 {strides = array<i32>} : memref<1x8x128xf32, #tpu.memory_space<vmem>>, vector<1x8x128xf32>,
    return
  }
  func.func @transform_0(%arg0: i32) -> (i32, i32) {
    %c0_i32 = arith.constant 0 : i32
    %c0_i32_0 = arith.constant 0 : i32
    return %arg0, %c0_i32 : i32, i32
  }
  func.func @transform_1(%arg0: i32) -> (i32, i32) {
    %c0_i32 = arith.constant 0 : i32
    %c0_i32_0 = arith.constant 0 : i32
    %c0_i32_1 = arith.constant 0 : i32
    return %c0_i32, %c0_i32_0 : i32, i32
  }
  func.func @transform_2(%arg0: i32) -> (i32, i32) {
    %c0_i32 = arith.constant 0 : i32
    %c0_i32_0 = arith.constant 0 : i32
    %c0_i32_1 = arith.constant 0 : i32
    return %c0_i32, %c0_i32_0 : i32, i32
  }
  func.func @transform_3(%arg0: i32) -> (i32, i32) {
    %c0_i32 = arith.constant 0 : i32
    %c0_i32_0 = arith.constant 0 : i32
    %c0_i32_1 = arith.constant 0 : i32
    return %c0_i32, %c0_i32_0 : i32, i32
  }
  func.func @transform_4(%arg0: i32) -> (i32, i32) {
    %c0_i32 = arith.constant 0 : i32
    %c0_i32_0 = arith.constant 0 : i32
    return %arg0, %c0_i32 : i32, i32
  }
  func.func @transform_5(%arg0: i32) -> (i32, i32, i32) {
    %c0_i32 = arith.constant 0 : i32
    %c0_i32_0 = arith.constant 0 : i32
    %c0_i32_1 = arith.constant 0 : i32
    return %arg0, %c0_i32, %c0_i32_0 : i32, i32, i32
  }
  func.func @transform_6(%arg0: i32) -> (i32, i32, i32) {
    %c0_i32 = arith.constant 0 : i32
    %c0_i32_0 = arith.constant 0 : i32
    %c0_i32_1 = arith.constant 0 : i32
    return %arg0, %c0_i32, %c0_i32_0 : i32, i32, i32
  }
}

module attributes {stable_mosaic.version = 11 : i64} {
  func.func @_bn_relu_residual_kernel(%arg0: i32, %arg1: memref<256x128xbf16, #tpu.memory_space<vmem>>, %arg2: memref<1x128xf32, #tpu.memory_space<vmem>>, %arg3: memref<1x128xf32, #tpu.memory_space<vmem>>, %arg4: memref<256x128xf32, #tpu.memory_space<vmem>>, %arg5: memref<256x128xf32, #tpu.memory_space<vmem>>) attributes {dimension_semantics = [#tpu.dimension_semantics<parallel>], iteration_bounds = array<i64: 2>, scalar_prefetch = 0 : i64, scratch_operands = 0 : i64, tpu.core_type = #tpu.core_type<tc>, window_params = [{transform_indices = @transform_0, window_bounds = array<i64: 256, 128>}, {pipeline_mode = #tpu.pipeline_mode<synchronous>, transform_indices = @transform_1, window_bounds = array<i64: 1, 128>}, {pipeline_mode = #tpu.pipeline_mode<synchronous>, transform_indices = @transform_2, window_bounds = array<i64: 1, 128>}, {transform_indices = @transform_3, window_bounds = array<i64: 256, 128>}, {transform_indices = @transform_4, window_bounds = array<i64: 256, 128>}]} {
    %c0 = arith.constant 0 : index
    %c0_0 = arith.constant 0 : index
    %0 = vector.load %arg1[%c0, %c0_0] : memref<256x128xbf16, #tpu.memory_space<vmem>>, vector<256x128xbf16>
    %1 = arith.extf %0 : vector<256x128xbf16> to vector<256x128xf32>
    %c0_1 = arith.constant 0 : index
    %c0_2 = arith.constant 0 : index
    %2 = vector.load %arg2[%c0_1, %c0_2] : memref<1x128xf32, #tpu.memory_space<vmem>>, vector<1x128xf32>
    %3 = vector.broadcast %2 : vector<1x128xf32> to vector<256x128xf32>
    %4 = arith.mulf %1, %3 : vector<256x128xf32>
    %c0_3 = arith.constant 0 : index
    %c0_4 = arith.constant 0 : index
    %5 = vector.load %arg3[%c0_3, %c0_4] : memref<1x128xf32, #tpu.memory_space<vmem>>, vector<1x128xf32>
    %6 = vector.broadcast %5 : vector<1x128xf32> to vector<256x128xf32>
    %7 = arith.addf %4, %6 : vector<256x128xf32>
    %cst = arith.constant 0.000000e+00 : f32
    %8 = vector.broadcast %cst : f32 to vector<256x128xf32>
    %9 = arith.maximumf %7, %8 : vector<256x128xf32>
    %c0_5 = arith.constant 0 : index
    %c0_6 = arith.constant 0 : index
    %10 = vector.load %arg4[%c0_5, %c0_6] : memref<256x128xf32, #tpu.memory_space<vmem>>, vector<256x128xf32>
    %11 = arith.addf %9, %10 : vector<256x128xf32>
    %c0_7 = arith.constant 0 : index
    %c0_8 = arith.constant 0 : index
    %12 = vector.load %arg5[%c0_7, %c0_8] : memref<256x128xf32, #tpu.memory_space<vmem>>, vector<256x128xf32>
    tpu.vector_store %arg5[%c0_7, %c0_8], %11 {strides = array<i32>} : memref<256x128xf32, #tpu.memory_space<vmem>>, vector<256x128xf32>,
    return
  }
  func.func @transform_0(%arg0: i32) -> (i32, i32) {
    %c0_i32 = arith.constant 0 : i32
    %c0_i32_0 = arith.constant 0 : i32
    return %arg0, %c0_i32 : i32, i32
  }
  func.func @transform_1(%arg0: i32) -> (i32, i32) {
    %c0_i32 = arith.constant 0 : i32
    %c0_i32_0 = arith.constant 0 : i32
    %c0_i32_1 = arith.constant 0 : i32
    return %c0_i32, %c0_i32_0 : i32, i32
  }
  func.func @transform_2(%arg0: i32) -> (i32, i32) {
    %c0_i32 = arith.constant 0 : i32
    %c0_i32_0 = arith.constant 0 : i32
    %c0_i32_1 = arith.constant 0 : i32
    return %c0_i32, %c0_i32_0 : i32, i32
  }
  func.func @transform_3(%arg0: i32) -> (i32, i32) {
    %c0_i32 = arith.constant 0 : i32
    %c0_i32_0 = arith.constant 0 : i32
    return %arg0, %c0_i32 : i32, i32
  }
  func.func @transform_4(%arg0: i32) -> (i32, i32) {
    %c0_i32 = arith.constant 0 : i32
    %c0_i32_0 = arith.constant 0 : i32
    return %arg0, %c0_i32 : i32, i32
  }
}

</mosaic_0001>

<bundles_post_ra>
// kernel: res_block_bottleneck.7
= control target key start
LH: loop header
LB: loop body
LE: loop exit
PB: predicated region body
PF: predicated region fallthrough
CT: control target
= control target key end

     0   :  { %s696_s15 = smov 0   ;;  %s884_s0 = inlined_call_operand.vmem [shape: bf16[512,128], index: 0, kind: input, shape index: {}]   ;;  %s885_s1 = inlined_call_operand.vmem [shape: f32[1,128], index: 1, kind: input, shape index: {}]   ;;  %s886_s2 = inlined_call_operand.vmem [shape: f32[1,128], index: 2, kind: input, shape index: {}]   ;;  %s887_s3 = inlined_call_operand.vmem [shape: f32[512,128], index: 3, kind: input, shape index: {}]   ;;  %s888_s4 = inlined_call_operand.vmem [shape: f32[512,128], index: 4, kind: output, shape index: {}]  }
   0x1 LB: > { %s561_s16 = sadd.s32 4294967295, %s669_s15   ;;  %p565_p0 = scmp.ge.s32.totalorder %s669_s15, 1  ;;  %s669_s15 = sphi %s696_s15, %s14_s15  }
   0x2   : > { %p174_p1 = scmp.lt.s32.totalorder %s669_s15, 3 }
   0x4   : > { %p175_p2 = pnand %p565_p0, %p174_p1 }
   0x5   : > { %s566_s17 = sshll.u32 (!%p175_p2), %s561_s16, 5  ;;  %v717_v1 = vld [vmem:[%s885_s1] ss:$0 sm:$0xff] (!%p175_p2) }
   0x6   : > { %178 = sbr.rel (%p175_p2) target bundleno = 60 (0x3c), region = 36  ;;  %p206_p3 = scmp.lt.s32.totalorder (!%p175_p2), %s566_s17, 63  ;;  %v723_v5 = vld [vmem:[%s886_s2] ss:$0 sm:$0xff] (!%p175_p2) }
   0xd   : > { %s890_s17 = smov (!%p206_p3, %s566_s17), 63 }
   0xe   : > { %s567_s18 = sshll.u32 %s890_s17, 2  ;;  %s569_s22 = sshll.u32 %s890_s17, 3 }
   0xf   : > { %s710_s21 = scalar_lea.vmem %s884_s0, %s567_s18  ;;  %s731_s29 = scalar_lea.vmem %s887_s3, %s569_s22 }
  0x10   : > { %v577_v0 = vld [vmem:[%s710_s21] sm:$0xff]   ;;  %v640_v4 = vld [vmem:[%s710_s21 + $0x8] sm:$0xff]   ;;  %v641_v8 = vld [vmem:[%s710_s21 + $0x10] sm:$0xff]   ;;  %s757_s6 = scalar_lea.vmem %s888_s4, %s569_s22 }
  0x11   : > { %v578_v2 = vunpack.c.l.bf16 %v577_v0  ;;  %v579_v3 = vunpack.c.h.bf16 %v577_v0  ;;  %v582_v6 = vunpack.c.l.bf16 %v640_v4  ;;  %v583_v7 = vunpack.c.h.bf16 %v640_v4  ;;  %v642_v13 = vld [vmem:[%s710_s21 + $0x18] sm:$0xff]   ;;  %v397_v22 = vld [vmem:[%s731_s29] sm:$0xff]  ;;  %v398_v23 = vld [vmem:[%s731_s29 + $0x8] sm:$0xff] }
  0x12   : > { %v586_v11 = vunpack.c.l.bf16 %v641_v8  ;;  %v587_v12 = vunpack.c.h.bf16 %v641_v8  ;;  %v590_v16 = vunpack.c.l.bf16 %v642_v13  ;;  %v591_v17 = vunpack.c.h.bf16 %v642_v13  ;;  %v399_v30 = vld [vmem:[%s731_s29 + $0x10] sm:$0xff]  ;;  %v400_v31 = vld [vmem:[%s731_s29 + $0x18] sm:$0xff]  ;;  %v401_v36 = vld [vmem:[%s731_s29 + $0x20] sm:$0xff] }
  0x13   : > { %v294_v9 = vmul.f32 %v578_v2, %v717_v1  ;;  %v295_v10 = vmul.f32 %v579_v3, %v717_v1  ;;  %v296_v14 = vmul.f32 %v582_v6, %v717_v1  ;;  %v297_v15 = vmul.f32 %v583_v7, %v717_v1  ;;  %v402_v37 = vld [vmem:[%s731_s29 + $0x28] sm:$0xff]  ;;  %v643_v40 = vld [vmem:[%s710_s21 + $0x20] sm:$0xff]   ;;  %v403_v45 = vld [vmem:[%s731_s29 + $0x30] sm:$0xff] }
  0x14   : > { %v298_v20 = vmul.f32 %v586_v11, %v717_v1  ;;  %v299_v21 = vmul.f32 %v587_v12, %v717_v1  ;;  %v300_v26 = vmul.f32 %v590_v16, %v717_v1  ;;  %v301_v27 = vmul.f32 %v591_v17, %v717_v1  ;;  %v404_v46 = vld [vmem:[%s731_s29 + $0x38] sm:$0xff]  ;;  %v644_v47 = vld [vmem:[%s710_s21 + $0x28] sm:$0xff]   ;;  %v645_v52 = vld [vmem:[%s710_s21 + $0x30] sm:$0xff]  }
  0x15   : > { %v333_v18 = vadd.f32 %v723_v5, %v294_v9  ;;  %v334_v19 = vadd.f32 %v723_v5, %v295_v10  ;;  %v335_v24 = vadd.f32 %v723_v5, %v296_v14  ;;  %v336_v25 = vadd.f32 %v723_v5, %v297_v15  ;;  %v646_v57 = vld [vmem:[%s710_s21 + $0x38] sm:$0xff]   ;;  %v405_v12 = vld [vmem:[%s731_s29 + $0x40] sm:$0xff]  ;;  %v406_v13 = vld [vmem:[%s731_s29 + $0x48] sm:$0xff] }
  0x16   : > { %v337_v32 = vadd.f32 %v723_v5, %v298_v20  ;;  %v338_v33 = vadd.f32 %v723_v5, %v299_v21  ;;  %v339_v38 = vadd.f32 %v723_v5, %v300_v26  ;;  %v340_v39 = vadd.f32 %v723_v5, %v301_v27  ;;  %v407_v20 = vld [vmem:[%s731_s29 + $0x50] sm:$0xff]  ;;  %v408_v21 = vld [vmem:[%s731_s29 + $0x58] sm:$0xff]  ;;  %v409_v26 = vld [vmem:[%s731_s29 + $0x60] sm:$0xff] }
  0x17   : > { %v365_v28 = vmax.f32 %v333_v18, 0.0  ;;  %v366_v29 = vmax.f32 %v334_v19, 0.0  ;;  %v367_v34 = vmax.f32 %v335_v24, 0.0  ;;  %v368_v35 = vmax.f32 %v336_v25, 0.0  ;;  %v410_v27 = vld [vmem:[%s731_s29 + $0x68] sm:$0xff] }
  0x18   : > { %v369_v43 = vmax.f32 %v337_v32, 0.0  ;;  %v370_v44 = vmax.f32 %v338_v33, 0.0  ;;  %v371_v50 = vmax.f32 %v339_v38, 0.0  ;;  %v372_v51 = vmax.f32 %v340_v39, 0.0 }
  0x19   : > { %v429_v41 = vadd.f32 %v397_v22, %v365_v28  ;;  %v430_v42 = vadd.f32 %v398_v23, %v366_v29  ;;  %v431_v48 = vadd.f32 %v399_v30, %v367_v34  ;;  %v432_v49 = vadd.f32 %v400_v31, %v368_v35  ;;  %v647_v30 = vld [vmem:[%s710_s21 + $0x40] sm:$0xff]   ;;  %v411_v35 = vld [vmem:[%s731_s29 + $0x70] sm:$0xff] }
  0x1a   : > { %v433_v53 = vadd.f32 %v401_v36, %v369_v43  ;;  %v434_v54 = vadd.f32 %v402_v37, %v370_v44  ;;  %v594_v55 = vunpack.c.l.bf16 %v643_v40  ;;  %v595_v56 = vunpack.c.h.bf16 %v643_v40  ;;  %v412_v36 = vld [vmem:[%s731_s29 + $0x78] sm:$0xff]  ;;  %v648_v37 = vld [vmem:[%s710_s21 + $0x48] sm:$0xff]  }
  0x1b   : > { %461 = vst [vmem:[%s757_s6] sm:$0xff] %v429_v41  ;;  %462 = vst [vmem:[%s757_s6 + $0x8] sm:$0xff] %v430_v42  ;;  %v435_v58 = vadd.f32 %v403_v45, %v371_v50  ;;  %v436_v59 = vadd.f32 %v404_v46, %v372_v51  ;;  %v598_v60 = vunpack.c.l.bf16 %v644_v47  ;;  %v599_v61 = vunpack.c.h.bf16 %v644_v47  ;;  %v649_v42 = vld [vmem:[%s710_s21 + $0x50] sm:$0xff]   ;;  %v650_v47 = vld [vmem:[%s710_s21 + $0x58] sm:$0xff]  }
  0x1c   : > { %463 = vst [vmem:[%s757_s6 + $0x10] sm:$0xff] %v431_v48  ;;  %464 = vst [vmem:[%s757_s6 + $0x18] sm:$0xff] %v432_v49  ;;  %v302_v62 = vmul.f32 %v594_v55, %v717_v1  ;;  %v303_v63 = vmul.f32 %v595_v56, %v717_v1  ;;  %v602_v0 = vunpack.c.l.bf16 %v645_v52  ;;  %v603_v2 = vunpack.c.h.bf16 %v645_v52 }
  0x1d   : > { %465 = vst [vmem:[%s757_s6 + $0x20] sm:$0xff] %v433_v53  ;;  %466 = vst [vmem:[%s757_s6 + $0x28] sm:$0xff] %v434_v54  ;;  %v304_v3 = vmul.f32 %v598_v60, %v717_v1  ;;  %v305_v4 = vmul.f32 %v599_v61, %v717_v1  ;;  %v606_v6 = vunpack.c.l.bf16 %v646_v57  ;;  %v607_v7 = vunpack.c.h.bf16 %v646_v57 }
  0x1e   : > { %467 = vst [vmem:[%s757_s6 + $0x30] sm:$0xff] %v435_v58  ;;  %468 = vst [vmem:[%s757_s6 + $0x38] sm:$0xff] %v436_v59  ;;  %v341_v8 = vadd.f32 %v723_v5, %v302_v62  ;;  %v342_v9 = vadd.f32 %v723_v5, %v303_v63  ;;  %v306_v10 = vmul.f32 %v602_v0, %v717_v1  ;;  %v610_v45 = vunpack.c.l.bf16 %v647_v30  ;;  %v413_v0 = vld [vmem:[%s731_s29 + $0x80] sm:$0xff] }
  0x1f   : > { %v307_v11 = vmul.f32 %v603_v2, %v717_v1  ;;  %v343_v14 = vadd.f32 %v723_v5, %v304_v3  ;;  %v344_v15 = vadd.f32 %v723_v5, %v305_v4  ;;  %v308_v16 = vmul.f32 %v606_v6, %v717_v1  ;;  %v414_v2 = vld [vmem:[%s731_s29 + $0x88] sm:$0xff] }
  0x20   : > { %v309_v17 = vmul.f32 %v607_v7, %v717_v1  ;;  %v373_v18 = vmax.f32 %v341_v8, 0.0  ;;  %v374_v19 = vmax.f32 %v342_v9, 0.0  ;;  %v345_v22 = vadd.f32 %v723_v5, %v306_v10  ;;  %v415_v10 = vld [vmem:[%s731_s29 + $0x90] sm:$0xff] }
  0x21   : > { %v346_v23 = vadd.f32 %v723_v5, %v307_v11  ;;  %v375_v24 = vmax.f32 %v343_v14, 0.0  ;;  %v376_v25 = vmax.f32 %v344_v15, 0.0  ;;  %v347_v28 = vadd.f32 %v723_v5, %v308_v16  ;;  %v416_v11 = vld [vmem:[%s731_s29 + $0x98] sm:$0xff]  ;;  %v417_v16 = vld [vmem:[%s731_s29 + $0xa0] sm:$0xff] }
  0x22   : > { %v348_v29 = vadd.f32 %v723_v5, %v309_v17  ;;  %v437_v31 = vadd.f32 %v405_v12, %v373_v18  ;;  %v438_v32 = vadd.f32 %v406_v13, %v374_v19  ;;  %v377_v33 = vmax.f32 %v345_v22, 0.0  ;;  %v418_v17 = vld [vmem:[%s731_s29 + $0xa8] sm:$0xff] }
  0x23   : > { %v378_v34 = vmax.f32 %v346_v23, 0.0  ;;  %v439_v38 = vadd.f32 %v407_v20, %v375_v24  ;;  %v440_v39 = vadd.f32 %v408_v21, %v376_v25  ;;  %v379_v40 = vmax.f32 %v347_v28, 0.0  ;;  %v651_v20 = vld [vmem:[%s710_s21 + $0x60] sm:$0xff]   ;;  %v419_v25 = vld [vmem:[%s731_s29 + $0xb0] sm:$0xff] }
  0x24   : > { %v380_v41 = vmax.f32 %v348_v29, 0.0  ;;  %469 = vst [vmem:[%s757_s6 + $0x40] sm:$0xff] %v437_v31  ;;  %470 = vst [vmem:[%s757_s6 + $0x48] sm:$0xff] %v438_v32  ;;  %v441_v43 = vadd.f32 %v409_v26, %v377_v33  ;;  %v611_v46 = vunpack.c.h.bf16 %v647_v30  ;;  %v614_v50 = vunpack.c.l.bf16 %v648_v37  ;;  %v420_v26 = vld [vmem:[%s731_s29 + $0xb8] sm:$0xff]  ;;  %v653_v32 = vld [vmem:[%s710_s21 + $0x70] sm:$0xff]  }
  0x25   : > { %v442_v44 = vadd.f32 %v410_v27, %v378_v34  ;;  %471 = vst [vmem:[%s757_s6 + $0x50] sm:$0xff] %v439_v38  ;;  %472 = vst [vmem:[%s757_s6 + $0x58] sm:$0xff] %v440_v39  ;;  %v443_v48 = vadd.f32 %v411_v35, %v379_v40  ;;  %v615_v51 = vunpack.c.h.bf16 %v648_v37  ;;  %v310_v52 = vmul.f32 %v610_v45, %v717_v1  ;;  %v652_v27 = vld [vmem:[%s710_s21 + $0x68] sm:$0xff]   ;;  %v654_v37 = vld [vmem:[%s710_s21 + $0x78] sm:$0xff]  }
  0x26   : > { %v444_v49 = vadd.f32 %v412_v36, %v380_v41  ;;  %473 = vst [vmem:[%s757_s6 + $0x60] sm:$0xff] %v441_v43  ;;  %v311_v53 = vmul.f32 %v611_v46, %v717_v1  ;;  %v618_v54 = vunpack.c.l.bf16 %v649_v42  ;;  %v619_v55 = vunpack.c.h.bf16 %v649_v42 }
  0x27   : > { %474 = vst [vmem:[%s757_s6 + $0x68] sm:$0xff] %v442_v44  ;;  %475 = vst [vmem:[%s757_s6 + $0x70] sm:$0xff] %v443_v48  ;;  %v312_v56 = vmul.f32 %v614_v50, %v717_v1  ;;  %v313_v57 = vmul.f32 %v615_v51, %v717_v1  ;;  %v622_v58 = vunpack.c.l.bf16 %v650_v47  ;;  %v623_v59 = vunpack.c.h.bf16 %v650_v47 }
  0x28   : > { %476 = vst [vmem:[%s757_s6 + $0x78] sm:$0xff] %v444_v49  ;;  %v349_v60 = vadd.f32 %v723_v5, %v310_v52  ;;  %v350_v61 = vadd.f32 %v723_v5, %v311_v53  ;;  %v314_v62 = vmul.f32 %v618_v54, %v717_v1  ;;  %v315_v63 = vmul.f32 %v619_v55, %v717_v1  ;;  %v421_v54 = vld [vmem:[%s731_s29 + $0xc0] sm:$0xff]  ;;  %v422_v55 = vld [vmem:[%s731_s29 + $0xc8] sm:$0xff] }
  0x29   : > { %v351_v3 = vadd.f32 %v723_v5, %v312_v56  ;;  %v352_v4 = vadd.f32 %v723_v5, %v313_v57  ;;  %v316_v6 = vmul.f32 %v622_v58, %v717_v1  ;;  %v317_v7 = vmul.f32 %v623_v59, %v717_v1 }
  0x2a   : > { %v381_v8 = vmax.f32 %v349_v60, 0.0  ;;  %v382_v9 = vmax.f32 %v350_v61, 0.0  ;;  %v353_v12 = vadd.f32 %v723_v5, %v314_v62  ;;  %v354_v13 = vadd.f32 %v723_v5, %v315_v63  ;;  %v423_v62 = vld [vmem:[%s731_s29 + $0xd0] sm:$0xff]  ;;  %v424_v63 = vld [vmem:[%s731_s29 + $0xd8] sm:$0xff] }
  0x2b   : > { %v383_v14 = vmax.f32 %v351_v3, 0.0  ;;  %v384_v15 = vmax.f32 %v352_v4, 0.0  ;;  %v355_v18 = vadd.f32 %v723_v5, %v316_v6  ;;  %v356_v19 = vadd.f32 %v723_v5, %v317_v7  ;;  %v425_v6 = vld [vmem:[%s731_s29 + $0xe0] sm:$0xff]  ;;  %v426_v7 = vld [vmem:[%s731_s29 + $0xe8] sm:$0xff] }
  0x2c   : > { %v445_v21 = vadd.f32 %v413_v0, %v381_v8  ;;  %v446_v22 = vadd.f32 %v414_v2, %v382_v9  ;;  %v385_v23 = vmax.f32 %v353_v12, 0.0  ;;  %v386_v24 = vmax.f32 %v354_v13, 0.0  ;;  %v427_v13 = vld [vmem:[%s731_s29 + $0xf0] sm:$0xff] }
  0x2d   : > { %v447_v28 = vadd.f32 %v415_v10, %v383_v14  ;;  %v448_v29 = vadd.f32 %v416_v11, %v384_v15  ;;  %v387_v30 = vmax.f32 %v355_v18, 0.0  ;;  %v388_v31 = vmax.f32 %v356_v19, 0.0  ;;  %v428_v14 = vld [vmem:[%s731_s29 + $0xf8] sm:$0xff] }
  0x2e   : > { %477 = vst [vmem:[%s757_s6 + $0x80] sm:$0xff] %v445_v21  ;;  %478 = vst [vmem:[%s757_s6 + $0x88] sm:$0xff] %v446_v22  ;;  %v449_v33 = vadd.f32 %v417_v16, %v385_v23  ;;  %v450_v34 = vadd.f32 %v418_v17, %v386_v24  ;;  %v626_v35 = vunpack.c.l.bf16 %v651_v20  ;;  %v627_v36 = vunpack.c.h.bf16 %v651_v20 }
  0x2f   : > { %479 = vst [vmem:[%s757_s6 + $0x90] sm:$0xff] %v447_v28  ;;  %480 = vst [vmem:[%s757_s6 + $0x98] sm:$0xff] %v448_v29  ;;  %v451_v38 = vadd.f32 %v419_v25, %v387_v30  ;;  %v452_v39 = vadd.f32 %v420_v26, %v388_v31  ;;  %v630_v40 = vunpack.c.l.bf16 %v652_v27  ;;  %v631_v41 = vunpack.c.h.bf16 %v652_v27 }
  0x30   : > { %481 = vst [vmem:[%s757_s6 + $0xa0] sm:$0xff] %v449_v33  ;;  %482 = vst [vmem:[%s757_s6 + $0xa8] sm:$0xff] %v450_v34  ;;  %v318_v42 = vmul.f32 %v626_v35, %v717_v1  ;;  %v319_v43 = vmul.f32 %v627_v36, %v717_v1  ;;  %v634_v44 = vunpack.c.l.bf16 %v653_v32  ;;  %v635_v45 = vunpack.c.h.bf16 %v653_v32 }
  0x31   : > { %483 = vst [vmem:[%s757_s6 + $0xb0] sm:$0xff] %v451_v38  ;;  %484 = vst [vmem:[%s757_s6 + $0xb8] sm:$0xff] %v452_v39  ;;  %v320_v46 = vmul.f32 %v630_v40, %v717_v1  ;;  %v321_v47 = vmul.f32 %v631_v41, %v717_v1  ;;  %v638_v48 = vunpack.c.l.bf16 %v654_v37  ;;  %v639_v49 = vunpack.c.h.bf16 %v654_v37 }
  0x32   : > { %v357_v50 = vadd.f32 %v723_v5, %v318_v42  ;;  %v358_v51 = vadd.f32 %v723_v5, %v319_v43  ;;  %v322_v52 = vmul.f32 %v634_v44, %v717_v1  ;;  %v323_v53 = vmul.f32 %v635_v45, %v717_v1 }
  0x33   : > { %v359_v56 = vadd.f32 %v723_v5, %v320_v46  ;;  %v360_v57 = vadd.f32 %v723_v5, %v321_v47  ;;  %v324_v58 = vmul.f32 %v638_v48, %v717_v1  ;;  %v325_v59 = vmul.f32 %v639_v49, %v717_v1 }
  0x34   : > { %v389_v60 = vmax.f32 %v357_v50, 0.0  ;;  %v390_v61 = vmax.f32 %v358_v51, 0.0  ;;  %v361_v0 = vadd.f32 %v723_v5, %v322_v52  ;;  %v362_v2 = vadd.f32 %v723_v5, %v323_v53 }
  0x35   : > { %v391_v3 = vmax.f32 %v359_v56, 0.0  ;;  %v392_v4 = vmax.f32 %v360_v57, 0.0  ;;  %v363_v8 = vadd.f32 %v723_v5, %v324_v58  ;;  %v364_v1 = vadd.f32 %v723_v5, %v325_v59 }
  0x36   : > { %v453_v9 = vadd.f32 %v421_v54, %v389_v60  ;;  %v454_v10 = vadd.f32 %v422_v55, %v390_v61  ;;  %v393_v11 = vmax.f32 %v361_v0, 0.0  ;;  %v394_v12 = vmax.f32 %v362_v2, 0.0 }
  0x37   : > { %v455_v15 = vadd.f32 %v423_v62, %v391_v3  ;;  %v456_v16 = vadd.f32 %v424_v63, %v392_v4  ;;  %v395_v17 = vmax.f32 %v363_v8, 0.0  ;;  %v396_v18 = vmax.f32 %v364_v1, 0.0 }
  0x38   : > { %485 = vst [vmem:[%s757_s6 + $0xc0] sm:$0xff] %v453_v9  ;;  %486 = vst [vmem:[%s757_s6 + $0xc8] sm:$0xff] %v454_v10  ;;  %v457_v19 = vadd.f32 %v425_v6, %v393_v11  ;;  %v458_v20 = vadd.f32 %v426_v7, %v394_v12 }
  0x39   : > { %487 = vst [vmem:[%s757_s6 + $0xd0] sm:$0xff] %v455_v15  ;;  %488 = vst [vmem:[%s757_s6 + $0xd8] sm:$0xff] %v456_v16  ;;  %v459_v5 = vadd.f32 %v427_v13, %v395_v17  ;;  %v460_v21 = vadd.f32 %v428_v14, %v396_v18 }
  0x3a   : > { %489 = vst [vmem:[%s757_s6 + $0xe0] sm:$0xff] %v457_v19  ;;  %490 = vst [vmem:[%s757_s6 + $0xe8] sm:$0xff] %v458_v20 }
  0x3b   : > { %491 = vst [vmem:[%s757_s6 + $0xf0] sm:$0xff] %v459_v5  ;;  %492 = vst [vmem:[%s757_s6 + $0xf8] sm:$0xff] %v460_v21 }
  0x3c PF: > { %s14_s15 = sadd.s32 1, %s669_s15  }
  0x3d   : > { %p11_p4 = scmp.ge.s32.totalorder %s14_s15, 4  }
  0x3f   :  { %13 = sbr.rel (!%p11_p4) target bundleno = 1 (0x1), region = 69 }

// kernel: res_block_bottleneck.4
= control target key start
LH: loop header
LB: loop body
LE: loop exit
PB: predicated region body
PF: predicated region fallthrough
CT: control target
= control target key end

     0   :  { %s1311_s15 = smov 0   ;;  %s1490_s0 = inlined_call_operand.vmem [shape: bf16[512,128], index: 0, kind: input, shape index: {}]   ;;  %s1491_s1 = inlined_call_operand.vmem [shape: bf16[128,128], index: 1, kind: input, shape index: {}]   ;;  %s1492_s2 = inlined_call_operand.vmem [shape: bf16[512,128], index: 2, kind: output, shape index: {0}]   ;;  %s1493_s3 = inlined_call_operand.vmem [shape: f32[2,8,128], index: 3, kind: output, shape index: {1}]   ;;  %s1494_s4 = inlined_call_operand.vmem [shape: f32[2,8,128], index: 4, kind: output, shape index: {2}]  }
   0x1 LB: > { %s1317_s16 = sadd.s32 4294967295, %s1284_s15   ;;  %p966_p0 = scmp.ge.s32.totalorder %s1284_s15, 1  ;;  %s1284_s15 = sphi %s1311_s15, %s15_s15  }
   0x2   : > { %p168_p1 = scmp.lt.s32.totalorder %s1284_s15, 3 }
   0x4   : > { %p169_p2 = pnand %p966_p0, %p168_p1 }
   0x5   : > { %v1254_v0 = vld [vmem:[%s1491_s1] sm:$0xff] (!%p169_p2)   ;;  %s967_s19 = sshll.u32 (!%p169_p2), %s1317_s16, 5  ;;  %v1255_v1 = vld [vmem:[%s1491_s1 + $0x8] sm:$0xff] (!%p169_p2)   ;;  %v1256_v2 = vld [vmem:[%s1491_s1 + $0x10] sm:$0xff] (!%p169_p2)   ;;  %p214_p4 = scmp.lt.s32.totalorder (!%p169_p2), %s1317_s16, 1 }
   0x6   : > { %172 = sbr.rel (%p169_p2) target bundleno = 330 (0x14a), region = 28  ;;  %p203_p3 = scmp.lt.s32.totalorder (!%p169_p2), %s967_s19, 63  ;;  %1182 = vmatprep.subr.bf16.mxu0 (!%p169_p2), %v1254_v0  ;;  %1230 = vmatprep.subr.bf16.mxu1 (!%p169_p2), %v1254_v0  ;;  %v1257_v3 = vld [vmem:[%s1491_s1 + $0x18] sm:$0xff] (!%p169_p2)   ;;  %v1258_v5 = vld [vmem:[%s1491_s1 + $0x20] sm:$0xff] (!%p169_p2)   ;;  %v1259_v6 = vld [vmem:[%s1491_s1 + $0x28] sm:$0xff] (!%p169_p2)  }
   0x7   : > { %1183 = vmatpush3.bf16.msra.mxu0 (!%p169_p2), %v1254_v0  ;;  %1238 = vmatpush3.bf16.msra.mxu1 (!%p169_p2), %v1254_v0  ;;  %v1260_v8 = vld [vmem:[%s1491_s1 + $0x30] sm:$0xff] (!%p169_p2)   ;;  %v1261_v9 = vld [vmem:[%s1491_s1 + $0x38] sm:$0xff] (!%p169_p2)  }
   0x8   : > { %1184 = vmatprep.subr.bf16.mxu0 (!%p169_p2), %v1255_v1  ;;  %1231 = vmatprep.subr.bf16.mxu1 (!%p169_p2), %v1255_v1 }
   0xb   : > { %1185 = vmatpush3.bf16.msra.mxu0 (!%p169_p2), %v1255_v1  ;;  %1239 = vmatpush3.bf16.msra.mxu1 (!%p169_p2), %v1255_v1 }
   0xc   : > { %1186 = vmatprep.subr.bf16.mxu0 (!%p169_p2), %v1256_v2  ;;  %1232 = vmatprep.subr.bf16.mxu1 (!%p169_p2), %v1256_v2 }
   0xd   : > { %s1496_s19 = smov (!%p203_p3, %s967_s19), 63  ;;  %s1498_s16 = smov (!%p214_p4, %s1317_s16), 1 }
   0xe   : > { %s968_s24 = sshll.u32 %s1496_s19, 2  ;;  %s971_s17 = sshll.u32 %s1498_s16, 3 }
   0xf   : > { %s1339_s27 = scalar_lea.vmem %s1490_s0, %s968_s24  ;;  %1187 = vmatpush3.bf16.msra.mxu0 %v1256_v2  ;;  %1240 = vmatpush3.bf16.msra.mxu1 %v1256_v2  ;;  %s1381_s14 = scalar_lea.vmem %s1492_s2, %s968_s24 }
  0x10   : > { %v1262_v4 = vld [vmem:[%s1339_s27] sm:$0xff]   ;;  %1188 = vmatprep.subr.bf16.mxu0 %v1257_v3  ;;  %1233 = vmatprep.subr.bf16.mxu1 %v1257_v3  ;;  %v1263_v10 = vld [vmem:[%s1339_s27 + $0x8] sm:$0xff]   ;;  %v1264_v12 = vld [vmem:[%s1339_s27 + $0x10] sm:$0xff]   ;;  %s217_s20 = scalar_lea.vmem %s1493_s3, %s971_s17  ;;  %s221_s23 = scalar_lea.vmem %s1494_s4, %s971_s17 }
  0x11   : > { %1198 = vmatprep.mubr.bf16.mxu0 %v1262_v4  ;;  %v1270_v7 = vld [vmem:[%s1339_s27 + $0x40] sm:$0xff]   ;;  %v1271_v11 = vld [vmem:[%s1339_s27 + $0x48] sm:$0xff]   ;;  %v1272_v13 = vld [vmem:[%s1339_s27 + $0x50] sm:$0xff]  }
  0x12   : > { %1214 = vmatprep.mubr.bf16.mxu1 %v1270_v7  ;;  %v1265_v14 = vld [vmem:[%s1339_s27 + $0x18] sm:$0xff]   ;;  %v1266_v16 = vld [vmem:[%s1339_s27 + $0x20] sm:$0xff]   ;;  %v1267_v18 = vld [vmem:[%s1339_s27 + $0x28] sm:$0xff]  }
  0x13   : > { %1189 = vmatpush3.bf16.msra.mxu0 %v1257_v3  ;;  %1241 = vmatpush3.bf16.msra.mxu1 %v1257_v3  ;;  %v1273_v15 = vld [vmem:[%s1339_s27 + $0x58] sm:$0xff]   ;;  %v1274_v17 = vld [vmem:[%s1339_s27 + $0x60] sm:$0xff]   ;;  %v1275_v19 = vld [vmem:[%s1339_s27 + $0x68] sm:$0xff]  }
  0x14   : > { %1190 = vmatprep.subr.bf16.mxu0 %v1258_v5  ;;  %1234 = vmatprep.subr.bf16.mxu1 %v1258_v5  ;;  %v1268_v20 = vld [vmem:[%s1339_s27 + $0x30] sm:$0xff]   ;;  %v1269_v22 = vld [vmem:[%s1339_s27 + $0x38] sm:$0xff]  }
  0x15   : > { %v1276_v21 = vld [vmem:[%s1339_s27 + $0x70] sm:$0xff]   ;;  %v1277_v23 = vld [vmem:[%s1339_s27 + $0x78] sm:$0xff]  }
  0x17   : > { %1191 = vmatpush3.bf16.msra.mxu0 %v1258_v5  ;;  %1242 = vmatpush3.bf16.msra.mxu1 %v1258_v5 }
  0x18   : > { %1192 = vmatprep.subr.bf16.mxu0 %v1259_v6  ;;  %1235 = vmatprep.subr.bf16.mxu1 %v1259_v6 }
  0x1b   : > { %1193 = vmatpush3.bf16.msra.mxu0 %v1259_v6  ;;  %1243 = vmatpush3.bf16.msra.mxu1 %v1259_v6 }
  0x1c   : > { %1194 = vmatprep.subr.bf16.mxu0 %v1260_v8  ;;  %1236 = vmatprep.subr.bf16.mxu1 %v1260_v8 }
  0x1f   : > { %1195 = vmatpush3.bf16.msra.mxu0 %v1260_v8  ;;  %1244 = vmatpush3.bf16.msra.mxu1 %v1260_v8 }
  0x20   : > { %1196 = vmatprep.subr.bf16.mxu0 %v1261_v9  ;;  %1237 = vmatprep.subr.bf16.mxu1 %v1261_v9 }
  0x23   : > { %1197 = vmatpush3.bf16.msra.mxu0 %v1261_v9  ;;  %1245 = vmatpush3.bf16.msra.mxu1 %v1261_v9 }
  0x26   : > { %1199 = vmatmul.mubr.bf16.vlgmr.msra.gmra.mrb[0].mxu0 %v1263_v10  ;;  %1215 = vmatmul.mubr.bf16.vlgmr.msra.gmra.mrb[0].mxu1 %v1271_v11 }
  0x27   : > { %1202 = vmatprep.mubr.bf16.mxu0 %v1264_v12  ;;  %1218 = vmatprep.mubr.bf16.mxu1 %v1272_v13 }
  0x2e   : > { %1203 = vmatmul.mubr.bf16.gmra.mrb[4].mxu0 %v1265_v14  ;;  %1219 = vmatmul.mubr.bf16.gmra.mrb[4].mxu1 %v1273_v15 }
  0x2f   : > { %1206 = vmatprep.mubr.bf16.mxu0 %v1266_v16  ;;  %1222 = vmatprep.mubr.bf16.mxu1 %v1274_v17 }
  0x36   : > { %1207 = vmatmul.mubr.bf16.gmra.mrb[8].mxu0 %v1267_v18  ;;  %1223 = vmatmul.mubr.bf16.gmra.mrb[8].mxu1 %v1275_v19 }
  0x37   : > { %1210 = vmatprep.mubr.bf16.mxu0 %v1268_v20  ;;  %1226 = vmatprep.mubr.bf16.mxu1 %v1276_v21 }
  0x3e   : > { %1211 = vmatmul.mubr.bf16.gmra.mrb[12].mxu0 %v1269_v22  ;;  %1227 = vmatmul.mubr.bf16.gmra.mrb[12].mxu1 %v1277_v23 }
  0xf9   : > { %v1200_v24 = vpop.f32.mrb[0].mxu0  ;;  %v1372_v25 = vpop.f32.mrb[0].mxu1 }
  0xfa   : > { %v449_v26 = vpop.f32.mrb[1].mxu0  ;;  %v1374_v27 = vpop.f32.mrb[1].mxu1  ;;  %v776_v39 = vmul.f32 %v1200_v24, %v1200_v24 }
  0xfb   : > { %v1201_v28 = vpop.f32.mrb[2].mxu0  ;;  %v1383_v29 = vpop.f32.mrb[2].mxu1  ;;  %v774_v30 = vmul.f32 %v449_v26, %v449_v26 }
  0xfc   : > { %v1071_v31 = vpack.c.bf16 %v1201_v28, %v1200_v24  ;;  %v452_v32 = vpop.f32.mrb[3].mxu0  ;;  %v1111_v33 = vpack.c.bf16 %v1383_v29, %v1372_v25  ;;  %v1387_v34 = vpop.f32.mrb[3].mxu1  ;;  %v777_v42 = vmul.f32 %v1201_v28, %v1201_v28 }
  0xfd   : > { %v1066_v35 = vpack.c.bf16 %v452_v32, %v449_v26  ;;  %v736_v36 = vadd.f32 %v452_v32, %v449_v26  ;;  %v775_v37 = vmul.f32 %v452_v32, %v452_v32  ;;  %v1106_v38 = vpack.c.bf16 %v1387_v34, %v1374_v27 }
  0xfe   : > { %1143 = vst [vmem:[%s1381_s14 + $0x8] sm:$0xff] %v1071_v31   ;;  %1151 = vst [vmem:[%s1381_s14 + $0x48] sm:$0xff] %v1111_v33  }
  0xff   : > { %1067 = vst [vmem:[%s1381_s14] sm:$0xff] %v1066_v35   ;;  %v737_v40 = vadd.f32 %v1200_v24, %v736_v36  ;;  %v806_v41 = vadd.f32 %v775_v37, %v774_v30  ;;  %1150 = vst [vmem:[%s1381_s14 + $0x40] sm:$0xff] %v1106_v38  }
 0x101   : > { %v807_v43 = vadd.f32 %v806_v41, %v776_v39  ;;  %v1204_v44 = vpop.f32.mrb[4].mxu0  ;;  %v738_v45 = vadd.f32 %v1201_v28, %v737_v40  ;;  %v1395_v46 = vpop.f32.mrb[4].mxu1 }
 0x102   : > { %v465_v47 = vpop.f32.mrb[5].mxu0  ;;  %v1397_v48 = vpop.f32.mrb[5].mxu1  ;;  %v780_v63 = vmul.f32 %v1204_v44, %v1204_v44 }
 0x103   : > { %v739_v49 = vadd.f32 %v738_v45, %v465_v47  ;;  %v778_v50 = vmul.f32 %v465_v47, %v465_v47  ;;  %v808_v51 = vadd.f32 %v807_v43, %v777_v42  ;;  %v1205_v52 = vpop.f32.mrb[6].mxu0  ;;  %v1399_v53 = vpop.f32.mrb[6].mxu1 }
 0x104   : > { %v1081_v54 = vpack.c.bf16 %v1205_v52, %v1204_v44  ;;  %v468_v55 = vpop.f32.mrb[7].mxu0  ;;  %v1121_v56 = vpack.c.bf16 %v1399_v53, %v1395_v46  ;;  %v1403_v57 = vpop.f32.mrb[7].mxu1  ;;  %v781_v2 = vmul.f32 %v1205_v52, %v1205_v52 }
 0x105   : > { %v809_v58 = vadd.f32 %v808_v51, %v778_v50  ;;  %v1076_v59 = vpack.c.bf16 %v468_v55, %v465_v47  ;;  %v740_v60 = vadd.f32 %v739_v49, %v468_v55  ;;  %v779_v61 = vmul.f32 %v468_v55, %v468_v55 }
 0x106   : > { %1145 = vst [vmem:[%s1381_s14 + $0x18] sm:$0xff] %v1081_v54   ;;  %1153 = vst [vmem:[%s1381_s14 + $0x58] sm:$0xff] %v1121_v56   ;;  %v1116_v62 = vpack.c.bf16 %v1403_v57, %v1397_v48 }
 0x107   : > { %1144 = vst [vmem:[%s1381_s14 + $0x10] sm:$0xff] %v1076_v59   ;;  %v741_v0 = vadd.f32 %v1204_v44, %v740_v60  ;;  %v810_v1 = vadd.f32 %v809_v58, %v779_v61  ;;  %v790_v61 = vmul.f32 %v1374_v27, %v1374_v27 }
 0x108   : > { %1152 = vst [vmem:[%s1381_s14 + $0x50] sm:$0xff] %v1116_v62  }
 0x109   : > { %v811_v3 = vadd.f32 %v810_v1, %v780_v63  ;;  %v1208_v4 = vpop.f32.mrb[8].mxu0  ;;  %v742_v5 = vadd.f32 %v1205_v52, %v741_v0  ;;  %v1411_v6 = vpop.f32.mrb[8].mxu1 }
 0x10a   : > { %v481_v7 = vpop.f32.mrb[9].mxu0  ;;  %v1413_v8 = vpop.f32.mrb[9].mxu1  ;;  %v784_v23 = vmul.f32 %v1208_v4, %v1208_v4 }
 0x10b   : > { %v743_v9 = vadd.f32 %v742_v5, %v481_v7  ;;  %v782_v10 = vmul.f32 %v481_v7, %v481_v7  ;;  %v812_v11 = vadd.f32 %v811_v3, %v781_v2  ;;  %v1209_v12 = vpop.f32.mrb[10].mxu0  ;;  %v1415_v13 = vpop.f32.mrb[10].mxu1  ;;  %v791_v2 = vmul.f32 %v1387_v34, %v1387_v34 }
 0x10c   : > { %v1091_v14 = vpack.c.bf16 %v1209_v12, %v1208_v4  ;;  %v484_v15 = vpop.f32.mrb[11].mxu0  ;;  %v1131_v16 = vpack.c.bf16 %v1415_v13, %v1411_v6  ;;  %v1419_v17 = vpop.f32.mrb[11].mxu1  ;;  %v785_v28 = vmul.f32 %v1209_v12, %v1209_v12  ;;  %v792_v3 = vmul.f32 %v1372_v25, %v1372_v25 }
 0x10d   : > { %v813_v18 = vadd.f32 %v812_v11, %v782_v10  ;;  %v1086_v19 = vpack.c.bf16 %v484_v15, %v481_v7  ;;  %v744_v20 = vadd.f32 %v743_v9, %v484_v15  ;;  %v783_v21 = vmul.f32 %v484_v15, %v484_v15 }
 0x10e   : > { %1147 = vst [vmem:[%s1381_s14 + $0x28] sm:$0xff] %v1091_v14   ;;  %1155 = vst [vmem:[%s1381_s14 + $0x68] sm:$0xff] %v1131_v16   ;;  %v1126_v22 = vpack.c.bf16 %v1419_v17, %v1413_v8  ;;  %v793_v7 = vmul.f32 %v1383_v29, %v1383_v29  ;;  %v795_v15 = vmul.f32 %v1403_v57, %v1403_v57 }
 0x10f   : > { %1146 = vst [vmem:[%s1381_s14 + $0x20] sm:$0xff] %v1086_v19   ;;  %v745_v24 = vadd.f32 %v1208_v4, %v744_v20  ;;  %v814_v26 = vadd.f32 %v813_v18, %v783_v21 }
 0x110   : > { %1154 = vst [vmem:[%s1381_s14 + $0x60] sm:$0xff] %v1126_v22  }
 0x111   : > { %v815_v30 = vadd.f32 %v814_v26, %v784_v23  ;;  %v1212_v31 = vpop.f32.mrb[12].mxu0  ;;  %v746_v32 = vadd.f32 %v1209_v12, %v745_v24  ;;  %v1427_v33 = vpop.f32.mrb[12].mxu1  ;;  %v799_v24 = vmul.f32 %v1419_v17, %v1419_v17 }
 0x112   : > { %v497_v35 = vpop.f32.mrb[13].mxu0  ;;  %v561_v36 = vpop.f32.mrb[13].mxu1  ;;  %v788_v54 = vmul.f32 %v1212_v31, %v1212_v31 }
 0x113   : > { %v747_v37 = vadd.f32 %v746_v32, %v497_v35  ;;  %v786_v38 = vmul.f32 %v497_v35, %v497_v35  ;;  %v816_v39 = vadd.f32 %v815_v30, %v785_v28  ;;  %v1213_v40 = vpop.f32.mrb[14].mxu0  ;;  %v1429_v41 = vpop.f32.mrb[14].mxu1 }
 0x114   : > { %v1101_v42 = vpack.c.bf16 %v1213_v40, %v1212_v31  ;;  %v500_v43 = vpop.f32.mrb[15].mxu0  ;;  %v1141_v44 = vpack.c.bf16 %v1429_v41, %v1427_v33  ;;  %v564_v45 = vpop.f32.mrb[15].mxu1  ;;  %v789_v58 = vmul.f32 %v1213_v40, %v1213_v40 }
 0x115   : > { %v817_v47 = vadd.f32 %v816_v39, %v786_v38  ;;  %v1096_v49 = vpack.c.bf16 %v500_v43, %v497_v35  ;;  %v748_v50 = vadd.f32 %v747_v37, %v500_v43  ;;  %v787_v51 = vmul.f32 %v500_v43, %v500_v43 }
 0x116   : > { %1149 = vst [vmem:[%s1381_s14 + $0x38] sm:$0xff] %v1101_v42   ;;  %1157 = vst [vmem:[%s1381_s14 + $0x78] sm:$0xff] %v1141_v44   ;;  %v1136_v52 = vpack.c.bf16 %v564_v45, %v561_v36  ;;  %v804_v39 = vmul.f32 %v1427_v33, %v1427_v33  ;;  %v805_v42 = vmul.f32 %v1429_v41, %v1429_v41 }
 0x117   : > { %1148 = vst [vmem:[%s1381_s14 + $0x30] sm:$0xff] %v1096_v49   ;;  %v749_v55 = vadd.f32 %v1212_v31, %v748_v50  ;;  %v818_v56 = vadd.f32 %v817_v47, %v787_v51  ;;  %v802_v31 = vmul.f32 %v561_v36, %v561_v36 }
 0x118   : > { %1156 = vst [vmem:[%s1381_s14 + $0x70] sm:$0xff] %v1136_v52  }
 0x119   : > { %v819_v59 = vadd.f32 %v818_v56, %v788_v54  ;;  %v750_v60 = vadd.f32 %v1213_v40, %v749_v55 }
 0x11b   : > { %v751_v62 = vadd.f32 %v750_v60, %v1374_v27  ;;  %v820_v63 = vadd.f32 %v819_v59, %v789_v58  ;;  %v794_v27 = vmul.f32 %v1397_v48, %v1397_v48 }
 0x11d   : > { %v821_v0 = vadd.f32 %v820_v63, %v790_v61  ;;  %v752_v1 = vadd.f32 %v751_v62, %v1387_v34 }
 0x11f   : > { %v753_v4 = vadd.f32 %v1372_v25, %v752_v1  ;;  %v822_v5 = vadd.f32 %v821_v0, %v791_v2  ;;  %v796_v25 = vmul.f32 %v1395_v46, %v1395_v46 }
 0x121   : > { %v823_v9 = vadd.f32 %v822_v5, %v792_v3  ;;  %v754_v10 = vadd.f32 %v1383_v29, %v753_v4  ;;  %v797_v29 = vmul.f32 %v1399_v53, %v1399_v53 }
 0x123   : > { %v755_v11 = vadd.f32 %v754_v10, %v1397_v48  ;;  %v824_v12 = vadd.f32 %v823_v9, %v793_v7  ;;  %v798_v48 = vmul.f32 %v1413_v8, %v1413_v8 }
 0x125   : > { %v825_v14 = vadd.f32 %v824_v12, %v794_v27  ;;  %v756_v34 = vadd.f32 %v755_v11, %v1403_v57 }
 0x127   : > { %v757_v16 = vadd.f32 %v1395_v46, %v756_v34  ;;  %v826_v18 = vadd.f32 %v825_v14, %v795_v15  ;;  %v800_v46 = vmul.f32 %v1411_v6, %v1411_v6 }
 0x129   : > { %v827_v19 = vadd.f32 %v826_v18, %v796_v25  ;;  %v758_v20 = vadd.f32 %v1399_v53, %v757_v16  ;;  %v801_v53 = vmul.f32 %v1415_v13, %v1415_v13 }
 0x12b   : > { %v759_v21 = vadd.f32 %v758_v20, %v1413_v8  ;;  %v828_v22 = vadd.f32 %v827_v19, %v797_v29 }
 0x12d   : > { %v829_v23 = vadd.f32 %v828_v22, %v798_v48  ;;  %v760_v57 = vadd.f32 %v759_v21, %v1419_v17  ;;  %v803_v17 = vmul.f32 %v564_v45, %v564_v45 }
 0x12f   : > { %v761_v26 = vadd.f32 %v1411_v6, %v760_v57  ;;  %v830_v28 = vadd.f32 %v829_v23, %v799_v24 }
 0x131   : > { %v831_v30 = vadd.f32 %v830_v28, %v800_v46  ;;  %v762_v8 = vadd.f32 %v1415_v13, %v761_v26 }
 0x133   : > { %v763_v32 = vadd.f32 %v762_v8, %v561_v36  ;;  %v832_v35 = vadd.f32 %v831_v30, %v801_v53 }
 0x135   : > { %v833_v37 = vadd.f32 %v832_v35, %v802_v31  ;;  %v764_v38 = vadd.f32 %v763_v32, %v564_v45 }
 0x137   : > { %v765_v40 = vadd.f32 %v1427_v33, %v764_v38  ;;  %v834_v6 = vadd.f32 %v833_v37, %v803_v17 }
 0x139   : > { %v766_v43 = vadd.f32 %v1429_v41, %v765_v40  ;;  %v835_v13 = vadd.f32 %v834_v6, %v804_v39 }
 0x13b   : > { %v767_v44 = vrot.slane %v766_v43, 4  ;;  %v836_v47 = vadd.f32 %v835_v13, %v805_v42 }
 0x13d   : > { %v768_v36 = vadd.f32 %v767_v44, %v766_v43  ;;  %v837_v49 = vrot.slane %v836_v47, 4 }
 0x13f   : > { %v769_v50 = vrot.slane %v768_v36, 2  ;;  %v838_v45 = vadd.f32 %v837_v49, %v836_v47 }
 0x141   : > { %v770_v51 = vadd.f32 %v769_v50, %v768_v36  ;;  %v839_v52 = vrot.slane %v838_v45, 2 }
 0x143   : > { %v771_v54 = vrot.slane %v770_v51, 1  ;;  %v840_v33 = vadd.f32 %v839_v52, %v838_v45 }
 0x145   : > { %v772_v55 = vadd.f32 %v771_v54, %v770_v51  ;;  %v841_v56 = vrot.slane %v840_v33, 1 }
 0x147   : > { %773 = vst [vmem:[%s217_s20] sm:$0xff] %v772_v55  ;;  %v842_v41 = vadd.f32 %v841_v56, %v840_v33 }
 0x149   : > { %843 = vst [vmem:[%s221_s23] sm:$0xff] %v842_v41 }
 0x14a PF: > { %s15_s15 = sadd.s32 1, %s1284_s15  }
 0x14b   : > { %p12_p5 = scmp.ge.s32.totalorder %s15_s15, 4  }
 0x14d   :  { %14 = sbr.rel (!%p12_p5) target bundleno = 1 (0x1), region = 82 }

// kernel: res_block_bottleneck.6
= control target key start
LH: loop header
LB: loop body
LE: loop exit
PB: predicated region body
PF: predicated region fallthrough
CT: control target
= control target key end

     0   :  { %s1486_s21 = smov 0   ;;  %s1757_s0 = inlined_call_operand.vmem [shape: bf16[512,128], index: 0, kind: input, shape index: {}]   ;;  %s1758_s1 = inlined_call_operand.vmem [shape: f32[1,128], index: 1, kind: input, shape index: {}]   ;;  %s1759_s2 = inlined_call_operand.vmem [shape: f32[1,128], index: 2, kind: input, shape index: {}]   ;;  %s1760_s3 = inlined_call_operand.vmem [shape: bf16[128,128], index: 3, kind: input, shape index: {}]   ;;  %s1761_s4 = inlined_call_operand.vmem [shape: bf16[512,128], index: 4, kind: output, shape index: {0}]   ;;  %s1762_s5 = inlined_call_operand.vmem [shape: f32[2,8,128], index: 5, kind: output, shape index: {1}]   ;;  %s1763_s6 = inlined_call_operand.vmem [shape: f32[2,8,128], index: 6, kind: output, shape index: {2}]  }
   0x1 LB: > { %s1492_s22 = sadd.s32 4294967295, %s1449_s21   ;;  %p1082_p0 = scmp.ge.s32.totalorder %s1449_s21, 1  ;;  %s1449_s21 = sphi %s1486_s21, %s17_s21  }
   0x2   : > { %p218_p1 = scmp.lt.s32.totalorder %s1449_s21, 3 }
   0x4   : > { %p219_p2 = pnand %p1082_p0, %p218_p1 }
   0x5   : > { %v1435_v0 = vld [vmem:[%s1760_s3] sm:$0xff] (!%p219_p2)   ;;  %s1083_s25 = sshll.u32 (!%p219_p2), %s1492_s22, 5  ;;  %v1436_v1 = vld [vmem:[%s1760_s3 + $0x8] sm:$0xff] (!%p219_p2)   ;;  %v1437_v2 = vld [vmem:[%s1760_s3 + $0x10] sm:$0xff] (!%p219_p2)   ;;  %p268_p4 = scmp.lt.s32.totalorder (!%p219_p2), %s1492_s22, 1 }
   0x6   : > { %222 = sbr.rel (%p219_p2) target bundleno = 330 (0x14a), region = 36  ;;  %p257_p3 = scmp.lt.s32.totalorder (!%p219_p2), %s1083_s25, 63  ;;  %1363 = vmatprep.subr.bf16.mxu0 (!%p219_p2), %v1435_v0  ;;  %1411 = vmatprep.subr.bf16.mxu1 (!%p219_p2), %v1435_v0  ;;  %v1438_v3 = vld [vmem:[%s1760_s3 + $0x18] sm:$0xff] (!%p219_p2)   ;;  %v1523_v5 = vld [vmem:[%s1758_s1] ss:$0 sm:$0xff] (!%p219_p2)  ;;  %v1440_v34 = vld [vmem:[%s1760_s3 + $0x28] sm:$0xff] (!%p219_p2)  }
   0x7   : > { %1364 = vmatpush3.bf16.msra.mxu0 (!%p219_p2), %v1435_v0  ;;  %1419 = vmatpush3.bf16.msra.mxu1 (!%p219_p2), %v1435_v0  ;;  %v1531_v11 = vld [vmem:[%s1759_s2] ss:$0 sm:$0xff] (!%p219_p2)  ;;  %v1441_v49 = vld [vmem:[%s1760_s3 + $0x30] sm:$0xff] (!%p219_p2)   ;;  %v1442_v63 = vld [vmem:[%s1760_s3 + $0x38] sm:$0xff] (!%p219_p2)  }
   0x8   : > { %1365 = vmatprep.subr.bf16.mxu0 (!%p219_p2), %v1436_v1  ;;  %1412 = vmatprep.subr.bf16.mxu1 (!%p219_p2), %v1436_v1  ;;  %v1439_v20 = vld [vmem:[%s1760_s3 + $0x20] sm:$0xff] (!%p219_p2)  }
   0xb   : > { %1366 = vmatpush3.bf16.msra.mxu0 (!%p219_p2), %v1436_v1  ;;  %1420 = vmatpush3.bf16.msra.mxu1 (!%p219_p2), %v1436_v1 }
   0xc   : > { %1367 = vmatprep.subr.bf16.mxu0 (!%p219_p2), %v1437_v2  ;;  %1413 = vmatprep.subr.bf16.mxu1 (!%p219_p2), %v1437_v2 }
   0xd   : > { %s1765_s25 = smov (!%p257_p3, %s1083_s25), 63  ;;  %s1767_s22 = smov (!%p268_p4, %s1492_s22), 1 }
   0xe   : > { %s1084_s30 = sshll.u32 %s1765_s25, 2  ;;  %s1087_s25 = sshll.u32 %s1767_s22, 3 }
   0xf   : > { %s1514_s9 = scalar_lea.vmem %s1757_s0, %s1084_s30  ;;  %1368 = vmatpush3.bf16.msra.mxu0 %v1437_v2  ;;  %1421 = vmatpush3.bf16.msra.mxu1 %v1437_v2  ;;  %s1656_s29 = scalar_lea.vmem %s1761_s4, %s1084_s30 }
  0x10   : > { %v1166_v4 = vld [vmem:[%s1514_s9] sm:$0xff]   ;;  %v1309_v8 = vld [vmem:[%s1514_s9 + $0x8] sm:$0xff]   ;;  %v1310_v9 = vld [vmem:[%s1514_s9 + $0x10] sm:$0xff]   ;;  %1369 = vmatprep.subr.bf16.mxu0 %v1438_v3  ;;  %1414 = vmatprep.subr.bf16.mxu1 %v1438_v3  ;;  %s271_s8 = scalar_lea.vmem %s1762_s5, %s1087_s25  ;;  %s275_s11 = scalar_lea.vmem %s1763_s6, %s1087_s25 }
  0x11   : > { %v1167_v6 = vunpack.c.l.bf16 %v1166_v4  ;;  %v1168_v7 = vunpack.c.h.bf16 %v1166_v4  ;;  %v1311_v10 = vld [vmem:[%s1514_s9 + $0x18] sm:$0xff]   ;;  %v1171_v12 = vunpack.c.l.bf16 %v1309_v8  ;;  %v1172_v13 = vunpack.c.h.bf16 %v1309_v8  ;;  %v1312_v29 = vld [vmem:[%s1514_s9 + $0x20] sm:$0xff]   ;;  %v1313_v33 = vld [vmem:[%s1514_s9 + $0x28] sm:$0xff]  }
  0x12   : > { %v1175_v14 = vunpack.c.l.bf16 %v1310_v9  ;;  %v1176_v15 = vunpack.c.h.bf16 %v1310_v9  ;;  %v1179_v18 = vunpack.c.l.bf16 %v1311_v10  ;;  %v1180_v19 = vunpack.c.h.bf16 %v1311_v10  ;;  %v1314_v42 = vld [vmem:[%s1514_s9 + $0x30] sm:$0xff]   ;;  %v1560_v48 = vld [vmem:[%s1514_s9 + $0x38] sm:$0xff]   ;;  %v1316_v60 = vld [vmem:[%s1514_s9 + $0x40] sm:$0xff]  }
  0x13   : > { %v348_v16 = vmul.f32 %v1167_v6, %v1523_v5  ;;  %v349_v17 = vmul.f32 %v1168_v7, %v1523_v5  ;;  %v350_v21 = vmul.f32 %v1171_v12, %v1523_v5  ;;  %v351_v22 = vmul.f32 %v1172_v13, %v1523_v5  ;;  %1370 = vmatpush3.bf16.msra.mxu0 %v1438_v3  ;;  %v1318_v9 = vld [vmem:[%s1514_s9 + $0x50] sm:$0xff]  }
  0x14   : > { %v352_v23 = vmul.f32 %v1175_v14, %v1523_v5  ;;  %v353_v24 = vmul.f32 %v1176_v15, %v1523_v5  ;;  %v354_v27 = vmul.f32 %v1179_v18, %v1523_v5  ;;  %v355_v28 = vmul.f32 %v1180_v19, %v1523_v5  ;;  %1422 = vmatpush3.bf16.msra.mxu1 %v1438_v3  ;;  %v1317_v3 = vld [vmem:[%s1514_s9 + $0x48] sm:$0xff]   ;;  %v1319_v19 = vld [vmem:[%s1514_s9 + $0x58] sm:$0xff]  }
  0x15   : > { %v387_v25 = vadd.f32 %v1531_v11, %v348_v16  ;;  %v388_v26 = vadd.f32 %v1531_v11, %v349_v17  ;;  %v389_v32 = vadd.f32 %v1531_v11, %v350_v21  ;;  %1371 = vmatprep.subr.bf16.mxu0 %v1439_v20  ;;  %v390_v35 = vadd.f32 %v1531_v11, %v351_v22 }
  0x16   : > { %v391_v36 = vadd.f32 %v1531_v11, %v352_v23  ;;  %v392_v37 = vadd.f32 %v1531_v11, %v353_v24  ;;  %1415 = vmatprep.subr.bf16.mxu1 %v1439_v20  ;;  %v393_v39 = vadd.f32 %v1531_v11, %v354_v27  ;;  %v394_v40 = vadd.f32 %v1531_v11, %v355_v28 }
  0x17   : > { %v419_v30 = vmax.f32 %v387_v25, 0.0  ;;  %v420_v31 = vmax.f32 %v388_v26, 0.0  ;;  %v1183_v41 = vunpack.c.l.bf16 %v1312_v29  ;;  %v1184_v43 = vunpack.c.h.bf16 %v1312_v29  ;;  %1372 = vmatpush3.bf16.msra.mxu0 %v1439_v20 }
  0x18   : > { %v1187_v44 = vunpack.c.l.bf16 %v1313_v33  ;;  %v421_v45 = vmax.f32 %v389_v32, 0.0  ;;  %v1188_v47 = vunpack.c.h.bf16 %v1313_v33  ;;  %1373 = vmatprep.subr.bf16.mxu0 %v1440_v34  ;;  %v422_v50 = vmax.f32 %v390_v35, 0.0  ;;  %1423 = vmatpush3.bf16.msra.mxu1 %v1439_v20  ;;  %v1320_v32 = vld [vmem:[%s1514_s9 + $0x60] sm:$0xff]  }
  0x19   : > { %v451_v38 = vpack.c.bf16 %v420_v31, %v419_v30  ;;  %v356_v46 = vmul.f32 %v1183_v41, %v1523_v5  ;;  %v423_v51 = vmax.f32 %v391_v36, 0.0  ;;  %v424_v52 = vmax.f32 %v392_v37, 0.0  ;;  %1416 = vmatprep.subr.bf16.mxu1 %v1440_v34 }
  0x1a   : > { %v1191_v53 = vunpack.c.l.bf16 %v1314_v42  ;;  %v425_v54 = vmax.f32 %v393_v39, 0.0  ;;  %v426_v55 = vmax.f32 %v394_v40, 0.0  ;;  %v357_v56 = vmul.f32 %v1184_v43, %v1523_v5 }
  0x1b   : > { %1379 = vmatprep.mubr.bf16.mxu0 %v451_v38  ;;  %v358_v57 = vmul.f32 %v1187_v44, %v1523_v5  ;;  %v1192_v58 = vunpack.c.h.bf16 %v1314_v42  ;;  %v1195_v59 = vunpack.c.l.bf16 %v1560_v48  ;;  %1374 = vmatpush3.bf16.msra.mxu0 %v1440_v34  ;;  %v1570_v61 = vadd.f32 %v1531_v11, %v356_v46 }
  0x1c   : > { %v359_v62 = vmul.f32 %v1188_v47, %v1523_v5  ;;  %1375 = vmatprep.subr.bf16.mxu0 %v1441_v49  ;;  %v452_v0 = vpack.c.bf16 %v422_v50, %v421_v45  ;;  %v453_v1 = vpack.c.bf16 %v424_v52, %v423_v51  ;;  %1424 = vmatpush3.bf16.msra.mxu1 %v1440_v34  ;;  %v1196_v7 = vunpack.c.h.bf16 %v1560_v48  ;;  %v1321_v45 = vld [vmem:[%s1514_s9 + $0x68] sm:$0xff]  }
  0x1d   : > { %v360_v2 = vmul.f32 %v1191_v53, %v1523_v5  ;;  %v1578_v4 = vpack.c.bf16 %v426_v55, %v425_v54  ;;  %v1581_v6 = vadd.f32 %v1531_v11, %v357_v56  ;;  %1417 = vmatprep.subr.bf16.mxu1 %v1441_v49  ;;  %v1199_v8 = vunpack.c.l.bf16 %v1316_v60  ;;  %v1322_v55 = vld [vmem:[%s1514_s9 + $0x70] sm:$0xff]  }
  0x1e   : > { %v1586_v10 = vadd.f32 %v1531_v11, %v358_v57  ;;  %v1589_v12 = vmul.f32 %v1192_v58, %v1523_v5  ;;  %v1592_v13 = vmul.f32 %v1195_v59, %v1523_v5  ;;  %v1200_v14 = vunpack.c.h.bf16 %v1316_v60 }
  0x1f   : > { %1376 = vmatpush3.bf16.msra.mxu0 %v1441_v49  ;;  %v427_v15 = vmax.f32 %v1570_v61, 0.0  ;;  %v1596_v16 = vadd.f32 %v1531_v11, %v359_v62  ;;  %v364_v17 = vmul.f32 %v1199_v8, %v1523_v5  ;;  %v1203_v18 = vunpack.c.l.bf16 %v1317_v3 }
  0x20   : > { %1377 = vmatprep.subr.bf16.mxu0 %v1442_v63  ;;  %1425 = vmatpush3.bf16.msra.mxu1 %v1441_v49  ;;  %v1601_v20 = vadd.f32 %v1531_v11, %v360_v2  ;;  %v365_v21 = vmul.f32 %v1200_v14, %v1523_v5  ;;  %v1204_v22 = vunpack.c.h.bf16 %v1317_v3  ;;  %v1207_v23 = vunpack.c.l.bf16 %v1318_v9 }
  0x21   : > { %v428_v24 = vmax.f32 %v1581_v6, 0.0  ;;  %1418 = vmatprep.subr.bf16.mxu1 %v1442_v63  ;;  %v403_v25 = vadd.f32 %v1531_v11, %v364_v17  ;;  %v366_v26 = vmul.f32 %v1203_v18, %v1523_v5  ;;  %v1208_v27 = vunpack.c.h.bf16 %v1318_v9  ;;  %v1323_v17 = vld [vmem:[%s1514_s9 + $0x78] sm:$0xff]  }
  0x22   : > { %v404_v28 = vadd.f32 %v1531_v11, %v365_v21  ;;  %v367_v29 = vmul.f32 %v1204_v22, %v1523_v5  ;;  %v368_v30 = vmul.f32 %v1207_v23, %v1523_v5  ;;  %v1211_v31 = vunpack.c.l.bf16 %v1319_v19 }
  0x23   : > { %1378 = vmatpush3.bf16.msra.mxu0 %v1442_v63  ;;  %v435_v33 = vmax.f32 %v403_v25, 0.0  ;;  %v405_v34 = vadd.f32 %v1531_v11, %v366_v26  ;;  %v369_v35 = vmul.f32 %v1208_v27, %v1523_v5  ;;  %v1212_v36 = vunpack.c.h.bf16 %v1319_v19 }
  0x24   : > { %1426 = vmatpush3.bf16.msra.mxu1 %v1442_v63  ;;  %v436_v37 = vmax.f32 %v404_v28, 0.0  ;;  %v406_v38 = vadd.f32 %v1531_v11, %v367_v29  ;;  %v407_v39 = vadd.f32 %v1531_v11, %v368_v30  ;;  %v370_v40 = vmul.f32 %v1211_v31, %v1523_v5 }
  0x25   : > { %v437_v41 = vmax.f32 %v405_v34, 0.0  ;;  %v408_v42 = vadd.f32 %v1531_v11, %v369_v35  ;;  %v371_v43 = vmul.f32 %v1212_v36, %v1523_v5  ;;  %v1215_v44 = vunpack.c.l.bf16 %v1320_v32 }
  0x26   : > { %1380 = vmatmul.mubr.bf16.vlgmr.msra.gmra.mrb[0].mxu0 %v452_v0  ;;  %v459_v46 = vpack.c.bf16 %v436_v37, %v435_v33  ;;  %v438_v47 = vmax.f32 %v406_v38, 0.0  ;;  %v439_v49 = vmax.f32 %v407_v39, 0.0  ;;  %v409_v50 = vadd.f32 %v1531_v11, %v370_v40 }
  0x27   : > { %1383 = vmatprep.mubr.bf16.mxu0 %v453_v1  ;;  %v440_v51 = vmax.f32 %v408_v42, 0.0  ;;  %v410_v52 = vadd.f32 %v1531_v11, %v371_v43  ;;  %v1216_v53 = vunpack.c.h.bf16 %v1320_v32  ;;  %v372_v54 = vmul.f32 %v1215_v44, %v1523_v5 }
  0x28   : > { %1395 = vmatprep.mubr.bf16.mxu1 %v459_v46  ;;  %v460_v56 = vpack.c.bf16 %v438_v47, %v437_v41  ;;  %v441_v57 = vmax.f32 %v409_v50, 0.0  ;;  %v1219_v58 = vunpack.c.l.bf16 %v1321_v45  ;;  %v1220_v59 = vunpack.c.h.bf16 %v1321_v45 }
  0x29   : > { %v461_v60 = vpack.c.bf16 %v440_v51, %v439_v49  ;;  %v442_v61 = vmax.f32 %v410_v52, 0.0  ;;  %v373_v62 = vmul.f32 %v1216_v53, %v1523_v5  ;;  %v411_v63 = vadd.f32 %v1531_v11, %v372_v54 }
  0x2a   : > { %1396 = vmatmul.mubr.bf16.vlgmr.msra.gmra.mrb[0].mxu1 %v460_v56  ;;  %v374_v0 = vmul.f32 %v1219_v58, %v1523_v5  ;;  %v375_v1 = vmul.f32 %v1220_v59, %v1523_v5  ;;  %v1223_v2 = vunpack.c.l.bf16 %v1322_v55  ;;  %v1224_v3 = vunpack.c.h.bf16 %v1322_v55 }
  0x2b   : > { %v455_v6 = vpack.c.bf16 %v428_v24, %v427_v15  ;;  %v400_v8 = vadd.f32 %v1531_v11, %v1589_v12  ;;  %1399 = vmatprep.mubr.bf16.mxu1 %v461_v60  ;;  %v412_v9 = vadd.f32 %v1531_v11, %v373_v62  ;;  %v443_v14 = vmax.f32 %v411_v63, 0.0 }
  0x2c   : > { %v429_v18 = vmax.f32 %v1586_v10, 0.0  ;;  %v363_v19 = vmul.f32 %v1196_v7, %v1523_v5  ;;  %v376_v21 = vmul.f32 %v1223_v2, %v1523_v5  ;;  %v377_v22 = vmul.f32 %v1224_v3, %v1523_v5 }
  0x2d   : > { %v430_v15 = vmax.f32 %v1596_v16, 0.0  ;;  %v431_v23 = vmax.f32 %v1601_v20, 0.0  ;;  %v462_v12 = vpack.c.bf16 %v442_v61, %v441_v57  ;;  %v444_v24 = vmax.f32 %v412_v9, 0.0 }
  0x2e   : > { %1384 = vmatmul.mubr.bf16.gmra.mrb[4].mxu0 %v1578_v4  ;;  %v413_v25 = vadd.f32 %v1531_v11, %v374_v0  ;;  %v414_v10 = vadd.f32 %v1531_v11, %v375_v1  ;;  %v1227_v26 = vunpack.c.l.bf16 %v1323_v17  ;;  %v1228_v27 = vunpack.c.h.bf16 %v1323_v17 }
  0x2f   : > { %1387 = vmatprep.mubr.bf16.mxu0 %v455_v6  ;;  %v432_v48 = vmax.f32 %v400_v8, 0.0  ;;  %v463_v7 = vpack.c.bf16 %v444_v24, %v443_v14  ;;  %v415_v28 = vadd.f32 %v1531_v11, %v376_v21  ;;  %v416_v29 = vadd.f32 %v1531_v11, %v377_v22 }
  0x30   : > { %v456_v16 = vpack.c.bf16 %v430_v15, %v429_v18  ;;  %v401_v20 = vadd.f32 %v1531_v11, %v1592_v13  ;;  %v402_v30 = vadd.f32 %v1531_v11, %v363_v19  ;;  %v445_v4 = vmax.f32 %v413_v25, 0.0 }
  0x31   : > { %v446_v31 = vmax.f32 %v414_v10, 0.0  ;;  %v378_v32 = vmul.f32 %v1227_v26, %v1523_v5  ;;  %v379_v33 = vmul.f32 %v1228_v27, %v1523_v5  ;;  %v457_v34 = vpack.c.bf16 %v432_v48, %v431_v23 }
  0x32   : > { %1400 = vmatmul.mubr.bf16.gmra.mrb[4].mxu1 %v462_v12  ;;  %v447_v35 = vmax.f32 %v415_v28, 0.0  ;;  %v448_v36 = vmax.f32 %v416_v29, 0.0  ;;  %v433_v37 = vmax.f32 %v401_v20, 0.0  ;;  %v434_v38 = vmax.f32 %v402_v30, 0.0 }
  0x33   : > { %1403 = vmatprep.mubr.bf16.mxu1 %v463_v7  ;;  %v464_v39 = vpack.c.bf16 %v446_v31, %v445_v4  ;;  %v417_v13 = vadd.f32 %v1531_v11, %v378_v32  ;;  %v418_v40 = vadd.f32 %v1531_v11, %v379_v33 }
  0x34   : > { %v465_v41 = vpack.c.bf16 %v448_v36, %v447_v35  ;;  %v458_v42 = vpack.c.bf16 %v434_v38, %v433_v37 }
  0x35   : > { %v449_v43 = vmax.f32 %v417_v13, 0.0  ;;  %v450_v44 = vmax.f32 %v418_v40, 0.0 }
  0x36   : > { %1388 = vmatmul.mubr.bf16.gmra.mrb[8].mxu0 %v456_v16 }
  0x37   : > { %1391 = vmatprep.mubr.bf16.mxu0 %v457_v34  ;;  %v466_v5 = vpack.c.bf16 %v450_v44, %v449_v43 }
  0x3a   : > { %1404 = vmatmul.mubr.bf16.gmra.mrb[8].mxu1 %v464_v39 }
  0x3b   : > { %1407 = vmatprep.mubr.bf16.mxu1 %v465_v41 }
  0x3e   : > { %1392 = vmatmul.mubr.bf16.gmra.mrb[12].mxu0 %v458_v42 }
  0x42   : > { %1408 = vmatmul.mubr.bf16.gmra.mrb[12].mxu1 %v466_v5 }
  0xf9   : > { %v1381_v45 = vpop.f32.mrb[0].mxu0 }
  0xfa   : > { %v565_v46 = vpop.f32.mrb[1].mxu0  ;;  %v892_v56 = vmul.f32 %v1381_v45, %v1381_v45 }
  0xfb   : > { %v1382_v11 = vpop.f32.mrb[2].mxu0  ;;  %v890_v50 = vmul.f32 %v565_v46, %v565_v46 }
  0xfc   : > { %v1237_v47 = vpack.c.bf16 %v1382_v11, %v1381_v45  ;;  %v568_v49 = vpop.f32.mrb[3].mxu0  ;;  %v893_v62 = vmul.f32 %v1382_v11, %v1382_v11 }
  0xfd   : > { %v1232_v51 = vpack.c.bf16 %v568_v49, %v565_v46  ;;  %v852_v52 = vadd.f32 %v568_v49, %v565_v46  ;;  %v891_v53 = vmul.f32 %v568_v49, %v568_v49  ;;  %v1658_v54 = vpop.f32.mrb[0].mxu1 }
  0xfe   : > { %1324 = vst [vmem:[%s1656_s29 + $0x8] sm:$0xff] %v1237_v47   ;;  %v1661_v55 = vpop.f32.mrb[1].mxu1 }
  0xff   : > { %1233 = vst [vmem:[%s1656_s29] sm:$0xff] %v1232_v51   ;;  %v853_v57 = vadd.f32 %v1381_v45, %v852_v52  ;;  %v922_v58 = vadd.f32 %v891_v53, %v890_v50  ;;  %v1664_v59 = vpop.f32.mrb[2].mxu1 }
 0x100   : > { %v1277_v60 = vpack.c.bf16 %v1664_v59, %v1658_v54  ;;  %v1668_v61 = vpop.f32.mrb[3].mxu1 }
 0x101   : > { %v923_v63 = vadd.f32 %v922_v58, %v892_v56  ;;  %v1385_v0 = vpop.f32.mrb[4].mxu0  ;;  %v854_v1 = vadd.f32 %v1382_v11, %v853_v57  ;;  %v1272_v2 = vpack.c.bf16 %v1668_v61, %v1661_v55 }
 0x102   : > { %v581_v3 = vpop.f32.mrb[5].mxu0  ;;  %1332 = vst [vmem:[%s1656_s29 + $0x48] sm:$0xff] %v1277_v60   ;;  %v896_v24 = vmul.f32 %v1385_v0, %v1385_v0 }
 0x103   : > { %v855_v6 = vadd.f32 %v854_v1, %v581_v3  ;;  %v894_v8 = vmul.f32 %v581_v3, %v581_v3  ;;  %v924_v9 = vadd.f32 %v923_v63, %v893_v62  ;;  %v1386_v14 = vpop.f32.mrb[6].mxu0  ;;  %1331 = vst [vmem:[%s1656_s29 + $0x40] sm:$0xff] %v1272_v2  }
 0x104   : > { %v1247_v17 = vpack.c.bf16 %v1386_v14, %v1385_v0  ;;  %v584_v18 = vpop.f32.mrb[7].mxu0  ;;  %v897_v7 = vmul.f32 %v1386_v14, %v1386_v14 }
 0x105   : > { %v925_v19 = vadd.f32 %v924_v9, %v894_v8  ;;  %v1242_v21 = vpack.c.bf16 %v584_v18, %v581_v3  ;;  %v856_v22 = vadd.f32 %v855_v6, %v584_v18  ;;  %v895_v15 = vmul.f32 %v584_v18, %v584_v18  ;;  %v1674_v23 = vpop.f32.mrb[4].mxu1 }
 0x106   : > { %1326 = vst [vmem:[%s1656_s29 + $0x18] sm:$0xff] %v1247_v17   ;;  %v1677_v12 = vpop.f32.mrb[5].mxu1  ;;  %v906_v17 = vmul.f32 %v1661_v55, %v1661_v55 }
 0x107   : > { %1325 = vst [vmem:[%s1656_s29 + $0x10] sm:$0xff] %v1242_v21   ;;  %v857_v25 = vadd.f32 %v1385_v0, %v856_v22  ;;  %v926_v10 = vadd.f32 %v925_v19, %v895_v15  ;;  %v1680_v26 = vpop.f32.mrb[6].mxu1 }
 0x108   : > { %v1287_v27 = vpack.c.bf16 %v1680_v26, %v1674_v23  ;;  %v1684_v48 = vpop.f32.mrb[7].mxu1 }
 0x109   : > { %v927_v28 = vadd.f32 %v926_v10, %v896_v24  ;;  %v1389_v29 = vpop.f32.mrb[8].mxu0  ;;  %v858_v16 = vadd.f32 %v1386_v14, %v857_v25  ;;  %v1282_v20 = vpack.c.bf16 %v1684_v48, %v1677_v12 }
 0x10a   : > { %v597_v30 = vpop.f32.mrb[9].mxu0  ;;  %1334 = vst [vmem:[%s1656_s29 + $0x58] sm:$0xff] %v1287_v27   ;;  %v900_v41 = vmul.f32 %v1389_v29, %v1389_v29 }
 0x10b   : > { %v859_v4 = vadd.f32 %v858_v16, %v597_v30  ;;  %v898_v31 = vmul.f32 %v597_v30, %v597_v30  ;;  %v928_v32 = vadd.f32 %v927_v28, %v897_v7  ;;  %v1390_v33 = vpop.f32.mrb[10].mxu0  ;;  %1333 = vst [vmem:[%s1656_s29 + $0x50] sm:$0xff] %v1282_v20   ;;  %v907_v28 = vmul.f32 %v1668_v61, %v1668_v61 }
 0x10c   : > { %v1257_v34 = vpack.c.bf16 %v1390_v33, %v1389_v29  ;;  %v600_v35 = vpop.f32.mrb[11].mxu0  ;;  %v901_v46 = vmul.f32 %v1390_v33, %v1390_v33 }
 0x10d   : > { %v929_v36 = vadd.f32 %v928_v32, %v898_v31  ;;  %v1252_v37 = vpack.c.bf16 %v600_v35, %v597_v30  ;;  %v860_v38 = vadd.f32 %v859_v4, %v600_v35  ;;  %v899_v39 = vmul.f32 %v600_v35, %v600_v35  ;;  %v1690_v13 = vpop.f32.mrb[8].mxu1 }
 0x10e   : > { %1328 = vst [vmem:[%s1656_s29 + $0x28] sm:$0xff] %v1257_v34   ;;  %v1693_v40 = vpop.f32.mrb[9].mxu1  ;;  %v909_v30 = vmul.f32 %v1664_v59, %v1664_v59  ;;  %v910_v31 = vmul.f32 %v1677_v12, %v1677_v12  ;;  %v911_v35 = vmul.f32 %v1684_v48, %v1684_v48 }
 0x10f   : > { %1327 = vst [vmem:[%s1656_s29 + $0x20] sm:$0xff] %v1252_v37   ;;  %v861_v42 = vadd.f32 %v1389_v29, %v860_v38  ;;  %v930_v43 = vadd.f32 %v929_v36, %v899_v39  ;;  %v1696_v44 = vpop.f32.mrb[10].mxu1  ;;  %v908_v29 = vmul.f32 %v1658_v54, %v1658_v54 }
 0x110   : > { %v1297_v5 = vpack.c.bf16 %v1696_v44, %v1690_v13  ;;  %v1700_v45 = vpop.f32.mrb[11].mxu1 }
 0x111   : > { %v931_v11 = vadd.f32 %v930_v43, %v900_v41  ;;  %v1393_v47 = vpop.f32.mrb[12].mxu0  ;;  %v862_v49 = vadd.f32 %v1390_v33, %v861_v42  ;;  %v1292_v50 = vpack.c.bf16 %v1700_v45, %v1693_v40 }
 0x112   : > { %v613_v51 = vpop.f32.mrb[13].mxu0  ;;  %1336 = vst [vmem:[%s1656_s29 + $0x68] sm:$0xff] %v1297_v5   ;;  %v904_v6 = vmul.f32 %v1393_v47, %v1393_v47  ;;  %v915_v5 = vmul.f32 %v1700_v45, %v1700_v45 }
 0x113   : > { %v863_v52 = vadd.f32 %v862_v49, %v613_v51  ;;  %v902_v53 = vmul.f32 %v613_v51, %v613_v51  ;;  %v932_v56 = vadd.f32 %v931_v11, %v901_v46  ;;  %v1394_v57 = vpop.f32.mrb[14].mxu0  ;;  %1335 = vst [vmem:[%s1656_s29 + $0x60] sm:$0xff] %v1292_v50  }
 0x114   : > { %v1267_v58 = vpack.c.bf16 %v1394_v57, %v1393_v47  ;;  %v616_v60 = vpop.f32.mrb[15].mxu0  ;;  %v905_v21 = vmul.f32 %v1394_v57, %v1394_v57 }
 0x115   : > { %v933_v62 = vadd.f32 %v932_v56, %v902_v53  ;;  %v1262_v63 = vpack.c.bf16 %v616_v60, %v613_v51  ;;  %v864_v0 = vadd.f32 %v863_v52, %v616_v60  ;;  %v903_v1 = vmul.f32 %v616_v60, %v616_v60  ;;  %v1409_v2 = vpop.f32.mrb[12].mxu1 }
 0x116   : > { %1330 = vst [vmem:[%s1656_s29 + $0x38] sm:$0xff] %v1267_v58   ;;  %v677_v3 = vpop.f32.mrb[13].mxu1  ;;  %v920_v56 = vmul.f32 %v1409_v2, %v1409_v2 }
 0x117   : > { %1329 = vst [vmem:[%s1656_s29 + $0x30] sm:$0xff] %v1262_v63   ;;  %v865_v8 = vadd.f32 %v1393_v47, %v864_v0  ;;  %v934_v9 = vadd.f32 %v933_v62, %v903_v1  ;;  %v1410_v14 = vpop.f32.mrb[14].mxu1  ;;  %v918_v49 = vmul.f32 %v677_v3, %v677_v3 }
 0x118   : > { %v1307_v18 = vpack.c.bf16 %v1410_v14, %v1409_v2  ;;  %v680_v19 = vpop.f32.mrb[15].mxu1  ;;  %v921_v60 = vmul.f32 %v1410_v14, %v1410_v14 }
 0x119   : > { %v935_v22 = vadd.f32 %v934_v9, %v904_v6  ;;  %v866_v15 = vadd.f32 %v1394_v57, %v865_v8  ;;  %v1302_v24 = vpack.c.bf16 %v680_v19, %v677_v3 }
 0x11a   : > { %1338 = vst [vmem:[%s1656_s29 + $0x78] sm:$0xff] %v1307_v18  }
 0x11b   : > { %v867_v25 = vadd.f32 %v866_v15, %v1661_v55  ;;  %v936_v10 = vadd.f32 %v935_v22, %v905_v21  ;;  %1337 = vst [vmem:[%s1656_s29 + $0x70] sm:$0xff] %v1302_v24  }
 0x11d   : > { %v937_v27 = vadd.f32 %v936_v10, %v906_v17  ;;  %v868_v7 = vadd.f32 %v867_v25, %v1668_v61 }
 0x11f   : > { %v869_v16 = vadd.f32 %v1658_v54, %v868_v7  ;;  %v938_v20 = vadd.f32 %v937_v27, %v907_v28  ;;  %v912_v54 = vmul.f32 %v1674_v23, %v1674_v23 }
 0x121   : > { %v939_v4 = vadd.f32 %v938_v20, %v908_v29  ;;  %v870_v55 = vadd.f32 %v1664_v59, %v869_v16  ;;  %v913_v59 = vmul.f32 %v1680_v26, %v1680_v26 }
 0x123   : > { %v871_v32 = vadd.f32 %v870_v55, %v1677_v12  ;;  %v940_v33 = vadd.f32 %v939_v4, %v909_v30  ;;  %v914_v12 = vmul.f32 %v1693_v40, %v1693_v40 }
 0x125   : > { %v941_v34 = vadd.f32 %v940_v33, %v910_v31  ;;  %v872_v61 = vadd.f32 %v871_v32, %v1684_v48 }
 0x127   : > { %v873_v36 = vadd.f32 %v1674_v23, %v872_v61  ;;  %v942_v37 = vadd.f32 %v941_v34, %v911_v35  ;;  %v916_v23 = vmul.f32 %v1690_v13, %v1690_v13 }
 0x129   : > { %v943_v38 = vadd.f32 %v942_v37, %v912_v54  ;;  %v874_v39 = vadd.f32 %v1680_v26, %v873_v36  ;;  %v917_v26 = vmul.f32 %v1696_v44, %v1696_v44 }
 0x12b   : > { %v875_v41 = vadd.f32 %v874_v39, %v1693_v40  ;;  %v944_v42 = vadd.f32 %v943_v38, %v913_v59 }
 0x12d   : > { %v945_v43 = vadd.f32 %v944_v42, %v914_v12  ;;  %v876_v48 = vadd.f32 %v875_v41, %v1700_v45  ;;  %v919_v45 = vmul.f32 %v680_v19, %v680_v19 }
 0x12f   : > { %v877_v46 = vadd.f32 %v1690_v13, %v876_v48  ;;  %v946_v11 = vadd.f32 %v945_v43, %v915_v5 }
 0x131   : > { %v947_v47 = vadd.f32 %v946_v11, %v916_v23  ;;  %v878_v40 = vadd.f32 %v1696_v44, %v877_v46 }
 0x133   : > { %v879_v50 = vadd.f32 %v878_v40, %v677_v3  ;;  %v948_v51 = vadd.f32 %v947_v47, %v917_v26 }
 0x135   : > { %v949_v52 = vadd.f32 %v948_v51, %v918_v49  ;;  %v880_v53 = vadd.f32 %v879_v50, %v680_v19 }
 0x137   : > { %v881_v57 = vadd.f32 %v1409_v2, %v880_v53  ;;  %v950_v58 = vadd.f32 %v949_v52, %v919_v45 }
 0x139   : > { %v882_v13 = vadd.f32 %v1410_v14, %v881_v57  ;;  %v951_v62 = vadd.f32 %v950_v58, %v920_v56 }
 0x13b   : > { %v883_v63 = vrot.slane %v882_v13, 4  ;;  %v952_v0 = vadd.f32 %v951_v62, %v921_v60 }
 0x13d   : > { %v884_v1 = vadd.f32 %v883_v63, %v882_v13  ;;  %v953_v6 = vrot.slane %v952_v0, 4 }
 0x13f   : > { %v885_v44 = vrot.slane %v884_v1, 2  ;;  %v954_v8 = vadd.f32 %v953_v6, %v952_v0 }
 0x141   : > { %v886_v3 = vadd.f32 %v885_v44, %v884_v1  ;;  %v955_v9 = vrot.slane %v954_v8, 2 }
 0x143   : > { %v887_v17 = vrot.slane %v886_v3, 1  ;;  %v956_v18 = vadd.f32 %v955_v9, %v954_v8 }
 0x145   : > { %v888_v2 = vadd.f32 %v887_v17, %v886_v3  ;;  %v957_v19 = vrot.slane %v956_v18, 1 }
 0x147   : > { %889 = vst [vmem:[%s271_s8] sm:$0xff] %v888_v2  ;;  %v958_v14 = vadd.f32 %v957_v19, %v956_v18 }
 0x149   : > { %959 = vst [vmem:[%s275_s11] sm:$0xff] %v958_v14 }
 0x14a PF: > { %s17_s21 = sadd.s32 1, %s1449_s21  }
 0x14b   : > { %p14_p5 = scmp.ge.s32.totalorder %s17_s21, 4  }
 0x14d   :  { %16 = sbr.rel (!%p14_p5) target bundleno = 1 (0x1), region = 90 }

// kernel: res_block_bottleneck.5
= control target key start
LH: loop header
LB: loop body
LE: loop exit
PB: predicated region body
PF: predicated region fallthrough
CT: control target
= control target key end

     0   :  { %s7085_s21 = smov 0   ;;  %s8827_s0 = inlined_call_operand.vmem [shape: bf16[2,16,16,128], index: 0, kind: input, shape index: {}]   ;;  %s8828_s1 = inlined_call_operand.vmem [shape: f32[1,128], index: 1, kind: input, shape index: {}]   ;;  %s8829_s2 = inlined_call_operand.vmem [shape: f32[1,128], index: 2, kind: input, shape index: {}]   ;;  %s8830_s3 = inlined_call_operand.vmem [shape: bf16[1152,128], index: 3, kind: input, shape index: {}]   ;;  %s8831_s4 = inlined_call_operand.vmem [shape: bf16[2,16,16,128], index: 4, kind: output, shape index: {0}]   ;;  %s8832_s5 = inlined_call_operand.vmem [shape: f32[2,8,128], index: 5, kind: output, shape index: {1}]   ;;  %s8833_s6 = inlined_call_operand.vmem [shape: f32[2,8,128], index: 6, kind: output, shape index: {2}]  }
   0x1 LB: > { %s5788_s22 = sadd.s32 4294967295, %s7047_s21   ;;  %p5792_p0 = scmp.ge.s32.totalorder %s7047_s21, 1  ;;  %s7047_s21 = sphi %s7085_s21, %s17_s21  }
   0x2   : > { %p217_p1 = scmp.lt.s32.totalorder %s7047_s21, 3 }
   0x4   : > { %p218_p2 = pnand %p5792_p0, %p217_p1 }
   0x6   : > { %221 = sbr.rel (%p218_p2) target bundleno = 672 (0x2a0), region = 36 }
   0xd   : > { %v6916_v0 = vld [vmem:[%s8830_s3 + $0x40] sm:$0xff]   ;;  %v7049_v2 = vmov 0   ;;  %v6918_v3 = vld [vmem:[%s8830_s3 + $0x48] sm:$0xff]   ;;  %v6920_v5 = vld [vmem:[%s8830_s3 + $0x50] sm:$0xff]   ;;  %p255_p3 = scmp.lt.s32.totalorder %s5788_s22, 1  ;;  %vm922_vm3 = vcmask 1043456  }
   0xe   : > { %v6917_v1 = vld [vmem:[%s8830_s3] sm:$0xff]   ;;  %448 = vst [vmem:[#allocation2] sm:$0xf] %v7049_v2  ;;  %449 = vst [vmem:[#allocation2 + $0x4] sm:$0xf] %v7049_v2  ;;  %6371 = vmatprep.subr.bf16.mxu0 %v6916_v0  ;;  %6891 = vmatprep.subr.bf16.mxu1 %v6916_v0  ;;  %v6919_v4 = vld [vmem:[%s8830_s3 + $0x8] sm:$0xff]  }
   0xf   : > { %450 = vst [vmem:[#allocation2 + $0x8] sm:$0x1] %v7049_v2  ;;  %451 = vst [vmem:[#allocation2 + $0xc] sm:$0xf] %v7049_v2  ;;  %6372 = vmatpush3.bf16.msra.mxu0 %v6917_v1  ;;  %6899 = vmatpush3.bf16.msra.mxu1 %v6917_v1  ;;  %v6921_v6 = vld [vmem:[%s8830_s3 + $0x10] sm:$0xff]   ;;  %v6922_v7 = vld [vmem:[%s8830_s3 + $0x58] sm:$0xff]  }
  0x10   : > { %452 = vst [vmem:[#allocation2 + $0x10] sm:$0xf] %v7049_v2  ;;  %453 = vst [vmem:[#allocation2 + $0x14] sm:$0x1] %v7049_v2  ;;  %6373 = vmatprep.subr.bf16.mxu0 %v6918_v3  ;;  %6892 = vmatprep.subr.bf16.mxu1 %v6918_v3  ;;  %s8869_s22 = smov (!%p255_p3, %s5788_s22), 1  ;;  %v6923_v8 = vld [vmem:[%s8830_s3 + $0x18] sm:$0xff]  }
  0x11   : > { %454 = vst [vmem:[#allocation2 + $0x18] sm:$0xf] %v7049_v2  ;;  %455 = vst [vmem:[#allocation2 + $0x1c] sm:$0xf] %v7049_v2  ;;  %v6924_v9 = vld [vmem:[%s8830_s3 + $0x60] sm:$0xff]   ;;  %s6131_s17 = sshll.u32 %s8869_s22, 7 }
  0x12   : > { %456 = vst [vmem:[#allocation2 + $0x20] sm:$0x1] %v7049_v2  ;;  %457 = vst [vmem:[#allocation2 + $0x24] sm:$0xf] %v7049_v2  ;;  %v6925_v10 = vld [vmem:[%s8830_s3 + $0x20] sm:$0xff]   ;;  %v6926_v11 = vld [vmem:[%s8830_s3 + $0x68] sm:$0xff]   ;;  %s7138_s26 = scalar_lea.vmem %s8827_s0, %s6131_s17  ;;  %s8758_s23 = scalar_lea.vmem %s8831_s4, %s6131_s17 }
  0x13   : > { %458 = vst [vmem:[#allocation2 + $0x28] sm:$0xf] %v7049_v2  ;;  %459 = vst [vmem:[#allocation2 + $0x2c] sm:$0x1] %v7049_v2  ;;  %6374 = vmatpush3.bf16.msra.mxu0 %v6919_v4  ;;  %6900 = vmatpush3.bf16.msra.mxu1 %v6919_v4  ;;  %vm1231_vm0 = vsmask.f32 3328 }
  0x14   : > { %460 = vst [vmem:[#allocation2 + $0x30] sm:$0xf] %v7049_v2  ;;  %461 = vst [vmem:[#allocation2 + $0x34] sm:$0xf] %v7049_v2  ;;  %6375 = vmatprep.subr.bf16.mxu0 %v6920_v5  ;;  %6893 = vmatprep.subr.bf16.mxu1 %v6920_v5  ;;  %vm1232_vm1 = vsmask.f32 7440 }
  0x15   : > { %462 = vst [vmem:[#allocation2 + $0x38] sm:$0x1] %v7049_v2  ;;  %463 = vst [vmem:[#allocation2 + $0x3c] sm:$0xf] %v7049_v2  ;;  %v1183_v12 = vld [vmem:[#allocation2] sm:$0xf] }
  0x16   : > { %464 = vst [vmem:[#allocation2 + $0x40] sm:$0xf] %v7049_v2  ;;  %465 = vst [vmem:[#allocation2 + $0x44] sm:$0x1] %v7049_v2  ;;  %v1184_v13 = vld [vmem:[#allocation2 + $0x4] sm:$0xf] }
  0x17   : > { %466 = vst [vmem:[#allocation2 + $0x48] sm:$0xf] %v7049_v2  ;;  %467 = vst [vmem:[#allocation2 + $0x4c] sm:$0xf] %v7049_v2  ;;  %6376 = vmatpush3.bf16.msra.mxu0 %v6921_v6  ;;  %6901 = vmatpush3.bf16.msra.mxu1 %v6921_v6  ;;  %v1185_v14 = vld [vmem:[#allocation2 + $0x8] sm:$0x1] }
  0x18   : > { %468 = vst [vmem:[#allocation2 + $0x50] sm:$0x1] %v7049_v2  ;;  %469 = vst [vmem:[#allocation2 + $0x54] sm:$0xf] %v7049_v2  ;;  %6377 = vmatprep.subr.bf16.mxu0 %v6922_v7  ;;  %6894 = vmatprep.subr.bf16.mxu1 %v6922_v7  ;;  %v1235_v15 = vshrl.u32 %v1183_v12, 16  ;;  %v1238_v16 = vshll.u32 %v1183_v12, 16 }
  0x19   : > { %470 = vst [vmem:[#allocation2 + $0x58] sm:$0xf] %v7049_v2  ;;  %471 = vst [vmem:[#allocation2 + $0x5c] sm:$0x1] %v7049_v2  ;;  %v6927_v17 = vld [vmem:[%s8830_s3 + $0x28] sm:$0xff]   ;;  %v1244_v18 = vshll.u32 %v1184_v13, 16 }
  0x1a   : > { %472 = vst [vmem:[#allocation2 + $0x60] sm:$0xf] %v7049_v2  ;;  %473 = vst [vmem:[#allocation2 + $0x64] sm:$0xf] %v7049_v2  ;;  %v1248_v19 = vshrl.u32 %v1184_v13, 16  ;;  %v1254_v20 = vshll.u32 %v1185_v14, 16 }
  0x1b   : > { %474 = vst [vmem:[#allocation2 + $0x68] sm:$0x1] %v7049_v2  ;;  %475 = vst [vmem:[#allocation2 + $0x6c] sm:$0xf] %v7049_v2  ;;  %6378 = vmatpush3.bf16.msra.mxu0 %v6923_v8  ;;  %6902 = vmatpush3.bf16.msra.mxu1 %v6923_v8  ;;  %v1237_v21 = vrot.slane %v1235_v15, 4  ;;  %v1240_v22 = vrot.slane %v1238_v16, 5 }
  0x1c   : > { %476 = vst [vmem:[#allocation2 + $0x70] sm:$0xf] %v7049_v2  ;;  %477 = vst [vmem:[#allocation2 + $0x74] sm:$0x1] %v7049_v2  ;;  %6379 = vmatprep.subr.bf16.mxu0 %v6924_v9  ;;  %6895 = vmatprep.subr.bf16.mxu1 %v6924_v9  ;;  %v6198_v23 = vld [vmem:[%s7138_s26] sm:$0xff]   ;;  %v6351_v24 = vld [vmem:[%s7138_s26 + $0x58] sm:$0xff]  }
  0x1d   : > { %478 = vst [vmem:[#allocation2 + $0x78] sm:$0xf] %v7049_v2  ;;  %479 = vst [vmem:[#allocation2 + $0x7c] sm:$0xf] %v7049_v2  ;;  %v6928_v25 = vld [vmem:[%s8830_s3 + $0x70] sm:$0xff]   ;;  %v1246_v26 = vrot.slane %v1244_v18, 5  ;;  %v6199_v28 = vunpack.c.l.bf16 %v6198_v23  ;;  %v1241_v30 = vor.u32 %v1240_v22, %v1237_v21  ;;  %v6200_v31 = vunpack.c.h.bf16 %v6198_v23 }
  0x1e   : > { %480 = vst [vmem:[#allocation2 + $0x80] sm:$0x1] %v7049_v2  ;;  %481 = vst [vmem:[#allocation2 + $0x84] sm:$0xf] %v7049_v2  ;;  %v1250_v27 = vrot.slane %v1248_v19, 4  ;;  %v1256_v35 = vrot.slane %v1254_v20, 5  ;;  %v6243_v37 = vunpack.c.l.bf16 %v6351_v24  ;;  %v6244_v41 = vunpack.c.h.bf16 %v6351_v24 }
  0x1f   : > { %482 = vst [vmem:[#allocation2 + $0x88] sm:$0xf] %v7049_v2  ;;  %483 = vst [vmem:[#allocation2 + $0x8c] sm:$0x1] %v7049_v2  ;;  %6380 = vmatpush3.bf16.msra.mxu0 %v6925_v10  ;;  %6903 = vmatpush3.bf16.msra.mxu1 %v6925_v10  ;;  %v7151_v29 = vld [vmem:[%s8828_s1] ss:$0 sm:$0xff] }
  0x20   : > { %484 = vst [vmem:[#allocation2 + $0x90] sm:$0xf] %v7049_v2  ;;  %485 = vst [vmem:[#allocation2 + $0x94] sm:$0xf] %v7049_v2  ;;  %6381 = vmatprep.subr.bf16.mxu0 %v6926_v11  ;;  %6896 = vmatprep.subr.bf16.mxu1 %v6926_v11  ;;  %v7156_v32 = vld [vmem:[%s8829_s2] ss:$0 sm:$0xff]  ;;  %v1251_v34 = vor.u32 %v1250_v27, %v1246_v26  ;;  %v345_v36 = vmul.f32 %v6199_v28, %v7151_v29 }
  0x21   : > { %486 = vst [vmem:[#allocation2 + $0x98] sm:$0x1] %v7049_v2  ;;  %487 = vst [vmem:[#allocation2 + $0x9c] sm:$0xf] %v7049_v2  ;;  %v6929_v38 = vld [vmem:[%s8830_s3 + $0x30] sm:$0xff]   ;;  %v1242_v39 = vrot.slane %v1241_v30, 4  ;;  %v346_v40 = vmul.f32 %v6200_v31, %v7151_v29  ;;  %v367_v45 = vmul.f32 %v6243_v37, %v7151_v29  ;;  %v368_v48 = vmul.f32 %v6244_v41, %v7151_v29 }
  0x22   : > { %488 = vst [vmem:[#allocation2 + $0xa0] sm:$0xf] %v7049_v2  ;;  %489 = vst [vmem:[#allocation2 + $0xa4] sm:$0x1] %v7049_v2  ;;  %vm598_vm4 = vsmask.f32 256  ;;  %v384_v44 = vadd.f32 %v7156_v32, %v345_v36 }
  0x23   : > { %490 = vst [vmem:[#allocation2 + $0xa8] sm:$0xf] %v7049_v2  ;;  %491 = vst [vmem:[#allocation2 + $0xac] sm:$0xf] %v7049_v2  ;;  %6382 = vmatpush3.bf16.msra.mxu0 %v6927_v17  ;;  %6904 = vmatpush3.bf16.msra.mxu1 %v6927_v17  ;;  %v6930_v42 = vld [vmem:[%s8830_s3 + $0x78] sm:$0xff]   ;;  %v1252_v43 = vrot.slane %v1251_v34, 4  ;;  %v385_v47 = vadd.f32 %v7156_v32, %v346_v40  ;;  %v406_v52 = vadd.f32 %v7156_v32, %v367_v45 }
  0x24   : > { %492 = vst [vmem:[#allocation2 + $0xb0] sm:$0x1] %v7049_v2  ;;  %493 = vst [vmem:[#allocation2 + $0xb4] sm:$0xf] %v7049_v2  ;;  %6383 = vmatprep.subr.bf16.mxu0 %v6928_v25  ;;  %6897 = vmatprep.subr.bf16.mxu1 %v6928_v25  ;;  %vm599_vm5 = vsmask.f32 4368  ;;  %v407_v55 = vadd.f32 %v7156_v32, %v368_v48 }
  0x25   : > { %494 = vst [vmem:[#allocation2 + $0xb8] sm:$0xf] %v7049_v2  ;;  %495 = vst [vmem:[#allocation2 + $0xbc] sm:$0x1] %v7049_v2  ;;  %v6931_v49 = vld [vmem:[%s8830_s3 + $0x38] sm:$0xff]   ;;  %v416_v51 = vmax.f32 %v384_v44, 0.0 }
  0x26   : > { %496 = vst [vmem:[#allocation2 + $0xc0] sm:$0xf] %v7049_v2  ;;  %497 = vst [vmem:[#allocation2 + $0xc4] sm:$0xf] %v7049_v2  ;;  %v417_v54 = vmax.f32 %v385_v47, 0.0  ;;  %v6933_v56 = vld [vmem:[%s8830_s3 + $0xc0] sm:$0xff]  }
  0x27   : > { %498 = vst [vmem:[#allocation2 + $0xc8] sm:$0x1] %v7049_v2  ;;  %499 = vst [vmem:[#allocation2 + $0xcc] sm:$0xf] %v7049_v2  ;;  %6384 = vmatpush3.bf16.msra.mxu0 %v6929_v38  ;;  %6905 = vmatpush3.bf16.msra.mxu1 %v6929_v38  ;;  %v6133_v57 = vpack.c.bf16 %v416_v51, %v416_v51  ;;  %v438_v58 = vmax.f32 %v406_v52, 0.0  ;;  %v6934_v59 = vld [vmem:[%s8830_s3 + $0x140] sm:$0xff]  }
  0x28   : > { %500 = vst [vmem:[#allocation2 + $0xd0] sm:$0xf] %v7049_v2  ;;  %501 = vst [vmem:[#allocation2 + $0xd4] sm:$0x1] %v7049_v2  ;;  %6385 = vmatprep.subr.bf16.mxu0 %v6930_v42  ;;  %6898 = vmatprep.subr.bf16.mxu1 %v6930_v42  ;;  %v6134_v60 = vpack.c.bf16 %v417_v54, %v417_v54  ;;  %vm929_vm6 = vcmask 1040384   ;;  %v439_v61 = vmax.f32 %v407_v55, 0.0 }
  0x29   : > { %vm7160_vm2 = vmor %vm1231_vm0, %vm1232_vm1  ;;  %v6932_v62 = vld [vmem:[#allocation2] sm:$0xff]   ;;  %v602_v63 = vshrl.u32 %v6133_v57, 16  ;;  %v605_v0 = vshll.u32 %v6133_v57, 16  ;;  %vm923_vm7 = vsmask.f32 7938  ;;  %v6155_v1 = vpack.c.bf16 %v438_v58, %v438_v58  ;;  %v6341_v2 = vld [vmem:[%s7138_s26 + $0x8] sm:$0xff]  }
  0x2a   : > { %v1247_v46 = vsel %vm7160_vm2, %v1242_v39, %v1246_v26  ;;  %v1257_v50 = vsel %vm7160_vm2, %v1252_v43, %v1256_v35  ;;  %v610_v3 = vshrl.u32 %v6134_v60, 16  ;;  %v613_v4 = vshll.u32 %v6134_v60, 16  ;;  %v925_v5 = vld [vmem:[#allocation2 + $0xc] sm:$0xf]  ;;  %v6938_v7 = vld [vmem:[%s8830_s3 + $0x100] sm:$0xff]   ;;  %vm7197_vm8 = vmor %vm598_vm4, %vm599_vm5  ;;  %s5797_s17 = sshll.u32 %s8869_s22, 3 }
  0x2b   : > { %v5849_v53 = vcombine.low %v1247_v46, %v1257_v50  ;;  %6386 = vmatpush3.bf16.msra.mxu0 %v6931_v49  ;;  %6906 = vmatpush3.bf16.msra.mxu1 %v6931_v49  ;;  %v6156_v6 = vpack.c.bf16 %v439_v61, %v439_v61  ;;  %v6203_v8 = vunpack.c.l.bf16 %v6341_v2  ;;  %v604_v10 = vrot.slane %v602_v63, 7  ;;  %v931_v11 = vld [vmem:[#allocation2 + $0x14] sm:$0x1]  ;;  %vm7203_vm9 = vmand %vm922_vm3, %vm923_vm7  ;;  %v1004_v19 = vld [vmem:[#allocation2 + $0x90] sm:$0xf]  ;;  %s268_s25 = scalar_lea.vmem %s8832_s5, %s5797_s17  ;;  %s272_s29 = scalar_lea.vmem %s8833_s6, %s5797_s17 }
  0x2c   : > { %v789_v12 = vshrl.u32 %v6155_v1, 16  ;;  %v792_v13 = vshll.u32 %v6155_v1, 16  ;;  %6483 = vmatprep.subr.bf16.mxu1 %v6933_v56  ;;  %6595 = vmatprep.subr.bf16.mxu0 %v6934_v59  ;;  %v6204_v14 = vunpack.c.h.bf16 %v6341_v2  ;;  %v612_v15 = vrot.slane %v610_v3, 7  ;;  %v6352_v21 = vld [vmem:[%s7138_s26 + $0x60] sm:$0xff]   ;;  %vm7211_vm10 = vmand %vm929_vm6, %vm598_vm4  ;;  %v1008_v26 = vld [vmem:[#allocation2 + $0x98] sm:$0x1] }
  0x2d   : > { %4630 = vmatprep.mubr.bf16.mxu0 %v5849_v53  ;;  %v797_v17 = vshrl.u32 %v6156_v6, 16  ;;  %v800_v18 = vshll.u32 %v6156_v6, 16  ;;  %v347_v20 = vmul.f32 %v6203_v8, %v7151_v29  ;;  %v607_v22 = vor.u32 %v605_v0, %v604_v10  ;;  %v6946_v43 = vld [vmem:[%s8830_s3 + $0x148] sm:$0xff]   ;;  %v6342_v52 = vld [vmem:[%s7138_s26 + $0x10] sm:$0xff]  }
  0x2e   : > { %4631 = vmatmul.mubr.bf16.vlgmr.msra.gmra.mrb[0].mxu0 %v6932_v62  ;;  %v608_v23 = vrot.slane %v604_v10, 4  ;;  %v791_v25 = vrot.slane %v789_v12, 7  ;;  %v348_v27 = vmul.f32 %v6204_v14, %v7151_v29  ;;  %v615_v28 = vor.u32 %v613_v4, %v612_v15  ;;  %v6948_v48 = vld [vmem:[%s8830_s3 + $0x108] sm:$0xff]  }
  0x2f   : > { %v617_v30 = vrot.slane %v612_v15, 4  ;;  %v799_v31 = vrot.slane %v797_v17, 7  ;;  %6596 = vmatpush3.bf16.msra.mxu0 %v6938_v7  ;;  %v386_v34 = vadd.f32 %v7156_v32, %v347_v20  ;;  %v926_v35 = vsel %vm7203_vm9, %v607_v22, %v925_v5  ;;  %v6353_v57 = vld [vmem:[%s7138_s26 + $0x68] sm:$0xff]  }
  0x30   : > { %v794_v36 = vor.u32 %v792_v13, %v791_v25  ;;  %v795_v37 = vrot.slane %v791_v25, 4  ;;  %v387_v38 = vadd.f32 %v7156_v32, %v348_v27  ;;  %v616_v39 = vsel %vm7197_vm8, %v608_v23, %v615_v28  ;;  %927 = vst [vmem:[#allocation2 + $0xc] sm:$0xf] %v926_v35  ;;  %6597 = vmatprep.subr.bf16.mxu0 %v6946_v43  ;;  %v938_v43 = vld [vmem:[#allocation2 + $0x20] sm:$0x1] }
  0x31   : > { %v932_v40 = vsel %vm7211_vm10, %v617_v30, %v931_v11  ;;  %v802_v41 = vor.u32 %v800_v18, %v799_v31  ;;  %v804_v42 = vrot.slane %v799_v31, 4  ;;  %928 = vst [vmem:[#allocation2 + $0x10] sm:$0xf] %v616_v39  ;;  %v418_v45 = vmax.f32 %v386_v34, 0.0 }
  0x32   : > { %933 = vst [vmem:[#allocation2 + $0x14] sm:$0x1] %v932_v40  ;;  %v1005_v44 = vsel %vm7203_vm9, %v794_v36, %v1004_v19  ;;  %v419_v46 = vmax.f32 %v387_v38, 0.0  ;;  %v6247_v47 = vunpack.c.l.bf16 %v6352_v21  ;;  %v6248_v51 = vunpack.c.h.bf16 %v6352_v21  ;;  %v934_v38 = vld [vmem:[#allocation2 + $0x18] sm:$0xf] }
  0x33   : > { %v803_v49 = vsel %vm7197_vm8, %v795_v37, %v802_v41  ;;  %1006 = vst [vmem:[#allocation2 + $0x90] sm:$0xf] %v1005_v44  ;;  %v1009_v50 = vsel %vm7211_vm10, %v804_v42, %v1008_v26  ;;  %v6135_v53 = vpack.c.bf16 %v418_v45, %v418_v45  ;;  %6598 = vmatpush3.bf16.msra.mxu0 %v6948_v48  ;;  %v6207_v56 = vunpack.c.l.bf16 %v6342_v52 }
  0x34   : > { %1007 = vst [vmem:[#allocation2 + $0x94] sm:$0xf] %v803_v49  ;;  %1010 = vst [vmem:[#allocation2 + $0x98] sm:$0x1] %v1009_v50  ;;  %v6136_v54 = vpack.c.bf16 %v419_v46, %v419_v46  ;;  %v369_v55 = vmul.f32 %v6247_v47, %v7151_v29  ;;  %v370_v58 = vmul.f32 %v6248_v51, %v7151_v29  ;;  %v6208_v59 = vunpack.c.h.bf16 %v6342_v52 }
  0x35   : > { %v6251_v60 = vunpack.c.l.bf16 %v6353_v57  ;;  %v6252_v61 = vunpack.c.h.bf16 %v6353_v57  ;;  %v619_v62 = vshrl.u32 %v6135_v53, 16  ;;  %v622_v63 = vshll.u32 %v6135_v53, 16 }
  0x36   : > { %v627_v0 = vshrl.u32 %v6136_v54, 16  ;;  %v630_v1 = vshll.u32 %v6136_v54, 16  ;;  %v7241_v2 = vadd.f32 %v7156_v32, %v369_v55  ;;  %v7244_v3 = vadd.f32 %v7156_v32, %v370_v58 }
  0x37   : > { %v349_v4 = vmul.f32 %v6207_v56, %v7151_v29  ;;  %v350_v5 = vmul.f32 %v6208_v59, %v7151_v29  ;;  %v1186_v6 = vld [vmem:[#allocation2 + $0xc] sm:$0xf]  ;;  %v621_v7 = vrot.slane %v619_v62, 7  ;;  %v371_v10 = vmul.f32 %v6251_v60, %v7151_v29 }
  0x38   : > { %v629_v8 = vrot.slane %v627_v0, 7  ;;  %v372_v11 = vmul.f32 %v6252_v61, %v7151_v29  ;;  %v1187_v12 = vld [vmem:[#allocation2 + $0x10] sm:$0xf]  ;;  %v1259_v14 = vshrl.u32 %v1186_v6, 16  ;;  %v1262_v15 = vshll.u32 %v1186_v6, 16 }
  0x39   : > { %v1188_v13 = vld [vmem:[#allocation2 + $0x14] sm:$0x1]  ;;  %v7251_v17 = vadd.f32 %v7156_v32, %v349_v4  ;;  %v7254_v18 = vadd.f32 %v7156_v32, %v350_v5  ;;  %v1268_v19 = vshll.u32 %v1187_v12, 16  ;;  %v1272_v20 = vshrl.u32 %v1187_v12, 16  ;;  %v6935_v61 = vld [vmem:[#allocation2 + $0xc] sm:$0xff]  }
  0x3a   : > { %v1278_v21 = vshll.u32 %v1188_v13, 16  ;;  %v1219_v22 = vld [vmem:[#allocation2 + $0x90] sm:$0xf]  ;;  %v624_v23 = vor.u32 %v622_v63, %v621_v7  ;;  %v1261_v25 = vrot.slane %v1259_v14, 4  ;;  %v1264_v26 = vrot.slane %v1262_v15, 5 }
  0x3b   : > { %v1220_v27 = vld [vmem:[#allocation2 + $0x94] sm:$0xf]  ;;  %v1221_v28 = vld [vmem:[#allocation2 + $0x98] sm:$0x1]  ;;  %v632_v30 = vor.u32 %v630_v1, %v629_v8  ;;  %v7257_v31 = vadd.f32 %v7156_v32, %v371_v10  ;;  %v1270_v34 = vrot.slane %v1268_v19, 5  ;;  %v1274_v35 = vrot.slane %v1272_v20, 4 }
  0x3c   : > { %v1280_v36 = vrot.slane %v1278_v21, 5  ;;  %v1523_v37 = vshrl.u32 %v1219_v22, 16  ;;  %v1265_v39 = vor.u32 %v1264_v26, %v1261_v25  ;;  %v1526_v40 = vshll.u32 %v1219_v22, 16  ;;  %v6956_v14 = vld [vmem:[%s8830_s3 + $0x150] sm:$0xff]   ;;  %v6939_v26 = vld [vmem:[%s8830_s3 + $0xc8] sm:$0xff]  }
  0x3d   : > { %v1532_v41 = vshll.u32 %v1220_v27, 16  ;;  %v1536_v42 = vshrl.u32 %v1220_v27, 16  ;;  %v1275_v44 = vor.u32 %v1274_v35, %v1270_v34  ;;  %v1542_v46 = vshll.u32 %v1221_v28, 16  ;;  %v7293_v20 = vld [vmem:[%s7138_s26 + $0x70] sm:$0xff]   ;;  %6599 = vmatprep.subr.bf16.mxu0 %v6956_v14  ;;  %v1011_v28 = vld [vmem:[#allocation2 + $0x9c] sm:$0xf] }
  0x3e   : > { %v1525_v45 = vrot.slane %v1523_v37, 4  ;;  %v625_v47 = vrot.slane %v621_v7, 4  ;;  %v1266_v48 = vrot.slane %v1265_v39, 4  ;;  %v1528_v49 = vrot.slane %v1526_v40, 5  ;;  %v6936_v7 = vld [vmem:[#allocation2 + $0x90] sm:$0xff]  }
  0x3f   : > { %v1534_v50 = vrot.slane %v1532_v41, 5  ;;  %v1538_v51 = vrot.slane %v1536_v42, 4  ;;  %v1276_v52 = vrot.slane %v1275_v44, 4  ;;  %v1544_v53 = vrot.slane %v1542_v46, 5  ;;  %v6960_v25 = vld [vmem:[%s8830_s3 + $0x110] sm:$0xff]   ;;  %v6940_v46 = vld [vmem:[%s8830_s3 + $0x88] sm:$0xff]  }
  0x40   : > { %v633_v54 = vsel %vm7197_vm8, %v625_v47, %v632_v30  ;;  %v634_v55 = vrot.slane %v629_v8, 4  ;;  %v1271_v56 = vsel %vm7160_vm2, %v1266_v48, %v1270_v34  ;;  %v1529_v57 = vor.u32 %v1528_v49, %v1525_v45  ;;  %v6937_v8 = vld [vmem:[%s8830_s3 + $0x80] sm:$0xff]   ;;  %6600 = vmatpush3.bf16.msra.mxu0 %v6960_v25  ;;  %v945_v14 = vld [vmem:[#allocation2 + $0x2c] sm:$0x1] }
  0x41   : > { %v1539_v58 = vor.u32 %v1538_v51, %v1534_v50  ;;  %v935_v59 = vsel %vm7203_vm9, %v624_v23, %v934_v38  ;;  %937 = vst [vmem:[#allocation2 + $0x1c] sm:$0xf] %v633_v54  ;;  %v1281_v60 = vsel %vm7160_vm2, %v1276_v52, %v1280_v36  ;;  %v440_v63 = vmax.f32 %v7241_v2, 0.0 }
  0x42   : > { %936 = vst [vmem:[#allocation2 + $0x18] sm:$0xf] %v935_v59  ;;  %v939_v62 = vsel %vm7211_vm10, %v634_v55, %v938_v43  ;;  %v441_v0 = vmax.f32 %v7244_v3, 0.0  ;;  %v5850_v1 = vcombine.low %v1271_v56, %v1281_v60  ;;  %v1530_v4 = vrot.slane %v1529_v57, 4  ;;  %v7280_v3 = vld [vmem:[%s7138_s26 + $0x18] sm:$0xff]   ;;  %v6941_v56 = vld [vmem:[%s8830_s3 + $0xd0] sm:$0xff]  }
  0x43   : > { %v1540_v5 = vrot.slane %v1539_v58, 4  ;;  %940 = vst [vmem:[#allocation2 + $0x20] sm:$0x1] %v939_v62  ;;  %v420_v6 = vmax.f32 %v7251_v17, 0.0  ;;  %v6157_v10 = vpack.c.bf16 %v440_v63, %v440_v63  ;;  %v421_v13 = vmax.f32 %v7254_v18, 0.0 }
  0x44   : > { %v6158_v12 = vpack.c.bf16 %v441_v0, %v441_v0  ;;  %v7277_v2 = vadd.f32 %v7156_v32, %v372_v11  ;;  %4638 = vmatprep.mubr.bf16.mxu0 %v5850_v1  ;;  %v1535_v15 = vsel %vm7160_vm2, %v1530_v4, %v1534_v50  ;;  %v442_v18 = vmax.f32 %v7257_v31, 0.0  ;;  %v1015_v43 = vld [vmem:[#allocation2 + $0xa4] sm:$0x1] }
  0x45   : > { %v1545_v17 = vsel %vm7160_vm2, %v1540_v5, %v1544_v53  ;;  %v7289_v19 = vpack.c.bf16 %v420_v6, %v420_v6  ;;  %4639 = vmatmul.mubr.bf16.gmra.mrb[4].mxu0 %v6935_v61  ;;  %v806_v21 = vshrl.u32 %v6157_v10, 16  ;;  %v809_v22 = vshll.u32 %v6157_v10, 16  ;;  %v6944_v61 = vld [vmem:[%s8830_s3 + $0x90] sm:$0xff]   ;;  %v941_v62 = vld [vmem:[#allocation2 + $0x24] sm:$0xf] }
  0x46   : > { %v5861_v11 = vcombine.low %v1535_v15, %v1545_v17  ;;  %v814_v23 = vshrl.u32 %v6158_v12, 16  ;;  %v817_v27 = vshll.u32 %v6158_v12, 16  ;;  %v7301_v30 = vpack.c.bf16 %v421_v13, %v421_v13  ;;  %v6945_v12 = vld [vmem:[%s8830_s3 + $0xd8] sm:$0xff]  }
  0x47   : > { %v636_v31 = vshrl.u32 %v7289_v19, 16  ;;  %v639_v34 = vshll.u32 %v7289_v19, 16  ;;  %v808_v36 = vrot.slane %v806_v21, 7  ;;  %v7305_v38 = vpack.c.bf16 %v442_v18, %v442_v18  ;;  %v6947_v19 = vld [vmem:[%s8830_s3 + $0x98] sm:$0xff]  }
  0x48   : > { %4726 = vmatprep.mubr.bf16.mxu1 %v5861_v11  ;;  %v1190_v35 = vld [vmem:[#allocation2 + $0x1c] sm:$0xf]  ;;  %v816_v37 = vrot.slane %v814_v23, 7  ;;  %v6211_v39 = vunpack.c.l.bf16 %v7280_v3  ;;  %v6212_v44 = vunpack.c.h.bf16 %v7280_v3  ;;  %v6255_v45 = vunpack.c.l.bf16 %v7293_v20 }
  0x49   : > { %4727 = vmatmul.mubr.bf16.vlgmr.msra.gmra.mrb[0].mxu1 %v6936_v7  ;;  %v1189_v40 = vld [vmem:[#allocation2 + $0x18] sm:$0xf]  ;;  %v1292_v41 = vshll.u32 %v1190_v35, 16  ;;  %v1296_v42 = vshrl.u32 %v1190_v35, 16  ;;  %v811_v50 = vor.u32 %v809_v22, %v808_v36  ;;  %v812_v51 = vrot.slane %v808_v36, 4 }
  0x4a   : > { %6484 = vmatpush3.bf16.msra.mxu1 %v6937_v8  ;;  %v1191_v47 = vld [vmem:[#allocation2 + $0x20] sm:$0x1]  ;;  %v1283_v48 = vshrl.u32 %v1189_v40, 16  ;;  %v1286_v49 = vshll.u32 %v1189_v40, 16  ;;  %v819_v55 = vor.u32 %v817_v27, %v816_v37  ;;  %v821_v59 = vrot.slane %v816_v37, 4  ;;  %v6942_v23 = vld [vmem:[#allocation2 + $0x18] sm:$0xff]  }
  0x4b   : > { %6485 = vmatprep.subr.bf16.mxu1 %v6939_v26  ;;  %v1294_v52 = vrot.slane %v1292_v41, 5  ;;  %v1298_v53 = vrot.slane %v1296_v42, 4  ;;  %v1302_v54 = vshll.u32 %v1191_v47, 16  ;;  %v1012_v60 = vsel %vm7203_vm9, %v811_v50, %v1011_v28  ;;  %v1018_v27 = vld [vmem:[#allocation2 + $0xa8] sm:$0xf]  ;;  %v6967_v47 = vld [vmem:[%s8830_s3 + $0x158] sm:$0xff]  }
  0x4c   : > { %v1285_v57 = vrot.slane %v1283_v48, 4  ;;  %v1288_v58 = vrot.slane %v1286_v49, 5  ;;  %v820_v1 = vsel %vm7197_vm8, %v812_v51, %v819_v55  ;;  %1013 = vst [vmem:[#allocation2 + $0x9c] sm:$0xf] %v1012_v60  ;;  %v638_v4 = vrot.slane %v636_v31, 7  ;;  %6601 = vmatprep.subr.bf16.mxu0 %v6967_v47 }
  0x4d   : > { %v1299_v63 = vor.u32 %v1298_v53, %v1294_v52  ;;  %v1304_v0 = vrot.slane %v1302_v54, 5  ;;  %1014 = vst [vmem:[#allocation2 + $0xa0] sm:$0xf] %v820_v1  ;;  %v1016_v6 = vsel %vm7211_vm10, %v821_v59, %v1015_v43  ;;  %v644_v7 = vshrl.u32 %v7301_v30, 16 }
  0x4e   : > { %6486 = vmatpush3.bf16.msra.mxu1 %v6940_v46  ;;  %v1289_v5 = vor.u32 %v1288_v58, %v1285_v57  ;;  %v647_v8 = vshll.u32 %v7301_v30, 16  ;;  %1017 = vst [vmem:[#allocation2 + $0xa4] sm:$0x1] %v1016_v6  ;;  %v641_v13 = vor.u32 %v639_v34, %v638_v4  ;;  %v642_v3 = vrot.slane %v638_v4, 4  ;;  %v6952_v57 = vld [vmem:[%s8830_s3 + $0xa0] sm:$0xff]   ;;  %v6968_v6 = vld [vmem:[%s8830_s3 + $0x118] sm:$0xff]  }
  0x4f   : > { %v1300_v10 = vrot.slane %v1299_v63, 4  ;;  %6487 = vmatprep.subr.bf16.mxu1 %v6941_v56  ;;  %v443_v15 = vmax.f32 %v7277_v2, 0.0  ;;  %v646_v18 = vrot.slane %v644_v7, 7  ;;  %v823_v11 = vshrl.u32 %v7305_v38, 16  ;;  %6602 = vmatpush3.bf16.msra.mxu0 %v6968_v6 }
  0x50   : > { %v1290_v17 = vrot.slane %v1289_v5, 4  ;;  %v826_v21 = vshll.u32 %v7305_v38, 16  ;;  %v942_v25 = vsel %vm7203_vm9, %v641_v13, %v941_v62  ;;  %v351_v2 = vmul.f32 %v6211_v39, %v7151_v29  ;;  %v6949_v38 = vld [vmem:[%s8830_s3 + $0xe0] sm:$0xff]   ;;  %v1022_v5 = vld [vmem:[#allocation2 + $0xb0] sm:$0x1] }
  0x51   : > { %v1305_v22 = vsel %vm7160_vm2, %v1300_v10, %v1304_v0  ;;  %v6160_v26 = vpack.c.bf16 %v443_v15, %v443_v15  ;;  %v649_v30 = vor.u32 %v647_v8, %v646_v18  ;;  %v651_v31 = vrot.slane %v646_v18, 4  ;;  %943 = vst [vmem:[#allocation2 + $0x24] sm:$0xf] %v942_v25  ;;  %v6955_v18 = vld [vmem:[%s8830_s3 + $0xf0] sm:$0xff]  }
  0x52   : > { %v1295_v28 = vsel %vm7160_vm2, %v1290_v17, %v1294_v52  ;;  %6488 = vmatpush3.bf16.msra.mxu1 %v6944_v61  ;;  %v825_v34 = vrot.slane %v823_v11, 7  ;;  %v352_v40 = vmul.f32 %v6212_v44, %v7151_v29  ;;  %v390_v44 = vadd.f32 %v7156_v32, %v351_v2  ;;  %v6953_v61 = vld [vmem:[%s8830_s3 + $0xe8] sm:$0xff]  }
  0x53   : > { %v5851_v35 = vcombine.low %v1295_v28, %v1305_v22  ;;  %6489 = vmatprep.subr.bf16.mxu1 %v6945_v12  ;;  %v831_v36 = vshrl.u32 %v6160_v26, 16  ;;  %v834_v37 = vshll.u32 %v6160_v26, 16  ;;  %v1222_v41 = vld [vmem:[#allocation2 + $0x9c] sm:$0xf]  ;;  %v650_v39 = vsel %vm7197_vm8, %v642_v3, %v649_v30 }
  0x54   : > { %v946_v42 = vsel %vm7211_vm10, %v651_v31, %v945_v14  ;;  %v828_v43 = vor.u32 %v826_v21, %v825_v34  ;;  %v829_v46 = vrot.slane %v825_v34, 4  ;;  %v1223_v48 = vld [vmem:[#allocation2 + $0xa0] sm:$0xf]  ;;  %v1547_v49 = vshrl.u32 %v1222_v41, 16  ;;  %944 = vst [vmem:[#allocation2 + $0x28] sm:$0xf] %v650_v39 }
  0x55   : > { %4646 = vmatprep.mubr.bf16.mxu0 %v5851_v35  ;;  %v1550_v50 = vshll.u32 %v1222_v41, 16  ;;  %947 = vst [vmem:[#allocation2 + $0x2c] sm:$0x1] %v946_v42  ;;  %v391_v51 = vadd.f32 %v7156_v32, %v352_v40  ;;  %v1224_v52 = vld [vmem:[#allocation2 + $0xa4] sm:$0x1]  ;;  %v1556_v53 = vshll.u32 %v1223_v48, 16  ;;  %v6256_v28 = vunpack.c.h.bf16 %v7293_v20 }
  0x56   : > { %v1560_v54 = vshrl.u32 %v1223_v48, 16  ;;  %4647 = vmatmul.mubr.bf16.gmra.mrb[8].mxu0 %v6942_v23  ;;  %6490 = vmatpush3.bf16.msra.mxu1 %v6947_v19  ;;  %v833_v55 = vrot.slane %v831_v36, 7  ;;  %v1019_v56 = vsel %vm7203_vm9, %v828_v43, %v1018_v27  ;;  %v1549_v58 = vrot.slane %v1547_v49, 4  ;;  %v6954_v19 = vld [vmem:[%s8830_s3 + $0xa8] sm:$0xff]   ;;  %v6943_v34 = vld [vmem:[#allocation2 + $0x9c] sm:$0xff]  }
  0x57   : > { %v1552_v59 = vrot.slane %v1550_v50, 5  ;;  %v1566_v60 = vshll.u32 %v1224_v52, 16  ;;  %1020 = vst [vmem:[#allocation2 + $0xa8] sm:$0xf] %v1019_v56  ;;  %6491 = vmatprep.subr.bf16.mxu1 %v6949_v38  ;;  %v422_v62 = vmax.f32 %v390_v44, 0.0  ;;  %v1558_v63 = vrot.slane %v1556_v53, 5 }
  0x58   : > { %v1562_v0 = vrot.slane %v1560_v54, 4  ;;  %v836_v1 = vor.u32 %v834_v37, %v833_v55  ;;  %v838_v4 = vrot.slane %v833_v55, 4  ;;  %v1192_v10 = vld [vmem:[#allocation2 + $0x24] sm:$0xf]  ;;  %v423_v12 = vmax.f32 %v391_v51, 0.0  ;;  %v6959_v38 = vld [vmem:[%s8830_s3 + $0xb0] sm:$0xff]  }
  0x59   : > { %v1553_v7 = vor.u32 %v1552_v59, %v1549_v58  ;;  %v1568_v8 = vrot.slane %v1566_v60, 5  ;;  %v6139_v13 = vpack.c.bf16 %v422_v62, %v422_v62  ;;  %v1307_v14 = vshrl.u32 %v1192_v10, 16  ;;  %v948_v56 = vld [vmem:[#allocation2 + $0x30] sm:$0xf] }
  0x5a   : > { %v1563_v3 = vor.u32 %v1562_v0, %v1558_v63  ;;  %v1310_v15 = vshll.u32 %v1192_v10, 16  ;;  %v837_v17 = vsel %vm7197_vm8, %v829_v46, %v836_v1  ;;  %6492 = vmatpush3.bf16.msra.mxu1 %v6952_v57  ;;  %v1023_v21 = vsel %vm7211_vm10, %v838_v4, %v1022_v5  ;;  %v6962_v5 = vld [vmem:[%s8830_s3 + $0xb8] sm:$0xff]  }
  0x5b   : > { %v1554_v11 = vrot.slane %v1553_v7, 4  ;;  %1021 = vst [vmem:[#allocation2 + $0xac] sm:$0xf] %v837_v17  ;;  %6493 = vmatprep.subr.bf16.mxu1 %v6953_v61  ;;  %v7377_v22 = vpack.c.bf16 %v423_v12, %v423_v12  ;;  %v653_v23 = vshrl.u32 %v6139_v13, 16  ;;  %v1193_v26 = vld [vmem:[#allocation2 + $0x28] sm:$0xf]  ;;  %v373_v30 = vmul.f32 %v6255_v45, %v7151_v29 }
  0x5c   : > { %v1564_v25 = vrot.slane %v1563_v3, 4  ;;  %v1194_v27 = vld [vmem:[#allocation2 + $0x2c] sm:$0x1]  ;;  %v1309_v2 = vrot.slane %v1307_v14, 4  ;;  %1024 = vst [vmem:[#allocation2 + $0xb0] sm:$0x1] %v1023_v21  ;;  %v374_v20 = vmul.f32 %v6256_v28, %v7151_v29 }
  0x5d   : > { %v1559_v31 = vsel %vm7160_vm2, %v1554_v11, %v1558_v63  ;;  %v1312_v35 = vrot.slane %v1310_v15, 5  ;;  %v1316_v36 = vshll.u32 %v1193_v26, 16  ;;  %v1320_v37 = vshrl.u32 %v1193_v26, 16  ;;  %v6961_v45 = vld [vmem:[%s8830_s3 + $0xf8] sm:$0xff]   ;;  %v6964_v3 = vld [vmem:[%s8830_s3 + $0x1c0] sm:$0xff]  }
  0x5e   : > { %v1569_v40 = vsel %vm7160_vm2, %v1564_v25, %v1568_v8  ;;  %v1326_v41 = vshll.u32 %v1194_v27, 16  ;;  %v1225_v39 = vld [vmem:[#allocation2 + $0xa8] sm:$0xf]  ;;  %6494 = vmatpush3.bf16.msra.mxu1 %v6954_v19  ;;  %v655_v42 = vrot.slane %v653_v23, 7  ;;  %vm1794_vm11 = vcmask 1042432  }
  0x5f   : > { %vm1795_vm12 = vcmask 1046532   ;;  %v5862_v43 = vcombine.low %v1559_v31, %v1569_v40  ;;  %v1313_v46 = vor.u32 %v1312_v35, %v1309_v2  ;;  %v1318_v47 = vrot.slane %v1316_v36, 5  ;;  %6495 = vmatprep.subr.bf16.mxu1 %v6955_v18  ;;  %v6950_v8 = vld [vmem:[#allocation2 + $0x24] sm:$0xff]   ;;  %v1698_v28 = vld [vmem:[#allocation2] sm:$0xe] }
  0x60   : > { %v1322_v48 = vrot.slane %v1320_v37, 4  ;;  %v1328_v49 = vrot.slane %v1326_v41, 5  ;;  %v1571_v50 = vshrl.u32 %v1225_v39, 16  ;;  %v1574_v44 = vshll.u32 %v1225_v39, 16  ;;  %vm7419_vm13 = vmor %vm1794_vm11, %vm1795_vm12 }
  0x61   : > { %v656_v51 = vshll.u32 %v6139_v13, 16  ;;  %4734 = vmatprep.mubr.bf16.mxu1 %v5862_v43  ;;  %v1314_v52 = vrot.slane %v1313_v46, 4  ;;  %v659_v54 = vrot.slane %v655_v42, 4  ;;  %v661_v55 = vshrl.u32 %v7377_v22, 16  ;;  %v6344_v13 = vld [vmem:[%s7138_s26 + $0x20] sm:$0xff]  }
  0x62   : > { %v1323_v53 = vor.u32 %v1322_v48, %v1318_v47  ;;  %4735 = vmatmul.mubr.bf16.gmra.mrb[4].mxu1 %v6943_v34  ;;  %v1226_v57 = vld [vmem:[#allocation2 + $0xac] sm:$0xf]  ;;  %v1573_v58 = vrot.slane %v1571_v50, 4  ;;  %v1576_v59 = vrot.slane %v1574_v44, 5  ;;  %v412_v61 = vadd.f32 %v7156_v32, %v373_v30  ;;  %v1699_v30 = vld [vmem:[#allocation2 + $0x4] sm:$0xf] }
  0x63   : > { %v658_v60 = vor.u32 %v656_v51, %v655_v42  ;;  %v1319_v62 = vsel %vm7160_vm2, %v1314_v52, %v1318_v47  ;;  %v1227_v0 = vld [vmem:[#allocation2 + $0xb0] sm:$0x1]  ;;  %v1580_v1 = vshll.u32 %v1226_v57, 16  ;;  %v1584_v4 = vshrl.u32 %v1226_v57, 16  ;;  %6496 = vmatpush3.bf16.msra.mxu1 %v6959_v38  ;;  %v6951_v39 = vld [vmem:[#allocation2 + $0xa8] sm:$0xff]   ;;  %v6972_v46 = vld [vmem:[%s8830_s3 + $0x160] sm:$0xff]  }
  0x64   : > { %v1324_v63 = vrot.slane %v1323_v53, 4  ;;  %v1577_v6 = vor.u32 %v1576_v59, %v1573_v58  ;;  %v1590_v7 = vshll.u32 %v1227_v0, 16  ;;  %v663_v10 = vrot.slane %v661_v55, 7  ;;  %6497 = vmatprep.subr.bf16.mxu1 %v6961_v45  ;;  %v7433_v51 = vld [vmem:[%s8829_s2] ss:$0 sm:$0xff]  ;;  %6603 = vmatprep.subr.bf16.mxu0 %v6972_v46 }
  0x65   : > { %v664_v12 = vshll.u32 %v7377_v22, 16  ;;  %v1582_v15 = vrot.slane %v1580_v1, 5  ;;  %v1586_v17 = vrot.slane %v1584_v4, 4  ;;  %v949_v19 = vsel %vm7203_vm9, %v658_v60, %v948_v56  ;;  %v952_v22 = vld [vmem:[#allocation2 + $0x38] sm:$0x1] }
  0x66   : > { %v1329_v14 = vsel %vm7160_vm2, %v1324_v63, %v1328_v49  ;;  %v1578_v11 = vrot.slane %v1577_v6, 4  ;;  %v1592_v21 = vrot.slane %v1590_v7, 5  ;;  %950 = vst [vmem:[#allocation2 + $0x30] sm:$0xf] %v949_v19  ;;  %v668_v26 = vrot.slane %v663_v10, 4 }
  0x67   : > { %v5852_v18 = vcombine.low %v1319_v62, %v1329_v14  ;;  %v666_v23 = vor.u32 %v664_v12, %v663_v10  ;;  %v1587_v25 = vor.u32 %v1586_v17, %v1582_v15  ;;  %v413_v27 = vadd.f32 %v7156_v32, %v374_v20  ;;  %6498 = vmatpush3.bf16.msra.mxu1 %v6962_v5  ;;  %v1700_v53 = vld [vmem:[#allocation2 + $0x8] sm:$0x1]  ;;  %v1025_v59 = vld [vmem:[#allocation2 + $0xb4] sm:$0xf]  ;;  %v1029_v63 = vld [vmem:[#allocation2 + $0xbc] sm:$0x1] }
  0x68   : > { %v444_v2 = vmax.f32 %v412_v61, 0.0  ;;  %v1583_v31 = vsel %vm7160_vm2, %v1578_v11, %v1582_v15  ;;  %v6215_v35 = vunpack.c.l.bf16 %v6344_v13  ;;  %v6216_v36 = vunpack.c.h.bf16 %v6344_v13  ;;  %6707 = vmatprep.subr.bf16.mxu1 %v6964_v3 }
  0x69   : > { %4654 = vmatprep.mubr.bf16.mxu0 %v5852_v18  ;;  %v667_v34 = vsel %vm7197_vm8, %v659_v54, %v666_v23  ;;  %v1588_v37 = vrot.slane %v1587_v25, 4  ;;  %v953_v32 = vsel %vm7211_vm10, %v668_v26, %v952_v22  ;;  %v445_v38 = vmax.f32 %v413_v27, 0.0  ;;  %v6345_v26 = vld [vmem:[%s7138_s26 + $0x28] sm:$0xff]  }
  0x6a   : > { %4655 = vmatmul.mubr.bf16.gmra.mrb[12].mxu0 %v6950_v8  ;;  %951 = vst [vmem:[#allocation2 + $0x34] sm:$0xf] %v667_v34  ;;  %v6161_v40 = vpack.c.bf16 %v444_v2, %v444_v2  ;;  %954 = vst [vmem:[#allocation2 + $0x38] sm:$0x1] %v953_v32  ;;  %v353_v42 = vmul.f32 %v6215_v35, %v7151_v29  ;;  %v354_v20 = vmul.f32 %v6216_v36, %v7151_v29  ;;  %v6975_v8 = vld [vmem:[%s8830_s3 + $0x120] sm:$0xff]  }
  0x6b   : > { %v5865_v45 = vrot.slane %v1698_v28, 9  ;;  %v1799_v43 = vrot.slane %v1699_v30, 5  ;;  %v1593_v47 = vsel %vm7160_vm2, %v1588_v37, %v1592_v21  ;;  %v6162_v48 = vpack.c.bf16 %v445_v38, %v445_v38  ;;  %6604 = vmatpush3.bf16.msra.mxu0 %v6975_v8  ;;  %v1701_v34 = vld [vmem:[#allocation2 + $0xc] sm:$0xe]  ;;  %v1702_v38 = vld [vmem:[#allocation2 + $0x10] sm:$0xf] }
  0x6c   : > { %v840_v49 = vshrl.u32 %v6161_v40, 16  ;;  %v843_v50 = vshll.u32 %v6161_v40, 16  ;;  %v5863_v44 = vcombine.low %v1583_v31, %v1593_v47  ;;  %v392_v29 = vadd.f32 %v7433_v51, %v353_v42  ;;  %v955_v31 = vld [vmem:[#allocation2 + $0x3c] sm:$0xf] }
  0x6d   : > { %v393_v52 = vadd.f32 %v7433_v51, %v354_v20  ;;  %v7439_v54 = vsel %vm7419_vm13, %v5865_v45, %v1799_v43  ;;  %v1195_v55 = vld [vmem:[#allocation2 + $0x30] sm:$0xf]  ;;  %v848_v57 = vshrl.u32 %v6162_v48, 16  ;;  %v851_v58 = vshll.u32 %v6162_v48, 16  ;;  %v1703_v45 = vld [vmem:[#allocation2 + $0x14] sm:$0x1] }
  0x6e   : > { %v842_v56 = vrot.slane %v840_v49, 7  ;;  %v1801_v60 = vrot.slane %v1799_v43, 4  ;;  %4742 = vmatprep.mubr.bf16.mxu1 %v5863_v44  ;;  %v1331_v61 = vshrl.u32 %v1195_v55, 16  ;;  %v1334_v62 = vshll.u32 %v1195_v55, 16 }
  0x6f   : > { %v424_v0 = vmax.f32 %v392_v29, 0.0  ;;  %v425_v1 = vmax.f32 %v393_v52, 0.0  ;;  %4743 = vmatmul.mubr.bf16.gmra.mrb[8].mxu1 %v6951_v39  ;;  %v850_v6 = vrot.slane %v848_v57, 7  ;;  %v1802_v7 = vrot.slane %v1700_v53, 5  ;;  %v959_v29 = vld [vmem:[#allocation2 + $0x44] sm:$0x1] }
  0x70   : > { %v845_v4 = vor.u32 %v843_v50, %v842_v56  ;;  %v846_v5 = vrot.slane %v842_v56, 4  ;;  %v1333_v12 = vrot.slane %v1331_v61, 4  ;;  %v1336_v13 = vrot.slane %v1334_v62, 5 }
  0x71   : > { %v1196_v10 = vld [vmem:[#allocation2 + $0x34] sm:$0xf]  ;;  %v6141_v3 = vpack.c.bf16 %v424_v0, %v424_v0  ;;  %v6142_v14 = vpack.c.bf16 %v425_v1, %v425_v1  ;;  %v1197_v15 = vld [vmem:[#allocation2 + $0x38] sm:$0x1]  ;;  %v853_v18 = vor.u32 %v851_v58, %v850_v6  ;;  %v855_v11 = vrot.slane %v850_v6, 4  ;;  %v6980_v1 = vld [vmem:[%s8830_s3 + $0x128] sm:$0xff]  }
  0x72   : > { %v1340_v17 = vshll.u32 %v1196_v10, 16  ;;  %v1344_v19 = vshrl.u32 %v1196_v10, 16  ;;  %v1337_v21 = vor.u32 %v1336_v13, %v1333_v12  ;;  %v1350_v23 = vshll.u32 %v1197_v15, 16  ;;  %v6957_v50 = vld [vmem:[#allocation2 + $0x30] sm:$0xff]  }
  0x73   : > { %v1026_v22 = vsel %vm7203_vm9, %v845_v4, %v1025_v59  ;;  %v670_v25 = vshrl.u32 %v6141_v3, 16  ;;  %v854_v28 = vsel %vm7197_vm8, %v846_v5, %v853_v18  ;;  %v1030_v30 = vsel %vm7211_vm10, %v855_v11, %v1029_v63  ;;  %v6979_v59 = vld [vmem:[%s8830_s3 + $0x168] sm:$0xff]   ;;  %v7469_v63 = vld [vmem:[%s8828_s1] ss:$0 sm:$0xff] }
  0x74   : > { %v1342_v27 = vrot.slane %v1340_v17, 5  ;;  %v1346_v2 = vrot.slane %v1344_v19, 4  ;;  %1027 = vst [vmem:[#allocation2 + $0xb4] sm:$0xf] %v1026_v22  ;;  %v1338_v35 = vrot.slane %v1337_v21, 4  ;;  %v1352_v36 = vrot.slane %v1350_v23, 5  ;;  %6605 = vmatprep.subr.bf16.mxu0 %v6979_v59 }
  0x75   : > { %1028 = vst [vmem:[#allocation2 + $0xb8] sm:$0xf] %v854_v28  ;;  %1031 = vst [vmem:[#allocation2 + $0xbc] sm:$0x1] %v1030_v30  ;;  %v672_v37 = vrot.slane %v670_v25, 7  ;;  %v673_v32 = vshll.u32 %v6141_v3, 16  ;;  %v7453_v20 = vsel %vm7419_vm13, %v1801_v60, %v1802_v7  ;;  %v6219_v52 = vunpack.c.l.bf16 %v6345_v26  ;;  %6606 = vmatpush3.bf16.msra.mxu0 %v6980_v1 }
  0x76   : > { %v1347_v40 = vor.u32 %v1346_v2, %v1342_v27  ;;  %v678_v39 = vshrl.u32 %v6142_v14, 16  ;;  %v681_v42 = vshll.u32 %v6142_v14, 16  ;;  %v1343_v43 = vsel %vm7160_vm2, %v1338_v35, %v1342_v27  ;;  %v6346_v21 = vld [vmem:[%s7138_s26 + $0x30] sm:$0xff]   ;;  %v7491_v27 = vld [vmem:[#allocation2 + $0x18] sm:$0xe] }
  0x77   : > { %v675_v46 = vor.u32 %v673_v32, %v672_v37  ;;  %v676_v47 = vrot.slane %v672_v37, 4  ;;  %v5881_v48 = vcombine.low %v7439_v54, %v7453_v20  ;;  %v6220_v53 = vunpack.c.h.bf16 %v6345_v26 }
  0x78   : > { %v1348_v49 = vrot.slane %v1347_v40, 4  ;;  %v680_v44 = vrot.slane %v678_v39, 7  ;;  %v5866_v56 = vrot.slane %v1701_v34, 9  ;;  %v1806_v57 = vrot.slane %v1702_v38, 5 }
  0x79   : > { %v956_v55 = vsel %vm7203_vm9, %v675_v46, %v955_v31  ;;  %v1809_v58 = vrot.slane %v1703_v45, 5  ;;  %v355_v0 = vmul.f32 %v7469_v63, %v6219_v52  ;;  %v356_v6 = vmul.f32 %v7469_v63, %v6220_v53  ;;  %v6986_v52 = vld [vmem:[%s8830_s3 + $0x170] sm:$0xff]  }
  0x7a   : > { %v1353_v60 = vsel %vm7160_vm2, %v1348_v49, %v1352_v36  ;;  %v683_v61 = vor.u32 %v681_v42, %v680_v44  ;;  %v685_v62 = vrot.slane %v680_v44, 4  ;;  %957 = vst [vmem:[#allocation2 + $0x3c] sm:$0xf] %v956_v55  ;;  %v7478_v7 = vsel %vm7419_vm13, %v5866_v56, %v1806_v57  ;;  %6607 = vmatprep.subr.bf16.mxu0 %v6986_v52 }
  0x7b   : > { %v5853_v4 = vcombine.low %v1343_v43, %v1353_v60  ;;  %v1228_v5 = vld [vmem:[#allocation2 + $0xb4] sm:$0xf]  ;;  %v1808_v8 = vrot.slane %v1806_v57, 4  ;;  %v394_v11 = vadd.f32 %v7433_v51, %v355_v0  ;;  %v395_v25 = vadd.f32 %v7433_v51, %v356_v6  ;;  %v1705_v60 = vld [vmem:[#allocation2 + $0x1c] sm:$0xf] }
  0x7c   : > { %v1229_v10 = vld [vmem:[#allocation2 + $0xb8] sm:$0xf]  ;;  %v1230_v12 = vld [vmem:[#allocation2 + $0xbc] sm:$0x1]  ;;  %v1595_v13 = vshrl.u32 %v1228_v5, 16  ;;  %v1598_v3 = vshll.u32 %v1228_v5, 16  ;;  %v684_v14 = vsel %vm7197_vm8, %v676_v47, %v683_v61  ;;  %v960_v15 = vsel %vm7211_vm10, %v685_v62, %v959_v29 }
  0x7d   : > { %4662 = vmatprep.mubr.bf16.mxu0 %v5853_v4  ;;  %v1604_v17 = vshll.u32 %v1229_v10, 16  ;;  %v1608_v19 = vshrl.u32 %v1229_v10, 16  ;;  %v1614_v18 = vshll.u32 %v1230_v12, 16  ;;  %958 = vst [vmem:[#allocation2 + $0x40] sm:$0xf] %v684_v14  ;;  %v7489_v26 = vsel %vm7419_vm13, %v1808_v8, %v1809_v58  ;;  %v6958_v62 = vld [vmem:[#allocation2 + $0xb4] sm:$0xff]  }
  0x7e   : > { %961 = vst [vmem:[#allocation2 + $0x44] sm:$0x1] %v960_v15  ;;  %v1597_v23 = vrot.slane %v1595_v13, 4  ;;  %v1600_v22 = vrot.slane %v1598_v3, 5  ;;  %4663 = vmatmul.mubr.bf16.gmra.mrb[16].mxu0 %v6957_v50  ;;  %v426_v31 = vmax.f32 %v394_v11, 0.0  ;;  %v427_v35 = vmax.f32 %v395_v25, 0.0 }
  0x7f   : > { %v1606_v2 = vrot.slane %v1604_v17, 5  ;;  %v1610_v28 = vrot.slane %v1608_v19, 4  ;;  %v1616_v30 = vrot.slane %v1614_v18, 5  ;;  %v5882_v36 = vcombine.low %v7478_v7, %v7489_v26  ;;  %v962_v5 = vld [vmem:[#allocation2 + $0x48] sm:$0xf]  ;;  %v6963_v10 = vld [vmem:[#allocation2 + $0xc] sm:$0xff]  }
  0x80   : > { %v1601_v34 = vor.u32 %v1600_v22, %v1597_v23  ;;  %v6223_v37 = vunpack.c.l.bf16 %v6346_v21  ;;  %v6143_v40 = vpack.c.bf16 %v426_v31, %v426_v31  ;;  %v6224_v39 = vunpack.c.h.bf16 %v6346_v21  ;;  %v6988_v3 = vld [vmem:[%s8830_s3 + $0x130] sm:$0xff]   ;;  %v1706_v25 = vld [vmem:[#allocation2 + $0x20] sm:$0x1] }
  0x81   : > { %v1611_v32 = vor.u32 %v1610_v28, %v1606_v2  ;;  %v1198_v38 = vld [vmem:[#allocation2 + $0x3c] sm:$0xf]  ;;  %v5867_v42 = vrot.slane %v7491_v27, 9  ;;  %v6144_v47 = vpack.c.bf16 %v427_v35, %v427_v35  ;;  %v966_v18 = vld [vmem:[#allocation2 + $0x50] sm:$0x1]  ;;  %6608 = vmatpush3.bf16.msra.mxu0 %v6988_v3  ;;  %v1816_v52 = vrot.slane %v1706_v25, 5 }
  0x82   : > { %v1602_v45 = vrot.slane %v1601_v34, 4  ;;  %v1355_v43 = vshrl.u32 %v1198_v38, 16  ;;  %v1358_v46 = vshll.u32 %v1198_v38, 16  ;;  %v687_v50 = vshrl.u32 %v6143_v40, 16  ;;  %v1707_v38 = vld [vmem:[#allocation2 + $0x24] sm:$0xe] }
  0x83   : > { %v1612_v49 = vrot.slane %v1611_v32, 4  ;;  %v690_v44 = vshll.u32 %v6143_v40, 16  ;;  %v357_v29 = vmul.f32 %v7469_v63, %v6223_v37  ;;  %v358_v59 = vmul.f32 %v7469_v63, %v6224_v39  ;;  %v6347_v32 = vld [vmem:[%s7138_s26 + $0x38] sm:$0xff]   ;;  %v6976_v25 = vld [vmem:[%s8830_s3 + $0x188] sm:$0xff]  }
  0x84   : > { %v1607_v53 = vsel %vm7160_vm2, %v1602_v45, %v1606_v2  ;;  %v1199_v55 = vld [vmem:[#allocation2 + $0x40] sm:$0xf]  ;;  %v1357_v57 = vrot.slane %v1355_v43, 4  ;;  %v1360_v58 = vrot.slane %v1358_v46, 5  ;;  %v689_v12 = vrot.slane %v687_v50, 7  ;;  %v6993_v46 = vld [vmem:[%s8830_s3 + $0x178] sm:$0xff]  }
  0x85   : > { %v1200_v56 = vld [vmem:[#allocation2 + $0x44] sm:$0x1]  ;;  %v1617_v61 = vsel %vm7160_vm2, %v1612_v49, %v1616_v30  ;;  %v1364_v0 = vshll.u32 %v1199_v55, 16  ;;  %v1368_v1 = vshrl.u32 %v1199_v55, 16  ;;  %v695_v13 = vshrl.u32 %v6144_v47, 16  ;;  %v6965_v55 = vld [vmem:[#allocation2 + $0x3c] sm:$0xff]   ;;  %6609 = vmatprep.subr.bf16.mxu0 %v6993_v46 }
  0x86   : > { %v1374_v4 = vshll.u32 %v1200_v56, 16  ;;  %v5864_v6 = vcombine.low %v1607_v53, %v1617_v61  ;;  %v1361_v8 = vor.u32 %v1360_v58, %v1357_v57  ;;  %v698_v19 = vshll.u32 %v6144_v47, 16  ;;  %v6966_v47 = vld [vmem:[%s8830_s3 + $0x180] sm:$0xff]  }
  0x87   : > { %v1366_v14 = vrot.slane %v1364_v0, 5  ;;  %v1370_v15 = vrot.slane %v1368_v1, 4  ;;  %v692_v21 = vor.u32 %v690_v44, %v689_v12  ;;  %v693_v23 = vrot.slane %v689_v12, 4  ;;  %v6969_v44 = vld [vmem:[#allocation2 + $0x18] sm:$0xff]   ;;  %v7536_v1 = vld [vmem:[%s7138_s26 + $0x40] sm:$0xff]   ;;  %v6973_v12 = vld [vmem:[%s8830_s3 + $0x1c8] sm:$0xff]  }
  0x88   : > { %v1376_v17 = vrot.slane %v1374_v4, 5  ;;  %4750 = vmatprep.mubr.bf16.mxu1 %v5864_v6  ;;  %v1362_v11 = vrot.slane %v1361_v8, 4  ;;  %v697_v22 = vrot.slane %v695_v13, 7  ;;  %v396_v2 = vadd.f32 %v7433_v51, %v357_v29  ;;  %v6994_v4 = vld [vmem:[%s8830_s3 + $0x138] sm:$0xff]  }
  0x89   : > { %4751 = vmatmul.mubr.bf16.gmra.mrb[12].mxu1 %v6958_v62  ;;  %v1371_v27 = vor.u32 %v1370_v15, %v1366_v14  ;;  %v397_v28 = vadd.f32 %v7433_v51, %v358_v59  ;;  %v1813_v30 = vrot.slane %v1705_v60, 5  ;;  %v963_v37 = vsel %vm7203_vm9, %v692_v21, %v962_v5  ;;  %v1709_v59 = vld [vmem:[#allocation2 + $0x2c] sm:$0x1]  ;;  %6610 = vmatpush3.bf16.msra.mxu0 %v6994_v4 }
  0x8a   : > { %v1367_v31 = vsel %vm7160_vm2, %v1362_v11, %v1366_v14  ;;  %4791 = vmatprep.mubr.bf16.mxu1 %v6963_v10  ;;  %v700_v34 = vor.u32 %v698_v19, %v697_v22  ;;  %v702_v35 = vrot.slane %v697_v22, 4  ;;  %964 = vst [vmem:[#allocation2 + $0x48] sm:$0xf] %v963_v37  ;;  %v428_v39 = vmax.f32 %v396_v2, 0.0 }
  0x8b   : > { %v1372_v40 = vrot.slane %v1371_v27, 4  ;;  %v429_v45 = vmax.f32 %v397_v28, 0.0  ;;  %v7517_v43 = vsel %vm7419_vm13, %v5867_v42, %v1813_v30  ;;  %v1815_v29 = vrot.slane %v1813_v30, 4  ;;  %v1708_v42 = vld [vmem:[#allocation2 + $0x28] sm:$0xf] }
  0x8c   : > { %v701_v49 = vsel %vm7197_vm8, %v693_v23, %v700_v34  ;;  %v967_v50 = vsel %vm7211_vm10, %v702_v35, %v966_v18  ;;  %v6145_v56 = vpack.c.bf16 %v428_v39, %v428_v39  ;;  %v6227_v58 = vunpack.c.l.bf16 %v6347_v32  ;;  %v969_v18 = vld [vmem:[#allocation2 + $0x54] sm:$0xf]  ;;  %v6998_v23 = vld [vmem:[%s8830_s3 + $0x200] sm:$0xff]   ;;  %v973_v34 = vld [vmem:[#allocation2 + $0x5c] sm:$0x1] }
  0x8d   : > { %v1377_v53 = vsel %vm7160_vm2, %v1372_v40, %v1376_v17  ;;  %965 = vst [vmem:[#allocation2 + $0x4c] sm:$0xf] %v701_v49  ;;  %968 = vst [vmem:[#allocation2 + $0x50] sm:$0x1] %v967_v50  ;;  %v6146_v57 = vpack.c.bf16 %v429_v45, %v429_v45  ;;  %v7533_v61 = vsel %vm7419_vm13, %v1815_v29, %v1816_v52  ;;  %v6228_v62 = vunpack.c.h.bf16 %v6347_v32  ;;  %v6982_v35 = vld [vmem:[%s8830_s3 + $0x1d0] sm:$0xff]  }
  0x8e   : > { %v5854_v60 = vcombine.low %v1367_v31, %v1377_v53  ;;  %v5868_v0 = vrot.slane %v1707_v38, 9  ;;  %v704_v5 = vshrl.u32 %v6145_v56, 16  ;;  %v707_v6 = vshll.u32 %v6145_v56, 16  ;;  %6843 = vmatprep.subr.bf16.mxu0 %v6998_v23  ;;  %v6984_v29 = vld [vmem:[%s8830_s3 + $0x190] sm:$0xff]   ;;  %v6997_v23 = vld [vmem:[%s8830_s3 + $0x1e0] sm:$0xff]  }
  0x8f   : > { %v712_v8 = vshrl.u32 %v6146_v57, 16  ;;  %v715_v10 = vshll.u32 %v6146_v57, 16  ;;  %v5883_v13 = vcombine.low %v7517_v43, %v7533_v61  ;;  %v359_v3 = vmul.f32 %v7469_v63, %v6227_v58  ;;  %v1710_v56 = vld [vmem:[#allocation2 + $0x30] sm:$0xe]  ;;  %v1712_v43 = vld [vmem:[#allocation2 + $0x38] sm:$0x1] }
  0x90   : > { %4670 = vmatprep.mubr.bf16.mxu0 %v5854_v60  ;;  %v360_v14 = vmul.f32 %v7469_v63, %v6228_v62  ;;  %v1820_v15 = vrot.slane %v1708_v42, 5  ;;  %v706_v17 = vrot.slane %v704_v5, 7  ;;  %v1823_v11 = vrot.slane %v1709_v59, 5  ;;  %v1711_v62 = vld [vmem:[#allocation2 + $0x34] sm:$0xf] }
  0x91   : > { %4671 = vmatmul.mubr.bf16.gmra.mrb[20].mxu0 %v6965_v55  ;;  %4792 = vmatmul.mubr.bf16.vlgmr.msra.gmra.mrb[16].mxu1 %v5881_v48  ;;  %v714_v19 = vrot.slane %v712_v8, 7  ;;  %v6231_v21 = vunpack.c.l.bf16 %v7536_v1  ;;  %v1201_v22 = vld [vmem:[#allocation2 + $0x48] sm:$0xf]  ;;  %v398_v54 = vadd.f32 %v7433_v51, %v359_v3  ;;  %v6232_v39 = vunpack.c.h.bf16 %v7536_v1  ;;  %v7007_v61 = vld [vmem:[%s8830_s3 + $0x1f0] sm:$0xff]  }
  0x92   : > { %6708 = vmatpush3.bf16.msra.mxu1 %v6966_v47  ;;  %4799 = vmatprep.mubr.bf16.mxu1 %v6969_v44  ;;  %v399_v20 = vadd.f32 %v7433_v51, %v360_v14  ;;  %v7562_v48 = vsel %vm7419_vm13, %v5868_v0, %v1820_v15  ;;  %v1822_v27 = vrot.slane %v1820_v15, 4  ;;  %v1379_v2 = vshrl.u32 %v1201_v22, 16  ;;  %v6971_v44 = vld [vmem:[#allocation2 + $0x24] sm:$0xff]   ;;  %v6990_v0 = vld [vmem:[%s8830_s3 + $0x1d8] sm:$0xff]  }
  0x93   : > { %v1382_v28 = vshll.u32 %v1201_v22, 16  ;;  %v709_v30 = vor.u32 %v707_v6, %v706_v17  ;;  %v710_v31 = vrot.slane %v706_v17, 4  ;;  %6709 = vmatprep.subr.bf16.mxu1 %v6973_v12  ;;  %v717_v38 = vor.u32 %v715_v10, %v714_v19  ;;  %v6992_v14 = vld [vmem:[%s8830_s3 + $0x198] sm:$0xff]  }
  0x94   : > { %v1202_v37 = vld [vmem:[#allocation2 + $0x4c] sm:$0xf]  ;;  %v1203_v32 = vld [vmem:[#allocation2 + $0x50] sm:$0x1]  ;;  %v7569_v40 = vsel %vm7419_vm13, %v1822_v27, %v1823_v11  ;;  %v361_v45 = vmul.f32 %v7469_v63, %v6231_v21  ;;  %v1381_v46 = vrot.slane %v1379_v2, 4  ;;  %v719_v53 = vrot.slane %v714_v19, 4 }
  0x95   : > { %v1384_v47 = vrot.slane %v1382_v28, 5  ;;  %v1388_v49 = vshll.u32 %v1202_v37, 16  ;;  %v1392_v50 = vshrl.u32 %v1202_v37, 16  ;;  %v1398_v52 = vshll.u32 %v1203_v32, 16  ;;  %v7598_v21 = vld [vmem:[%s7138_s26 + $0x48] sm:$0xff]   ;;  %v6999_v37 = vld [vmem:[%s8830_s3 + $0x1a0] sm:$0xff]  }
  0x96   : > { %v718_v42 = vsel %vm7197_vm8, %v710_v31, %v717_v38  ;;  %v970_v55 = vsel %vm7203_vm9, %v709_v30, %v969_v18  ;;  %6710 = vmatpush3.bf16.msra.mxu1 %v6976_v25  ;;  %v430_v60 = vmax.f32 %v398_v54, 0.0  ;;  %v974_v4 = vsel %vm7211_vm10, %v719_v53, %v973_v34  ;;  %v6977_v54 = vld [vmem:[#allocation2 + $0x30] sm:$0xff]   ;;  %v6970_v28 = vld [vmem:[#allocation2 + $0x48] sm:$0xff]   ;;  %v976_v31 = vld [vmem:[#allocation2 + $0x60] sm:$0xf] }
  0x97   : > { %v1385_v57 = vor.u32 %v1384_v47, %v1381_v46  ;;  %v1390_v58 = vrot.slane %v1388_v49, 5  ;;  %v1394_v59 = vrot.slane %v1392_v50, 4  ;;  %971 = vst [vmem:[#allocation2 + $0x54] sm:$0xf] %v970_v55  ;;  %972 = vst [vmem:[#allocation2 + $0x58] sm:$0xf] %v718_v42  ;;  %6711 = vmatprep.subr.bf16.mxu1 %v6982_v35  ;;  %v5884_v6 = vcombine.low %v7562_v48, %v7569_v40 }
  0x98   : > { %v1400_v1 = vrot.slane %v1398_v52, 5  ;;  %v431_v5 = vmax.f32 %v399_v20, 0.0  ;;  %975 = vst [vmem:[#allocation2 + $0x5c] sm:$0x1] %v974_v4  ;;  %v6147_v12 = vpack.c.bf16 %v430_v60, %v430_v60  ;;  %v362_v3 = vmul.f32 %v7469_v63, %v6232_v39  ;;  %v7002_v32 = vld [vmem:[%s8830_s3 + $0x1e8] sm:$0xff]  }
  0x99   : > { %v1386_v8 = vrot.slane %v1385_v57, 4  ;;  %v1395_v10 = vor.u32 %v1394_v59, %v1390_v58  ;;  %4800 = vmatmul.mubr.bf16.gmra.mrb[20].mxu1 %v5882_v36  ;;  %v400_v17 = vadd.f32 %v7433_v51, %v361_v45  ;;  %v5869_v19 = vrot.slane %v1710_v56, 9  ;;  %v980_v42 = vld [vmem:[#allocation2 + $0x68] sm:$0x1] }
  0x9a   : > { %4807 = vmatprep.mubr.bf16.mxu1 %v6971_v44  ;;  %v6148_v15 = vpack.c.bf16 %v431_v5, %v431_v5  ;;  %v1827_v18 = vrot.slane %v1711_v62, 5  ;;  %6712 = vmatpush3.bf16.msra.mxu1 %v6984_v29  ;;  %v721_v36 = vshrl.u32 %v6147_v12, 16  ;;  %v724_v11 = vshll.u32 %v6147_v12, 16 }
  0x9b   : > { %v1391_v7 = vsel %vm7160_vm2, %v1386_v8, %v1390_v58  ;;  %v1396_v26 = vrot.slane %v1395_v10, 4  ;;  %6713 = vmatprep.subr.bf16.mxu1 %v6990_v0  ;;  %v401_v20 = vadd.f32 %v7433_v51, %v362_v3  ;;  %v432_v27 = vmax.f32 %v400_v17, 0.0  ;;  %v7004_v10 = vld [vmem:[%s8830_s3 + $0x1a8] sm:$0xff]  }
  0x9c   : > { %v729_v22 = vshrl.u32 %v6148_v15, 16  ;;  %v732_v25 = vshll.u32 %v6148_v15, 16  ;;  %v723_v30 = vrot.slane %v721_v36, 7  ;;  %v7608_v34 = vsel %vm7419_vm13, %v5869_v19, %v1827_v18 }
  0x9d   : > { %v1401_v2 = vsel %vm7160_vm2, %v1396_v26, %v1400_v1  ;;  %v7610_v35 = vrot.slane %v1827_v18, 4  ;;  %v6149_v46 = vpack.c.bf16 %v432_v27, %v432_v27  ;;  %v6235_v47 = vunpack.c.l.bf16 %v7598_v21 }
  0x9e   : > { %v5855_v38 = vcombine.low %v1391_v7, %v1401_v2  ;;  %v1204_v39 = vld [vmem:[#allocation2 + $0x54] sm:$0xf]  ;;  %v1205_v45 = vld [vmem:[#allocation2 + $0x58] sm:$0xf]  ;;  %v6236_v49 = vunpack.c.h.bf16 %v7598_v21  ;;  %6714 = vmatpush3.bf16.msra.mxu1 %v6992_v14  ;;  %v726_v55 = vor.u32 %v724_v11, %v723_v30  ;;  %v727_v56 = vrot.slane %v723_v30, 4 }
  0x9f   : > { %v1403_v50 = vshrl.u32 %v1204_v39, 16  ;;  %v1406_v44 = vshll.u32 %v1204_v39, 16  ;;  %v1412_v29 = vshll.u32 %v1205_v45, 16  ;;  %v1416_v52 = vshrl.u32 %v1205_v45, 16  ;;  %6715 = vmatprep.subr.bf16.mxu1 %v6997_v23  ;;  %v1206_v53 = vld [vmem:[#allocation2 + $0x5c] sm:$0x1] }
  0xa0   : > { %4678 = vmatprep.mubr.bf16.mxu0 %v5855_v38  ;;  %v731_v57 = vrot.slane %v729_v22, 7  ;;  %v433_v58 = vmax.f32 %v401_v20, 0.0  ;;  %v1422_v1 = vshll.u32 %v1206_v53, 16  ;;  %v977_v8 = vsel %vm7203_vm9, %v726_v55, %v976_v31  ;;  %v983_v7 = vld [vmem:[#allocation2 + $0x6c] sm:$0xf]  ;;  %v6981_v23 = vld [vmem:[#allocation2 + $0x3c] sm:$0xff]  }
  0xa1   : > { %4679 = vmatmul.mubr.bf16.gmra.mrb[24].mxu0 %v6970_v28  ;;  %v1405_v59 = vrot.slane %v1403_v50, 4  ;;  %v1408_v60 = vrot.slane %v1406_v44, 5  ;;  %v1414_v62 = vrot.slane %v1412_v29, 5  ;;  %v1418_v0 = vrot.slane %v1416_v52, 4  ;;  %4808 = vmatmul.mubr.bf16.gmra.mrb[24].mxu1 %v5883_v13  ;;  %978 = vst [vmem:[#allocation2 + $0x60] sm:$0xf] %v977_v8 }
  0xa2   : > { %v734_v4 = vor.u32 %v732_v25, %v731_v57  ;;  %v736_v5 = vrot.slane %v731_v57, 4  ;;  %4815 = vmatprep.mubr.bf16.mxu1 %v6977_v54  ;;  %6716 = vmatpush3.bf16.msra.mxu1 %v6999_v37  ;;  %v6150_v14 = vpack.c.bf16 %v433_v58, %v433_v58  ;;  %v738_v15 = vshrl.u32 %v6149_v46, 16  ;;  %v7636_v22 = vld [vmem:[%s7138_s26 + $0x50] sm:$0xff]   ;;  %v1713_v2 = vld [vmem:[#allocation2 + $0x3c] sm:$0xe] }
  0xa3   : > { %v1409_v12 = vor.u32 %v1408_v60, %v1405_v59  ;;  %v1419_v3 = vor.u32 %v1418_v0, %v1414_v62  ;;  %6717 = vmatprep.subr.bf16.mxu1 %v7002_v32  ;;  %v1424_v13 = vrot.slane %v1422_v1, 5  ;;  %v741_v18 = vshll.u32 %v6149_v46, 16  ;;  %v7640_v28 = vld [vmem:[#allocation2 + $0x40] sm:$0xf]  ;;  %v6974_v37 = vld [vmem:[#allocation2 + $0x54] sm:$0xff]  }
  0xa4   : > { %v735_v17 = vsel %vm7197_vm8, %v727_v56, %v734_v4  ;;  %v981_v19 = vsel %vm7211_vm10, %v736_v5, %v980_v42  ;;  %v740_v11 = vrot.slane %v738_v15, 7  ;;  %v746_v21 = vshrl.u32 %v6150_v14, 16  ;;  %v7009_v39 = vld [vmem:[%s8830_s3 + $0x1b0] sm:$0xff]  }
  0xa5   : > { %v1410_v26 = vrot.slane %v1409_v12, 4  ;;  %v1420_v36 = vrot.slane %v1419_v3, 4  ;;  %979 = vst [vmem:[#allocation2 + $0x64] sm:$0xf] %v735_v17  ;;  %982 = vst [vmem:[#allocation2 + $0x68] sm:$0x1] %v981_v19  ;;  %v363_v20 = vmul.f32 %v7469_v63, %v6235_v47  ;;  %v364_v27 = vmul.f32 %v7469_v63, %v6236_v49 }
  0xa6   : > { %v749_v25 = vshll.u32 %v6150_v14, 16  ;;  %v1830_v54 = vrot.slane %v1712_v43, 5  ;;  %6718 = vmatpush3.bf16.msra.mxu1 %v7004_v10  ;;  %v743_v32 = vor.u32 %v741_v18, %v740_v11  ;;  %v744_v38 = vrot.slane %v740_v11, 4  ;;  %v987_v44 = vld [vmem:[#allocation2 + $0x74] sm:$0x1]  ;;  %v6985_v10 = vld [vmem:[#allocation2 + $0x48] sm:$0xff]  }
  0xa7   : > { %v1415_v30 = vsel %vm7160_vm2, %v1410_v26, %v1414_v62  ;;  %v1425_v31 = vsel %vm7160_vm2, %v1420_v36, %v1424_v13  ;;  %6719 = vmatprep.subr.bf16.mxu1 %v7007_v61  ;;  %v748_v46 = vrot.slane %v746_v21, 7  ;;  %v402_v49 = vadd.f32 %v7433_v51, %v363_v20  ;;  %v7012_v43 = vld [vmem:[%s8830_s3 + $0x1f8] sm:$0xff]   ;;  %v1715_v21 = vld [vmem:[#allocation2 + $0x44] sm:$0x1] }
  0xa8   : > { %v5856_v45 = vcombine.low %v1415_v30, %v1425_v31  ;;  %v1831_v47 = vsel %vm7419_vm13, %v7610_v35, %v1830_v54  ;;  %v984_v50 = vsel %vm7203_vm9, %v743_v32, %v983_v7  ;;  %v403_v52 = vadd.f32 %v7433_v51, %v364_v27  ;;  %v1207_v53 = vld [vmem:[#allocation2 + $0x60] sm:$0xf]  ;;  %v990_v19 = vld [vmem:[#allocation2 + $0x78] sm:$0xf] }
  0xa9   : > { %4816 = vmatmul.mubr.bf16.gmra.mrb[28].mxu1 %v5884_v6  ;;  %v5885_v29 = vcombine.low %v7608_v34, %v1831_v47  ;;  %v5870_v42 = vrot.slane %v1713_v2, 9  ;;  %v751_v55 = vor.u32 %v749_v25, %v748_v46  ;;  %v753_v56 = vrot.slane %v748_v46, 4  ;;  %985 = vst [vmem:[#allocation2 + $0x6c] sm:$0xf] %v984_v50 }
  0xaa   : > { %4686 = vmatprep.mubr.bf16.mxu0 %v5856_v45  ;;  %4823 = vmatprep.mubr.bf16.mxu1 %v6981_v23  ;;  %v434_v35 = vmax.f32 %v402_v49, 0.0  ;;  %v6239_v57 = vunpack.c.l.bf16 %v7636_v22  ;;  %v1427_v48 = vshrl.u32 %v1207_v53, 16  ;;  %v1430_v40 = vshll.u32 %v1207_v53, 16  ;;  %v7014_v45 = vld [vmem:[%s8830_s3 + $0x1b8] sm:$0xff]  }
  0xab   : > { %4687 = vmatmul.mubr.bf16.gmra.mrb[28].mxu0 %v6974_v37  ;;  %v435_v6 = vmax.f32 %v403_v52, 0.0  ;;  %v1834_v58 = vrot.slane %v7640_v28, 5  ;;  %6720 = vmatpush3.bf16.msra.mxu1 %v7009_v39  ;;  %v752_v51 = vsel %vm7197_vm8, %v744_v38, %v751_v55  ;;  %v988_v60 = vsel %vm7211_vm10, %v753_v56, %v987_v44  ;;  %v994_v38 = vld [vmem:[#allocation2 + $0x80] sm:$0x1]  ;;  %v1716_v52 = vld [vmem:[#allocation2 + $0x48] sm:$0xe] }
  0xac   : > { %v1208_v34 = vld [vmem:[#allocation2 + $0x64] sm:$0xf]  ;;  %v1209_v59 = vld [vmem:[#allocation2 + $0x68] sm:$0x1]  ;;  %v6151_v62 = vpack.c.bf16 %v434_v35, %v434_v35  ;;  %v6240_v0 = vunpack.c.h.bf16 %v7636_v22  ;;  %v1429_v1 = vrot.slane %v1427_v48, 4  ;;  %v1432_v4 = vrot.slane %v1430_v40, 5  ;;  %6721 = vmatprep.subr.bf16.mxu1 %v7012_v43 }
  0xad   : > { %v1436_v5 = vshll.u32 %v1208_v34, 16  ;;  %v1440_v8 = vshrl.u32 %v1208_v34, 16  ;;  %986 = vst [vmem:[#allocation2 + $0x70] sm:$0xf] %v752_v51  ;;  %989 = vst [vmem:[#allocation2 + $0x74] sm:$0x1] %v988_v60  ;;  %v6152_v3 = vpack.c.bf16 %v435_v6, %v435_v6  ;;  %v7672_v18 = vsel %vm7419_vm13, %v5870_v42, %v1834_v58 }
  0xae   : > { %v1446_v12 = vshll.u32 %v1209_v59, 16  ;;  %v755_v14 = vshrl.u32 %v6151_v62, 16  ;;  %v758_v15 = vshll.u32 %v6151_v62, 16  ;;  %v1433_v61 = vor.u32 %v1432_v4, %v1429_v1  ;;  %v6978_v53 = vld [vmem:[#allocation2 + $0x60] sm:$0xff]   ;;  %v1718_v48 = vld [vmem:[#allocation2 + $0x50] sm:$0x1] }
  0xaf   : > { %v1438_v13 = vrot.slane %v1436_v5, 5  ;;  %v1442_v17 = vrot.slane %v1440_v8, 4  ;;  %v763_v36 = vshrl.u32 %v6152_v3, 16  ;;  %v766_v11 = vshll.u32 %v6152_v3, 16  ;;  %6722 = vmatpush3.bf16.msra.mxu1 %v7014_v45  ;;  %v2645_v59 = vld [vmem:[#allocation2 + $0xc] sm:$0xe] }
  0xb0   : > { %v1448_v7 = vrot.slane %v1446_v12, 5  ;;  %v757_v26 = vrot.slane %v755_v14, 7  ;;  %v1434_v23 = vrot.slane %v1433_v61, 4  ;;  %v1210_v25 = vld [vmem:[#allocation2 + $0x6c] sm:$0xf]  ;;  %v1836_v54 = vrot.slane %v1834_v58, 4 }
  0xb1   : > { %v1443_v22 = vor.u32 %v1442_v17, %v1438_v13  ;;  %4824 = vmatmul.mubr.bf16.gmra.mrb[32].mxu1 %v5885_v29  ;;  %v365_v20 = vmul.f32 %v7469_v63, %v6239_v57  ;;  %v1451_v27 = vshrl.u32 %v1210_v25, 16  ;;  %v1454_v2 = vshll.u32 %v1210_v25, 16  ;;  %v1717_v57 = vld [vmem:[#allocation2 + $0x4c] sm:$0xf]  ;;  %v6989_v1 = vld [vmem:[#allocation2 + $0x54] sm:$0xff]  }
  0xb2   : > { %v760_v28 = vor.u32 %v758_v15, %v757_v26  ;;  %v761_v30 = vrot.slane %v757_v26, 4  ;;  %4831 = vmatprep.mubr.bf16.mxu1 %v6985_v10  ;;  %v1439_v31 = vsel %vm7160_vm2, %v1434_v23, %v1438_v13  ;;  %v765_v32 = vrot.slane %v763_v36, 7  ;;  %v2646_v12 = vld [vmem:[#allocation2 + $0x10] sm:$0xf]  ;;  %v7695_v14 = vld [vmem:[%s8829_s2] ss:$0 sm:$0xff] }
  0xb3   : > { %v1444_v37 = vrot.slane %v1443_v22, 4  ;;  %v1837_v39 = vrot.slane %v1715_v21, 5  ;;  %v1453_v49 = vrot.slane %v1451_v27, 4  ;;  %v1456_v50 = vrot.slane %v1454_v2, 5  ;;  %v7699_v13 = vld [vmem:[#allocation2 + $0x14] sm:$0x1] }
  0xb4   : > { %v1211_v46 = vld [vmem:[#allocation2 + $0x70] sm:$0xf]  ;;  %v1212_v47 = vld [vmem:[#allocation2 + $0x74] sm:$0x1]  ;;  %v991_v44 = vsel %vm7203_vm9, %v760_v28, %v990_v19  ;;  %v366_v29 = vmul.f32 %v7469_v63, %v6240_v0  ;;  %v768_v58 = vor.u32 %v766_v11, %v765_v32  ;;  %v770_v34 = vrot.slane %v765_v32, 4  ;;  %v7704_v23 = vld [vmem:[%s7138_s26 + $0x78] sm:$0xff]  }
  0xb5   : > { %v1449_v42 = vsel %vm7160_vm2, %v1444_v37, %v1448_v7  ;;  %v1460_v55 = vshll.u32 %v1211_v46, 16  ;;  %v1464_v56 = vshrl.u32 %v1211_v46, 16  ;;  %v1470_v35 = vshll.u32 %v1212_v47, 16  ;;  %992 = vst [vmem:[#allocation2 + $0x78] sm:$0xf] %v991_v44  ;;  %v6983_v2 = vld [vmem:[#allocation2 + $0x6c] sm:$0xff]  }
  0xb6   : > { %v5857_v40 = vcombine.low %v1439_v31, %v1449_v42  ;;  %v1457_v6 = vor.u32 %v1456_v50, %v1453_v49  ;;  %v1838_v0 = vsel %vm7419_vm13, %v1836_v54, %v1837_v39  ;;  %v769_v5 = vsel %vm7197_vm8, %v761_v30, %v768_v58  ;;  %v6995_v50 = vld [vmem:[#allocation2 + $0x60] sm:$0xff]  }
  0xb7   : > { %v1462_v51 = vrot.slane %v1460_v55, 5  ;;  %v1466_v60 = vrot.slane %v1464_v56, 4  ;;  %v1472_v62 = vrot.slane %v1470_v35, 5  ;;  %v995_v8 = vsel %vm7211_vm10, %v770_v34, %v994_v38  ;;  %993 = vst [vmem:[#allocation2 + $0x7c] sm:$0xf] %v769_v5 }
  0xb8   : > { %4694 = vmatprep.mubr.bf16.mxu0 %v5857_v40  ;;  %v1458_v4 = vrot.slane %v1457_v6, 4  ;;  %v5886_v10 = vcombine.low %v7672_v18, %v1838_v0  ;;  %996 = vst [vmem:[#allocation2 + $0x80] sm:$0x1] %v995_v8  ;;  %v404_v15 = vadd.f32 %v7695_v14, %v365_v20  ;;  %v405_v43 = vadd.f32 %v7695_v14, %v366_v29  ;;  %v997_v40 = vld [vmem:[#allocation2 + $0x84] sm:$0xf] }
  0xb9   : > { %4695 = vmatmul.mubr.bf16.gmra.mrb[32].mxu0 %v6978_v53  ;;  %v1467_v3 = vor.u32 %v1466_v60, %v1462_v51  ;;  %v5871_v61 = vrot.slane %v1716_v52, 9  ;;  %v1841_v19 = vrot.slane %v1717_v57, 5  ;;  %v1844_v18 = vrot.slane %v1718_v48, 5  ;;  %v1719_v53 = vld [vmem:[#allocation2 + $0x54] sm:$0xe] }
  0xba   : > { %v1463_v17 = vsel %vm7160_vm2, %v1458_v4, %v1462_v51  ;;  %4832 = vmatmul.mubr.bf16.gmra.mrb[36].mxu1 %v5886_v10  ;;  %v5929_v7 = vrot.slane %v2645_v59, 9  ;;  %v436_v36 = vmax.f32 %v404_v15, 0.0  ;;  %v437_v11 = vmax.f32 %v405_v43, 0.0  ;;  %v1720_v51 = vld [vmem:[#allocation2 + $0x58] sm:$0xf] }
  0xbb   : > { %v1468_v26 = vrot.slane %v1467_v3, 4  ;;  %4839 = vmatprep.mubr.bf16.mxu1 %v6989_v1  ;;  %v2743_v21 = vrot.slane %v2646_v12, 5  ;;  %v1842_v25 = vsel %vm7419_vm13, %v5871_v61, %v1841_v19  ;;  %v1843_v54 = vrot.slane %v1841_v19, 4  ;;  %v2133_v60 = vld [vmem:[#allocation2 + $0xc] sm:$0xf] }
  0xbc   : > { %v1213_v22 = vld [vmem:[#allocation2 + $0x78] sm:$0xf]  ;;  %v2746_v20 = vrot.slane %v7699_v13, 5  ;;  %v6153_v31 = vpack.c.bf16 %v436_v36, %v436_v36  ;;  %v6154_v32 = vpack.c.bf16 %v437_v11, %v437_v11  ;;  %v6259_v39 = vunpack.c.l.bf16 %v7704_v23  ;;  %v1001_v4 = vld [vmem:[#allocation2 + $0x8c] sm:$0x1] }
  0xbd   : > { %v1473_v27 = vsel %vm7160_vm2, %v1468_v26, %v1472_v62  ;;  %v1475_v28 = vshrl.u32 %v1213_v22, 16  ;;  %v1478_v30 = vshll.u32 %v1213_v22, 16  ;;  %v1845_v38 = vsel %vm7419_vm13, %v1843_v54, %v1844_v18  ;;  %v1721_v5 = vld [vmem:[#allocation2 + $0x5c] sm:$0x1]  ;;  %v2134_v43 = vld [vmem:[#allocation2 + $0x10] sm:$0xf] }
  0xbe   : > { %v5858_v37 = vcombine.low %v1463_v17, %v1473_v27  ;;  %v772_v47 = vshrl.u32 %v6153_v31, 16  ;;  %v775_v49 = vshll.u32 %v6153_v31, 16  ;;  %v1214_v44 = vld [vmem:[#allocation2 + $0x7c] sm:$0xf]  ;;  %v5887_v52 = vcombine.low %v1842_v25, %v1845_v38  ;;  %v2135_v18 = vld [vmem:[#allocation2 + $0x14] sm:$0x1] }
  0xbf   : > { %v1477_v45 = vrot.slane %v1475_v28, 4  ;;  %v1480_v46 = vrot.slane %v1478_v30, 5  ;;  %v1215_v29 = vld [vmem:[#allocation2 + $0x80] sm:$0x1]  ;;  %v7716_v42 = vsel %vm7419_vm13, %v5929_v7, %v2743_v21  ;;  %v6260_v55 = vunpack.c.h.bf16 %v7704_v23  ;;  %v2648_v11 = vld [vmem:[#allocation2 + $0x18] sm:$0xe] }
  0xc0   : > { %4702 = vmatprep.mubr.bf16.mxu0 %v5858_v37  ;;  %v1484_v35 = vshll.u32 %v1214_v44, 16  ;;  %v1488_v57 = vshrl.u32 %v1214_v44, 16  ;;  %v1494_v48 = vshll.u32 %v1215_v29, 16  ;;  %v774_v6 = vrot.slane %v772_v47, 7  ;;  %v2649_v27 = vld [vmem:[#allocation2 + $0x1c] sm:$0xf] }
  0xc1   : > { %4703 = vmatmul.mubr.bf16.gmra.mrb[36].mxu0 %v6983_v2  ;;  %v1481_v56 = vor.u32 %v1480_v46, %v1477_v45  ;;  %v780_v58 = vshrl.u32 %v6154_v32, 16  ;;  %v783_v34 = vshll.u32 %v6154_v32, 16  ;;  %v2745_v59 = vrot.slane %v2743_v21, 4  ;;  %v2650_v2 = vld [vmem:[#allocation2 + $0x20] sm:$0x1] }
  0xc2   : > { %4840 = vmatmul.mubr.bf16.gmra.mrb[40].mxu1 %v5887_v52  ;;  %v1486_v0 = vrot.slane %v1484_v35, 5  ;;  %v1490_v1 = vrot.slane %v1488_v57, 4  ;;  %v7720_v8 = vmul.f32 %v7469_v63, %v6259_v39  ;;  %v1496_v10 = vrot.slane %v1494_v48, 5  ;;  %v1722_v37 = vld [vmem:[#allocation2 + $0x60] sm:$0xe]  ;;  %v6987_v39 = vld [vmem:[#allocation2 + $0x78] sm:$0xff]  }
  0xc3   : > { %v1482_v62 = vrot.slane %v1481_v56, 4  ;;  %4847 = vmatprep.mubr.bf16.mxu1 %v6995_v50  ;;  %v777_v12 = vor.u32 %v775_v49, %v774_v6  ;;  %v778_v3 = vrot.slane %v774_v6, 4  ;;  %v782_v15 = vrot.slane %v780_v58, 7  ;;  %v1723_v32 = vld [vmem:[#allocation2 + $0x64] sm:$0xf] }
  0xc4   : > { %v1491_v13 = vor.u32 %v1490_v1, %v1486_v0  ;;  %v7726_v17 = vsel %vm7419_vm13, %v2745_v59, %v2746_v20  ;;  %v5872_v19 = vrot.slane %v1719_v53, 9  ;;  %v1848_v36 = vrot.slane %v1720_v51, 5  ;;  %v1724_v49 = vld [vmem:[#allocation2 + $0x68] sm:$0x1]  ;;  %v6996_v53 = vld [vmem:[#allocation2 + $0x6c] sm:$0xff]  }
  0xc5   : > { %v1487_v61 = vsel %vm7160_vm2, %v1482_v62, %v1486_v0  ;;  %v785_v7 = vor.u32 %v783_v34, %v782_v15  ;;  %v787_v26 = vrot.slane %v782_v15, 4  ;;  %v998_v63 = vsel %vm7203_vm9, %v777_v12, %v997_v40  ;;  %v2136_v56 = vld [vmem:[#allocation2 + $0x18] sm:$0xf] }
  0xc6   : > { %v1492_v21 = vrot.slane %v1491_v13, 4  ;;  %999 = vst [vmem:[#allocation2 + $0x84] sm:$0xf] %v998_v63  ;;  %v1851_v22 = vrot.slane %v1721_v5, 5  ;;  %v2182_v25 = vshrl.u32 %v2133_v60, 16  ;;  %v2185_v54 = vshll.u32 %v2133_v60, 16 }
  0xc7   : > { %v786_v20 = vsel %vm7197_vm8, %v778_v3, %v785_v7  ;;  %v1002_v28 = vsel %vm7211_vm10, %v787_v26, %v1001_v4  ;;  %v1849_v30 = vsel %vm7419_vm13, %v5872_v19, %v1848_v36  ;;  %v1850_v31 = vrot.slane %v1848_v36, 4  ;;  %v7039_v26 = vld [vmem:[%s8828_s1] ss:$0 sm:$0xff]  ;;  %v2160_v9 = vld [vmem:[#allocation2 + $0x78] sm:$0xf] }
  0xc8   : > { %v1497_v38 = vsel %vm7160_vm2, %v1492_v21, %v1496_v10  ;;  %1000 = vst [vmem:[#allocation2 + $0x88] sm:$0xf] %v786_v20  ;;  %1003 = vst [vmem:[#allocation2 + $0x8c] sm:$0x1] %v1002_v28  ;;  %v2184_v45 = vrot.slane %v2182_v25, 4  ;;  %v2187_v46 = vrot.slane %v2185_v54, 5  ;;  %v5945_v6 = vcombine.low %v7716_v42, %v7726_v17 }
  0xc9   : > { %v2191_v47 = vshll.u32 %v2134_v43, 16  ;;  %v5859_v50 = vcombine.low %v1487_v61, %v1497_v38  ;;  %v1852_v44 = vsel %vm7419_vm13, %v1850_v31, %v1851_v22  ;;  %v2195_v29 = vshrl.u32 %v2134_v43, 16  ;;  %v2137_v54 = vld [vmem:[#allocation2 + $0x1c] sm:$0xf] }
  0xca   : > { %v2201_v52 = vshll.u32 %v2135_v18, 16  ;;  %v5888_v35 = vcombine.low %v1849_v30, %v1852_v44  ;;  %v2188_v57 = vor.u32 %v2187_v46, %v2184_v45  ;;  %v5930_v40 = vrot.slane %v2648_v11, 9  ;;  %v7000_v46 = vld [vmem:[#allocation2 + $0x78] sm:$0xff]  }
  0xcb   : > { %v2193_v48 = vrot.slane %v2191_v47, 5  ;;  %4710 = vmatprep.mubr.bf16.mxu0 %v5859_v50  ;;  %v2197_v58 = vrot.slane %v2195_v29, 4  ;;  %v2750_v34 = vrot.slane %v2649_v27, 5  ;;  %v2753_v59 = vrot.slane %v2650_v2, 5  ;;  %v2138_v27 = vld [vmem:[#allocation2 + $0x20] sm:$0x1] }
  0xcc   : > { %4711 = vmatmul.mubr.bf16.gmra.mrb[40].mxu0 %v6987_v39  ;;  %4848 = vmatmul.mubr.bf16.gmra.mrb[44].mxu1 %v5888_v35  ;;  %v2189_v51 = vrot.slane %v2188_v57, 4  ;;  %v2203_v60 = vrot.slane %v2201_v52, 5  ;;  %v5873_v62 = vrot.slane %v1722_v37, 9  ;;  %v1855_v0 = vrot.slane %v1723_v32, 5  ;;  %v2651_v32 = vld [vmem:[#allocation2 + $0x24] sm:$0xe] }
  0xcd   : > { %v1216_v1 = vld [vmem:[#allocation2 + $0x84] sm:$0xf]  ;;  %v2198_v4 = vor.u32 %v2197_v58, %v2193_v48  ;;  %4855 = vmatprep.mubr.bf16.mxu1 %v6996_v53  ;;  %v7744_v5 = vsel %vm7419_vm13, %v5930_v40, %v2750_v34  ;;  %v2752_v10 = vrot.slane %v2750_v34, 4  ;;  %v1858_v12 = vrot.slane %v1724_v49, 5  ;;  %v2652_v47 = vld [vmem:[#allocation2 + $0x28] sm:$0xf] }
  0xce   : > { %v1499_v3 = vshrl.u32 %v1216_v1, 16  ;;  %v1502_v15 = vshll.u32 %v1216_v1, 16  ;;  %v2194_v43 = vsel %vm7160_vm2, %v2189_v51, %v2193_v48  ;;  %v2206_v61 = vshrl.u32 %v2136_v56, 16  ;;  %v2653_v52 = vld [vmem:[#allocation2 + $0x2c] sm:$0x1] }
  0xcf   : > { %v1217_v13 = vld [vmem:[#allocation2 + $0x88] sm:$0xf]  ;;  %v1218_v19 = vld [vmem:[#allocation2 + $0x8c] sm:$0x1]  ;;  %v7750_v18 = vsel %vm7419_vm13, %v2752_v10, %v2753_v59  ;;  %v1856_v7 = vsel %vm7419_vm13, %v5873_v62, %v1855_v0  ;;  %v7759_v63 = vmul.f32 %v7039_v26, %v6260_v55  ;;  %v7763_v36 = vadd.f32 %v7695_v14, %v7720_v8  ;;  %v1725_v53 = vld [vmem:[#allocation2 + $0x6c] sm:$0xe] }
  0xd0   : > { %v1501_v11 = vrot.slane %v1499_v3, 4  ;;  %v1504_v21 = vrot.slane %v1502_v15, 5  ;;  %v1508_v22 = vshll.u32 %v1217_v13, 16  ;;  %v1512_v25 = vshrl.u32 %v1217_v13, 16  ;;  %v1726_v58 = vld [vmem:[#allocation2 + $0x70] sm:$0xf] }
  0xd1   : > { %v1518_v2 = vshll.u32 %v1218_v19, 16  ;;  %v2199_v20 = vrot.slane %v2198_v4, 4  ;;  %v5946_v28 = vcombine.low %v7744_v5, %v7750_v18  ;;  %v1857_v30 = vrot.slane %v1855_v0, 4  ;;  %v1727_v34 = vld [vmem:[#allocation2 + $0x74] sm:$0x1]  ;;  %v6991_v15 = vld [vmem:[#allocation2 + $0x84] sm:$0xff]  }
  0xd2   : > { %v1505_v31 = vor.u32 %v1504_v21, %v1501_v11  ;;  %v1510_v23 = vrot.slane %v1508_v22, 5  ;;  %v1514_v55 = vrot.slane %v1512_v25, 4  ;;  %v2208_v37 = vrot.slane %v2206_v61, 4  ;;  %v2139_v62 = vld [vmem:[#allocation2 + $0x24] sm:$0xf] }
  0xd3   : > { %v1520_v38 = vrot.slane %v1518_v2, 5  ;;  %v2204_v8 = vsel %vm7160_vm2, %v2199_v20, %v2203_v60  ;;  %v1859_v39 = vsel %vm7419_vm13, %v1857_v30, %v1858_v12  ;;  %v2209_v45 = vshll.u32 %v2136_v56, 16  ;;  %v2140_v12 = vld [vmem:[#allocation2 + $0x28] sm:$0xf]  ;;  %v2141_v21 = vld [vmem:[#allocation2 + $0x2c] sm:$0x1] }
  0xd4   : > { %v1506_v49 = vrot.slane %v1505_v31, 4  ;;  %v1515_v50 = vor.u32 %v1514_v55, %v1510_v23  ;;  %v7771_v44 = vcombine.low %v2194_v43, %v2204_v8  ;;  %v5889_v29 = vcombine.low %v1856_v7, %v1859_v39  ;;  %v2654_v22 = vld [vmem:[#allocation2 + $0x30] sm:$0xe]  ;;  %v2655_v55 = vld [vmem:[#allocation2 + $0x34] sm:$0xf] }
  0xd5   : > { %v2211_v35 = vrot.slane %v2209_v45, 5  ;;  %v2215_v57 = vshll.u32 %v2137_v54, 16  ;;  %v2219_v48 = vshrl.u32 %v2137_v54, 16  ;;  %v2225_v40 = vshll.u32 %v2138_v27, 16 }
  0xd6   : > { %v1511_v59 = vsel %vm7160_vm2, %v1506_v49, %v1510_v23  ;;  %v1516_v51 = vrot.slane %v1515_v50, 4  ;;  %4856 = vmatmul.mubr.bf16.gmra.mrb[48].mxu1 %v5889_v29  ;;  %v5931_v56 = vrot.slane %v2651_v32, 9  ;;  %v2757_v60 = vrot.slane %v2652_v47, 5  ;;  %v1728_v32 = vld [vmem:[#allocation2 + $0x78] sm:$0xe] }
  0xd7   : > { %v2212_v0 = vor.u32 %v2211_v35, %v2208_v37  ;;  %v2217_v1 = vrot.slane %v2215_v57, 5  ;;  %v2221_v4 = vrot.slane %v2219_v48, 4  ;;  %v2227_v10 = vrot.slane %v2225_v40, 5  ;;  %4863 = vmatprep.mubr.bf16.mxu1 %v7000_v46  ;;  %v2656_v37 = vld [vmem:[#allocation2 + $0x38] sm:$0x1]  ;;  %v7001_v48 = vld [vmem:[#allocation2 + $0x84] sm:$0xff]  }
  0xd8   : > { %v1521_v3 = vsel %vm7160_vm2, %v1516_v51, %v1520_v38  ;;  %v7779_v43 = vsel %vm7419_vm13, %v5931_v56, %v2757_v60  ;;  %v2759_v61 = vrot.slane %v2757_v60, 4  ;;  %v2760_v13 = vrot.slane %v2653_v52, 5  ;;  %v1729_v38 = vld [vmem:[#allocation2 + $0x7c] sm:$0xf]  ;;  %v1730_v52 = vld [vmem:[#allocation2 + $0x80] sm:$0x1] }
  0xd9   : > { %v5860_v19 = vcombine.low %v1511_v59, %v1521_v3  ;;  %v2213_v7 = vrot.slane %v2212_v0, 4  ;;  %v2222_v26 = vor.u32 %v2221_v4, %v2217_v1  ;;  %v5874_v11 = vrot.slane %v1725_v53, 9  ;;  %v7003_v4 = vld [vmem:[%s8830_s3 + $0x208] sm:$0xff]  }
  0xda   : > { %v7783_v25 = vsel %vm7419_vm13, %v2759_v61, %v2760_v13  ;;  %v1862_v54 = vrot.slane %v1726_v58, 5  ;;  %v1865_v27 = vrot.slane %v1727_v34, 5  ;;  %v2230_v2 = vshrl.u32 %v2139_v62, 16  ;;  %v2142_v58 = vld [vmem:[#allocation2 + $0x30] sm:$0xf] }
  0xdb   : > { %4718 = vmatprep.mubr.bf16.mxu0 %v5860_v19  ;;  %v2218_v20 = vsel %vm7160_vm2, %v2213_v7, %v2217_v1  ;;  %v2223_v30 = vrot.slane %v2222_v26, 4  ;;  %v5947_v31 = vcombine.low %v7779_v43, %v7783_v25  ;;  %v2233_v23 = vshll.u32 %v2139_v62, 16  ;;  %v2143_v62 = vld [vmem:[#allocation2 + $0x34] sm:$0xf]  ;;  %v2657_v7 = vld [vmem:[#allocation2 + $0x3c] sm:$0xe] }
  0xdc   : > { %4719 = vmatmul.mubr.bf16.gmra.mrb[44].mxu0 %v6991_v15  ;;  %v1863_v8 = vsel %vm7419_vm13, %v5874_v11, %v1862_v54  ;;  %v1864_v39 = vrot.slane %v1862_v54, 4  ;;  %v2232_v45 = vrot.slane %v2230_v2, 4  ;;  %v2239_v46 = vshll.u32 %v2140_v12, 16 }
  0xdd   : > { %4952 = vmatprep.mubr.bf16.mxu0 %v5945_v6  ;;  %v2228_v47 = vsel %vm7160_vm2, %v2223_v30, %v2227_v10  ;;  %v2235_v49 = vrot.slane %v2233_v23, 5  ;;  %v2243_v50 = vshrl.u32 %v2140_v12, 16  ;;  %v2249_v29 = vshll.u32 %v2141_v21, 16  ;;  %v2144_v12 = vld [vmem:[#allocation2 + $0x38] sm:$0x1] }
  0xde   : > { %v7796_v53 = vcombine.low %v2218_v20, %v2228_v47  ;;  %v1866_v35 = vsel %vm7419_vm13, %v1864_v39, %v1865_v27  ;;  %v2241_v57 = vrot.slane %v2239_v46, 5  ;;  %v5932_v40 = vrot.slane %v2654_v22, 9  ;;  %v2658_v30 = vld [vmem:[#allocation2 + $0x40] sm:$0xf]  ;;  %v2659_v23 = vld [vmem:[#allocation2 + $0x44] sm:$0x1] }
  0xdf   : > { %v5890_v34 = vcombine.low %v1863_v8, %v1866_v35  ;;  %v2236_v59 = vor.u32 %v2235_v49, %v2232_v45  ;;  %v2245_v42 = vrot.slane %v2243_v50, 4  ;;  %v2251_v17 = vrot.slane %v2249_v29, 5  ;;  %v7005_v8 = vld [vmem:[#allocation2 + $0x90] sm:$0xff]   ;;  %v1731_v39 = vld [vmem:[#allocation2 + $0x84] sm:$0xe] }
  0xe0   : > { %v2764_v6 = vrot.slane %v2655_v55, 5  ;;  %v2767_v51 = vrot.slane %v2656_v37, 5  ;;  %v5875_v56 = vrot.slane %v1728_v32, 9  ;;  %v1869_v60 = vrot.slane %v1729_v38, 5  ;;  %v7040_v55 = vld [vmem:[%s8830_s3 + $0x200] sm:$0xff]   ;;  %v7008_v49 = vld [vmem:[%s8830_s3 + $0x210] sm:$0xff]  }
  0xe1   : > { %4864 = vmatmul.mubr.bf16.gmra.mrb[52].mxu1 %v5890_v34  ;;  %v2237_v0 = vrot.slane %v2236_v59, 4  ;;  %v2246_v1 = vor.u32 %v2245_v42, %v2241_v57  ;;  %v1872_v10 = vrot.slane %v1730_v52, 5  ;;  %v2254_v3 = vshrl.u32 %v2142_v58, 16  ;;  %v1732_v45 = vld [vmem:[#allocation2 + $0x88] sm:$0xf] }
  0xe2   : > { %4871 = vmatprep.mubr.bf16.mxu1 %v7001_v48  ;;  %v7805_v15 = vsel %vm7419_vm13, %v5932_v40, %v2764_v6  ;;  %v2766_v61 = vrot.slane %v2764_v6, 4  ;;  %v1870_v13 = vsel %vm7419_vm13, %v5875_v56, %v1869_v60  ;;  %v1871_v19 = vrot.slane %v1869_v60, 4  ;;  %v1733_v47 = vld [vmem:[#allocation2 + $0x8c] sm:$0x1]  ;;  %v2146_v59 = vld [vmem:[#allocation2 + $0x40] sm:$0xf] }
  0xe3   : > { %v2242_v26 = vsel %vm7160_vm2, %v2237_v0, %v2241_v57  ;;  %v2247_v11 = vrot.slane %v2246_v1, 4  ;;  %v2256_v21 = vrot.slane %v2254_v3, 4  ;;  %v2257_v22 = vshll.u32 %v2142_v58, 16  ;;  %v2145_v57 = vld [vmem:[#allocation2 + $0x3c] sm:$0xf] }
  0xe4   : > { %4953 = vmatmul.mubr.bf16.vlgmr.msra.gmra.mrb[48].mxu0 %v7771_v44  ;;  %v7814_v54 = vsel %vm7419_vm13, %v2766_v61, %v2767_v51  ;;  %v1873_v27 = vsel %vm7419_vm13, %v1871_v19, %v1872_v10  ;;  %v2263_v2 = vshll.u32 %v2143_v62, 16  ;;  %v2267_v20 = vshrl.u32 %v2143_v62, 16  ;;  %v2147_v56 = vld [vmem:[#allocation2 + $0x44] sm:$0x1]  ;;  %v2660_v60 = vld [vmem:[#allocation2 + $0x48] sm:$0xe] }
  0xe5   : > { %4960 = vmatprep.mubr.bf16.mxu0 %v5946_v28  ;;  %6844 = vmatpush3.bf16.msra.mxu0 %v7040_v55  ;;  %v2252_v44 = vsel %vm7160_vm2, %v2247_v11, %v2251_v17  ;;  %v5948_v37 = vcombine.low %v7805_v15, %v7814_v54  ;;  %v5891_v32 = vcombine.low %v1870_v13, %v1873_v27  ;;  %v2259_v38 = vrot.slane %v2257_v22, 5  ;;  %v2661_v62 = vld [vmem:[#allocation2 + $0x4c] sm:$0xf]  ;;  %v2662_v3 = vld [vmem:[#allocation2 + $0x50] sm:$0x1] }
  0xe6   : > { %v7828_v46 = vcombine.low %v2242_v26, %v2252_v44  ;;  %6845 = vmatprep.subr.bf16.mxu0 %v7003_v4  ;;  %v2265_v5 = vrot.slane %v2263_v2, 5  ;;  %v2269_v18 = vrot.slane %v2267_v20, 4  ;;  %v2273_v28 = vshll.u32 %v2144_v12, 16  ;;  %v1734_v61 = vld [vmem:[#allocation2 + $0x90] sm:$0xe]  ;;  %v7006_v2 = vld [vmem:[#allocation2 + $0x9c] sm:$0xff]  }
  0xe7   : > { %v2260_v50 = vor.u32 %v2259_v38, %v2256_v21  ;;  %v5933_v29 = vrot.slane %v2657_v7, 9  ;;  %v2771_v52 = vrot.slane %v2658_v30, 5  ;;  %v2774_v35 = vrot.slane %v2659_v23, 5  ;;  %v1735_v20 = vld [vmem:[#allocation2 + $0x94] sm:$0xf]  ;;  %v7016_v23 = vld [vmem:[%s8830_s3 + $0x220] sm:$0xff]  }
  0xe8   : > { %v2270_v48 = vor.u32 %v2269_v18, %v2265_v5  ;;  %v2275_v40 = vrot.slane %v2273_v28, 5  ;;  %v5876_v58 = vrot.slane %v1731_v39, 9  ;;  %v1876_v34 = vrot.slane %v1732_v45, 5  ;;  %v1736_v30 = vld [vmem:[#allocation2 + $0x98] sm:$0x1] }
  0xe9   : > { %4872 = vmatmul.mubr.bf16.gmra.mrb[56].mxu1 %v5891_v32  ;;  %v2261_v42 = vrot.slane %v2260_v50, 4  ;;  %6846 = vmatpush3.bf16.msra.mxu0 %v7003_v4  ;;  %v7835_v17 = vsel %vm7419_vm13, %v5933_v29, %v2771_v52  ;;  %v2773_v6 = vrot.slane %v2771_v52, 4  ;;  %v1879_v51 = vrot.slane %v1733_v47, 5  ;;  %v7013_v4 = vld [vmem:[%s8830_s3 + $0x218] sm:$0xff]   ;;  %v2148_v38 = vld [vmem:[#allocation2 + $0x48] sm:$0xf] }
  0xea   : > { %v2271_v0 = vrot.slane %v2270_v48, 4  ;;  %4879 = vmatprep.mubr.bf16.mxu1 %v7005_v8  ;;  %v1877_v1 = vsel %vm7419_vm13, %v5876_v58, %v1876_v34  ;;  %v1878_v10 = vrot.slane %v1876_v34, 4  ;;  %v2278_v12 = vshrl.u32 %v2145_v57, 16  ;;  %6847 = vmatprep.subr.bf16.mxu0 %v7008_v49  ;;  %v2149_v18 = vld [vmem:[#allocation2 + $0x4c] sm:$0xf] }
  0xeb   : > { %v2266_v13 = vsel %vm7160_vm2, %v2261_v42, %v2265_v5  ;;  %v7846_v19 = vsel %vm7419_vm13, %v2773_v6, %v2774_v35  ;;  %v2281_v7 = vshll.u32 %v2145_v57, 16  ;;  %v2287_v26 = vshll.u32 %v2146_v59, 16  ;;  %v2150_v35 = vld [vmem:[#allocation2 + $0x50] sm:$0x1]  ;;  %v2663_v58 = vld [vmem:[#allocation2 + $0x54] sm:$0xe] }
  0xec   : > { %4961 = vmatmul.mubr.bf16.gmra.mrb[52].mxu0 %v7796_v53  ;;  %v2276_v11 = vsel %vm7160_vm2, %v2271_v0, %v2275_v40  ;;  %v5949_v21 = vcombine.low %v7835_v17, %v7846_v19  ;;  %v1880_v22 = vsel %vm7419_vm13, %v1878_v10, %v1879_v51  ;;  %v2280_v27 = vrot.slane %v2278_v12, 4  ;;  %v7019_v34 = vld [vmem:[%s8830_s3 + $0x228] sm:$0xff]   ;;  %v1737_v12 = vld [vmem:[#allocation2 + $0x9c] sm:$0xe]  ;;  %v2152_v15 = vld [vmem:[#allocation2 + $0x58] sm:$0xf] }
  0xed   : > { %4968 = vmatprep.mubr.bf16.mxu0 %v5947_v31  ;;  %v7861_v53 = vcombine.low %v2266_v13, %v2276_v11  ;;  %v5892_v55 = vcombine.low %v1877_v1, %v1880_v22  ;;  %v2283_v44 = vrot.slane %v2281_v7, 5  ;;  %v2289_v32 = vrot.slane %v2287_v26, 5  ;;  %6848 = vmatpush3.bf16.msra.mxu0 %v7008_v49  ;;  %v7010_v26 = vld [vmem:[#allocation2 + $0xa8] sm:$0xff]   ;;  %v1739_v11 = vld [vmem:[#allocation2 + $0xa4] sm:$0x1]  ;;  %v7022_v22 = vld [vmem:[%s8830_s3 + $0x230] sm:$0xff]  }
  0xee   : > { %v2291_v8 = vshrl.u32 %v2146_v59, 16  ;;  %v2297_v39 = vshll.u32 %v2147_v56, 16  ;;  %v5934_v45 = vrot.slane %v2660_v60, 9  ;;  %v2778_v5 = vrot.slane %v2661_v62, 5  ;;  %6849 = vmatprep.subr.bf16.mxu0 %v7013_v4  ;;  %v2664_v56 = vld [vmem:[#allocation2 + $0x58] sm:$0xf] }
  0xef   : > { %v2284_v28 = vor.u32 %v2283_v44, %v2280_v27  ;;  %v2781_v47 = vrot.slane %v2662_v3, 5  ;;  %v5877_v50 = vrot.slane %v1734_v61, 9  ;;  %v1883_v29 = vrot.slane %v1735_v20, 5  ;;  %v2665_v60 = vld [vmem:[#allocation2 + $0x5c] sm:$0x1] }
  0xf0   : > { %v2293_v52 = vrot.slane %v2291_v8, 4  ;;  %v2299_v43 = vrot.slane %v2297_v39, 5  ;;  %v7865_v25 = vsel %vm7419_vm13, %v5934_v45, %v2778_v5  ;;  %v2780_v31 = vrot.slane %v2778_v5, 4  ;;  %v1738_v3 = vld [vmem:[#allocation2 + $0xa0] sm:$0xf] }
  0xf1   : > { %4880 = vmatmul.mubr.bf16.gmra.mrb[60].mxu1 %v5892_v55  ;;  %v2285_v49 = vrot.slane %v2284_v28, 4  ;;  %v1884_v57 = vsel %vm7419_vm13, %v5877_v50, %v1883_v29  ;;  %v1885_v48 = vrot.slane %v1883_v29, 4  ;;  %v1886_v40 = vrot.slane %v1736_v30, 5  ;;  %6850 = vmatpush3.bf16.msra.mxu0 %v7013_v4  ;;  %v2153_v28 = vld [vmem:[#allocation2 + $0x5c] sm:$0x1] }
  0xf2   : > { %v2294_v59 = vor.u32 %v2293_v52, %v2289_v32  ;;  %4887 = vmatprep.mubr.bf16.mxu1 %v7006_v2  ;;  %v7874_v42 = vsel %vm7419_vm13, %v2780_v31, %v2781_v47  ;;  %v2302_v6 = vshrl.u32 %v2148_v38, 16  ;;  %v2305_v51 = vshll.u32 %v2148_v38, 16  ;;  %6851 = vmatprep.subr.bf16.mxu0 %v7016_v23  ;;  %v2151_v38 = vld [vmem:[#allocation2 + $0x54] sm:$0xf] }
  0xf3   : > { %v2290_v62 = vsel %vm7160_vm2, %v2285_v49, %v2289_v32  ;;  %v5950_v0 = vcombine.low %v7865_v25, %v7874_v42  ;;  %v1887_v1 = vsel %vm7419_vm13, %v1885_v48, %v1886_v40  ;;  %v2311_v10 = vshll.u32 %v2149_v18, 16  ;;  %v2667_v48 = vld [vmem:[#allocation2 + $0x64] sm:$0xf]  ;;  %v2668_v40 = vld [vmem:[#allocation2 + $0x68] sm:$0x1] }
  0xf4   : > { %4969 = vmatmul.mubr.bf16.gmra.mrb[56].mxu0 %v7828_v46  ;;  %v2295_v61 = vrot.slane %v2294_v59, 4  ;;  %v5893_v4 = vcombine.low %v1884_v57, %v1887_v1  ;;  %v2304_v13 = vrot.slane %v2302_v6, 4  ;;  %v2307_v7 = vrot.slane %v2305_v51, 5 }
  0xf5   : > { %4976 = vmatprep.mubr.bf16.mxu0 %v5948_v37  ;;  %v2313_v27 = vrot.slane %v2311_v10, 5  ;;  %v2315_v2 = vshrl.u32 %v2149_v18, 16  ;;  %v2321_v20 = vshll.u32 %v2150_v35, 16  ;;  %v5935_v30 = vrot.slane %v2663_v58, 9  ;;  %6852 = vmatpush3.bf16.msra.mxu0 %v7016_v23  ;;  %v7025_v58 = vld [vmem:[%s8830_s3 + $0x238] sm:$0xff]  }
  0xf6   : > { %v2300_v46 = vsel %vm7160_vm2, %v2295_v61, %v2299_v43  ;;  %v2308_v55 = vor.u32 %v2307_v7, %v2304_v13  ;;  %v2785_v44 = vrot.slane %v2664_v56, 5  ;;  %v2788_v32 = vrot.slane %v2665_v60, 5  ;;  %6853 = vmatprep.subr.bf16.mxu0 %v7019_v34  ;;  %v2666_v43 = vld [vmem:[#allocation2 + $0x60] sm:$0xe]  ;;  %v1740_v56 = vld [vmem:[#allocation2 + $0xa8] sm:$0xe] }
  0xf7   : > { %v7891_v8 = vcombine.low %v2290_v62, %v2300_v46  ;;  %v2317_v39 = vrot.slane %v2315_v2, 4  ;;  %v2323_v45 = vrot.slane %v2321_v20, 5  ;;  %v5878_v5 = vrot.slane %v1737_v12, 9  ;;  %v1741_v12 = vld [vmem:[#allocation2 + $0xac] sm:$0xf]  ;;  %v7011_v20 = vld [vmem:[#allocation2 + $0xb4] sm:$0xff]  }
  0xf8   : > { %v2309_v54 = vrot.slane %v2308_v55, 4  ;;  %v7895_v37 = vsel %vm7419_vm13, %v5935_v30, %v2785_v44  ;;  %v2787_v23 = vrot.slane %v2785_v44, 4  ;;  %v1890_v18 = vrot.slane %v1738_v3, 5  ;;  %v1742_v7 = vld [vmem:[#allocation2 + $0xb0] sm:$0x1] }
  0xf9   : > { %4888 = vmatmul.mubr.bf16.gmra.mrb[64].mxu1 %v5893_v4  ;;  %v2318_v47 = vor.u32 %v2317_v39, %v2313_v27  ;;  %v1893_v50 = vrot.slane %v1739_v11, 5  ;;  %v2326_v29 = vshrl.u32 %v2151_v38, 16  ;;  %v2329_v52 = vshll.u32 %v2151_v38, 16  ;;  %6854 = vmatpush3.bf16.msra.mxu0 %v7019_v34 }
  0xfa   : > { %v2314_v31 = vsel %vm7160_vm2, %v2309_v54, %v2313_v27  ;;  %4895 = vmatprep.mubr.bf16.mxu1 %v7010_v26  ;;  %v7901_v35 = vsel %vm7419_vm13, %v2787_v23, %v2788_v32  ;;  %v1891_v49 = vsel %vm7419_vm13, %v5878_v5, %v1890_v18  ;;  %v1892_v57 = vrot.slane %v1890_v18, 4  ;;  %6855 = vmatprep.subr.bf16.mxu0 %v7022_v22  ;;  %v2154_v26 = vld [vmem:[#allocation2 + $0x60] sm:$0xf]  ;;  %v2155_v32 = vld [vmem:[#allocation2 + $0x64] sm:$0xf] }
  0xfb   : > { %v2319_v34 = vrot.slane %v2318_v47, 4  ;;  %v5951_v59 = vcombine.low %v7895_v37, %v7901_v35  ;;  %v2328_v6 = vrot.slane %v2326_v29, 4  ;;  %v2331_v51 = vrot.slane %v2329_v52, 5  ;;  %v2156_v5 = vld [vmem:[#allocation2 + $0x68] sm:$0x1] }
  0xfc   : > { %4977 = vmatmul.mubr.bf16.gmra.mrb[60].mxu0 %v7861_v53  ;;  %v1894_v60 = vsel %vm7419_vm13, %v1892_v57, %v1893_v50  ;;  %v2335_v62 = vshll.u32 %v2152_v15, 16  ;;  %v2339_v1 = vshrl.u32 %v2152_v15, 16  ;;  %v2345_v10 = vshll.u32 %v2153_v28, 16  ;;  %v2669_v47 = vld [vmem:[#allocation2 + $0x6c] sm:$0xe] }
  0xfd   : > { %4984 = vmatprep.mubr.bf16.mxu0 %v5949_v21  ;;  %v2324_v3 = vsel %vm7160_vm2, %v2319_v34, %v2323_v45  ;;  %v5894_v61 = vcombine.low %v1891_v49, %v1894_v60  ;;  %v2332_v4 = vor.u32 %v2331_v51, %v2328_v6  ;;  %v5936_v13 = vrot.slane %v2666_v43, 9  ;;  %6856 = vmatpush3.bf16.msra.mxu0 %v7022_v22  ;;  %v2670_v50 = vld [vmem:[#allocation2 + $0x70] sm:$0xf]  ;;  %v2671_v6 = vld [vmem:[#allocation2 + $0x74] sm:$0x1] }
  0xfe   : > { %v7918_v53 = vcombine.low %v2314_v31, %v2324_v3  ;;  %v2337_v11 = vrot.slane %v2335_v62, 5  ;;  %v2341_v27 = vrot.slane %v2339_v1, 4  ;;  %v2347_v2 = vrot.slane %v2345_v10, 5  ;;  %6857 = vmatprep.subr.bf16.mxu0 %v7025_v58  ;;  %v1743_v1 = vld [vmem:[#allocation2 + $0xb4] sm:$0xe] }
  0xff   : > { %v2333_v30 = vrot.slane %v2332_v4, 4  ;;  %v2792_v46 = vrot.slane %v2667_v48, 5  ;;  %v2795_v17 = vrot.slane %v2668_v40, 5  ;;  %v5879_v19 = vrot.slane %v1740_v56, 9  ;;  %v1744_v10 = vld [vmem:[#allocation2 + $0xb8] sm:$0xf] }
 0x100   : > { %v2342_v21 = vor.u32 %v2341_v27, %v2337_v11  ;;  %v1897_v55 = vrot.slane %v1741_v12, 5  ;;  %v1900_v44 = vrot.slane %v1742_v7, 5  ;;  %v2350_v38 = vshrl.u32 %v2154_v26, 16  ;;  %v2673_v37 = vld [vmem:[#allocation2 + $0x7c] sm:$0xf] }
 0x101   : > { %4896 = vmatmul.mubr.bf16.gmra.mrb[68].mxu1 %v5894_v61  ;;  %v2338_v22 = vsel %vm7160_vm2, %v2333_v30, %v2337_v11  ;;  %v7924_v39 = vsel %vm7419_vm13, %v5936_v13, %v2792_v46  ;;  %v2794_v45 = vrot.slane %v2792_v46, 4  ;;  %v2353_v15 = vshll.u32 %v2154_v26, 16  ;;  %6858 = vmatpush3.bf16.msra.mxu0 %v7025_v58  ;;  %v7928_v29 = vpop.f32.mrb[0].mxu0 }
 0x102   : > { %v2343_v54 = vrot.slane %v2342_v21, 4  ;;  %4903 = vmatprep.mubr.bf16.mxu1 %v7011_v20  ;;  %v1898_v23 = vsel %vm7419_vm13, %v5879_v19, %v1897_v55  ;;  %v1899_v18 = vrot.slane %v1897_v55, 4  ;;  %v2352_v28 = vrot.slane %v2350_v38, 4  ;;  %v7934_v57 = vpop.f32.mrb[1].mxu0  ;;  %v2157_v55 = vld [vmem:[#allocation2 + $0x6c] sm:$0xf] }
 0x103   : > { %v7932_v52 = vsel %vm7419_vm13, %v2794_v45, %v2795_v17  ;;  %v2355_v43 = vrot.slane %v2353_v15, 5  ;;  %v2359_v31 = vshll.u32 %v2155_v32, 16  ;;  %v2363_v49 = vshrl.u32 %v2155_v32, 16  ;;  %v7943_v51 = vpop.f32.mrb[2].mxu0 }
 0x104   : > { %4985 = vmatmul.mubr.bf16.gmra.mrb[64].mxu0 %v7891_v8  ;;  %v2348_v48 = vsel %vm7160_vm2, %v2343_v54, %v2347_v2  ;;  %v5952_v40 = vcombine.low %v7924_v39, %v7932_v52  ;;  %v1901_v58 = vsel %vm7419_vm13, %v1899_v18, %v1900_v44  ;;  %v2369_v34 = vshll.u32 %v2156_v5, 16  ;;  %v7950_v12 = vpop.f32.mrb[3].mxu0  ;;  %v1745_v2 = vld [vmem:[#allocation2 + $0xbc] sm:$0x1]  ;;  %v1032_v44 = vld [vmem:[#allocation2 + $0xc0] sm:$0xf] }
 0x105   : > { %4992 = vmatprep.mubr.bf16.mxu0 %v5950_v0  ;;  %v7948_v56 = vcombine.low %v2338_v22, %v2348_v48  ;;  %v5895_v8 = vcombine.low %v1898_v23, %v1901_v58  ;;  %v2356_v60 = vor.u32 %v2355_v43, %v2352_v28  ;;  %v2361_v62 = vrot.slane %v2359_v31, 5  ;;  %v2158_v5 = vld [vmem:[#allocation2 + $0x70] sm:$0xf]  ;;  %v2159_v28 = vld [vmem:[#allocation2 + $0x74] sm:$0x1] }
 0x106   : > { %v2365_v3 = vrot.slane %v2363_v49, 4  ;;  %v2371_v61 = vrot.slane %v2369_v34, 5  ;;  %v415_v4 = vadd.f32 %v7695_v14, %v7759_v63  ;;  %v446_v13 = vmax.f32 %v7763_v36, 0.0  ;;  %v2672_v31 = vld [vmem:[#allocation2 + $0x78] sm:$0xe] }
 0x107   : > { %v2357_v7 = vrot.slane %v2356_v60, 4  ;;  %v5937_v26 = vrot.slane %v2669_v47, 9  ;;  %v2799_v25 = vrot.slane %v2670_v50, 5  ;;  %v2802_v42 = vrot.slane %v2671_v6, 5  ;;  %v2674_v60 = vld [vmem:[#allocation2 + $0x80] sm:$0x1] }
 0x108   : > { %v2366_v0 = vor.u32 %v2365_v3, %v2361_v62  ;;  %v447_v11 = vmax.f32 %v415_v4, 0.0  ;;  %v6163_v27 = vpack.c.bf16 %v446_v13, %v446_v13  ;;  %v5880_v20 = vrot.slane %v1743_v1, 9 }
 0x109   : > { %4904 = vmatmul.mubr.bf16.gmra.mrb[72].mxu1 %v5895_v8  ;;  %v2362_v30 = vsel %vm7160_vm2, %v2357_v7, %v2361_v62  ;;  %v7959_v46 = vsel %vm7419_vm13, %v5937_v26, %v2799_v25  ;;  %v2801_v14 = vrot.slane %v2799_v25, 4  ;;  %v1904_v63 = vrot.slane %v1744_v10, 5  ;;  %v3079_v25 = vld [vmem:[#allocation2 + $0x1c] sm:$0xf] }
 0x10a   : > { %v2367_v36 = vrot.slane %v2366_v0, 4  ;;  %v6164_v17 = vpack.c.bf16 %v447_v11, %v447_v11  ;;  %v857_v19 = vshrl.u32 %v6163_v27, 16  ;;  %v860_v21 = vshll.u32 %v6163_v27, 16 }
 0x10b   : > { %v7963_v32 = vsel %vm7419_vm13, %v2801_v14, %v2802_v42  ;;  %v7967_v38 = vsel %vm7419_vm13, %v5880_v20, %v1904_v63  ;;  %v1906_v22 = vrot.slane %v1904_v63, 4  ;;  %v1907_v45 = vrot.slane %v1745_v2, 5  ;;  %v3080_v2 = vld [vmem:[#allocation2 + $0x20] sm:$0x1] }
 0x10c   : > { %4993 = vmatmul.mubr.bf16.gmra.mrb[68].mxu0 %v7918_v53  ;;  %v2372_v15 = vsel %vm7160_vm2, %v2367_v36, %v2371_v61  ;;  %v859_v54 = vrot.slane %v857_v19, 7  ;;  %v865_v23 = vshrl.u32 %v6164_v17, 16  ;;  %v868_v18 = vshll.u32 %v6164_v17, 16  ;;  %v3078_v61 = vld [vmem:[#allocation2 + $0x18] sm:$0xf] }
 0x10d   : > { %5000 = vmatprep.mubr.bf16.mxu0 %v5951_v59  ;;  %v7975_v47 = vcombine.low %v2362_v30, %v2372_v15  ;;  %v5953_v50 = vcombine.low %v7959_v46, %v7963_v32  ;;  %v7981_v43 = vsel %vm7419_vm13, %v1906_v22, %v1907_v45  ;;  %v2374_v53 = vshrl.u32 %v2157_v55, 16  ;;  %v2161_v45 = vld [vmem:[#allocation2 + $0x7c] sm:$0xf]  ;;  %v2163_v46 = vld [vmem:[#allocation2 + $0x84] sm:$0xf] }
 0x10e   : > { %v862_v49 = vor.u32 %v860_v21, %v859_v54  ;;  %v863_v48 = vrot.slane %v859_v54, 4  ;;  %v7983_v58 = vrot.slane %v865_v23, 7  ;;  %v5896_v34 = vcombine.low %v7967_v38, %v7981_v43  ;;  %v2162_v23 = vld [vmem:[#allocation2 + $0x80] sm:$0x1]  ;;  %v2164_v32 = vld [vmem:[#allocation2 + $0x88] sm:$0xf] }
 0x10f   : > { %v2376_v35 = vrot.slane %v2374_v53, 4  ;;  %v2377_v59 = vshll.u32 %v2157_v55, 16  ;;  %v2383_v6 = vshll.u32 %v2158_v5, 16  ;;  %v2387_v8 = vshrl.u32 %v2158_v5, 16 }
 0x110   : > { %v870_v62 = vor.u32 %v868_v18, %v7983_v58  ;;  %v872_v1 = vrot.slane %v7983_v58, 4  ;;  %v1033_v10 = vsel %vm7203_vm9, %v862_v49, %v1032_v44  ;;  %v2393_v3 = vshll.u32 %v2159_v28, 16  ;;  %v2675_v28 = vld [vmem:[#allocation2 + $0x84] sm:$0xe] }
 0x111   : > { %1034 = vst [vmem:[#allocation2 + $0xc0] sm:$0xf] %v1033_v10  ;;  %v2379_v4 = vrot.slane %v2377_v59, 5  ;;  %v2385_v13 = vrot.slane %v2383_v6, 5  ;;  %v2389_v7 = vrot.slane %v2387_v8, 4  ;;  %v5938_v26 = vrot.slane %v2672_v31, 9 }
 0x112   : > { %v871_v42 = vsel %vm7197_vm8, %v863_v48, %v870_v62  ;;  %v2395_v0 = vrot.slane %v2393_v3, 5  ;;  %v2806_v11 = vrot.slane %v2673_v37, 5  ;;  %v2809_v27 = vrot.slane %v2674_v60, 5  ;;  %v2676_v37 = vld [vmem:[#allocation2 + $0x88] sm:$0xf] }
 0x113   : > { %1035 = vst [vmem:[#allocation2 + $0xc4] sm:$0xf] %v871_v42  ;;  %v2380_v20 = vor.u32 %v2379_v4, %v2376_v35  ;;  %v2390_v30 = vor.u32 %v2389_v7, %v2385_v13  ;;  %v3127_v16 = vshrl.u32 %v3078_v61, 16  ;;  %v3130_v14 = vshll.u32 %v3078_v61, 16  ;;  %v2677_v60 = vld [vmem:[#allocation2 + $0x8c] sm:$0x1] }
 0x114   : > { %5001 = vmatmul.mubr.bf16.gmra.mrb[72].mxu0 %v7948_v56  ;;  %v7996_v63 = vsel %vm7419_vm13, %v5938_v26, %v2806_v11  ;;  %v2808_v36 = vrot.slane %v2806_v11, 4  ;;  %v3136_v17 = vshll.u32 %v3079_v25, 16  ;;  %v3140_v19 = vshrl.u32 %v3079_v25, 16  ;;  %v3081_v42 = vld [vmem:[#allocation2 + $0x24] sm:$0xf] }
 0x115   : > { %5008 = vmatprep.mubr.bf16.mxu0 %v5952_v40  ;;  %v2381_v21 = vrot.slane %v2380_v20, 4  ;;  %v2391_v55 = vrot.slane %v2390_v30, 4  ;;  %v3129_v44 = vrot.slane %v3127_v16, 4  ;;  %v3132_v22 = vrot.slane %v3130_v14, 5 }
 0x116   : > { %v8003_v56 = vsel %vm7419_vm13, %v2808_v36, %v2809_v27  ;;  %v3138_v5 = vrot.slane %v3136_v17, 5  ;;  %v3142_v15 = vrot.slane %v3140_v19, 4  ;;  %v3146_v54 = vshll.u32 %v3080_v2, 16  ;;  %v3083_v36 = vld [vmem:[#allocation2 + $0x2c] sm:$0x1] }
 0x117   : > { %v2386_v18 = vsel %vm7160_vm2, %v2381_v21, %v2385_v13  ;;  %v2396_v39 = vsel %vm7160_vm2, %v2391_v55, %v2395_v0  ;;  %v5954_v52 = vcombine.low %v7996_v63, %v8003_v56  ;;  %v3133_v40 = vor.u32 %v3132_v22, %v3129_v44  ;;  %v3086_v63 = vld [vmem:[#allocation2 + $0x38] sm:$0x1] }
 0x118   : > { %v8011_v53 = vcombine.low %v2386_v18, %v2396_v39  ;;  %v3143_v31 = vor.u32 %v3142_v15, %v3138_v5  ;;  %v3148_v49 = vrot.slane %v3146_v54, 5  ;;  %v2398_v48 = vshrl.u32 %v2160_v9, 16  ;;  %v8019_v0 = vpop.f32.mrb[4].mxu0  ;;  %v2178_v24 = vld [vmem:[#allocation2 + $0xc0] sm:$0xf] }
 0x119   : > { %v3134_v35 = vrot.slane %v3133_v40, 4  ;;  %v2401_v59 = vshll.u32 %v2160_v9, 16  ;;  %v2407_v6 = vshll.u32 %v2161_v45, 16  ;;  %v2411_v8 = vshrl.u32 %v2161_v45, 16  ;;  %v2165_v45 = vld [vmem:[#allocation2 + $0x8c] sm:$0x1] }
 0x11a   : > { %v7015_v62 = vld [vmem:[#allocation2 + $0xc0] sm:$0xff]   ;;  %v3144_v10 = vrot.slane %v3143_v31, 4  ;;  %v2400_v3 = vrot.slane %v2398_v48, 4  ;;  %v2417_v61 = vshll.u32 %v2162_v23, 16  ;;  %v8015_v4 = vadd.f32 %v7934_v57, %v7928_v29  ;;  %v3082_v29 = vld [vmem:[#allocation2 + $0x28] sm:$0xf] }
 0x11b   : > { %v3139_v13 = vsel %vm7160_vm2, %v3134_v35, %v3138_v5  ;;  %v2403_v7 = vrot.slane %v2401_v59, 5  ;;  %v2409_v26 = vrot.slane %v2407_v6, 5  ;;  %v2413_v25 = vrot.slane %v2411_v8, 4  ;;  %4911 = vmatprep.mubr.bf16.mxu1 %v7015_v62  ;;  %v8052_v48 = vpop.f32.mrb[5].mxu0  ;;  %v2679_v8 = vld [vmem:[#allocation2 + $0x94] sm:$0xf] }
 0x11c   : > { %5009 = vmatmul.mubr.bf16.gmra.mrb[76].mxu0 %v7975_v47  ;;  %v3149_v11 = vsel %vm7160_vm2, %v3144_v10, %v3148_v49  ;;  %v2419_v27 = vrot.slane %v2417_v61, 5  ;;  %v5939_v2 = vrot.slane %v2675_v28, 9  ;;  %v2813_v20 = vrot.slane %v2676_v37, 5  ;;  %v8024_v57 = vpop.f32.mrb[0].mxu1  ;;  %4912 = vmatmul.mubr.bf16.gmra.mrb[76].mxu1 %v5896_v34  ;;  %v7017_v34 = vld [vmem:[#allocation2 + $0x18] sm:$0xff]  }
 0x11d   : > { %5016 = vmatprep.mubr.bf16.mxu0 %v5953_v50  ;;  %v5977_v30 = vcombine.low %v3139_v13, %v3149_v11  ;;  %v2404_v47 = vor.u32 %v2403_v7, %v2400_v3  ;;  %v2414_v16 = vor.u32 %v2413_v25, %v2409_v26  ;;  %v2816_v14 = vrot.slane %v2677_v60, 5  ;;  %v8032_v17 = vpop.f32.mrb[1].mxu1  ;;  %v2678_v49 = vld [vmem:[#allocation2 + $0x90] sm:$0xe]  ;;  %v2680_v61 = vld [vmem:[#allocation2 + $0x98] sm:$0x1] }
 0x11e   : > { %v8036_v19 = vsel %vm7419_vm13, %v5939_v2, %v2813_v20  ;;  %v2815_v9 = vrot.slane %v2813_v20, 4  ;;  %v3151_v21 = vshrl.u32 %v3081_v42, 16  ;;  %v3154_v55 = vshll.u32 %v3081_v42, 16  ;;  %v8038_v50 = vpop.f32.mrb[2].mxu1  ;;  %v3084_v42 = vld [vmem:[#allocation2 + $0x30] sm:$0xf] }
 0x11f   : > { %5113 = vmatprep.mubr.bf16.mxu1 %v5977_v30  ;;  %v2405_v38 = vrot.slane %v2404_v47, 4  ;;  %v2415_v43 = vrot.slane %v2414_v16, 4  ;;  %v3160_v44 = vshll.u32 %v3082_v29, 16  ;;  %v3164_v22 = vshrl.u32 %v3082_v29, 16  ;;  %v8044_v18 = vpop.f32.mrb[3].mxu1  ;;  %v8055_v11 = vpop.f32.mrb[6].mxu0 }
 0x120   : > { %v8042_v5 = vsel %vm7419_vm13, %v2815_v9, %v2816_v14  ;;  %v3153_v15 = vrot.slane %v3151_v21, 4  ;;  %v3156_v54 = vrot.slane %v3154_v55, 5  ;;  %v3170_v23 = vshll.u32 %v3083_v36, 16  ;;  %v3085_v30 = vld [vmem:[#allocation2 + $0x34] sm:$0xf]  ;;  %v8062_v36 = vpop.f32.mrb[7].mxu0 }
 0x121   : > { %v2410_v39 = vsel %vm7160_vm2, %v2405_v38, %v2409_v26  ;;  %v2420_v40 = vsel %vm7160_vm2, %v2415_v43, %v2419_v27  ;;  %v5955_v28 = vcombine.low %v8036_v19, %v8042_v5  ;;  %v3162_v31 = vrot.slane %v3160_v44, 5  ;;  %v7018_v55 = vld [vmem:[#allocation2 + $0x24] sm:$0xff]   ;;  %v2167_v44 = vld [vmem:[#allocation2 + $0x94] sm:$0xf] }
 0x122   : > { %v5922_v37 = vcombine.low %v2410_v39, %v2420_v40  ;;  %v3157_v35 = vor.u32 %v3156_v54, %v3153_v15  ;;  %v3166_v59 = vrot.slane %v3164_v22, 4  ;;  %v3172_v6 = vrot.slane %v3170_v23, 5 }
 0x123   : > { %v2422_v60 = vshrl.u32 %v2163_v46, 16  ;;  %v2425_v62 = vshll.u32 %v2163_v46, 16  ;;  %v2431_v10 = vshll.u32 %v2164_v32, 16  ;;  %v2435_v3 = vshrl.u32 %v2164_v32, 16 }
 0x124   : > { %5017 = vmatmul.mubr.bf16.gmra.mrb[80].mxu0 %v8011_v53  ;;  %v3158_v13 = vrot.slane %v3157_v35, 4  ;;  %v3167_v7 = vor.u32 %v3166_v59, %v3162_v31  ;;  %v2441_v26 = vshll.u32 %v2165_v45, 16  ;;  %v5940_v25 = vrot.slane %v2678_v49, 9  ;;  %5114 = vmatmul.mubr.bf16.vlgmr.msra.gmra.mrb[80].mxu1 %v7017_v34  ;;  %v2166_v34 = vld [vmem:[#allocation2 + $0x90] sm:$0xf] }
 0x125   : > { %5024 = vmatprep.mubr.bf16.mxu0 %v5954_v52  ;;  %v2424_v27 = vrot.slane %v2422_v60, 4  ;;  %v2427_v2 = vrot.slane %v2425_v62, 5  ;;  %v2433_v20 = vrot.slane %v2431_v10, 5  ;;  %v2437_v29 = vrot.slane %v2435_v3, 4  ;;  %v2168_v62 = vld [vmem:[#allocation2 + $0x98] sm:$0x1] }
 0x126   : > { %v3163_v53 = vsel %vm7160_vm2, %v3158_v13, %v3162_v31  ;;  %v3168_v47 = vrot.slane %v3167_v7, 4  ;;  %v2443_v16 = vrot.slane %v2441_v26, 5  ;;  %v2820_v14 = vrot.slane %v2679_v8, 5  ;;  %v2681_v26 = vld [vmem:[#allocation2 + $0x9c] sm:$0xe] }
 0x127   : > { %v2428_v9 = vor.u32 %v2427_v2, %v2424_v27  ;;  %v2438_v21 = vor.u32 %v2437_v29, %v2433_v20  ;;  %v2823_v46 = vrot.slane %v2680_v61, 5  ;;  %v3175_v56 = vshrl.u32 %v3084_v42, 16  ;;  %v2683_v29 = vld [vmem:[#allocation2 + $0xa4] sm:$0x1] }
 0x128   : > { %v3173_v52 = vsel %vm7160_vm2, %v3168_v47, %v3172_v6  ;;  %v8068_v32 = vsel %vm7419_vm13, %v5940_v25, %v2820_v14  ;;  %v2822_v38 = vrot.slane %v2820_v14, 4  ;;  %v3178_v43 = vshll.u32 %v3084_v42, 16  ;;  %v2682_v25 = vld [vmem:[#allocation2 + $0xa0] sm:$0xf] }
 0x129   : > { %v5978_v22 = vcombine.low %v3163_v53, %v3173_v52  ;;  %v2429_v45 = vrot.slane %v2428_v9, 4  ;;  %v2439_v15 = vrot.slane %v2438_v21, 4  ;;  %v3177_v54 = vrot.slane %v3175_v56, 4  ;;  %v8070_v23 = vpop.f32.mrb[8].mxu0  ;;  %v3088_v56 = vld [vmem:[#allocation2 + $0x40] sm:$0xf] }
 0x12a   : > { %v8074_v39 = vsel %vm7419_vm13, %v2822_v38, %v2823_v46  ;;  %v3180_v40 = vrot.slane %v3178_v43, 5  ;;  %v3184_v31 = vshll.u32 %v3085_v30, 16  ;;  %v3188_v49 = vshrl.u32 %v3085_v30, 16  ;;  %v8076_v35 = vpop.f32.mrb[9].mxu0 }
 0x12b   : > { %5121 = vmatprep.mubr.bf16.mxu1 %v5978_v22  ;;  %v2434_v59 = vsel %vm7160_vm2, %v2429_v45, %v2433_v20  ;;  %v2444_v6 = vsel %vm7160_vm2, %v2439_v15, %v2443_v16  ;;  %v5956_v8 = vcombine.low %v8068_v32, %v8074_v39  ;;  %v3194_v60 = vshll.u32 %v3086_v63, 16  ;;  %v8084_v10 = vpop.f32.mrb[10].mxu0  ;;  %v3087_v16 = vld [vmem:[#allocation2 + $0x3c] sm:$0xf]  ;;  %v7020_v32 = vld [vmem:[#allocation2 + $0x30] sm:$0xff]  }
 0x12c   : > { %5025 = vmatmul.mubr.bf16.gmra.mrb[84].mxu0 %v5922_v37  ;;  %v5923_v3 = vcombine.low %v2434_v59, %v2444_v6  ;;  %v3181_v61 = vor.u32 %v3180_v40, %v3177_v54  ;;  %v3186_v13 = vrot.slane %v3184_v31, 5  ;;  %v3190_v7 = vrot.slane %v3188_v49, 4  ;;  %5122 = vmatmul.mubr.bf16.gmra.mrb[84].mxu1 %v7018_v55  ;;  %v8089_v14 = vpop.f32.mrb[11].mxu0  ;;  %v2169_v59 = vld [vmem:[#allocation2 + $0x9c] sm:$0xf] }
 0x12d   : > { %5032 = vmatprep.mubr.bf16.mxu0 %v5955_v28  ;;  %v3196_v42 = vrot.slane %v3194_v60, 5  ;;  %v2446_v27 = vshrl.u32 %v2166_v34, 16  ;;  %v2449_v2 = vshll.u32 %v2166_v34, 16  ;;  %v2455_v20 = vshll.u32 %v2167_v44, 16  ;;  %v3089_v34 = vld [vmem:[#allocation2 + $0x44] sm:$0x1] }
 0x12e   : > { %v3182_v30 = vrot.slane %v3181_v61, 4  ;;  %v3191_v53 = vor.u32 %v3190_v7, %v3186_v13  ;;  %v2459_v47 = vshrl.u32 %v2167_v44, 16  ;;  %v2465_v37 = vshll.u32 %v2168_v62, 16  ;;  %v2170_v6 = vld [vmem:[#allocation2 + $0xa0] sm:$0xf] }
 0x12f   : > { %v2448_v9 = vrot.slane %v2446_v27, 4  ;;  %v2451_v21 = vrot.slane %v2449_v2, 5  ;;  %v2457_v46 = vrot.slane %v2455_v20, 5  ;;  %v5941_v63 = vrot.slane %v2681_v26, 9  ;;  %v2171_v7 = vld [vmem:[#allocation2 + $0xa4] sm:$0x1] }
 0x130   : > { %v3187_v19 = vsel %vm7160_vm2, %v3182_v30, %v3186_v13  ;;  %v3192_v5 = vrot.slane %v3191_v53, 4  ;;  %v2461_v28 = vrot.slane %v2459_v47, 4  ;;  %v2467_v55 = vrot.slane %v2465_v37, 5  ;;  %v2684_v2 = vld [vmem:[#allocation2 + $0xa8] sm:$0xe] }
 0x131   : > { %v2452_v52 = vor.u32 %v2451_v21, %v2448_v9  ;;  %v2827_v38 = vrot.slane %v2682_v25, 5  ;;  %v2830_v43 = vrot.slane %v2683_v29, 5  ;;  %v3199_v44 = vshrl.u32 %v3087_v16, 16  ;;  %v2685_v20 = vld [vmem:[#allocation2 + $0xac] sm:$0xf] }
 0x132   : > { %v3197_v22 = vsel %vm7160_vm2, %v3192_v5, %v3196_v42  ;;  %v2462_v45 = vor.u32 %v2461_v28, %v2457_v46  ;;  %v3202_v15 = vshll.u32 %v3087_v16, 16  ;;  %v3208_v54 = vshll.u32 %v3088_v56, 16  ;;  %v2686_v47 = vld [vmem:[#allocation2 + $0xb0] sm:$0x1]  ;;  %v3090_v28 = vld [vmem:[#allocation2 + $0x48] sm:$0xf] }
 0x133   : > { %v5979_v39 = vcombine.low %v3187_v19, %v3197_v22  ;;  %v2453_v40 = vrot.slane %v2452_v52, 4  ;;  %v2828_v31 = vsel %vm7419_vm13, %v5941_v63, %v2827_v38  ;;  %v2829_v49 = vrot.slane %v2827_v38, 4 }
 0x134   : > { %5033 = vmatmul.mubr.bf16.gmra.mrb[88].mxu0 %v5923_v3  ;;  %v2463_v60 = vrot.slane %v2462_v45, 4  ;;  %v3201_v62 = vrot.slane %v3199_v44, 4  ;;  %v3204_v61 = vrot.slane %v3202_v15, 5  ;;  %v3210_v13 = vrot.slane %v3208_v54, 5 }
 0x135   : > { %5040 = vmatprep.mubr.bf16.mxu0 %v5956_v8  ;;  %5129 = vmatprep.mubr.bf16.mxu1 %v5979_v39  ;;  %v2458_v26 = vsel %vm7160_vm2, %v2453_v40, %v2457_v46  ;;  %v2831_v25 = vsel %vm7419_vm13, %v2829_v49, %v2830_v43  ;;  %v3212_v42 = vshrl.u32 %v3088_v56, 16  ;;  %v3218_v27 = vshll.u32 %v3089_v34, 16  ;;  %v8103_v8 = vpop.f32.mrb[4].mxu1  ;;  %v3091_v43 = vld [vmem:[#allocation2 + $0x4c] sm:$0xf] }
 0x136   : > { %v2468_v3 = vsel %vm7160_vm2, %v2463_v60, %v2467_v55  ;;  %5130 = vmatmul.mubr.bf16.gmra.mrb[88].mxu1 %v7020_v32  ;;  %v5957_v29 = vcombine.low %v2828_v31, %v2831_v25  ;;  %v3205_v30 = vor.u32 %v3204_v61, %v3201_v62  ;;  %v2470_v53 = vshrl.u32 %v2169_v59, 16  ;;  %v8105_v46 = vpop.f32.mrb[5].mxu1  ;;  %v3092_v61 = vld [vmem:[#allocation2 + $0x50] sm:$0x1] }
 0x137   : > { %v5924_v37 = vcombine.low %v2458_v26, %v2468_v3  ;;  %v3214_v16 = vrot.slane %v3212_v42, 4  ;;  %v3220_v9 = vrot.slane %v3218_v27, 5  ;;  %v2473_v21 = vshll.u32 %v2169_v59, 16  ;;  %v8107_v34 = vpop.f32.mrb[6].mxu1  ;;  %v2172_v27 = vld [vmem:[#allocation2 + $0xa8] sm:$0xf] }
 0x138   : > { %v3206_v63 = vrot.slane %v3205_v30, 4  ;;  %v2472_v56 = vrot.slane %v2470_v53, 4  ;;  %v2479_v19 = vshll.u32 %v2170_v6, 16  ;;  %v2483_v5 = vshrl.u32 %v2170_v6, 16  ;;  %v8111_v54 = vpop.f32.mrb[7].mxu1  ;;  %v7021_v6 = vld [vmem:[#allocation2 + $0x3c] sm:$0xff]  }
 0x139   : > { %v3215_v52 = vor.u32 %v3214_v16, %v3210_v13  ;;  %v2475_v55 = vrot.slane %v2473_v21, 5  ;;  %v2489_v32 = vshll.u32 %v2171_v7, 16  ;;  %v5942_v38 = vrot.slane %v2684_v2, 9 }
 0x13a   : > { %v3211_v44 = vsel %vm7160_vm2, %v3206_v63, %v3210_v13  ;;  %v2481_v22 = vrot.slane %v2479_v19, 5  ;;  %v2485_v45 = vrot.slane %v2483_v5, 4  ;;  %v2834_v15 = vrot.slane %v2685_v20, 5 }
 0x13b   : > { %v3216_v39 = vrot.slane %v3215_v52, 4  ;;  %v2476_v40 = vor.u32 %v2475_v55, %v2472_v56  ;;  %v2491_v31 = vrot.slane %v2489_v32, 5  ;;  %v2837_v49 = vrot.slane %v2686_v47, 5  ;;  %v2173_v47 = vld [vmem:[#allocation2 + $0xac] sm:$0xf] }
 0x13c   : > { %5041 = vmatmul.mubr.bf16.gmra.mrb[92].mxu0 %v5924_v37  ;;  %v2486_v59 = vor.u32 %v2485_v45, %v2481_v22  ;;  %v2835_v60 = vsel %vm7419_vm13, %v5942_v38, %v2834_v15  ;;  %v2836_v62 = vrot.slane %v2834_v15, 4  ;;  %v3223_v7 = vshrl.u32 %v3090_v28, 16 }
 0x13d   : > { %5048 = vmatprep.mubr.bf16.mxu0 %v5957_v29  ;;  %v3221_v13 = vsel %vm7160_vm2, %v3216_v39, %v3220_v9  ;;  %v2477_v26 = vrot.slane %v2476_v40, 4  ;;  %v3226_v25 = vshll.u32 %v3090_v28, 16  ;;  %v3232_v42 = vshll.u32 %v3091_v43, 16  ;;  %v8117_v2 = vpop.f32.mrb[12].mxu0  ;;  %v2174_v9 = vld [vmem:[#allocation2 + $0xb0] sm:$0x1] }
 0x13e   : > { %v5980_v20 = vcombine.low %v3211_v44, %v3221_v13  ;;  %v2487_v3 = vrot.slane %v2486_v59, 4  ;;  %v2838_v30 = vsel %vm7419_vm13, %v2836_v62, %v2837_v49  ;;  %v3225_v53 = vrot.slane %v3223_v7, 4  ;;  %v8125_v28 = vpop.f32.mrb[13].mxu0  ;;  %v2687_v44 = vld [vmem:[#allocation2 + $0xb4] sm:$0xe] }
 0x13f   : > { %v2482_v37 = vsel %vm7160_vm2, %v2477_v26, %v2481_v22  ;;  %v5958_v29 = vcombine.low %v2835_v60, %v2838_v30  ;;  %v3228_v16 = vrot.slane %v3226_v25, 5  ;;  %v3234_v21 = vrot.slane %v3232_v42, 5  ;;  %v2688_v22 = vld [vmem:[#allocation2 + $0xb8] sm:$0xf]  ;;  %v2689_v49 = vld [vmem:[#allocation2 + $0xbc] sm:$0x1] }
 0x140   : > { %5137 = vmatprep.mubr.bf16.mxu1 %v5980_v20  ;;  %v2492_v63 = vsel %vm7160_vm2, %v2487_v3, %v2491_v31  ;;  %v3236_v56 = vshrl.u32 %v3091_v43, 16  ;;  %v3242_v19 = vshll.u32 %v3092_v61, 16  ;;  %v2494_v5 = vshrl.u32 %v2172_v27, 16  ;;  %v3093_v62 = vld [vmem:[#allocation2 + $0x54] sm:$0xf] }
 0x141   : > { %v5925_v52 = vcombine.low %v2482_v37, %v2492_v63  ;;  %5138 = vmatmul.mubr.bf16.gmra.mrb[92].mxu1 %v7021_v6  ;;  %v3229_v55 = vor.u32 %v3228_v16, %v3225_v53  ;;  %v2497_v32 = vshll.u32 %v2172_v27, 16  ;;  %v2503_v38 = vshll.u32 %v2173_v47, 16  ;;  %v3094_v26 = vld [vmem:[#allocation2 + $0x58] sm:$0xf] }
 0x142   : > { %v3238_v45 = vrot.slane %v3236_v56, 4  ;;  %v3244_v15 = vrot.slane %v3242_v19, 5  ;;  %v2496_v39 = vrot.slane %v2494_v5, 4  ;;  %v2507_v40 = vshrl.u32 %v2173_v47, 16  ;;  %v8127_v25 = vpop.f32.mrb[8].mxu1  ;;  %v7023_v47 = vld [vmem:[#allocation2 + $0x48] sm:$0xff]  }
 0x143   : > { %v3230_v59 = vrot.slane %v3229_v55, 4  ;;  %v2499_v60 = vrot.slane %v2497_v32, 5  ;;  %v2505_v31 = vrot.slane %v2503_v38, 5  ;;  %v2513_v43 = vshll.u32 %v2174_v9, 16  ;;  %v3095_v9 = vld [vmem:[#allocation2 + $0x5c] sm:$0x1] }
 0x144   : > { %5049 = vmatmul.mubr.bf16.gmra.mrb[96].mxu0 %v5925_v52  ;;  %v3239_v61 = vor.u32 %v3238_v45, %v3234_v21  ;;  %v2509_v7 = vrot.slane %v2507_v40, 4  ;;  %v5943_v13 = vrot.slane %v2687_v44, 9  ;;  %v2841_v6 = vrot.slane %v2688_v22, 5  ;;  %v2175_v32 = vld [vmem:[#allocation2 + $0xb4] sm:$0xf]  ;;  %v8139_v40 = vpop.f32.mrb[9].mxu1 }
 0x145   : > { %5056 = vmatprep.mubr.bf16.mxu0 %v5958_v29  ;;  %v3235_v42 = vsel %vm7160_vm2, %v3230_v59, %v3234_v21  ;;  %v2500_v27 = vor.u32 %v2499_v60, %v2496_v39  ;;  %v2515_v20 = vrot.slane %v2513_v43, 5  ;;  %v2844_v3 = vrot.slane %v2689_v49, 5  ;;  %v2176_v39 = vld [vmem:[#allocation2 + $0xb8] sm:$0xf]  ;;  %v2177_v43 = vld [vmem:[#allocation2 + $0xbc] sm:$0x1] }
 0x146   : > { %v3240_v30 = vrot.slane %v3239_v61, 4  ;;  %v2510_v53 = vor.u32 %v2509_v7, %v2505_v31  ;;  %v2842_v37 = vsel %vm7419_vm13, %v5943_v13, %v2841_v6  ;;  %v2843_v16 = vrot.slane %v2841_v6, 4 }
 0x147   : > { %v2501_v63 = vrot.slane %v2500_v27, 4  ;;  %v3247_v56 = vshrl.u32 %v3093_v62, 16  ;;  %v3250_v19 = vshll.u32 %v3093_v62, 16  ;;  %v3256_v5 = vshll.u32 %v3094_v26, 16  ;;  %v8143_v62 = vpop.f32.mrb[10].mxu1 }
 0x148   : > { %v3245_v29 = vsel %vm7160_vm2, %v3240_v30, %v3244_v15  ;;  %v2511_v52 = vrot.slane %v2510_v53, 4  ;;  %v2845_v21 = vsel %vm7419_vm13, %v2843_v16, %v2844_v3  ;;  %v3260_v55 = vshrl.u32 %v3094_v26, 16  ;;  %v8145_v26 = vpop.f32.mrb[11].mxu1  ;;  %v2691_v53 = vld [vmem:[#allocation2 + $0xc4] sm:$0xf] }
 0x149   : > { %v5981_v38 = vcombine.low %v3235_v42, %v3245_v29  ;;  %v2506_v44 = vsel %vm7160_vm2, %v2501_v63, %v2505_v31  ;;  %v5959_v22 = vcombine.low %v2842_v37, %v2845_v21  ;;  %v3249_v45 = vrot.slane %v3247_v56, 4  ;;  %v1036_v31 = vld [vmem:[#allocation2 + $0xc8] sm:$0x1]  ;;  %v3097_v21 = vld [vmem:[#allocation2 + $0x64] sm:$0xf] }
 0x14a   : > { %v2516_v49 = vsel %vm7160_vm2, %v2511_v52, %v2515_v20  ;;  %v3252_v59 = vrot.slane %v3250_v19, 5  ;;  %v3258_v15 = vrot.slane %v3256_v5, 5  ;;  %v3262_v60 = vrot.slane %v3260_v55, 4  ;;  %v2690_v20 = vld [vmem:[#allocation2 + $0xc0] sm:$0xe] }
 0x14b   : > { %5145 = vmatprep.mubr.bf16.mxu1 %v5981_v38  ;;  %v5926_v61 = vcombine.low %v2506_v44, %v2516_v49  ;;  %v3266_v7 = vshll.u32 %v3095_v9, 16  ;;  %v2518_v13 = vshrl.u32 %v2175_v32, 16  ;;  %v2521_v6 = vshll.u32 %v2175_v32, 16  ;;  %v3096_v19 = vld [vmem:[#allocation2 + $0x60] sm:$0xf] }
 0x14c   : > { %5146 = vmatmul.mubr.bf16.gmra.mrb[96].mxu1 %v7023_v47  ;;  %v3253_v42 = vor.u32 %v3252_v59, %v3249_v45  ;;  %v3263_v27 = vor.u32 %v3262_v60, %v3258_v15  ;;  %v2527_v3 = vshll.u32 %v2176_v39, 16  ;;  %v2531_v30 = vshrl.u32 %v2176_v39, 16  ;;  %v7024_v39 = vld [vmem:[#allocation2 + $0x54] sm:$0xff]   ;;  %v3098_v59 = vld [vmem:[#allocation2 + $0x68] sm:$0x1]  ;;  %v8155_v60 = vpop.f32.mrb[14].mxu0 }
 0x14d   : > { %5057 = vmatmul.mubr.bf16.gmra.mrb[100].mxu0 %v5926_v61  ;;  %v3268_v37 = vrot.slane %v3266_v7, 5  ;;  %v2520_v16 = vrot.slane %v2518_v13, 4  ;;  %v2523_v63 = vrot.slane %v2521_v6, 5  ;;  %v2537_v56 = vshll.u32 %v2177_v43, 16 }
 0x14e   : > { %5064 = vmatprep.mubr.bf16.mxu0 %v5959_v22  ;;  %v3254_v9 = vrot.slane %v3253_v42, 4  ;;  %v3264_v5 = vrot.slane %v3263_v27, 4  ;;  %v2529_v29 = vrot.slane %v2527_v3, 5  ;;  %v2533_v52 = vrot.slane %v2531_v30, 4 }
 0x14f   : > { %v2524_v55 = vor.u32 %v2523_v63, %v2520_v16  ;;  %v2539_v47 = vrot.slane %v2537_v56, 5  ;;  %v1037_v32 = vsel %vm7211_vm10, %v872_v1, %v1036_v31  ;;  %v5944_v38 = vrot.slane %v2690_v20, 9  ;;  %v8157_v1 = vpop.f32.mrb[15].mxu0 }
 0x150   : > { %v3259_v44 = vsel %vm7160_vm2, %v3254_v9, %v3258_v15  ;;  %v3269_v45 = vsel %vm7160_vm2, %v3264_v5, %v3268_v37  ;;  %v2534_v22 = vor.u32 %v2533_v52, %v2529_v29  ;;  %1038 = vst [vmem:[#allocation2 + $0xc8] sm:$0x1] %v1037_v32  ;;  %v2848_v49 = vrot.slane %v2691_v53, 5  ;;  %v2179_v53 = vld [vmem:[#allocation2 + $0xc4] sm:$0xf] }
 0x151   : > { %v5982_v43 = vcombine.low %v3259_v44, %v3269_v45  ;;  %v2525_v61 = vrot.slane %v2524_v55, 4  ;;  %v3271_v58 = vshrl.u32 %v3096_v19, 16  ;;  %v3274_v7 = vshll.u32 %v3096_v19, 16  ;;  %v8163_v42 = vpop.f32.mrb[16].mxu0  ;;  %v3099_v45 = vld [vmem:[#allocation2 + $0x6c] sm:$0xf] }
 0x152   : > { %v2535_v13 = vrot.slane %v2534_v22, 4  ;;  %v8161_v15 = vsel %vm7419_vm13, %v5944_v38, %v2848_v49  ;;  %v2850_v6 = vrot.slane %v2848_v49, 4  ;;  %v3280_v31 = vshll.u32 %v3097_v21, 16  ;;  %v8167_v37 = vpop.f32.mrb[17].mxu0 }
 0x153   : > { %5153 = vmatprep.mubr.bf16.mxu1 %v5982_v43  ;;  %v2530_v27 = vsel %vm7160_vm2, %v2525_v61, %v2529_v29  ;;  %v3273_v3 = vrot.slane %v3271_v58, 4  ;;  %v3276_v30 = vrot.slane %v3274_v7, 5  ;;  %v3284_v20 = vshrl.u32 %v3097_v21, 16  ;;  %v8171_v9 = vpop.f32.mrb[18].mxu0  ;;  %v3100_v61 = vld [vmem:[#allocation2 + $0x70] sm:$0xf] }
 0x154   : > { %v2540_v16 = vsel %vm7160_vm2, %v2535_v13, %v2539_v47  ;;  %5154 = vmatmul.mubr.bf16.gmra.mrb[100].mxu1 %v7024_v39  ;;  %v3282_v63 = vrot.slane %v3280_v31, 5  ;;  %v3290_v56 = vshll.u32 %v3098_v59, 16  ;;  %v2542_v19 = vshrl.u32 %v2178_v24, 16 }
 0x155   : > { %v5927_v5 = vcombine.low %v2530_v27, %v2540_v16  ;;  %v3277_v52 = vor.u32 %v3276_v30, %v3273_v3  ;;  %v3286_v55 = vrot.slane %v3284_v20, 4  ;;  %v2545_v32 = vshll.u32 %v2178_v24, 16  ;;  %v3101_v20 = vld [vmem:[#allocation2 + $0x74] sm:$0x1] }
 0x156   : > { %v3292_v29 = vrot.slane %v3290_v56, 5  ;;  %v2544_v38 = vrot.slane %v2542_v19, 4  ;;  %v2551_v44 = vshll.u32 %v2179_v53, 16  ;;  %v2555_v21 = vshrl.u32 %v2179_v53, 16  ;;  %v8183_v53 = vpop.f32.mrb[19].mxu0 }
 0x157   : > { %5065 = vmatmul.mubr.bf16.gmra.mrb[104].mxu0 %v5927_v5  ;;  %v2692_v22 = vld [vmem:[#allocation2 + $0xc8] sm:$0x1]  ;;  %v3278_v49 = vrot.slane %v3277_v52, 4  ;;  %v3287_v43 = vor.u32 %v3286_v55, %v3282_v63  ;;  %v2547_v39 = vrot.slane %v2545_v32, 5  ;;  %v8175_v59 = vadd.f32 %v7950_v12, %v7943_v51  ;;  %v3590_v19 = vld [vmem:[#allocation2 + $0x18] sm:$0xe] }
 0x158   : > { %v2180_v47 = vld [vmem:[#allocation2 + $0xc8] sm:$0x1]  ;;  %v2851_v58 = vrot.slane %v2692_v22, 5  ;;  %v2553_v7 = vrot.slane %v2551_v44, 5  ;;  %v2557_v13 = vrot.slane %v2555_v21, 4  ;;  %v8181_v30 = vadd.f32 %v8032_v17, %v8024_v57  ;;  %v7026_v52 = vld [vmem:[#allocation2 + $0x60] sm:$0xff]  }
 0x159   : > { %v2561_v24 = vshll.u32 %v2180_v47, 16  ;;  %v3283_v31 = vsel %vm7160_vm2, %v3278_v49, %v3282_v63  ;;  %v3288_v27 = vrot.slane %v3287_v43, 4  ;;  %v2548_v3 = vor.u32 %v2547_v39, %v2544_v38  ;;  %v3591_v63 = vld [vmem:[#allocation2 + $0x1c] sm:$0xf]  ;;  %v3592_v32 = vld [vmem:[#allocation2 + $0x20] sm:$0x1] }
 0x15a   : > { %8844 = vst [vmem:[#allocation4_spill] sm:$0xff] %v8181_v30  ;;  %v2852_v51 = vsel %vm7419_vm13, %v2850_v6, %v2851_v58  ;;  %v2558_v12 = vor.u32 %v2557_v13, %v2553_v7  ;;  %v8189_v56 = vadd.f32 %v8044_v18, %v8038_v50  ;;  %v3295_v55 = vshrl.u32 %v3099_v45, 16  ;;  %v3593_v49 = vld [vmem:[#allocation2 + $0x24] sm:$0xe]  ;;  %v3594_v47 = vld [vmem:[#allocation2 + $0x28] sm:$0xf] }
 0x15b   : > { %v2563_v16 = vrot.slane %v2561_v24, 5  ;;  %v5960_v5 = vcombine.low %v8161_v15, %v2852_v51  ;;  %v3293_v57 = vsel %vm7160_vm2, %v3288_v27, %v3292_v29  ;;  %v2549_v17 = vrot.slane %v2548_v3, 4 }
 0x15c   : > { %8845 = vst [vmem:[#allocation5_spill] sm:$0xff] %v8189_v56  ;;  %v8194_v38 = vpop.f32.mrb[12].mxu1  ;;  %v5983_v6 = vcombine.low %v3283_v31, %v3293_v57  ;;  %v2559_v44 = vrot.slane %v2558_v12, 4  ;;  %v3298_v21 = vshll.u32 %v3099_v45, 16  ;;  %v3304_v22 = vshll.u32 %v3100_v61, 16 }
 0x15d   : > { %v8196_v50 = vpop.f32.mrb[13].mxu1  ;;  %5072 = vmatprep.mubr.bf16.mxu0 %v5960_v5  ;;  %v2554_v18 = vsel %vm7160_vm2, %v2549_v17, %v2553_v7  ;;  %v3297_v15 = vrot.slane %v3295_v55, 4  ;;  %v3308_v43 = vshrl.u32 %v3100_v61, 16  ;;  %v3314_v29 = vshll.u32 %v3101_v20, 16  ;;  %v3595_v31 = vld [vmem:[#allocation2 + $0x2c] sm:$0x1] }
 0x15e   : > { %v8200_v39 = vpop.f32.mrb[14].mxu1  ;;  %5161 = vmatprep.mubr.bf16.mxu1 %v5983_v6  ;;  %v2564_v58 = vsel %vm7160_vm2, %v2559_v44, %v2563_v16  ;;  %v3300_v13 = vrot.slane %v3298_v21, 5  ;;  %v3306_v45 = vrot.slane %v3304_v22, 5  ;;  %v5993_v24 = vrot.slane %v3590_v19, 9  ;;  %v3102_v17 = vld [vmem:[#allocation2 + $0x78] sm:$0xf] }
 0x15f   : > { %v8204_v27 = vpop.f32.mrb[15].mxu1  ;;  %v5928_v3 = vcombine.low %v2554_v18, %v2564_v58  ;;  %5162 = vmatmul.mubr.bf16.gmra.mrb[104].mxu1 %v7026_v52  ;;  %v3310_v51 = vrot.slane %v3308_v43, 4  ;;  %v3316_v7 = vrot.slane %v3314_v29, 5  ;;  %v3688_v12 = vrot.slane %v3591_v63, 5  ;;  %v3103_v44 = vld [vmem:[#allocation2 + $0x7c] sm:$0xf] }
 0x160   : > { %v3301_v61 = vor.u32 %v3300_v13, %v3297_v15  ;;  %v3691_v20 = vrot.slane %v3592_v32, 5  ;;  %v5994_v5 = vrot.slane %v3593_v49, 9  ;;  %v3695_v57 = vrot.slane %v3594_v47, 5  ;;  %v3104_v32 = vld [vmem:[#allocation2 + $0x80] sm:$0x1]  ;;  %v7027_v43 = vld [vmem:[#allocation2 + $0x6c] sm:$0xff]  }
 0x161   : > { %5073 = vmatmul.mubr.bf16.gmra.mrb[108].mxu0 %v5928_v3  ;;  %v3311_v55 = vor.u32 %v3310_v51, %v3306_v45  ;;  %v3689_v16 = vsel %vm7419_vm13, %v5993_v24, %v3688_v12  ;;  %v3690_v6 = vrot.slane %v3688_v12, 4  ;;  %v3698_v19 = vrot.slane %v3595_v31, 5  ;;  %v3596_v49 = vld [vmem:[#allocation2 + $0x30] sm:$0xe]  ;;  %v3597_v58 = vld [vmem:[#allocation2 + $0x34] sm:$0xf] }
 0x162   : > { %v3302_v21 = vrot.slane %v3301_v61, 4  ;;  %v3696_v52 = vsel %vm7419_vm13, %v5994_v5, %v3695_v57  ;;  %v3697_v22 = vrot.slane %v3695_v57, 4  ;;  %v8212_v63 = vadd.f32 %v8052_v48, %v8019_v0  ;;  %v3599_v3 = vld [vmem:[#allocation2 + $0x3c] sm:$0xe] }
 0x163   : > { %v3312_v18 = vrot.slane %v3311_v55, 4  ;;  %v3692_v15 = vsel %vm7419_vm13, %v3690_v6, %v3691_v20  ;;  %v8218_v29 = vadd.f32 %v8062_v36, %v8055_v11  ;;  %v8222_v47 = vadd.f32 %v8105_v46, %v8103_v8  ;;  %v3598_v36 = vld [vmem:[#allocation2 + $0x38] sm:$0x1]  ;;  %v3600_v20 = vld [vmem:[#allocation2 + $0x40] sm:$0xf] }
 0x164   : > { %v8224_v13 = vpop.f32.mrb[16].mxu1  ;;  %v8226_v0 = vpop.f32.mrb[20].mxu0  ;;  %v3307_v48 = vsel %vm7160_vm2, %v3302_v21, %v3306_v45  ;;  %v6009_v24 = vcombine.low %v3689_v16, %v3692_v15  ;;  %v3699_v31 = vsel %vm7419_vm13, %v3697_v22, %v3698_v19  ;;  %v8234_v11 = vadd.f32 %v8111_v54, %v8107_v34 }
 0x165   : > { %8846 = vst [vmem:[#allocation6_spill] sm:$0xff] %v8222_v47  ;;  %v8236_v8 = vpop.f32.mrb[17].mxu1  ;;  %v8238_v46 = vpop.f32.mrb[21].mxu0  ;;  %v3317_v51 = vsel %vm7160_vm2, %v3312_v18, %v3316_v7  ;;  %v6010_v12 = vcombine.low %v3696_v52, %v3699_v31  ;;  %v3319_v61 = vshrl.u32 %v3102_v17, 16  ;;  %v3322_v45 = vshll.u32 %v3102_v17, 16 }
 0x166   : > { %8847 = vst [vmem:[#allocation7_spill] sm:$0xff] %v8234_v11  ;;  %v8242_v5 = vpop.f32.mrb[18].mxu1  ;;  %v8244_v57 = vpop.f32.mrb[22].mxu0  ;;  %v5984_v55 = vcombine.low %v3307_v48, %v3317_v51  ;;  %6859 = vmatprep.mubr.bf16.mxu0 %v6009_v24  ;;  %v3328_v34 = vshll.u32 %v3103_v44, 16  ;;  %v3332_v54 = vshrl.u32 %v3103_v44, 16  ;;  %v3338_v16 = vshll.u32 %v3104_v32, 16 }
 0x167   : > { %v8246_v6 = vpop.f32.mrb[19].mxu1  ;;  %v8248_v19 = vpop.f32.mrb[23].mxu0  ;;  %v3321_v21 = vrot.slane %v3319_v61, 4  ;;  %v3324_v22 = vrot.slane %v3322_v45, 5  ;;  %v5995_v7 = vrot.slane %v3596_v49, 9  ;;  %v3702_v52 = vrot.slane %v3597_v58, 5 }
 0x168   : > { %v3601_v18 = vld [vmem:[#allocation2 + $0x44] sm:$0x1]  ;;  %5169 = vmatprep.mubr.bf16.mxu1 %v5984_v55  ;;  %v3330_v17 = vrot.slane %v3328_v34, 5  ;;  %v3334_v15 = vrot.slane %v3332_v54, 4  ;;  %v3340_v31 = vrot.slane %v3338_v16, 5  ;;  %v3705_v11 = vrot.slane %v3598_v36, 5 }
 0x169   : > { %5170 = vmatmul.mubr.bf16.gmra.mrb[108].mxu1 %v7027_v43  ;;  %6860 = vmatmul.mubr.bf16.vlgmr.msra.gmra.mrb[112].mxu0 %v6010_v12  ;;  %v3325_v48 = vor.u32 %v3324_v22, %v3321_v21  ;;  %v3703_v44 = vsel %vm7419_vm13, %v5995_v7, %v3702_v52  ;;  %v3704_v32 = vrot.slane %v3702_v52, 4  ;;  %v5996_v24 = vrot.slane %v3599_v3, 9  ;;  %v3105_v51 = vld [vmem:[#allocation2 + $0x84] sm:$0xf]  ;;  %v3106_v58 = vld [vmem:[#allocation2 + $0x88] sm:$0xf] }
 0x16a   : > { %v3335_v47 = vor.u32 %v3334_v15, %v3330_v17  ;;  %v3709_v61 = vrot.slane %v3600_v20, 5  ;;  %v3712_v45 = vrot.slane %v3601_v18, 5  ;;  %v8254_v49 = vadd.f32 %v8076_v35, %v8070_v23  ;;  %v3107_v12 = vld [vmem:[#allocation2 + $0x8c] sm:$0x1]  ;;  %v3602_v20 = vld [vmem:[#allocation2 + $0x48] sm:$0xe] }
 0x16b   : > { %v3326_v55 = vrot.slane %v3325_v48, 4  ;;  %v3706_v43 = vsel %vm7419_vm13, %v3704_v32, %v3705_v11  ;;  %v8260_v36 = vadd.f32 %v8089_v14, %v8084_v10  ;;  %v8264_v3 = vadd.f32 %v8139_v40, %v8127_v25  ;;  %v3603_v21 = vld [vmem:[#allocation2 + $0x4c] sm:$0xf]  ;;  %v3604_v22 = vld [vmem:[#allocation2 + $0x50] sm:$0x1]  ;;  %v7028_v52 = vld [vmem:[#allocation2 + $0x78] sm:$0xff]  }
 0x16c   : > { %v8266_v34 = vpop.f32.mrb[20].mxu1  ;;  %v3336_v54 = vrot.slane %v3335_v47, 4  ;;  %v6011_v23 = vcombine.low %v3703_v44, %v3706_v43  ;;  %v3710_v35 = vsel %vm7419_vm13, %v5996_v24, %v3709_v61  ;;  %v3711_v16 = vrot.slane %v3709_v61, 4  ;;  %v3607_v61 = vld [vmem:[#allocation2 + $0x5c] sm:$0x1] }
 0x16d   : > { %8848 = vst [vmem:[#allocation8_spill] sm:$0xff] %v8264_v3  ;;  %v8270_v11 = vpop.f32.mrb[21].mxu1  ;;  %v3331_v10 = vsel %vm7160_vm2, %v3326_v55, %v3330_v17  ;;  %v8276_v14 = vadd.f32 %v8145_v26, %v8143_v62  ;;  %v3343_v25 = vshrl.u32 %v3105_v51, 16  ;;  %v3346_v40 = vshll.u32 %v3105_v51, 16  ;;  %v3605_v17 = vld [vmem:[#allocation2 + $0x54] sm:$0xe] }
 0x16e   : > { %v8278_v7 = vpop.f32.mrb[22].mxu1  ;;  %v3341_v47 = vsel %vm7160_vm2, %v3336_v54, %v3340_v31  ;;  %6863 = vmatprep.mubr.bf16.mxu0 %v6011_v23  ;;  %v3713_v18 = vsel %vm7419_vm13, %v3711_v16, %v3712_v45  ;;  %v3352_v15 = vshll.u32 %v3106_v58, 16  ;;  %v3356_v48 = vshrl.u32 %v3106_v58, 16  ;;  %v3606_v51 = vld [vmem:[#allocation2 + $0x58] sm:$0xf] }
 0x16f   : > { %8849 = vst [vmem:[#allocation9_spill] sm:$0xff] %v8276_v14  ;;  %v8284_v44 = vpop.f32.mrb[23].mxu1  ;;  %v5985_v62 = vcombine.low %v3331_v10, %v3341_v47  ;;  %v6012_v26 = vcombine.low %v3710_v35, %v3713_v18  ;;  %v3345_v32 = vrot.slane %v3343_v25, 4  ;;  %v3348_v24 = vrot.slane %v3346_v40, 5  ;;  %v3108_v58 = vld [vmem:[#allocation2 + $0x90] sm:$0xf] }
 0x170   : > { %v3354_v55 = vrot.slane %v3352_v15, 5  ;;  %v3358_v43 = vrot.slane %v3356_v48, 4  ;;  %v3362_v14 = vshll.u32 %v3107_v12, 16  ;;  %v5997_v31 = vrot.slane %v3602_v20, 9  ;;  %v3109_v25 = vld [vmem:[#allocation2 + $0x94] sm:$0xf] }
 0x171   : > { %5177 = vmatprep.mubr.bf16.mxu1 %v5985_v62  ;;  %6864 = vmatmul.mubr.bf16.gmra.mrb[116].mxu0 %v6012_v26  ;;  %v3349_v54 = vor.u32 %v3348_v24, %v3345_v32  ;;  %v3716_v23 = vrot.slane %v3603_v21, 5  ;;  %v3719_v45 = vrot.slane %v3604_v22, 5  ;;  %v5998_v16 = vrot.slane %v3605_v17, 9  ;;  %v3110_v20 = vld [vmem:[#allocation2 + $0x98] sm:$0x1] }
 0x172   : > { %5178 = vmatmul.mubr.bf16.gmra.mrb[112].mxu1 %v7028_v52  ;;  %v3359_v3 = vor.u32 %v3358_v43, %v3354_v55  ;;  %v3364_v56 = vrot.slane %v3362_v14, 5  ;;  %v3723_v10 = vrot.slane %v3606_v51, 5  ;;  %v3726_v35 = vrot.slane %v3607_v61, 5  ;;  %v3608_v21 = vld [vmem:[#allocation2 + $0x60] sm:$0xe] }
 0x173   : > { %v3350_v40 = vrot.slane %v3349_v54, 4  ;;  %v3717_v47 = vsel %vm7419_vm13, %v5997_v31, %v3716_v23  ;;  %v3718_v18 = vrot.slane %v3716_v23, 4  ;;  %v8290_v12 = vadd.f32 %v8125_v28, %v8117_v2  ;;  %v3609_v62 = vld [vmem:[#allocation2 + $0x64] sm:$0xf] }
 0x174   : > { %v8292_v22 = vpop.f32.mrb[24].mxu0  ;;  %v8294_v15 = vpop.f32.mrb[24].mxu1  ;;  %v3360_v52 = vrot.slane %v3359_v3, 4  ;;  %v3724_v14 = vsel %vm7419_vm13, %v5998_v16, %v3723_v10  ;;  %v3725_v48 = vrot.slane %v3723_v10, 4  ;;  %v8300_v17 = vadd.f32 %v8157_v1, %v8155_v60  ;;  %v3610_v60 = vld [vmem:[#allocation2 + $0x68] sm:$0x1] }
 0x175   : > { %v8302_v26 = vpop.f32.mrb[25].mxu0  ;;  %v8304_v2 = vpop.f32.mrb[25].mxu1  ;;  %v3355_v28 = vsel %vm7160_vm2, %v3350_v40, %v3354_v55  ;;  %v3720_v32 = vsel %vm7419_vm13, %v3718_v18, %v3719_v45  ;;  %v8312_v3 = vadd.f32 %v8196_v50, %v8194_v38  ;;  %v8316_v24 = vadd.f32 %v8204_v27, %v8200_v39  ;;  %v3611_v1 = vld [vmem:[#allocation2 + $0x6c] sm:$0xe]  ;;  %v7029_v31 = vld [vmem:[#allocation2 + $0x84] sm:$0xff]  }
 0x176   : > { %8850 = vst [vmem:[#allocation10_spill] sm:$0xff] %v8300_v17  ;;  %v8318_v51 = vpop.f32.mrb[26].mxu0  ;;  %v8320_v61 = vpop.f32.mrb[26].mxu1  ;;  %v3365_v55 = vsel %vm7160_vm2, %v3360_v52, %v3364_v56  ;;  %v6013_v43 = vcombine.low %v3717_v47, %v3720_v32  ;;  %v3727_v54 = vsel %vm7419_vm13, %v3725_v48, %v3726_v35  ;;  %v3367_v38 = vshrl.u32 %v3108_v58, 16  ;;  %v3612_v50 = vld [vmem:[#allocation2 + $0x70] sm:$0xf] }
 0x177   : > { %8851 = vst [vmem:[#allocation11_spill] sm:$0xff] %v8312_v3  ;;  %8852 = vst [vmem:[#allocation12_spill] sm:$0xff] %v8316_v24  ;;  %v8326_v23 = vpop.f32.mrb[27].mxu0  ;;  %v8328_v39 = vpop.f32.mrb[27].mxu1  ;;  %v5986_v27 = vcombine.low %v3355_v28, %v3365_v55  ;;  %v6014_v45 = vcombine.low %v3724_v14, %v3727_v54  ;;  %v3370_v16 = vshll.u32 %v3108_v58, 16  ;;  %v3376_v10 = vshll.u32 %v3109_v25, 16 }
 0x178   : > { %v3613_v40 = vld [vmem:[#allocation2 + $0x74] sm:$0x1]  ;;  %6867 = vmatprep.mubr.bf16.mxu0 %v6013_v43  ;;  %v3369_v18 = vrot.slane %v3367_v38, 4  ;;  %v3380_v24 = vshrl.u32 %v3109_v25, 16  ;;  %v3386_v56 = vshll.u32 %v3110_v20, 16  ;;  %v5999_v47 = vrot.slane %v3608_v21, 9 }
 0x179   : > { %5185 = vmatprep.mubr.bf16.mxu1 %v5986_v27  ;;  %6868 = vmatmul.mubr.bf16.gmra.mrb[120].mxu0 %v6014_v45  ;;  %v3372_v52 = vrot.slane %v3370_v16, 5  ;;  %v3378_v35 = vrot.slane %v3376_v10, 5  ;;  %v3730_v48 = vrot.slane %v3609_v62, 5  ;;  %v3733_v32 = vrot.slane %v3610_v60, 5  ;;  %v3111_v25 = vld [vmem:[#allocation2 + $0x9c] sm:$0xf] }
 0x17a   : > { %5186 = vmatmul.mubr.bf16.gmra.mrb[116].mxu1 %v7029_v31  ;;  %v3382_v3 = vrot.slane %v3380_v24, 4  ;;  %v3388_v30 = vrot.slane %v3386_v56, 5  ;;  %v6000_v17 = vrot.slane %v3611_v1, 9  ;;  %v3737_v28 = vrot.slane %v3612_v50, 5  ;;  %v3112_v60 = vld [vmem:[#allocation2 + $0xa0] sm:$0xf] }
 0x17b   : > { %v3373_v14 = vor.u32 %v3372_v52, %v3369_v18  ;;  %v3731_v58 = vsel %vm7419_vm13, %v5999_v47, %v3730_v48  ;;  %v3732_v55 = vrot.slane %v3730_v48, 4  ;;  %v3740_v43 = vrot.slane %v3613_v40, 5  ;;  %v3113_v1 = vld [vmem:[#allocation2 + $0xa4] sm:$0x1]  ;;  %v3615_v45 = vld [vmem:[#allocation2 + $0x7c] sm:$0xf] }
 0x17c   : > { %v8332_v20 = vpop.f32.mrb[28].mxu1  ;;  %v3383_v21 = vor.u32 %v3382_v3, %v3378_v35  ;;  %v3738_v54 = vsel %vm7419_vm13, %v6000_v17, %v3737_v28  ;;  %v3739_v62 = vrot.slane %v3737_v28, 4  ;;  %v8338_v24 = vadd.f32 %v8167_v37, %v8163_v42  ;;  %v3614_v3 = vld [vmem:[#allocation2 + $0x78] sm:$0xe]  ;;  %v3616_v56 = vld [vmem:[#allocation2 + $0x80] sm:$0x1] }
 0x17d   : > { %v8340_v31 = vpop.f32.mrb[29].mxu1  ;;  %v3374_v38 = vrot.slane %v3373_v14, 4  ;;  %v3734_v50 = vsel %vm7419_vm13, %v3732_v55, %v3733_v32  ;;  %v8346_v27 = vadd.f32 %v8183_v53, %v8171_v9  ;;  %v6501_v17 = vadd.f32 %v8236_v8, %v8224_v13  ;;  %v3617_v48 = vld [vmem:[#allocation2 + $0x84] sm:$0xe]  ;;  %v3618_v32 = vld [vmem:[#allocation2 + $0x88] sm:$0xf] }
 0x17e   : > { %v8350_v16 = vpop.f32.mrb[28].mxu0  ;;  %v8352_v42 = vpop.f32.mrb[30].mxu1  ;;  %v3384_v37 = vrot.slane %v3383_v21, 4  ;;  %v6015_v10 = vcombine.low %v3731_v58, %v3734_v50  ;;  %v3741_v40 = vsel %vm7419_vm13, %v3739_v62, %v3740_v43  ;;  %v6504_v18 = vadd.f32 %v8246_v6, %v8242_v5  ;;  %v7030_v6 = vld [vmem:[#allocation2 + $0x90] sm:$0xff]  }
 0x17f   : > { %v8358_v9 = vpop.f32.mrb[29].mxu0  ;;  %v8360_v53 = vpop.f32.mrb[31].mxu1  ;;  %v3379_v13 = vsel %vm7160_vm2, %v3374_v38, %v3378_v35  ;;  %v6016_v8 = vcombine.low %v3738_v54, %v3741_v40  ;;  %v8365_v47 = vadd.f32 %v6501_v17, %v8015_v4  ;;  %v3391_v52 = vshrl.u32 %v3111_v25, 16  ;;  %v3619_v40 = vld [vmem:[#allocation2 + $0x8c] sm:$0x1] }
 0x180   : > { %v8367_v28 = vpop.f32.mrb[30].mxu0  ;;  %v3389_v5 = vsel %vm7160_vm2, %v3384_v37, %v3388_v30  ;;  %6871 = vmatprep.mubr.bf16.mxu0 %v6015_v10  ;;  %v8372_v14 = vadd.f32 %v6504_v18, %v8175_v59  ;;  %v3394_v58 = vshll.u32 %v3111_v25, 16  ;;  %v3400_v55 = vshll.u32 %v3112_v60, 16 }
 0x181   : > { %v8374_v35 = vpop.f32.mrb[31].mxu0  ;;  %v5987_v43 = vcombine.low %v3379_v13, %v3389_v5  ;;  %6872 = vmatmul.mubr.bf16.gmra.mrb[124].mxu0 %v6016_v8  ;;  %v3393_v4 = vrot.slane %v3391_v52, 4  ;;  %v3404_v21 = vshrl.u32 %v3112_v60, 16  ;;  %v3410_v54 = vshll.u32 %v3113_v1, 16 }
 0x182   : > { %v3396_v62 = vrot.slane %v3394_v58, 5  ;;  %v3402_v38 = vrot.slane %v3400_v55, 5  ;;  %v6001_v50 = vrot.slane %v3614_v3, 9  ;;  %v3744_v17 = vrot.slane %v3615_v45, 5 }
 0x183   : > { %5193 = vmatprep.mubr.bf16.mxu1 %v5987_v43  ;;  %v3406_v30 = vrot.slane %v3404_v21, 4  ;;  %v3412_v37 = vrot.slane %v3410_v54, 5  ;;  %v3747_v10 = vrot.slane %v3616_v56, 5  ;;  %v6002_v59 = vrot.slane %v3617_v48, 9  ;;  %v3114_v48 = vld [vmem:[#allocation2 + $0xa8] sm:$0xf] }
 0x184   : > { %v8376_v18 = vpop.f32.mrb[32].mxu1  ;;  %5194 = vmatmul.mubr.bf16.gmra.mrb[120].mxu1 %v7030_v6  ;;  %v3397_v25 = vor.u32 %v3396_v62, %v3393_v4  ;;  %v3745_v13 = vsel %vm7419_vm13, %v6001_v50, %v3744_v17  ;;  %v3746_v8 = vrot.slane %v3744_v17, 4  ;;  %v3751_v60 = vrot.slane %v3618_v32, 5  ;;  %v3115_v21 = vld [vmem:[#allocation2 + $0xac] sm:$0xf] }
 0x185   : > { %v8380_v1 = vpop.f32.mrb[33].mxu1  ;;  %v3407_v52 = vor.u32 %v3406_v30, %v3402_v38  ;;  %v3754_v3 = vrot.slane %v3619_v40, 5  ;;  %v8384_v45 = vadd.f32 %v8238_v46, %v8226_v0  ;;  %v8388_v56 = vadd.f32 %v8248_v19, %v8244_v57  ;;  %v7031_v46 = vld [vmem:[#allocation2 + $0x9c] sm:$0xff]   ;;  %v3116_v54 = vld [vmem:[#allocation2 + $0xb0] sm:$0x1] }
 0x186   : > { %v8390_v5 = vpop.f32.mrb[34].mxu1  ;;  %v3398_v6 = vrot.slane %v3397_v25, 4  ;;  %v3748_v58 = vsel %vm7419_vm13, %v3746_v8, %v3747_v10  ;;  %v3752_v32 = vsel %vm7419_vm13, %v6002_v59, %v3751_v60  ;;  %v3753_v55 = vrot.slane %v3751_v60, 4  ;;  %v3620_v30 = vld [vmem:[#allocation2 + $0x90] sm:$0xe] }
 0x187   : > { %v8396_v43 = vpop.f32.mrb[35].mxu1  ;;  %v3408_v4 = vrot.slane %v3407_v52, 4  ;;  %v6017_v0 = vcombine.low %v3745_v13, %v3748_v58  ;;  %v6507_v57 = vadd.f32 %v8270_v11, %v8266_v34  ;;  %v6510_v19 = vadd.f32 %v8284_v44, %v8278_v7  ;;  %v3621_v10 = vld [vmem:[#allocation2 + $0x94] sm:$0xf]  ;;  %v3622_v44 = vld [vmem:[#allocation2 + $0x98] sm:$0x1] }
 0x188   : > { %v3403_v62 = vsel %vm7160_vm2, %v3398_v6, %v3402_v38  ;;  %v3755_v50 = vsel %vm7419_vm13, %v3753_v55, %v3754_v3  ;;  %v3415_v17 = vshrl.u32 %v3114_v48, 16  ;;  %v3418_v40 = vshll.u32 %v3114_v48, 16  ;;  %v3623_v38 = vld [vmem:[#allocation2 + $0x9c] sm:$0xe]  ;;  %v3624_v25 = vld [vmem:[#allocation2 + $0xa0] sm:$0xf] }
 0x189   : > { %v3413_v59 = vsel %vm7160_vm2, %v3408_v4, %v3412_v37  ;;  %6875 = vmatprep.mubr.bf16.mxu0 %v6017_v0  ;;  %v6018_v34 = vcombine.low %v3752_v32, %v3755_v50  ;;  %v8409_v11 = vadd.f32 %v6507_v57, %v8212_v63  ;;  %v8412_v7 = vadd.f32 %v6510_v19, %v8218_v29  ;;  %v3625_v3 = vld [vmem:[#allocation2 + $0xa4] sm:$0x1]  ;;  %v3117_v0 = vld [vmem:[#allocation2 + $0xb4] sm:$0xf] }
 0x18a   : > { %v5988_v13 = vcombine.low %v3403_v62, %v3413_v59  ;;  %v3417_v8 = vrot.slane %v3415_v17, 4  ;;  %v3420_v60 = vrot.slane %v3418_v40, 5  ;;  %v3424_v52 = vshll.u32 %v3115_v21, 16 }
 0x18b   : > { %6876 = vmatmul.mubr.bf16.gmra.mrb[128].mxu0 %v6018_v34  ;;  %v3428_v48 = vshrl.u32 %v3115_v21, 16  ;;  %v3434_v6 = vshll.u32 %v3116_v54, 16  ;;  %v6003_v37 = vrot.slane %v3620_v30, 9  ;;  %v3758_v58 = vrot.slane %v3621_v10, 5 }
 0x18c   : > { %v8414_v32 = vpop.f32.mrb[32].mxu0  ;;  %5201 = vmatprep.mubr.bf16.mxu1 %v5988_v13  ;;  %v3421_v63 = vor.u32 %v3420_v60, %v3417_v8  ;;  %v3426_v55 = vrot.slane %v3424_v52, 5  ;;  %v3761_v29 = vrot.slane %v3622_v44, 5  ;;  %v6004_v4 = vrot.slane %v3623_v38, 9  ;;  %v3118_v60 = vld [vmem:[#allocation2 + $0xb8] sm:$0xf] }
 0x18d   : > { %v8416_v57 = vpop.f32.mrb[33].mxu0  ;;  %v8418_v19 = vpop.f32.mrb[36].mxu1  ;;  %5202 = vmatmul.mubr.bf16.gmra.mrb[124].mxu1 %v7031_v46  ;;  %v3430_v62 = vrot.slane %v3428_v48, 4  ;;  %v3436_v50 = vrot.slane %v3434_v6, 5  ;;  %v3759_v21 = vsel %vm7419_vm13, %v6003_v37, %v3758_v58  ;;  %v3760_v54 = vrot.slane %v3758_v58, 4 }
 0x18e   : > { %v8422_v17 = vpop.f32.mrb[34].mxu0  ;;  %v8424_v40 = vpop.f32.mrb[37].mxu1  ;;  %v3422_v30 = vrot.slane %v3421_v63, 4  ;;  %v3765_v10 = vrot.slane %v3624_v25, 5  ;;  %v3768_v59 = vrot.slane %v3625_v3, 5  ;;  %v8428_v34 = vadd.f32 %v8302_v26, %v8292_v22 }
 0x18f   : > { %v8430_v44 = vpop.f32.mrb[35].mxu0  ;;  %v8432_v46 = vpop.f32.mrb[38].mxu1  ;;  %v3431_v38 = vor.u32 %v3430_v62, %v3426_v55  ;;  %v3762_v13 = vsel %vm7419_vm13, %v3760_v54, %v3761_v29  ;;  %v8438_v8 = vadd.f32 %v8326_v23, %v8318_v51  ;;  %v6513_v25 = vadd.f32 %v8304_v2, %v8294_v15  ;;  %v3119_v6 = vld [vmem:[#allocation2 + $0xbc] sm:$0x1]  ;;  %v3626_v37 = vld [vmem:[#allocation2 + $0xa8] sm:$0xe] }
 0x190   : > { %v8442_v52 = vpop.f32.mrb[39].mxu1  ;;  %v3427_v22 = vsel %vm7160_vm2, %v3422_v30, %v3426_v55  ;;  %v6019_v26 = vcombine.low %v3759_v21, %v3762_v13  ;;  %v3766_v3 = vsel %vm7419_vm13, %v6004_v4, %v3765_v10  ;;  %v3767_v48 = vrot.slane %v3765_v10, 4  ;;  %v3627_v23 = vld [vmem:[#allocation2 + $0xac] sm:$0xf]  ;;  %v3628_v63 = vld [vmem:[#allocation2 + $0xb0] sm:$0x1] }
 0x191   : > { %v3432_v58 = vrot.slane %v3431_v38, 4  ;;  %v8449_v51 = vadd.f32 %v6513_v25, %v8254_v49  ;;  %v6516_v15 = vadd.f32 %v8328_v39, %v8320_v61  ;;  %v3439_v2 = vshrl.u32 %v3117_v0, 16  ;;  %v7032_v29 = vld [vmem:[#allocation2 + $0xa8] sm:$0xff]   ;;  %v3629_v54 = vld [vmem:[#allocation2 + $0xb4] sm:$0xe] }
 0x192   : > { %6879 = vmatprep.mubr.bf16.mxu0 %v6019_v26  ;;  %v3769_v55 = vsel %vm7419_vm13, %v3767_v48, %v3768_v59  ;;  %v3442_v62 = vshll.u32 %v3117_v0, 16  ;;  %v3448_v4 = vshll.u32 %v3118_v60, 16  ;;  %v3452_v21 = vshrl.u32 %v3118_v60, 16  ;;  %v3630_v39 = vld [vmem:[#allocation2 + $0xb8] sm:$0xf] }
 0x193   : > { %8853 = vst [vmem:[#allocation13_spill] sm:$0xff] %v8449_v51  ;;  %v3437_v30 = vsel %vm7160_vm2, %v3432_v58, %v3436_v50  ;;  %v6020_v49 = vcombine.low %v3766_v3, %v3769_v55  ;;  %v8458_v10 = vadd.f32 %v6516_v15, %v8260_v36  ;;  %v3441_v61 = vrot.slane %v3439_v2, 4  ;;  %v3631_v38 = vld [vmem:[#allocation2 + $0xbc] sm:$0x1] }
 0x194   : > { %v8460_v13 = vpop.f32.mrb[36].mxu0  ;;  %v5989_v25 = vcombine.low %v3427_v22, %v3437_v30  ;;  %v3444_v26 = vrot.slane %v3442_v62, 5  ;;  %v3450_v51 = vrot.slane %v3448_v4, 5  ;;  %v3454_v59 = vrot.slane %v3452_v21, 4 }
 0x195   : > { %8854 = vst [vmem:[#allocation14_spill] sm:$0xff] %v8458_v10  ;;  %v8462_v0 = vpop.f32.mrb[37].mxu0  ;;  %v8464_v60 = vpop.f32.mrb[40].mxu1  ;;  %6880 = vmatmul.mubr.bf16.gmra.mrb[132].mxu0 %v6020_v49  ;;  %v3458_v48 = vshll.u32 %v3119_v6, 16  ;;  %v6005_v50 = vrot.slane %v3626_v37, 9  ;;  %v3772_v3 = vrot.slane %v3627_v23, 5 }
 0x196   : > { %v3775_v58 = vrot.slane %v3628_v63, 5  ;;  %v8466_v36 = vpop.f32.mrb[38].mxu0  ;;  %v8468_v15 = vpop.f32.mrb[41].mxu1  ;;  %5209 = vmatprep.mubr.bf16.mxu1 %v5989_v25  ;;  %v3445_v2 = vor.u32 %v3444_v26, %v3441_v61  ;;  %v3455_v55 = vor.u32 %v3454_v59, %v3450_v51  ;;  %v6006_v22 = vrot.slane %v3629_v54, 9  ;;  %v3120_v26 = vld [vmem:[#allocation2 + $0xc0] sm:$0xf] }
 0x197   : > { %v3779_v62 = vrot.slane %v3630_v39, 5  ;;  %v8470_v4 = vpop.f32.mrb[39].mxu0  ;;  %v8472_v21 = vpop.f32.mrb[42].mxu1  ;;  %5210 = vmatmul.mubr.bf16.gmra.mrb[128].mxu1 %v7032_v29  ;;  %v3460_v30 = vrot.slane %v3458_v48, 5  ;;  %v3773_v6 = vsel %vm7419_vm13, %v6005_v50, %v3772_v3  ;;  %v3774_v37 = vrot.slane %v3772_v3, 4 }
 0x198   : > { %v3782_v23 = vrot.slane %v3631_v38, 5  ;;  %v8476_v63 = vpop.f32.mrb[43].mxu1  ;;  %v3446_v49 = vrot.slane %v3445_v2, 4  ;;  %v3456_v10 = vrot.slane %v3455_v55, 4  ;;  %v8484_v29 = vadd.f32 %v8358_v9, %v8350_v16  ;;  %v3121_v59 = vld [vmem:[#allocation2 + $0xc4] sm:$0xf] }
 0x199   : > { %v3780_v61 = vsel %vm7419_vm13, %v6006_v22, %v3779_v62  ;;  %v3781_v54 = vrot.slane %v3779_v62, 4  ;;  %v3776_v39 = vsel %vm7419_vm13, %v3774_v37, %v3775_v58  ;;  %v8488_v25 = vadd.f32 %v8374_v35, %v8367_v28  ;;  %v3122_v9 = vld [vmem:[#allocation2 + $0xc8] sm:$0x1]  ;;  %v7033_v2 = vld [vmem:[#allocation2 + $0xb4] sm:$0xff]   ;;  %v3633_v55 = vld [vmem:[#allocation2 + $0xc4] sm:$0xf] }
 0x19a   : > { %v6519_v38 = vadd.f32 %v8340_v31, %v8332_v20  ;;  %v3451_v48 = vsel %vm7160_vm2, %v3446_v49, %v3450_v51  ;;  %v3461_v50 = vsel %vm7160_vm2, %v3456_v10, %v3460_v30  ;;  %v6021_v3 = vcombine.low %v3773_v6, %v3776_v39  ;;  %v3632_v31 = vld [vmem:[#allocation2 + $0xc0] sm:$0xe]  ;;  %v3634_v30 = vld [vmem:[#allocation2 + $0xc8] sm:$0x1]  ;;  %v3636_v49 = vld [vmem:[#allocation2 + $0xd0] sm:$0xf] }
 0x19b   : > { %v3783_v16 = vsel %vm7419_vm13, %v3781_v54, %v3782_v23  ;;  %v5990_v58 = vcombine.low %v3451_v48, %v3461_v50  ;;  %v6522_v20 = vadd.f32 %v8360_v53, %v8352_v42  ;;  %v3463_v51 = vshrl.u32 %v3120_v26, 16  ;;  %v8855_v6 = vld [vmem:[#allocation10_spill] sm:$0xff] }
 0x19c   : > { %v6022_v28 = vcombine.low %v3780_v61, %v3783_v16  ;;  %v8499_v35 = vadd.f32 %v6519_v38, %v8290_v12  ;;  %6883 = vmatprep.mubr.bf16.mxu0 %v6021_v3  ;;  %v3466_v22 = vshll.u32 %v3120_v26, 16  ;;  %v3472_v10 = vshll.u32 %v3121_v59, 16  ;;  %v3635_v53 = vld [vmem:[#allocation2 + $0xcc] sm:$0xe]  ;;  %v3637_v26 = vld [vmem:[#allocation2 + $0xd4] sm:$0x1] }
 0x19d   : > { %v3476_v62 = vshrl.u32 %v3121_v59, 16  ;;  %5217 = vmatprep.mubr.bf16.mxu1 %v5990_v58  ;;  %v8504_v37 = vadd.f32 %v6522_v20, %v8855_v6  ;;  %v3482_v23 = vshll.u32 %v3122_v9, 16  ;;  %v8508_v12 = vadd.f32 %v8416_v57, %v8414_v32  ;;  %v3123_v58 = vld [vmem:[#allocation2 + $0xcc] sm:$0xf] }
 0x19e   : > { %6884 = vmatmul.mubr.bf16.gmra.mrb[136].mxu0 %v6022_v28  ;;  %v8512_v42 = vadd.f32 %v8430_v44, %v8422_v17  ;;  %v3465_v61 = vrot.slane %v3463_v51, 4  ;;  %v3468_v54 = vrot.slane %v3466_v22, 5  ;;  %v3474_v39 = vrot.slane %v3472_v10, 5 }
 0x19f   : > { %v3478_v38 = vrot.slane %v3476_v62, 4  ;;  %5218 = vmatmul.mubr.bf16.gmra.mrb[132].mxu1 %v7033_v2  ;;  %v3484_v59 = vrot.slane %v3482_v23, 5  ;;  %v6007_v48 = vrot.slane %v3632_v31, 9  ;;  %v3786_v50 = vrot.slane %v3633_v55, 5  ;;  %v6447_v16 = vpop.f32.mrb[40].mxu0  ;;  %v6541_v9 = vpop.f32.mrb[44].mxu1 }
 0x1a0   : > { %v3789_v3 = vrot.slane %v3634_v30, 5  ;;  %v3469_v32 = vor.u32 %v3468_v54, %v3465_v61  ;;  %v6525_v17 = vadd.f32 %v8380_v1, %v8376_v18  ;;  %v6008_v44 = vrot.slane %v3635_v53, 9  ;;  %v6448_v28 = vpop.f32.mrb[41].mxu0  ;;  %v6542_v20 = vpop.f32.mrb[45].mxu1  ;;  %v3124_v54 = vld [vmem:[#allocation2 + $0xd0] sm:$0xf] }
 0x1a1   : > { %v3479_v57 = vor.u32 %v3478_v38, %v3474_v39  ;;  %v3787_v51 = vsel %vm7419_vm13, %v6007_v48, %v3786_v50  ;;  %v3788_v22 = vrot.slane %v3786_v50, 4  ;;  %v3793_v2 = vrot.slane %v3636_v49, 5  ;;  %v6450_v31 = vpop.f32.mrb[42].mxu0  ;;  %v6544_v55 = vpop.f32.mrb[46].mxu1  ;;  %v3125_v38 = vld [vmem:[#allocation2 + $0xd4] sm:$0x1] }
 0x1a2   : > { %v3796_v10 = vrot.slane %v3637_v26, 5  ;;  %v3470_v62 = vrot.slane %v3469_v32, 4  ;;  %v8519_v6 = vadd.f32 %v6525_v17, %v8338_v24  ;;  %v6528_v18 = vadd.f32 %v8396_v43, %v8390_v5  ;;  %v6451_v1 = vpop.f32.mrb[43].mxu0  ;;  %v6545_v23 = vpop.f32.mrb[47].mxu1  ;;  %v7034_v50 = vld [vmem:[#allocation2 + $0xc0] sm:$0xff]  }
 0x1a3   : > { %v3480_v30 = vrot.slane %v3479_v57, 4  ;;  %v3790_v53 = vsel %vm7419_vm13, %v3788_v22, %v3789_v3  ;;  %v3794_v61 = vsel %vm7419_vm13, %v6008_v44, %v3793_v2  ;;  %v3795_v49 = vrot.slane %v3793_v2, 4 }
 0x1a4   : > { %8856 = vst [vmem:[#allocation10_spill] sm:$0xff] %v8519_v6  ;;  %v3487_v26 = vshrl.u32 %v3123_v58, 16  ;;  %v3475_v48 = vsel %vm7160_vm2, %v3470_v62, %v3474_v39  ;;  %v6023_v5 = vcombine.low %v3787_v51, %v3790_v53  ;;  %v8532_v43 = vadd.f32 %v6528_v18, %v8346_v27 }
 0x1a5   : > { %v3485_v24 = vsel %vm7160_vm2, %v3480_v30, %v3484_v59  ;;  %v3797_v3 = vsel %vm7419_vm13, %v3795_v49, %v3796_v10  ;;  %v3490_v17 = vshll.u32 %v3123_v58, 16  ;;  %v3496_v22 = vshll.u32 %v3124_v54, 16 }
 0x1a6   : > { %v5991_v32 = vcombine.low %v3475_v48, %v3485_v24  ;;  %v3489_v57 = vrot.slane %v3487_v26, 4  ;;  %6887 = vmatprep.mubr.bf16.mxu0 %v6023_v5  ;;  %v6024_v44 = vcombine.low %v3794_v61, %v3797_v3  ;;  %v3500_v2 = vshrl.u32 %v3124_v54, 16 }
 0x1a7   : > { %v3506_v6 = vshll.u32 %v3125_v38, 16  ;;  %v3492_v39 = vrot.slane %v3490_v17, 5  ;;  %v6443_v59 = vadd.f32 %v8462_v0, %v8460_v13  ;;  %v6446_v27 = vadd.f32 %v8470_v4, %v8466_v36 }
 0x1a8   : > { %5225 = vmatprep.mubr.bf16.mxu1 %v5991_v32  ;;  %v6531_v51 = vadd.f32 %v8424_v40, %v8418_v19  ;;  %6888 = vmatmul.mubr.bf16.gmra.mrb[140].mxu0 %v6024_v44  ;;  %v3498_v41 = vrot.slane %v3496_v22, 5  ;;  %v3502_v58 = vrot.slane %v3500_v2, 4  ;;  %v6534_v62 = vadd.f32 %v8442_v52, %v8432_v46 }
 0x1a9   : > { %5226 = vmatmul.mubr.bf16.gmra.mrb[136].mxu1 %v7034_v50  ;;  %v3508_v10 = vrot.slane %v3506_v6, 5  ;;  %v3493_v30 = vor.u32 %v3492_v39, %v3489_v57  ;;  %v6449_v53 = vadd.f32 %v6448_v28, %v6447_v16  ;;  %v6452_v13 = vadd.f32 %v6451_v1, %v6450_v31  ;;  %v6547_v0 = vpop.f32.mrb[48].mxu1 }
 0x1aa   : > { %v8545_v18 = vadd.f32 %v6531_v51, %v8384_v45  ;;  %v3503_v61 = vor.u32 %v3502_v58, %v3498_v41  ;;  %v8548_v36 = vadd.f32 %v6534_v62, %v8388_v56  ;;  %v6537_v19 = vadd.f32 %v8468_v15, %v8464_v60  ;;  %v6548_v4 = vpop.f32.mrb[49].mxu1 }
 0x1ab   : > { %v6540_v40 = vadd.f32 %v8476_v63, %v8472_v21  ;;  %v3494_v6 = vrot.slane %v3493_v30, 4  ;;  %v6543_v46 = vadd.f32 %v6542_v20, %v6541_v9  ;;  %v6546_v52 = vadd.f32 %v6545_v23, %v6544_v55  ;;  %v6550_v45 = vpop.f32.mrb[50].mxu1  ;;  %v7035_v9 = vld [vmem:[#allocation2 + $0xcc] sm:$0xff]  }
 0x1ac   : > { %v6549_v49 = vadd.f32 %v6548_v4, %v6547_v0  ;;  %v3504_v54 = vrot.slane %v3503_v61, 4  ;;  %v8555_v16 = vadd.f32 %v6537_v19, %v8428_v34  ;;  %v6551_v56 = vpop.f32.mrb[51].mxu1 }
 0x1ad   : > { %v8558_v28 = vadd.f32 %v6540_v40, %v8438_v8  ;;  %v3499_v60 = vsel %vm7160_vm2, %v3494_v6, %v3498_v41  ;;  %v8563_v15 = vadd.f32 %v6543_v46, %v8484_v29  ;;  %v8566_v21 = vadd.f32 %v6546_v52, %v8488_v25 }
 0x1ae   : > { %v8569_v63 = vadd.f32 %v6549_v49, %v8508_v12  ;;  %v3509_v34 = vsel %vm7160_vm2, %v3504_v54, %v3508_v10  ;;  %v6552_v20 = vadd.f32 %v6551_v56, %v6550_v45 }
 0x1af   : > { %v5992_v8 = vcombine.low %v3499_v60, %v3509_v34  ;;  %v6453_v31 = vpop.f32.mrb[44].mxu0 }
 0x1b0   : > { %v6454_v55 = vpop.f32.mrb[45].mxu0  ;;  %v8574_v1 = vadd.f32 %v6552_v20, %v8512_v42 }
 0x1b1   : > { %5233 = vmatprep.mubr.bf16.mxu1 %v5992_v8  ;;  %v6455_v29 = vadd.f32 %v6454_v55, %v6453_v31  ;;  %v6456_v23 = vpop.f32.mrb[46].mxu0 }
 0x1b2   : > { %5234 = vmatmul.mubr.bf16.gmra.mrb[140].mxu1 %v7035_v9  ;;  %v6457_v25 = vpop.f32.mrb[47].mxu0 }
 0x1b3   : > { %v6458_v38 = vadd.f32 %v6457_v25, %v6456_v23  ;;  %v8858_v23 = vld [vmem:[#allocation14_spill] sm:$0xff] }
 0x1b4   : > { %v6553_v26 = vpop.f32.mrb[52].mxu1 }
 0x1b5   : > { %v6554_v12 = vpop.f32.mrb[53].mxu1 }
 0x1b6   : > { %v6555_v48 = vadd.f32 %v6554_v12, %v6553_v26  ;;  %v6556_v24 = vpop.f32.mrb[54].mxu1 }
 0x1b7   : > { %v6611_v33 = vpop.f32.mrb[48].mxu0  ;;  %v6557_v50 = vpop.f32.mrb[55].mxu1 }
 0x1b8   : > { %v6612_v5 = vpop.f32.mrb[49].mxu0  ;;  %v8576_v32 = vadd.f32 %v6555_v48, %v6443_v59  ;;  %v6558_v3 = vadd.f32 %v6557_v50, %v6556_v24  ;;  %v8859_v50 = vld [vmem:[#allocation4_spill] sm:$0xff] }
 0x1b9   : > { %v6613_v57 = vadd.f32 %v6612_v5, %v6611_v33  ;;  %v6614_v17 = vpop.f32.mrb[50].mxu0 }
 0x1ba   : > { %v6615_v42 = vpop.f32.mrb[51].mxu0  ;;  %v8578_v44 = vadd.f32 %v6558_v3, %v6446_v27 }
 0x1bb   : > { %v8581_v22 = vadd.f32 %v6613_v57, %v8365_v47  ;;  %v6616_v2 = vadd.f32 %v6615_v42, %v6614_v17  ;;  %v8860_v42 = vld [vmem:[#allocation5_spill] sm:$0xff] }
 0x1bc   : > { %v6559_v39 = vpop.f32.mrb[56].mxu1 }
 0x1bd   : > { %v8584_v51 = vadd.f32 %v6616_v2, %v8372_v14  ;;  %v6560_v41 = vpop.f32.mrb[57].mxu1 }
 0x1be   : > { %v6561_v58 = vadd.f32 %v6560_v41, %v6559_v39  ;;  %v6562_v10 = vpop.f32.mrb[58].mxu1 }
 0x1bf   : > { %v6617_v62 = vpop.f32.mrb[52].mxu0  ;;  %v6563_v59 = vpop.f32.mrb[59].mxu1 }
 0x1c0   : > { %v6618_v30 = vpop.f32.mrb[53].mxu0  ;;  %v8586_v0 = vadd.f32 %v6561_v58, %v6449_v53  ;;  %v6564_v61 = vadd.f32 %v6563_v59, %v6562_v10 }
 0x1c1   : > { %v6619_v19 = vadd.f32 %v6618_v30, %v6617_v62  ;;  %v6620_v27 = vpop.f32.mrb[54].mxu0 }
 0x1c2   : > { %v6621_v40 = vpop.f32.mrb[55].mxu0  ;;  %v8588_v4 = vadd.f32 %v6564_v61, %v6452_v13 }
 0x1c3   : > { %v8591_v47 = vadd.f32 %v6619_v19, %v8409_v11  ;;  %v6622_v6 = vadd.f32 %v6621_v40, %v6620_v27  ;;  %v8857_v11 = vld [vmem:[#allocation13_spill] sm:$0xff]  ;;  %v8861_v40 = vld [vmem:[#allocation6_spill] sm:$0xff] }
 0x1c4   : > { %v6565_v14 = vpop.f32.mrb[60].mxu1 }
 0x1c5   : > { %v8594_v46 = vadd.f32 %v6622_v6, %v8412_v7  ;;  %v6566_v52 = vpop.f32.mrb[61].mxu1 }
 0x1c6   : > { %v6567_v49 = vadd.f32 %v6566_v52, %v6565_v14  ;;  %v6568_v45 = vpop.f32.mrb[62].mxu1 }
 0x1c7   : > { %v6623_v54 = vpop.f32.mrb[56].mxu0  ;;  %v6569_v53 = vpop.f32.mrb[63].mxu1 }
 0x1c8   : > { %v6624_v56 = vpop.f32.mrb[57].mxu0  ;;  %v8596_v60 = vadd.f32 %v6567_v49, %v6455_v29  ;;  %v6570_v34 = vadd.f32 %v6569_v53, %v6568_v45  ;;  %v8863_v53 = vld [vmem:[#allocation10_spill] sm:$0xff] }
 0x1c9   : > { %v6625_v9 = vadd.f32 %v6624_v56, %v6623_v54  ;;  %v6626_v13 = vpop.f32.mrb[58].mxu0 }
 0x1ca   : > { %v6627_v20 = vpop.f32.mrb[59].mxu0  ;;  %v8598_v8 = vadd.f32 %v6570_v34, %v6458_v38 }
 0x1cb   : > { %v8601_v31 = vadd.f32 %v6625_v9, %v8857_v11  ;;  %v6628_v55 = vadd.f32 %v6627_v20, %v6626_v13 }
 0x1cc   : > { %v6571_v7 = vpop.f32.mrb[64].mxu1 }
 0x1cd   : > { %v8604_v25 = vadd.f32 %v6628_v55, %v8858_v23  ;;  %v6572_v26 = vpop.f32.mrb[65].mxu1 }
 0x1ce   : > { %v6573_v12 = vadd.f32 %v6572_v26, %v6571_v7  ;;  %v6574_v48 = vpop.f32.mrb[66].mxu1  ;;  %v8864_v26 = vld [vmem:[#allocation8_spill] sm:$0xff] }
 0x1cf   : > { %v6629_v24 = vpop.f32.mrb[60].mxu0  ;;  %v6575_v29 = vpop.f32.mrb[67].mxu1 }
 0x1d0   : > { %v6630_v33 = vpop.f32.mrb[61].mxu0  ;;  %v8607_v5 = vadd.f32 %v6573_v12, %v8859_v50  ;;  %v6576_v3 = vadd.f32 %v6575_v29, %v6574_v48  ;;  %v8865_v50 = vld [vmem:[#allocation9_spill] sm:$0xff] }
 0x1d1   : > { %v6631_v38 = vadd.f32 %v6630_v33, %v6629_v24  ;;  %v6632_v57 = vpop.f32.mrb[62].mxu0 }
 0x1d2   : > { %v6633_v17 = vpop.f32.mrb[63].mxu0  ;;  %v8610_v2 = vadd.f32 %v6576_v3, %v8860_v42 }
 0x1d3   : > { %v8613_v39 = vadd.f32 %v6631_v38, %v8499_v35  ;;  %v6634_v41 = vadd.f32 %v6633_v17, %v6632_v57  ;;  %v8862_v35 = vld [vmem:[#allocation7_spill] sm:$0xff] }
 0x1d4   : > { %v6577_v58 = vpop.f32.mrb[68].mxu1 }
 0x1d5   : > { %v8616_v10 = vadd.f32 %v6634_v41, %v8504_v37  ;;  %v6578_v62 = vpop.f32.mrb[69].mxu1 }
 0x1d6   : > { %v6579_v59 = vadd.f32 %v6578_v62, %v6577_v58  ;;  %v6580_v30 = vpop.f32.mrb[70].mxu1 }
 0x1d7   : > { %v6635_v61 = vpop.f32.mrb[64].mxu0  ;;  %v6581_v19 = vpop.f32.mrb[71].mxu1 }
 0x1d8   : > { %v6636_v27 = vpop.f32.mrb[65].mxu0  ;;  %v8619_v6 = vadd.f32 %v6579_v59, %v8861_v40  ;;  %v6582_v14 = vadd.f32 %v6581_v19, %v6580_v30 }
 0x1d9   : > { %v6637_v52 = vadd.f32 %v6636_v27, %v6635_v61  ;;  %v6638_v49 = vpop.f32.mrb[66].mxu0 }
 0x1da   : > { %v6639_v45 = vpop.f32.mrb[67].mxu0  ;;  %v8622_v54 = vadd.f32 %v6582_v14, %v8862_v35 }
 0x1db   : > { %v8625_v56 = vadd.f32 %v6637_v52, %v8863_v53  ;;  %v6640_v37 = vadd.f32 %v6639_v45, %v6638_v49 }
 0x1dc   : > { %v6583_v34 = vpop.f32.mrb[72].mxu1 }
 0x1dd   : > { %v8628_v9 = vadd.f32 %v6640_v37, %v8532_v43  ;;  %v6584_v13 = vpop.f32.mrb[73].mxu1 }
 0x1de   : > { %v6585_v20 = vadd.f32 %v6584_v13, %v6583_v34  ;;  %v6586_v11 = vpop.f32.mrb[74].mxu1 }
 0x1df   : > { %v6641_v55 = vpop.f32.mrb[68].mxu0  ;;  %v6587_v7 = vpop.f32.mrb[75].mxu1 }
 0x1e0   : > { %v6642_v23 = vpop.f32.mrb[69].mxu0  ;;  %v8631_v12 = vadd.f32 %v6585_v20, %v8864_v26  ;;  %v6588_v48 = vadd.f32 %v6587_v7, %v6586_v11  ;;  %v8867_v20 = vld [vmem:[#allocation12_spill] sm:$0xff] }
 0x1e1   : > { %v6643_v24 = vadd.f32 %v6642_v23, %v6641_v55  ;;  %v6644_v29 = vpop.f32.mrb[70].mxu0 }
 0x1e2   : > { %v6645_v33 = vpop.f32.mrb[71].mxu0  ;;  %v8634_v3 = vadd.f32 %v6588_v48, %v8865_v50 }
 0x1e3   : > { %v8637_v38 = vadd.f32 %v6643_v24, %v8545_v18  ;;  %v6646_v43 = vadd.f32 %v6645_v33, %v6644_v29 }
 0x1e5   : > { %v8640_v57 = vadd.f32 %v6646_v43, %v8548_v36 }
 0x1e7   : > { %v6647_v17 = vpop.f32.mrb[72].mxu0 }
 0x1e8   : > { %v6648_v42 = vpop.f32.mrb[73].mxu0 }
 0x1e9   : > { %v6649_v41 = vadd.f32 %v6648_v42, %v6647_v17  ;;  %v6650_v58 = vpop.f32.mrb[74].mxu0 }
 0x1ea   : > { %v6651_v62 = vpop.f32.mrb[75].mxu0 }
 0x1eb   : > { %v8643_v59 = vadd.f32 %v6649_v41, %v8555_v16  ;;  %v6652_v30 = vadd.f32 %v6651_v62, %v6650_v58  ;;  %v8866_v16 = vld [vmem:[#allocation11_spill] sm:$0xff] }
 0x1ed   : > { %v8646_v61 = vadd.f32 %v6652_v30, %v8558_v28 }
 0x1ef   : > { %v6653_v19 = vpop.f32.mrb[76].mxu0  ;;  %v6589_v18 = vpop.f32.mrb[76].mxu1 }
 0x1f0   : > { %v6654_v27 = vpop.f32.mrb[77].mxu0  ;;  %v6590_v52 = vpop.f32.mrb[77].mxu1 }
 0x1f1   : > { %v6655_v40 = vadd.f32 %v6654_v27, %v6653_v19  ;;  %v6656_v14 = vpop.f32.mrb[78].mxu0  ;;  %v6591_v49 = vadd.f32 %v6590_v52, %v6589_v18  ;;  %v6592_v45 = vpop.f32.mrb[78].mxu1 }
 0x1f2   : > { %v6657_v36 = vpop.f32.mrb[79].mxu0  ;;  %v6593_v37 = vpop.f32.mrb[79].mxu1 }
 0x1f3   : > { %v8649_v35 = vadd.f32 %v6655_v40, %v8563_v15  ;;  %v6658_v53 = vadd.f32 %v6657_v36, %v6656_v14  ;;  %v8652_v34 = vadd.f32 %v6591_v49, %v8866_v16  ;;  %v6594_v13 = vadd.f32 %v6593_v37, %v6592_v45 }
 0x1f5   : > { %v8655_v28 = vadd.f32 %v6658_v53, %v8566_v21  ;;  %v8658_v11 = vadd.f32 %v6594_v13, %v8867_v20 }
 0x1f7   : > { %v6659_v55 = vpop.f32.mrb[80].mxu0  ;;  %v6723_v23 = vpop.f32.mrb[80].mxu1 }
 0x1f8   : > { %v6660_v7 = vpop.f32.mrb[81].mxu0  ;;  %v6724_v24 = vpop.f32.mrb[81].mxu1 }
 0x1f9   : > { %v6661_v26 = vadd.f32 %v6660_v7, %v6659_v55  ;;  %v6662_v48 = vpop.f32.mrb[82].mxu0  ;;  %v6725_v29 = vadd.f32 %v6724_v24, %v6723_v23  ;;  %v6726_v33 = vpop.f32.mrb[82].mxu1 }
 0x1fa   : > { %v6663_v15 = vpop.f32.mrb[83].mxu0  ;;  %v6727_v17 = vpop.f32.mrb[83].mxu1 }
 0x1fb   : > { %v8661_v50 = vadd.f32 %v6661_v26, %v8569_v63  ;;  %v6664_v43 = vadd.f32 %v6663_v15, %v6662_v48  ;;  %v6728_v42 = vadd.f32 %v6727_v17, %v6726_v33  ;;  %v8664_v21 = vadd.f32 %v6725_v29, %v8581_v22 }
 0x1fd   : > { %v8667_v41 = vadd.f32 %v6664_v43, %v8574_v1  ;;  %v8670_v58 = vadd.f32 %v6728_v42, %v8584_v51 }
 0x1ff   : > { %v6665_v62 = vpop.f32.mrb[84].mxu0  ;;  %v6729_v19 = vpop.f32.mrb[84].mxu1 }
 0x200   : > { %v6666_v30 = vpop.f32.mrb[85].mxu0  ;;  %v6730_v40 = vpop.f32.mrb[85].mxu1 }
 0x201   : > { %v6667_v27 = vadd.f32 %v6666_v30, %v6665_v62  ;;  %v6668_v18 = vpop.f32.mrb[86].mxu0  ;;  %v6731_v14 = vadd.f32 %v6730_v40, %v6729_v19  ;;  %v6732_v52 = vpop.f32.mrb[86].mxu1 }
 0x202   : > { %v6669_v63 = vpop.f32.mrb[87].mxu0  ;;  %v6733_v49 = vpop.f32.mrb[87].mxu1 }
 0x203   : > { %v8673_v36 = vadd.f32 %v6667_v27, %v8576_v32  ;;  %v6670_v22 = vadd.f32 %v6669_v63, %v6668_v18  ;;  %v6734_v45 = vadd.f32 %v6733_v49, %v6732_v52  ;;  %v8676_v1 = vadd.f32 %v6731_v14, %v8591_v47 }
 0x205   : > { %v8679_v51 = vadd.f32 %v6670_v22, %v8578_v44  ;;  %v8682_v53 = vadd.f32 %v6734_v45, %v8594_v46 }
 0x207   : > { %v6671_v37 = vpop.f32.mrb[88].mxu0 }
 0x208   : > { %v6672_v16 = vpop.f32.mrb[89].mxu0 }
 0x209   : > { %v6673_v13 = vadd.f32 %v6672_v16, %v6671_v37  ;;  %v6674_v20 = vpop.f32.mrb[90].mxu0  ;;  %v6735_v55 = vpop.f32.mrb[88].mxu1 }
 0x20a   : > { %v6675_v7 = vpop.f32.mrb[91].mxu0  ;;  %v6736_v32 = vpop.f32.mrb[89].mxu1 }
 0x20b   : > { %v8685_v23 = vadd.f32 %v6673_v13, %v8586_v0  ;;  %v6676_v26 = vadd.f32 %v6675_v7, %v6674_v20  ;;  %v6737_v48 = vadd.f32 %v6736_v32, %v6735_v55  ;;  %v6738_v47 = vpop.f32.mrb[90].mxu1 }
 0x20c   : > { %v6739_v24 = vpop.f32.mrb[91].mxu1 }
 0x20d   : > { %v8688_v44 = vadd.f32 %v6676_v26, %v8588_v4  ;;  %v6740_v15 = vadd.f32 %v6739_v24, %v6738_v47  ;;  %v8691_v46 = vadd.f32 %v6737_v48, %v8601_v31 }
 0x20f   : > { %v6677_v29 = vpop.f32.mrb[92].mxu0  ;;  %v8694_v33 = vadd.f32 %v6740_v15, %v8604_v25 }
 0x210   : > { %v6678_v43 = vpop.f32.mrb[93].mxu0 }
 0x211   : > { %v6679_v17 = vadd.f32 %v6678_v43, %v6677_v29  ;;  %v6680_v42 = vpop.f32.mrb[94].mxu0 }
 0x212   : > { %v6681_v0 = vpop.f32.mrb[95].mxu0 }
 0x213   : > { %v8697_v62 = vadd.f32 %v6679_v17, %v8596_v60  ;;  %v6682_v30 = vadd.f32 %v6681_v0, %v6680_v42 }
 0x214   : > { %v6741_v19 = vpop.f32.mrb[92].mxu1 }
 0x215   : > { %v8700_v4 = vadd.f32 %v6682_v30, %v8598_v8  ;;  %v6742_v27 = vpop.f32.mrb[93].mxu1 }
 0x216   : > { %v6743_v18 = vadd.f32 %v6742_v27, %v6741_v19  ;;  %v6744_v31 = vpop.f32.mrb[94].mxu1 }
 0x217   : > { %v6683_v40 = vpop.f32.mrb[96].mxu0  ;;  %v6745_v63 = vpop.f32.mrb[95].mxu1 }
 0x218   : > { %v6684_v14 = vpop.f32.mrb[97].mxu0  ;;  %v6746_v25 = vadd.f32 %v6745_v63, %v6744_v31  ;;  %v8703_v52 = vadd.f32 %v6743_v18, %v8613_v39 }
 0x219   : > { %v6685_v22 = vadd.f32 %v6684_v14, %v6683_v40  ;;  %v6686_v49 = vpop.f32.mrb[98].mxu0 }
 0x21a   : > { %v6687_v45 = vpop.f32.mrb[99].mxu0  ;;  %v8706_v60 = vadd.f32 %v6746_v25, %v8616_v10 }
 0x21b   : > { %v8709_v37 = vadd.f32 %v6685_v22, %v8607_v5  ;;  %v6688_v8 = vadd.f32 %v6687_v45, %v6686_v49 }
 0x21d   : > { %v8712_v16 = vadd.f32 %v6688_v8, %v8610_v2 }
 0x21f   : > { %v6747_v13 = vpop.f32.mrb[96].mxu1 }
 0x220   : > { %v6689_v20 = vpop.f32.mrb[100].mxu0  ;;  %v6748_v55 = vpop.f32.mrb[97].mxu1 }
 0x221   : > { %v6690_v7 = vpop.f32.mrb[101].mxu0  ;;  %v6749_v32 = vadd.f32 %v6748_v55, %v6747_v13  ;;  %v6750_v39 = vpop.f32.mrb[98].mxu1 }
 0x222   : > { %v6691_v26 = vadd.f32 %v6690_v7, %v6689_v20  ;;  %v6692_v48 = vpop.f32.mrb[102].mxu0  ;;  %v6751_v47 = vpop.f32.mrb[99].mxu1 }
 0x223   : > { %v6693_v24 = vpop.f32.mrb[103].mxu0  ;;  %v6752_v15 = vadd.f32 %v6751_v47, %v6750_v39  ;;  %v8715_v10 = vadd.f32 %v6749_v32, %v8625_v56 }
 0x224   : > { %v8718_v5 = vadd.f32 %v6691_v26, %v8619_v6  ;;  %v6694_v29 = vadd.f32 %v6693_v24, %v6692_v48 }
 0x225   : > { %v8721_v2 = vadd.f32 %v6752_v15, %v8628_v9 }
 0x226   : > { %v8724_v43 = vadd.f32 %v6694_v29, %v8622_v54 }
 0x227   : > { %v6753_v17 = vpop.f32.mrb[100].mxu1 }
 0x228   : > { %v6754_v42 = vpop.f32.mrb[101].mxu1 }
 0x229   : > { %v6755_v0 = vadd.f32 %v6754_v42, %v6753_v17  ;;  %v6756_v30 = vpop.f32.mrb[102].mxu1 }
 0x22a   : > { %v6695_v19 = vpop.f32.mrb[104].mxu0  ;;  %v6757_v27 = vpop.f32.mrb[103].mxu1 }
 0x22b   : > { %v6696_v18 = vpop.f32.mrb[105].mxu0  ;;  %v6758_v31 = vadd.f32 %v6757_v27, %v6756_v30  ;;  %v8727_v56 = vadd.f32 %v6755_v0, %v8637_v38 }
 0x22c   : > { %v6697_v6 = vadd.f32 %v6696_v18, %v6695_v19  ;;  %v6698_v40 = vpop.f32.mrb[106].mxu0 }
 0x22d   : > { %v6699_v63 = vpop.f32.mrb[107].mxu0  ;;  %v8730_v9 = vadd.f32 %v6758_v31, %v8640_v57 }
 0x22e   : > { %v8733_v54 = vadd.f32 %v6697_v6, %v8631_v12  ;;  %v6700_v14 = vadd.f32 %v6699_v63, %v6698_v40 }
 0x230   : > { %v8736_v25 = vadd.f32 %v6700_v14, %v8634_v3 }
 0x232   : > { %v6759_v22 = vpop.f32.mrb[104].mxu1 }
 0x233   : > { %v6760_v49 = vpop.f32.mrb[105].mxu1 }
 0x234   : > { %v6701_v45 = vpop.f32.mrb[108].mxu0  ;;  %v6761_v8 = vadd.f32 %v6760_v49, %v6759_v22  ;;  %v6762_v13 = vpop.f32.mrb[106].mxu1 }
 0x235   : > { %v6702_v38 = vpop.f32.mrb[109].mxu0  ;;  %v6763_v20 = vpop.f32.mrb[107].mxu1 }
 0x236   : > { %v6703_v55 = vadd.f32 %v6702_v38, %v6701_v45  ;;  %v6704_v7 = vpop.f32.mrb[110].mxu0  ;;  %v6764_v32 = vadd.f32 %v6763_v20, %v6762_v13  ;;  %v8739_v57 = vadd.f32 %v6761_v8, %v8643_v59 }
 0x237   : > { %v6705_v39 = vpop.f32.mrb[111].mxu0 }
 0x238   : > { %v8742_v12 = vadd.f32 %v6703_v55, %v8652_v34  ;;  %v6706_v3 = vadd.f32 %v6705_v39, %v6704_v7  ;;  %v8745_v26 = vadd.f32 %v6764_v32, %v8646_v61 }
 0x23a   : > { %v8748_v48 = vadd.f32 %v6706_v3, %v8658_v11 }
 0x23c   : > { %v6765_v47 = vpop.f32.mrb[108].mxu1  ;;  %v6861_v24 = vpop.f32.mrb[112].mxu0 }
 0x23d   : > { %v5285_v15 = vadd.f32 %v6861_v24, %v8676_v1  ;;  %v6766_v29 = vpop.f32.mrb[109].mxu1  ;;  %v5276_v17 = vpop.f32.mrb[113].mxu0 }
 0x23e   : > { %v6767_v59 = vadd.f32 %v6766_v29, %v6765_v47  ;;  %v5277_v42 = vadd.f32 %v5276_v17, %v8664_v21  ;;  %v6768_v0 = vpop.f32.mrb[110].mxu1  ;;  %v6862_v34 = vpop.f32.mrb[114].mxu0 }
 0x23f   : > { %v5288_v30 = vadd.f32 %v6862_v34, %v8682_v53  ;;  %v6769_v19 = vpop.f32.mrb[111].mxu1  ;;  %v5279_v27 = vpop.f32.mrb[115].mxu0  ;;  %v5603_v63 = vmul.f32 %v5285_v15, %v5285_v15 }
 0x240   : > { %v6770_v61 = vadd.f32 %v6769_v19, %v6768_v0  ;;  %v5280_v11 = vadd.f32 %v5279_v27, %v8670_v58  ;;  %v8762_v1 = vadd.f32 %v6767_v59, %v8649_v35  ;;  %v5601_v21 = vmul.f32 %v5277_v42, %v5277_v42 }
 0x241   : > { %v6269_v18 = vpack.c.bf16 %v5288_v30, %v5285_v15  ;;  %v5604_v35 = vmul.f32 %v5288_v30, %v5288_v30 }
 0x242   : > { %v6264_v31 = vpack.c.bf16 %v5280_v11, %v5277_v42  ;;  %v5563_v53 = vadd.f32 %v5280_v11, %v5277_v42  ;;  %v5602_v6 = vmul.f32 %v5280_v11, %v5280_v11  ;;  %v8765_v40 = vadd.f32 %v6770_v61, %v8655_v28 }
 0x243   : > { %6356 = vst [vmem:[%s8758_s23 + $0x8] sm:$0xff] %v6269_v18  }
 0x244   : > { %6265 = vst [vmem:[%s8758_s23] sm:$0xff] %v6264_v31   ;;  %v5564_v14 = vadd.f32 %v5563_v53, %v5285_v15  ;;  %v5633_v22 = vadd.f32 %v5602_v6, %v5601_v21  ;;  %v6865_v49 = vpop.f32.mrb[116].mxu0 }
 0x245   : > { %v6771_v45 = vpop.f32.mrb[112].mxu1  ;;  %v5301_v58 = vadd.f32 %v6865_v49, %v8703_v52  ;;  %v5292_v8 = vpop.f32.mrb[117].mxu0 }
 0x246   : > { %v5634_v13 = vadd.f32 %v5633_v22, %v5603_v63  ;;  %v6772_v38 = vpop.f32.mrb[113].mxu1  ;;  %v5293_v20 = vadd.f32 %v5292_v8, %v8691_v46  ;;  %v5565_v55 = vadd.f32 %v5564_v14, %v5288_v30  ;;  %v6866_v7 = vpop.f32.mrb[118].mxu0 }
 0x247   : > { %v6773_v32 = vadd.f32 %v6772_v38, %v6771_v45  ;;  %v6774_v28 = vpop.f32.mrb[114].mxu1  ;;  %v5304_v39 = vadd.f32 %v6866_v7, %v8706_v60  ;;  %v5295_v3 = vpop.f32.mrb[119].mxu0  ;;  %v5607_v19 = vmul.f32 %v5301_v58, %v5301_v58 }
 0x248   : > { %v5566_v47 = vadd.f32 %v5565_v55, %v5293_v20  ;;  %v5605_v24 = vmul.f32 %v5293_v20, %v5293_v20  ;;  %v5635_v15 = vadd.f32 %v5634_v13, %v5604_v35  ;;  %v6775_v29 = vpop.f32.mrb[115].mxu1  ;;  %v5296_v52 = vadd.f32 %v5295_v3, %v8694_v33 }
 0x249   : > { %v6279_v17 = vpack.c.bf16 %v5304_v39, %v5301_v58  ;;  %v6776_v59 = vadd.f32 %v6775_v29, %v6774_v28  ;;  %v8774_v42 = vadd.f32 %v6773_v32, %v8661_v50  ;;  %v5608_v31 = vmul.f32 %v5304_v39, %v5304_v39 }
 0x24a   : > { %v5636_v46 = vadd.f32 %v5635_v15, %v5605_v24  ;;  %v6274_v0 = vpack.c.bf16 %v5296_v52, %v5293_v20  ;;  %v5567_v34 = vadd.f32 %v5566_v47, %v5296_v52  ;;  %v5606_v30 = vmul.f32 %v5296_v52, %v5296_v52 }
 0x24b   : > { %6358 = vst [vmem:[%s8758_s23 + $0x18] sm:$0xff] %v6279_v17   ;;  %v8778_v60 = vadd.f32 %v6776_v59, %v8667_v41 }
 0x24c   : > { %6357 = vst [vmem:[%s8758_s23 + $0x10] sm:$0xff] %v6274_v0   ;;  %v5568_v27 = vadd.f32 %v5567_v34, %v5301_v58  ;;  %v5637_v61 = vadd.f32 %v5636_v46, %v5606_v30  ;;  %v6869_v11 = vpop.f32.mrb[120].mxu0 }
 0x24d   : > { %v6777_v21 = vpop.f32.mrb[116].mxu1  ;;  %v5317_v33 = vadd.f32 %v6869_v11, %v8727_v56  ;;  %v5308_v18 = vpop.f32.mrb[121].mxu0 }
 0x24e   : > { %v5638_v50 = vadd.f32 %v5637_v61, %v5607_v19  ;;  %v6778_v53 = vpop.f32.mrb[117].mxu1  ;;  %v5309_v6 = vadd.f32 %v5308_v18, %v8715_v10  ;;  %v5569_v63 = vadd.f32 %v5568_v27, %v5304_v39  ;;  %v6870_v14 = vpop.f32.mrb[122].mxu0 }
 0x24f   : > { %v6779_v22 = vadd.f32 %v6778_v53, %v6777_v21  ;;  %v6780_v41 = vpop.f32.mrb[118].mxu1  ;;  %v5320_v49 = vadd.f32 %v6870_v14, %v8730_v9  ;;  %v5311_v45 = vpop.f32.mrb[123].mxu0  ;;  %v5611_v9 = vmul.f32 %v5317_v33, %v5317_v33 }
 0x250   : > { %v5570_v58 = vadd.f32 %v5569_v63, %v5309_v6  ;;  %v5609_v8 = vmul.f32 %v5309_v6, %v5309_v6  ;;  %v5639_v35 = vadd.f32 %v5638_v50, %v5608_v31  ;;  %v6781_v13 = vpop.f32.mrb[119].mxu1  ;;  %v5312_v56 = vadd.f32 %v5311_v45, %v8721_v2 }
 0x251   : > { %v6289_v38 = vpack.c.bf16 %v5320_v49, %v5317_v33  ;;  %v6782_v20 = vadd.f32 %v6781_v13, %v6780_v41  ;;  %v5188_v55 = vadd.f32 %v6779_v22, %v8673_v36  ;;  %v5612_v2 = vmul.f32 %v5320_v49, %v5320_v49 }
 0x252   : > { %v5640_v10 = vadd.f32 %v5639_v35, %v5609_v8  ;;  %v6284_v7 = vpack.c.bf16 %v5312_v56, %v5309_v6  ;;  %v5571_v32 = vadd.f32 %v5570_v58, %v5312_v56  ;;  %v5610_v28 = vmul.f32 %v5312_v56, %v5312_v56 }
 0x253   : > { %6360 = vst [vmem:[%s8758_s23 + $0x28] sm:$0xff] %v6289_v38   ;;  %v5191_v39 = vadd.f32 %v6782_v20, %v8679_v51 }
 0x254   : > { %6359 = vst [vmem:[%s8758_s23 + $0x20] sm:$0xff] %v6284_v7   ;;  %v5572_v3 = vadd.f32 %v5571_v32, %v5317_v33  ;;  %v5641_v47 = vadd.f32 %v5640_v10, %v5610_v28  ;;  %v6873_v24 = vpop.f32.mrb[124].mxu0 }
 0x255   : > { %v5333_v15 = vadd.f32 %v6873_v24, %v8762_v1  ;;  %v5324_v29 = vpop.f32.mrb[125].mxu0 }
 0x256   : > { %v5642_v52 = vadd.f32 %v5641_v47, %v5611_v9  ;;  %v5325_v17 = vadd.f32 %v5324_v29, %v8739_v57  ;;  %v5573_v36 = vadd.f32 %v5572_v3, %v5320_v49  ;;  %v6874_v59 = vpop.f32.mrb[126].mxu0 }
 0x257   : > { %v6783_v46 = vpop.f32.mrb[120].mxu1  ;;  %v5336_v0 = vadd.f32 %v6874_v59, %v8765_v40  ;;  %v5327_v34 = vpop.f32.mrb[127].mxu0  ;;  %v5615_v6 = vmul.f32 %v5333_v15, %v5333_v15 }
 0x258   : > { %v6784_v51 = vpop.f32.mrb[121].mxu1  ;;  %v5574_v30 = vadd.f32 %v5573_v36, %v5325_v17  ;;  %v5613_v19 = vmul.f32 %v5325_v17, %v5325_v17  ;;  %v5643_v27 = vadd.f32 %v5642_v52, %v5612_v2  ;;  %v5328_v61 = vadd.f32 %v5327_v34, %v8745_v26 }
 0x259   : > { %v6785_v1 = vadd.f32 %v6784_v51, %v6783_v46  ;;  %v6786_v11 = vpop.f32.mrb[122].mxu1  ;;  %v6299_v21 = vpack.c.bf16 %v5336_v0, %v5333_v15  ;;  %v5616_v41 = vmul.f32 %v5336_v0, %v5336_v0 }
 0x25a   : > { %v5644_v33 = vadd.f32 %v5643_v27, %v5613_v19  ;;  %v6787_v18 = vpop.f32.mrb[123].mxu1  ;;  %v6294_v57 = vpack.c.bf16 %v5328_v61, %v5325_v17  ;;  %v5575_v31 = vadd.f32 %v5574_v30, %v5328_v61  ;;  %v5614_v50 = vmul.f32 %v5328_v61, %v5328_v61 }
 0x25b   : > { %6362 = vst [vmem:[%s8758_s23 + $0x38] sm:$0xff] %v6299_v21   ;;  %v6788_v53 = vadd.f32 %v6787_v18, %v6786_v11  ;;  %v5196_v40 = vadd.f32 %v6785_v1, %v8685_v23 }
 0x25c   : > { %6361 = vst [vmem:[%s8758_s23 + $0x30] sm:$0xff] %v6294_v57   ;;  %v5576_v63 = vadd.f32 %v5575_v31, %v5333_v15  ;;  %v5645_v14 = vadd.f32 %v5644_v33, %v5614_v50 }
 0x25d   : > { %v5199_v22 = vadd.f32 %v6788_v53, %v8688_v44 }
 0x25e   : > { %v5646_v26 = vadd.f32 %v5645_v14, %v5615_v6  ;;  %v6877_v49 = vpop.f32.mrb[128].mxu0  ;;  %v5577_v45 = vadd.f32 %v5576_v63, %v5336_v0 }
 0x25f   : > { %v5349_v58 = vadd.f32 %v6877_v49, %v5188_v55  ;;  %v5340_v8 = vpop.f32.mrb[129].mxu0 }
 0x260   : > { %v6789_v35 = vpop.f32.mrb[124].mxu1  ;;  %v5341_v13 = vadd.f32 %v5340_v8, %v8774_v42  ;;  %v5647_v56 = vadd.f32 %v5646_v26, %v5616_v41  ;;  %v6878_v38 = vpop.f32.mrb[130].mxu0 }
 0x261   : > { %v6790_v20 = vpop.f32.mrb[125].mxu1  ;;  %v5352_v23 = vadd.f32 %v6878_v38, %v5191_v39  ;;  %v5343_v10 = vpop.f32.mrb[131].mxu0  ;;  %v5619_v17 = vmul.f32 %v5349_v58, %v5349_v58 }
 0x262   : > { %v6791_v7 = vadd.f32 %v6790_v20, %v6789_v35  ;;  %v5578_v32 = vadd.f32 %v5577_v45, %v5341_v13  ;;  %v5617_v28 = vmul.f32 %v5341_v13, %v5341_v13  ;;  %v6792_v44 = vpop.f32.mrb[126].mxu1  ;;  %v5344_v9 = vadd.f32 %v5343_v10, %v8778_v60 }
 0x263   : > { %v6309_v3 = vpack.c.bf16 %v5352_v23, %v5349_v58  ;;  %v6793_v47 = vpop.f32.mrb[127].mxu1  ;;  %v5620_v0 = vmul.f32 %v5352_v23, %v5352_v23 }
 0x264   : > { %v5648_v55 = vadd.f32 %v5647_v56, %v5617_v28  ;;  %v6794_v24 = vadd.f32 %v6793_v47, %v6792_v44  ;;  %v6304_v15 = vpack.c.bf16 %v5344_v9, %v5341_v13  ;;  %v5579_v29 = vadd.f32 %v5578_v32, %v5344_v9 }
 0x265   : > { %6364 = vst [vmem:[%s8758_s23 + $0x48] sm:$0xff] %v6309_v3   ;;  %v5618_v42 = vmul.f32 %v5344_v9, %v5344_v9  ;;  %v5204_v2 = vadd.f32 %v6791_v7, %v8697_v62 }
 0x266   : > { %6363 = vst [vmem:[%s8758_s23 + $0x40] sm:$0xff] %v6304_v15   ;;  %v5580_v39 = vadd.f32 %v5579_v29, %v5349_v58  ;;  %v5207_v52 = vadd.f32 %v6794_v24, %v8700_v4 }
 0x267   : > { %v5649_v36 = vadd.f32 %v5648_v55, %v5618_v42 }
 0x268   : > { %v6881_v59 = vpop.f32.mrb[132].mxu0  ;;  %v5581_v46 = vadd.f32 %v5580_v39, %v5352_v23 }
 0x269   : > { %v5650_v60 = vadd.f32 %v5649_v36, %v5619_v17  ;;  %v5365_v34 = vadd.f32 %v6881_v59, %v5204_v2  ;;  %v5356_v51 = vpop.f32.mrb[133].mxu0 }
 0x26a   : > { %v6795_v30 = vpop.f32.mrb[128].mxu1  ;;  %v5357_v19 = vadd.f32 %v5356_v51, %v5196_v40  ;;  %v6882_v27 = vpop.f32.mrb[134].mxu0 }
 0x26b   : > { %v6796_v61 = vpop.f32.mrb[129].mxu1  ;;  %v5651_v1 = vadd.f32 %v5650_v60, %v5620_v0  ;;  %v5368_v11 = vadd.f32 %v6882_v27, %v5207_v52  ;;  %v5359_v62 = vpop.f32.mrb[135].mxu0  ;;  %v5623_v58 = vmul.f32 %v5365_v34, %v5365_v34 }
 0x26c   : > { %v6797_v21 = vadd.f32 %v6796_v61, %v6795_v30  ;;  %v5582_v33 = vadd.f32 %v5581_v46, %v5357_v19  ;;  %v5621_v4 = vmul.f32 %v5357_v19, %v5357_v19  ;;  %v6798_v18 = vpop.f32.mrb[130].mxu1  ;;  %v5360_v57 = vadd.f32 %v5359_v62, %v5199_v22 }
 0x26d   : > { %v6319_v31 = vpack.c.bf16 %v5368_v11, %v5365_v34  ;;  %v6799_v50 = vpop.f32.mrb[131].mxu1  ;;  %v5624_v20 = vmul.f32 %v5368_v11, %v5368_v11 }
 0x26e   : > { %v5652_v53 = vadd.f32 %v5651_v1, %v5621_v4  ;;  %v6800_v6 = vadd.f32 %v6799_v50, %v6798_v18  ;;  %v6314_v63 = vpack.c.bf16 %v5360_v57, %v5357_v19  ;;  %v5583_v14 = vadd.f32 %v5582_v33, %v5360_v57 }
 0x26f   : > { %6366 = vst [vmem:[%s8758_s23 + $0x58] sm:$0xff] %v6319_v31   ;;  %v5622_v40 = vmul.f32 %v5360_v57, %v5360_v57  ;;  %v5212_v41 = vadd.f32 %v6797_v21, %v8709_v37 }
 0x270   : > { %6365 = vst [vmem:[%s8758_s23 + $0x50] sm:$0xff] %v6314_v63   ;;  %v5584_v26 = vadd.f32 %v5583_v14, %v5365_v34  ;;  %v5215_v45 = vadd.f32 %v6800_v6, %v8712_v16 }
 0x271   : > { %v6885_v49 = vpop.f32.mrb[136].mxu0  ;;  %v5653_v8 = vadd.f32 %v5652_v53, %v5622_v40 }
 0x272   : > { %v5372_v35 = vpop.f32.mrb[137].mxu0  ;;  %v6801_v13 = vpop.f32.mrb[132].mxu1  ;;  %v5585_v56 = vadd.f32 %v5584_v26, %v5368_v11 }
 0x273   : > { %v5373_v22 = vadd.f32 %v5372_v35, %v5212_v41  ;;  %v6886_v38 = vpop.f32.mrb[138].mxu0  ;;  %v5654_v23 = vadd.f32 %v5653_v8, %v5623_v58  ;;  %v6802_v10 = vpop.f32.mrb[133].mxu1 }
 0x274   : > { %v5375_v7 = vpop.f32.mrb[139].mxu0  ;;  %v6803_v32 = vadd.f32 %v6802_v10, %v6801_v13  ;;  %v6804_v44 = vpop.f32.mrb[134].mxu1 }
 0x275   : > { %v5586_v28 = vadd.f32 %v5585_v56, %v5373_v22  ;;  %v5625_v37 = vmul.f32 %v5373_v22, %v5373_v22  ;;  %v5376_v9 = vadd.f32 %v5375_v7, %v5215_v45  ;;  %v5655_v3 = vadd.f32 %v5654_v23, %v5624_v20  ;;  %v6805_v47 = vpop.f32.mrb[135].mxu1 }
 0x276   : > { %v5220_v16 = vadd.f32 %v6803_v32, %v8718_v5  ;;  %v6806_v55 = vadd.f32 %v6805_v47, %v6804_v44 }
 0x277   : > { %v6324_v24 = vpack.c.bf16 %v5376_v9, %v5373_v22  ;;  %v5587_v15 = vadd.f32 %v5586_v28, %v5376_v9  ;;  %v5656_v29 = vadd.f32 %v5655_v3, %v5625_v37  ;;  %v5626_v42 = vmul.f32 %v5376_v9, %v5376_v9 }
 0x278   : > { %v5381_v2 = vadd.f32 %v6885_v49, %v5220_v16  ;;  %v5223_v39 = vadd.f32 %v6806_v55, %v8724_v43 }
 0x279   : > { %6367 = vst [vmem:[%s8758_s23 + $0x60] sm:$0xff] %v6324_v24   ;;  %v5657_v52 = vadd.f32 %v5656_v29, %v5626_v42 }
 0x27a   : > { %v5627_v17 = vmul.f32 %v5381_v2, %v5381_v2  ;;  %v5384_v36 = vadd.f32 %v6886_v38, %v5223_v39  ;;  %v5588_v59 = vadd.f32 %v5587_v15, %v5381_v2 }
 0x27b   : > { %v6889_v0 = vpop.f32.mrb[140].mxu0 }
 0x27c   : > { %v6807_v46 = vpop.f32.mrb[136].mxu1  ;;  %v6329_v60 = vpack.c.bf16 %v5384_v36, %v5381_v2  ;;  %v5628_v34 = vmul.f32 %v5384_v36, %v5384_v36  ;;  %v5658_v51 = vadd.f32 %v5657_v52, %v5627_v17  ;;  %v5388_v30 = vpop.f32.mrb[141].mxu0  ;;  %v5589_v19 = vadd.f32 %v5588_v59, %v5384_v36 }
 0x27d   : > { %v6808_v5 = vpop.f32.mrb[137].mxu1  ;;  %v6890_v1 = vpop.f32.mrb[142].mxu0 }
 0x27e   : > { %v6809_v27 = vadd.f32 %v6808_v5, %v6807_v46  ;;  %v6810_v61 = vpop.f32.mrb[138].mxu1  ;;  %6368 = vst [vmem:[%s8758_s23 + $0x68] sm:$0xff] %v6329_v60   ;;  %v5659_v43 = vadd.f32 %v5658_v51, %v5628_v34  ;;  %v5391_v62 = vpop.f32.mrb[143].mxu0 }
 0x27f   : > { %v6811_v11 = vpop.f32.mrb[139].mxu1 }
 0x280   : > { %v6812_v21 = vadd.f32 %v6811_v11, %v6810_v61  ;;  %v5228_v33 = vadd.f32 %v6809_v27, %v8733_v54 }
 0x282   : > { %v5389_v4 = vadd.f32 %v5388_v30, %v5228_v33  ;;  %v5231_v18 = vadd.f32 %v6812_v21, %v8736_v25 }
 0x284   : > { %v5590_v57 = vadd.f32 %v5589_v19, %v5389_v4  ;;  %v5629_v31 = vmul.f32 %v5389_v4, %v5389_v4  ;;  %v5392_v50 = vadd.f32 %v5391_v62, %v5231_v18 }
 0x285   : > { %v6813_v40 = vpop.f32.mrb[140].mxu1 }
 0x286   : > { %v5660_v53 = vadd.f32 %v5659_v43, %v5629_v31  ;;  %v6334_v6 = vpack.c.bf16 %v5392_v50, %v5389_v4  ;;  %v5591_v63 = vadd.f32 %v5590_v57, %v5392_v50  ;;  %v5630_v14 = vmul.f32 %v5392_v50, %v5392_v50  ;;  %v6814_v41 = vpop.f32.mrb[141].mxu1 }
 0x287   : > { %v6815_v49 = vadd.f32 %v6814_v41, %v6813_v40  ;;  %v6816_v45 = vpop.f32.mrb[142].mxu1 }
 0x288   : > { %6369 = vst [vmem:[%s8758_s23 + $0x70] sm:$0xff] %v6334_v6   ;;  %v5661_v26 = vadd.f32 %v5660_v53, %v5630_v14  ;;  %v6817_v58 = vpop.f32.mrb[143].mxu1 }
 0x289   : > { %v5236_v54 = vadd.f32 %v6815_v49, %v8742_v12  ;;  %v6818_v8 = vadd.f32 %v6817_v58, %v6816_v45 }
 0x28b   : > { %v5397_v35 = vadd.f32 %v6889_v0, %v5236_v54  ;;  %v5239_v25 = vadd.f32 %v6818_v8, %v8748_v48 }
 0x28d   : > { %v5592_v13 = vadd.f32 %v5591_v63, %v5397_v35  ;;  %v5631_v22 = vmul.f32 %v5397_v35, %v5397_v35  ;;  %v5400_v56 = vadd.f32 %v6890_v1, %v5239_v25 }
 0x28f   : > { %v5662_v38 = vadd.f32 %v5661_v26, %v5631_v22  ;;  %v6339_v20 = vpack.c.bf16 %v5400_v56, %v5397_v35  ;;  %v5593_v23 = vadd.f32 %v5592_v13, %v5400_v56  ;;  %v5632_v10 = vmul.f32 %v5400_v56, %v5400_v56 }
 0x291   : > { %6370 = vst [vmem:[%s8758_s23 + $0x78] sm:$0xff] %v6339_v20   ;;  %v5594_v7 = vrot.slane %v5593_v23, 4  ;;  %v5663_v32 = vadd.f32 %v5662_v38, %v5632_v10 }
 0x293   : > { %v5595_v28 = vadd.f32 %v5594_v7, %v5593_v23  ;;  %v5664_v37 = vrot.slane %v5663_v32, 4 }
 0x295   : > { %v5596_v44 = vrot.slane %v5595_v28, 2  ;;  %v5665_v9 = vadd.f32 %v5664_v37, %v5663_v32 }
 0x297   : > { %v5597_v12 = vadd.f32 %v5596_v44, %v5595_v28  ;;  %v5666_v3 = vrot.slane %v5665_v9, 2 }
 0x299   : > { %v5598_v47 = vrot.slane %v5597_v12, 1  ;;  %v5667_v16 = vadd.f32 %v5666_v3, %v5665_v9 }
 0x29b   : > { %v5599_v48 = vadd.f32 %v5598_v47, %v5597_v12  ;;  %v5668_v55 = vrot.slane %v5667_v16, 1 }
 0x29d   : > { %5600 = vst [vmem:[%s268_s25] sm:$0xff] %v5599_v48  ;;  %v5669_v24 = vadd.f32 %v5668_v55, %v5667_v16 }
 0x29f   : > { %5670 = vst [vmem:[%s272_s29] sm:$0xff] %v5669_v24 }
 0x2a0 PF: > { %s17_s21 = sadd.s32 1, %s7047_s21  }
 0x2a1   : > { %p14_p4 = scmp.ge.s32.totalorder %s17_s21, 4  }
 0x2a3   :  { %16 = sbr.rel (!%p14_p4) target bundleno = 1 (0x1), region = 92 }

</bundles_post_ra>
